<compile_context>
chip_gen: v7x
topology: tpu7x:2x2x1
jax: 0.10.0
libtpu: 0.0.40
codegen_flags: <defaults>
</compile_context>

<pallas_src>
import numpy as np

import jax
import jax.numpy as jnp
from jax import lax
from jax.experimental import pallas as pl
from jax.experimental.pallas import tpu as pltpu


# ------------------------------ fused kernel --------------------------------

def _mnist_fused_kernel(x_ref, b1m, b1b, s1, t1, b2m, b2b, s2, t2,
                        wf1, cf1, wf2, cf2, wf3, cf3, o_ref):
    f32, bf16 = jnp.float32, jnp.bfloat16

    x = x_ref[0]                                           # (30, 30) f32, pre-padded image

    # ---- conv1 (3x3, 1->32, pad=1) + ReLU; output layout (28, 28*32=896) ----
    acc = jnp.zeros((28, 896), f32)
    for kh in range(3):
        acc = acc + jnp.dot(x[kh:kh + 28, :].astype(bf16), b1m[kh],
                            preferred_element_type=f32)
    y1 = jnp.maximum(acc + b1b[...], 0.0).astype(bf16)     # (28, 896)

    # ---- maxpool 2x2 (+ zero-pad rows/cols for conv2): (28,896) -> (16, 16*32=512) ----
    hp = jnp.maximum(jnp.dot(s1[0], y1, preferred_element_type=f32),
                     jnp.dot(s1[1], y1, preferred_element_type=f32)).astype(bf16)   # (16,896)
    p1 = jnp.maximum(jnp.dot(hp, t1[0], preferred_element_type=f32),
                     jnp.dot(hp, t1[1], preferred_element_type=f32))                # (16,512) f32

    # ---- conv2 (3x3, 32->64, pad=1) + ReLU; output layout (14, 14*64=896) ----
    acc2 = jnp.zeros((14, 896), f32)
    for kh in range(3):
        acc2 = acc2 + jnp.dot(p1[kh:kh + 14, :].astype(bf16), b2m[kh],
                              preferred_element_type=f32)
    y2 = jnp.maximum(acc2 + b2b[...], 0.0).astype(bf16)    # (14, 896)

    # ---- maxpool 2x2: (14,896) -> (7, 7*64=448) ----
    hp2 = jnp.maximum(jnp.dot(s2[0], y2, preferred_element_type=f32),
                      jnp.dot(s2[1], y2, preferred_element_type=f32)).astype(bf16)  # (7,896)
    p2 = jnp.maximum(jnp.dot(hp2, t2[0], preferred_element_type=f32),
                     jnp.dot(hp2, t2[1], preferred_element_type=f32))               # (7,448) f32

    # ---- fc -> fc2 -> last_layer (fc1 weight pre-permuted to (h, w*64+c) order) ----
    h = cf1[...]                                           # (1, l1) f32
    for r in range(7):
        h = h + jnp.dot(p2[r:r + 1, :].astype(bf16), wf1[r],
                        preferred_element_type=f32)
    h = jnp.dot(h.astype(bf16), wf2[...], preferred_element_type=f32) + cf2[...]    # (1, 64)
    out = jnp.dot(h.astype(bf16), wf3[...], preferred_element_type=f32) + cf3[...]  # (1, 128)

    o_ref[0] = jnp.broadcast_to(out, (8, 128))             # lane-dense (8,128) store


# ------------------------- parameter preprocessing ---------------------------
# Done once outside the jitted forward (hoists all transposes / reshapes / packing).

def prepare_params(params):
    w1 = np.asarray(params["w1"], np.float32)      # (32, 1, 3, 3)
    b1 = np.asarray(params["b1"], np.float32)
    w2 = np.asarray(params["w2"], np.float32)      # (64, 32, 3, 3)
    b2 = np.asarray(params["b2"], np.float32)
    wfc1 = np.asarray(params["wfc1"], np.float32)  # (l1, 3136)
    bfc1 = np.asarray(params["bfc1"], np.float32)
    wfc2 = np.asarray(params["wfc2"], np.float32)  # (64, l1)
    bfc2 = np.asarray(params["bfc2"], np.float32)
    wfc3 = np.asarray(params["wfc3"], np.float32)  # (10, 64)
    bfc3 = np.asarray(params["bfc3"], np.float32)
    l1 = wfc1.shape[0]

    # conv1 as banded matmuls: B1[kh, u, w*32+co] = w1[co,0,kh,u-w] for u-w in {0,1,2}
    B1 = np.zeros((3, 30, 28, 32), np.float32)
    for kh in range(3):
        for kw in range(3):
            B1[kh, np.arange(28) + kw, np.arange(28), :] = w1[:, 0, kh, kw][None, :]
    B1 = B1.reshape(3, 30, 896)
    b1r = np.tile(b1, 28)[None, :]                                  # (1, 896)

    # pool1 row-selection (also adds the zero rows conv2's padding needs): (2, 16, 28)
    S1 = np.zeros((2, 16, 28), np.float32)
    for r in range(14):
        S1[0, r + 1, 2 * r] = 1.0
        S1[1, r + 1, 2 * r + 1] = 1.0
    # pool1 lane-selection (+ zero lane blocks for conv2 padding): (2, 896, 512)
    T1 = np.zeros((2, 28, 32, 16, 32), np.float32)
    eye32 = np.eye(32, dtype=np.float32)
    for w in range(14):
        T1[0, 2 * w, :, w + 1, :] = eye32
        T1[1, 2 * w + 1, :, w + 1, :] = eye32
    T1 = T1.reshape(2, 896, 512)

    # conv2 as banded matmuls over the padded pooled map (16 rows, 16*32 lanes)
    B2 = np.zeros((3, 16, 32, 14, 64), np.float32)
    for kh in range(3):
        for kw in range(3):
            for w in range(14):
                B2[kh, w + kw, :, w, :] = w2[:, :, kh, kw].T        # (ci, co)
    B2 = B2.reshape(3, 512, 896)
    b2r = np.tile(b2, 14)[None, :]                                  # (1, 896)

    # pool2 selections
    S2 = np.zeros((2, 7, 14), np.float32)
    for r in range(7):
        S2[0, r, 2 * r] = 1.0
        S2[1, r, 2 * r + 1] = 1.0
    T2 = np.zeros((2, 14, 64, 7, 64), np.float32)
    eye64 = np.eye(64, dtype=np.float32)
    for w in range(7):
        T2[0, 2 * w, :, w, :] = eye64
        T2[1, 2 * w + 1, :, w, :] = eye64
    T2 = T2.reshape(2, 896, 448)

    # fc weight permuted to the kernel's (h, w*64+c) flatten order (PyTorch flat = c*49+h*7+w)
    Wfc1 = wfc1.reshape(l1, 64, 7, 7).transpose(2, 3, 1, 0).reshape(7, 448, l1)
    Wfc2 = wfc2.T                                                   # (l1, 64)
    Wfc3 = np.zeros((64, 128), np.float32)                          # pad 10 -> 128 lanes
    Wfc3[:, :10] = wfc3.T
    cfc3 = np.zeros((1, 128), np.float32)
    cfc3[0, :10] = bfc3

    bf = jnp.bfloat16
    return dict(
        B1=jnp.asarray(B1, bf), b1r=jnp.asarray(b1r, jnp.float32),
        S1=jnp.asarray(S1, bf), T1=jnp.asarray(T1, bf),
        B2=jnp.asarray(B2, bf), b2r=jnp.asarray(b2r, jnp.float32),
        S2=jnp.asarray(S2, bf), T2=jnp.asarray(T2, bf),
        Wfc1=jnp.asarray(Wfc1, bf), cfc1=jnp.asarray(bfc1[None, :], jnp.float32),
        Wfc2=jnp.asarray(Wfc2, bf), cfc2=jnp.asarray(bfc2[None, :], jnp.float32),
        Wfc3=jnp.asarray(Wfc3, bf), cfc3=jnp.asarray(cfc3, jnp.float32),
    )


# --------------------------------- forward ----------------------------------

def mnist_net_forward(x_nchw, prep):
    """MnistNet.forward.  Input NCHW (B,1,28,28) f32 -> logits (B,10) f32."""
    B = x_nchw.shape[0]
    xpad = jnp.pad(x_nchw[:, 0], ((0, 0), (1, 1), (1, 1)))          # (B, 30, 30)

    def full(shape):
        return pl.BlockSpec(shape, lambda b, _n=len(shape): (0,) * _n)

    out = pl.pallas_call(
        _mnist_fused_kernel,
        out_shape=jax.ShapeDtypeStruct((B, 8, 128), jnp.float32),
        grid=(B,),
        in_specs=[
            pl.BlockSpec((1, 30, 30), lambda b: (b, 0, 0)),         # one image per grid step
            full(prep["B1"].shape), full(prep["b1r"].shape),
            full(prep["S1"].shape), full(prep["T1"].shape),
            full(prep["B2"].shape), full(prep["b2r"].shape),
            full(prep["S2"].shape), full(prep["T2"].shape),
            full(prep["Wfc1"].shape), full(prep["cfc1"].shape),
            full(prep["Wfc2"].shape), full(prep["cfc2"].shape),
            full(prep["Wfc3"].shape), full(prep["cfc3"].shape),
        ],
        out_specs=pl.BlockSpec((1, 8, 128), lambda b: (b, 0, 0)),
        compiler_params=pltpu.CompilerParams(
            dimension_semantics=("parallel",),
            vmem_limit_bytes=48 * 1024 * 1024),
    )(xpad, prep["B1"], prep["b1r"], prep["S1"], prep["T1"],
      prep["B2"], prep["b2r"], prep["S2"], prep["T2"],
      prep["Wfc1"], prep["cfc1"], prep["Wfc2"], prep["cfc2"],
      prep["Wfc3"], prep["cfc3"])
    return out[:, 0, :10]


# ------------------------- pure-JAX reference (check) ------------------------

def reference_forward(x_nchw, params):
    x = jnp.transpose(x_nchw, (0, 2, 3, 1))

    def conv(x, w, b):
        w_hwio = jnp.transpose(w, (2, 3, 1, 0))
        y = lax.conv_general_dilated(
            x, w_hwio, window_strides=(1, 1), padding="SAME",
            dimension_numbers=("NHWC", "HWIO", "NHWC"),
            precision=lax.Precision.HIGHEST)
        return jnp.maximum(y + b, 0.0)

    def pool(x):
        return lax.reduce_window(x, -jnp.inf, lax.max,
                                 (1, 2, 2, 1), (1, 2, 2, 1), "VALID")

    y = pool(conv(x, params["w1"], params["b1"]))
    y = pool(conv(y, params["w2"], params["b2"]))
    B = y.shape[0]
    flat = jnp.transpose(y, (0, 3, 1, 2)).reshape(B, -1)
    h = jnp.dot(flat, params["wfc1"].T, precision=lax.Precision.HIGHEST) + params["bfc1"]
    h = jnp.dot(h, params["wfc2"].T, precision=lax.Precision.HIGHEST) + params["bfc2"]
    return jnp.dot(h, params["wfc3"].T, precision=lax.Precision.HIGHEST) + params["bfc3"]


# ----------------------------------- main ------------------------------------

if __name__ == "__main__":
    key = jax.random.PRNGKey(0)
    ks = jax.random.split(key, 11)
    l1 = 128  # hidden width of the first Linear layer (constructor arg `l1`)

    # Deterministic synthetic parameters, PyTorch layouts:
    #   Conv2d weight (Cout, Cin, 3, 3); Linear weight (out_features, in_features).
    params = {
        "w1": 0.20 * jax.random.normal(ks[0], (32, 1, 3, 3), jnp.float32),
        "b1": 0.05 * jax.random.normal(ks[1], (32,), jnp.float32),
        "w2": 0.06 * jax.random.normal(ks[2], (64, 32, 3, 3), jnp.float32),
        "b2": 0.05 * jax.random.normal(ks[3], (64,), jnp.float32),
        "wfc1": 0.02 * jax.random.normal(ks[4], (l1, 7 * 7 * 64), jnp.float32),
        "bfc1": 0.05 * jax.random.normal(ks[5], (l1,), jnp.float32),
        "wfc2": 0.09 * jax.random.normal(ks[6], (64, l1), jnp.float32),
        "bfc2": 0.05 * jax.random.normal(ks[7], (64,), jnp.float32),
        "wfc3": 0.12 * jax.random.normal(ks[8], (10, 64), jnp.float32),
        "bfc3": 0.05 * jax.random.normal(ks[9], (10,), jnp.float32),
    }

    # MNIST-shaped input (the fc layer hard-codes 7*7*64, so spatial must be 28x28).
    x = jax.random.normal(ks[10], (2, 1, 28, 28), jnp.float32)

    prep = prepare_params(params)                 # one-time packing (outside hot path)
    fwd = jax.jit(mnist_net_forward)
    out = jax.block_until_ready(fwd(x, prep))
    assert out.shape == (2, 10) and out.dtype == jnp.float32

    ref = jax.block_until_ready(reference_forward(x, params))
    err = float(jnp.max(jnp.abs(out - ref)))
    # bf16 multiplies with f32 accumulation vs an f32 HIGHEST reference.
    if err > 2e-2:
        raise AssertionError(f"Pallas output mismatch vs reference: max abs err = {err}")

    print("KERNEL_OK")
</pallas_src>

<mosaic_0001>
module attributes {stable_mosaic.version = 11 : i64} {
  func.func @_mnist_fused_kernel(%arg0: i32, %arg1: memref<1x30x30xf32, #tpu.memory_space<vmem>>, %arg2: memref<3x30x896xbf16, #tpu.memory_space<vmem>>, %arg3: memref<1x896xf32, #tpu.memory_space<vmem>>, %arg4: memref<2x16x28xbf16, #tpu.memory_space<vmem>>, %arg5: memref<2x896x512xbf16, #tpu.memory_space<vmem>>, %arg6: memref<3x512x896xbf16, #tpu.memory_space<vmem>>, %arg7: memref<1x896xf32, #tpu.memory_space<vmem>>, %arg8: memref<2x7x14xbf16, #tpu.memory_space<vmem>>, %arg9: memref<2x896x448xbf16, #tpu.memory_space<vmem>>, %arg10: memref<7x448x128xbf16, #tpu.memory_space<vmem>>, %arg11: memref<1x128xf32, #tpu.memory_space<vmem>>, %arg12: memref<128x64xbf16, #tpu.memory_space<vmem>>, %arg13: memref<1x64xf32, #tpu.memory_space<vmem>>, %arg14: memref<64x128xbf16, #tpu.memory_space<vmem>>, %arg15: memref<1x128xf32, #tpu.memory_space<vmem>>, %arg16: memref<1x8x128xf32, #tpu.memory_space<vmem>>) attributes {dimension_semantics = [#tpu.dimension_semantics<parallel>], iteration_bounds = array<i64: 2>, scalar_prefetch = 0 : i64, scratch_operands = 0 : i64, tpu.core_type = #tpu.core_type<tc>, window_params = [{transform_indices = @transform_0, window_bounds = array<i64: 1, 30, 30>}, {pipeline_mode = #tpu.pipeline_mode<synchronous>, transform_indices = @transform_1, window_bounds = array<i64: 3, 30, 896>}, {pipeline_mode = #tpu.pipeline_mode<synchronous>, transform_indices = @transform_2, window_bounds = array<i64: 1, 896>}, {pipeline_mode = #tpu.pipeline_mode<synchronous>, transform_indices = @transform_3, window_bounds = array<i64: 2, 16, 28>}, {pipeline_mode = #tpu.pipeline_mode<synchronous>, transform_indices = @transform_4, window_bounds = array<i64: 2, 896, 512>}, {pipeline_mode = #tpu.pipeline_mode<synchronous>, transform_indices = @transform_5, window_bounds = array<i64: 3, 512, 896>}, {pipeline_mode = #tpu.pipeline_mode<synchronous>, transform_indices = @transform_6, window_bounds = array<i64: 1, 896>}, {pipeline_mode = #tpu.pipeline_mode<synchronous>, transform_indices = @transform_7, window_bounds = array<i64: 2, 7, 14>}, {pipeline_mode = #tpu.pipeline_mode<synchronous>, transform_indices = @transform_8, window_bounds = array<i64: 2, 896, 448>}, {pipeline_mode = #tpu.pipeline_mode<synchronous>, transform_indices = @transform_9, window_bounds = array<i64: 7, 448, 128>}, {pipeline_mode = #tpu.pipeline_mode<synchronous>, transform_indices = @transform_10, window_bounds = array<i64: 1, 128>}, {pipeline_mode = #tpu.pipeline_mode<synchronous>, transform_indices = @transform_11, window_bounds = array<i64: 128, 64>}, {pipeline_mode = #tpu.pipeline_mode<synchronous>, transform_indices = @transform_12, window_bounds = array<i64: 1, 64>}, {pipeline_mode = #tpu.pipeline_mode<synchronous>, transform_indices = @transform_13, window_bounds = array<i64: 64, 128>}, {pipeline_mode = #tpu.pipeline_mode<synchronous>, transform_indices = @transform_14, window_bounds = array<i64: 1, 128>}, {transform_indices = @transform_15, window_bounds = array<i64: 1, 8, 128>}]} {
    %c0 = arith.constant 0 : index
    %c0_0 = arith.constant 0 : index
    %c0_1 = arith.constant 0 : index
    %0 = vector.load %arg1[%c0, %c0_0, %c0_1] : memref<1x30x30xf32, #tpu.memory_space<vmem>>, vector<1x30x30xf32>
    %1 = vector.shape_cast %0 : vector<1x30x30xf32> to vector<30x30xf32>
    %cst = arith.constant 0.000000e+00 : f32
    %2 = vector.broadcast %cst : f32 to vector<28x896xf32>
    %3 = vector.extract_strided_slice %1 {offsets = [0, 0], sizes = [28, 30], strides = [1, 1]} : vector<30x30xf32> to vector<28x30xf32>
    %4 = arith.truncf %3 : vector<28x30xf32> to vector<28x30xbf16>
    %c0_2 = arith.constant 0 : index
    %c0_3 = arith.constant 0 : index
    %c0_4 = arith.constant 0 : index
    %5 = vector.load %arg2[%c0_2, %c0_3, %c0_4] : memref<3x30x896xbf16, #tpu.memory_space<vmem>>, vector<1x30x896xbf16>
    %6 = vector.shape_cast %5 : vector<1x30x896xbf16> to vector<30x896xbf16>
    %cst_5 = arith.constant dense<0.000000e+00> : vector<28x896xf32>
    %7 = tpu.matmul %4, %6, %cst_5 {dimension_numbers = #tpu.dot_dimension_numbers<[1], [0], [0], [1], [0, 0, 1, 1], [], []>} : vector<28x30xbf16>, vector<30x896xbf16>, vector<28x896xf32> -> vector<28x896xf32>
    %8 = arith.addf %2, %7 : vector<28x896xf32>
    %9 = vector.extract_strided_slice %1 {offsets = [1, 0], sizes = [28, 30], strides = [1, 1]} : vector<30x30xf32> to vector<28x30xf32>
    %10 = arith.truncf %9 : vector<28x30xf32> to vector<28x30xbf16>
    %c1 = arith.constant 1 : index
    %c0_6 = arith.constant 0 : index
    %c0_7 = arith.constant 0 : index
    %11 = vector.load %arg2[%c1, %c0_6, %c0_7] : memref<3x30x896xbf16, #tpu.memory_space<vmem>>, vector<1x30x896xbf16>
    %12 = vector.shape_cast %11 : vector<1x30x896xbf16> to vector<30x896xbf16>
    %cst_8 = arith.constant dense<0.000000e+00> : vector<28x896xf32>
    %13 = tpu.matmul %10, %12, %cst_8 {dimension_numbers = #tpu.dot_dimension_numbers<[1], [0], [0], [1], [0, 0, 1, 1], [], []>} : vector<28x30xbf16>, vector<30x896xbf16>, vector<28x896xf32> -> vector<28x896xf32>
    %14 = arith.addf %8, %13 : vector<28x896xf32>
    %15 = vector.extract_strided_slice %1 {offsets = [2, 0], sizes = [28, 30], strides = [1, 1]} : vector<30x30xf32> to vector<28x30xf32>
    %16 = arith.truncf %15 : vector<28x30xf32> to vector<28x30xbf16>
    %c2 = arith.constant 2 : index
    %c0_9 = arith.constant 0 : index
    %c0_10 = arith.constant 0 : index
    %17 = vector.load %arg2[%c2, %c0_9, %c0_10] : memref<3x30x896xbf16, #tpu.memory_space<vmem>>, vector<1x30x896xbf16>
    %18 = vector.shape_cast %17 : vector<1x30x896xbf16> to vector<30x896xbf16>
    %cst_11 = arith.constant dense<0.000000e+00> : vector<28x896xf32>
    %19 = tpu.matmul %16, %18, %cst_11 {dimension_numbers = #tpu.dot_dimension_numbers<[1], [0], [0], [1], [0, 0, 1, 1], [], []>} : vector<28x30xbf16>, vector<30x896xbf16>, vector<28x896xf32> -> vector<28x896xf32>
    %20 = arith.addf %14, %19 : vector<28x896xf32>
    %c0_12 = arith.constant 0 : index
    %c0_13 = arith.constant 0 : index
    %21 = vector.load %arg3[%c0_12, %c0_13] : memref<1x896xf32, #tpu.memory_space<vmem>>, vector<1x896xf32>
    %22 = vector.broadcast %21 : vector<1x896xf32> to vector<28x896xf32>
    %23 = arith.addf %20, %22 : vector<28x896xf32>
    %cst_14 = arith.constant 0.000000e+00 : f32
    %24 = vector.broadcast %cst_14 : f32 to vector<28x896xf32>
    %25 = arith.maximumf %23, %24 : vector<28x896xf32>
    %26 = arith.truncf %25 : vector<28x896xf32> to vector<28x896xbf16>
    %c0_15 = arith.constant 0 : index
    %c0_16 = arith.constant 0 : index
    %c0_17 = arith.constant 0 : index
    %27 = vector.load %arg4[%c0_15, %c0_16, %c0_17] : memref<2x16x28xbf16, #tpu.memory_space<vmem>>, vector<1x16x28xbf16>
    %28 = vector.shape_cast %27 : vector<1x16x28xbf16> to vector<16x28xbf16>
    %cst_18 = arith.constant dense<0.000000e+00> : vector<16x896xf32>
    %29 = tpu.matmul %28, %26, %cst_18 {dimension_numbers = #tpu.dot_dimension_numbers<[1], [0], [0], [1], [0, 0, 1, 1], [], []>} : vector<16x28xbf16>, vector<28x896xbf16>, vector<16x896xf32> -> vector<16x896xf32>
    %c1_19 = arith.constant 1 : index
    %c0_20 = arith.constant 0 : index
    %c0_21 = arith.constant 0 : index
    %30 = vector.load %arg4[%c1_19, %c0_20, %c0_21] : memref<2x16x28xbf16, #tpu.memory_space<vmem>>, vector<1x16x28xbf16>
    %31 = vector.shape_cast %30 : vector<1x16x28xbf16> to vector<16x28xbf16>
    %cst_22 = arith.constant dense<0.000000e+00> : vector<16x896xf32>
    %32 = tpu.matmul %31, %26, %cst_22 {dimension_numbers = #tpu.dot_dimension_numbers<[1], [0], [0], [1], [0, 0, 1, 1], [], []>} : vector<16x28xbf16>, vector<28x896xbf16>, vector<16x896xf32> -> vector<16x896xf32>
    %33 = arith.maximumf %29, %32 : vector<16x896xf32>
    %34 = arith.truncf %33 : vector<16x896xf32> to vector<16x896xbf16>
    %c0_23 = arith.constant 0 : index
    %c0_24 = arith.constant 0 : index
    %c0_25 = arith.constant 0 : index
    %35 = vector.load %arg5[%c0_23, %c0_24, %c0_25] : memref<2x896x512xbf16, #tpu.memory_space<vmem>>, vector<1x896x512xbf16>
    %36 = vector.shape_cast %35 : vector<1x896x512xbf16> to vector<896x512xbf16>
    %cst_26 = arith.constant dense<0.000000e+00> : vector<16x512xf32>
    %37 = tpu.matmul %34, %36, %cst_26 {dimension_numbers = #tpu.dot_dimension_numbers<[1], [0], [0], [1], [0, 0, 1, 1], [], []>} : vector<16x896xbf16>, vector<896x512xbf16>, vector<16x512xf32> -> vector<16x512xf32>
    %c1_27 = arith.constant 1 : index
    %c0_28 = arith.constant 0 : index
    %c0_29 = arith.constant 0 : index
    %38 = vector.load %arg5[%c1_27, %c0_28, %c0_29] : memref<2x896x512xbf16, #tpu.memory_space<vmem>>, vector<1x896x512xbf16>
    %39 = vector.shape_cast %38 : vector<1x896x512xbf16> to vector<896x512xbf16>
    %cst_30 = arith.constant dense<0.000000e+00> : vector<16x512xf32>
    %40 = tpu.matmul %34, %39, %cst_30 {dimension_numbers = #tpu.dot_dimension_numbers<[1], [0], [0], [1], [0, 0, 1, 1], [], []>} : vector<16x896xbf16>, vector<896x512xbf16>, vector<16x512xf32> -> vector<16x512xf32>
    %41 = arith.maximumf %37, %40 : vector<16x512xf32>
    %cst_31 = arith.constant 0.000000e+00 : f32
    %42 = vector.broadcast %cst_31 : f32 to vector<14x896xf32>
    %43 = vector.extract_strided_slice %41 {offsets = [0, 0], sizes = [14, 512], strides = [1, 1]} : vector<16x512xf32> to vector<14x512xf32>
    %44 = arith.truncf %43 : vector<14x512xf32> to vector<14x512xbf16>
    %c0_32 = arith.constant 0 : index
    %c0_33 = arith.constant 0 : index
    %c0_34 = arith.constant 0 : index
    %45 = vector.load %arg6[%c0_32, %c0_33, %c0_34] : memref<3x512x896xbf16, #tpu.memory_space<vmem>>, vector<1x512x896xbf16>
    %46 = vector.shape_cast %45 : vector<1x512x896xbf16> to vector<512x896xbf16>
    %cst_35 = arith.constant dense<0.000000e+00> : vector<14x896xf32>
    %47 = tpu.matmul %44, %46, %cst_35 {dimension_numbers = #tpu.dot_dimension_numbers<[1], [0], [0], [1], [0, 0, 1, 1], [], []>} : vector<14x512xbf16>, vector<512x896xbf16>, vector<14x896xf32> -> vector<14x896xf32>
    %48 = arith.addf %42, %47 : vector<14x896xf32>
    %49 = vector.extract_strided_slice %41 {offsets = [1, 0], sizes = [14, 512], strides = [1, 1]} : vector<16x512xf32> to vector<14x512xf32>
    %50 = arith.truncf %49 : vector<14x512xf32> to vector<14x512xbf16>
    %c1_36 = arith.constant 1 : index
    %c0_37 = arith.constant 0 : index
    %c0_38 = arith.constant 0 : index
    %51 = vector.load %arg6[%c1_36, %c0_37, %c0_38] : memref<3x512x896xbf16, #tpu.memory_space<vmem>>, vector<1x512x896xbf16>
    %52 = vector.shape_cast %51 : vector<1x512x896xbf16> to vector<512x896xbf16>
    %cst_39 = arith.constant dense<0.000000e+00> : vector<14x896xf32>
    %53 = tpu.matmul %50, %52, %cst_39 {dimension_numbers = #tpu.dot_dimension_numbers<[1], [0], [0], [1], [0, 0, 1, 1], [], []>} : vector<14x512xbf16>, vector<512x896xbf16>, vector<14x896xf32> -> vector<14x896xf32>
    %54 = arith.addf %48, %53 : vector<14x896xf32>
    %55 = vector.extract_strided_slice %41 {offsets = [2, 0], sizes = [14, 512], strides = [1, 1]} : vector<16x512xf32> to vector<14x512xf32>
    %56 = arith.truncf %55 : vector<14x512xf32> to vector<14x512xbf16>
    %c2_40 = arith.constant 2 : index
    %c0_41 = arith.constant 0 : index
    %c0_42 = arith.constant 0 : index
    %57 = vector.load %arg6[%c2_40, %c0_41, %c0_42] : memref<3x512x896xbf16, #tpu.memory_space<vmem>>, vector<1x512x896xbf16>
    %58 = vector.shape_cast %57 : vector<1x512x896xbf16> to vector<512x896xbf16>
    %cst_43 = arith.constant dense<0.000000e+00> : vector<14x896xf32>
    %59 = tpu.matmul %56, %58, %cst_43 {dimension_numbers = #tpu.dot_dimension_numbers<[1], [0], [0], [1], [0, 0, 1, 1], [], []>} : vector<14x512xbf16>, vector<512x896xbf16>, vector<14x896xf32> -> vector<14x896xf32>
    %60 = arith.addf %54, %59 : vector<14x896xf32>
    %c0_44 = arith.constant 0 : index
    %c0_45 = arith.constant 0 : index
    %61 = vector.load %arg7[%c0_44, %c0_45] : memref<1x896xf32, #tpu.memory_space<vmem>>, vector<1x896xf32>
    %62 = vector.broadcast %61 : vector<1x896xf32> to vector<14x896xf32>
    %63 = arith.addf %60, %62 : vector<14x896xf32>
    %cst_46 = arith.constant 0.000000e+00 : f32
    %64 = vector.broadcast %cst_46 : f32 to vector<14x896xf32>
    %65 = arith.maximumf %63, %64 : vector<14x896xf32>
    %66 = arith.truncf %65 : vector<14x896xf32> to vector<14x896xbf16>
    %c0_47 = arith.constant 0 : index
    %c0_48 = arith.constant 0 : index
    %c0_49 = arith.constant 0 : index
    %67 = vector.load %arg8[%c0_47, %c0_48, %c0_49] : memref<2x7x14xbf16, #tpu.memory_space<vmem>>, vector<1x7x14xbf16>
    %68 = vector.shape_cast %67 : vector<1x7x14xbf16> to vector<7x14xbf16>
    %cst_50 = arith.constant dense<0.000000e+00> : vector<7x896xf32>
    %69 = tpu.matmul %68, %66, %cst_50 {dimension_numbers = #tpu.dot_dimension_numbers<[1], [0], [0], [1], [0, 0, 1, 1], [], []>} : vector<7x14xbf16>, vector<14x896xbf16>, vector<7x896xf32> -> vector<7x896xf32>
    %c1_51 = arith.constant 1 : index
    %c0_52 = arith.constant 0 : index
    %c0_53 = arith.constant 0 : index
    %70 = vector.load %arg8[%c1_51, %c0_52, %c0_53] : memref<2x7x14xbf16, #tpu.memory_space<vmem>>, vector<1x7x14xbf16>
    %71 = vector.shape_cast %70 : vector<1x7x14xbf16> to vector<7x14xbf16>
    %cst_54 = arith.constant dense<0.000000e+00> : vector<7x896xf32>
    %72 = tpu.matmul %71, %66, %cst_54 {dimension_numbers = #tpu.dot_dimension_numbers<[1], [0], [0], [1], [0, 0, 1, 1], [], []>} : vector<7x14xbf16>, vector<14x896xbf16>, vector<7x896xf32> -> vector<7x896xf32>
    %73 = arith.maximumf %69, %72 : vector<7x896xf32>
    %74 = arith.truncf %73 : vector<7x896xf32> to vector<7x896xbf16>
    %c0_55 = arith.constant 0 : index
    %c0_56 = arith.constant 0 : index
    %c0_57 = arith.constant 0 : index
    %75 = vector.load %arg9[%c0_55, %c0_56, %c0_57] : memref<2x896x448xbf16, #tpu.memory_space<vmem>>, vector<1x896x448xbf16>
    %76 = vector.shape_cast %75 : vector<1x896x448xbf16> to vector<896x448xbf16>
    %cst_58 = arith.constant dense<0.000000e+00> : vector<7x448xf32>
    %77 = tpu.matmul %74, %76, %cst_58 {dimension_numbers = #tpu.dot_dimension_numbers<[1], [0], [0], [1], [0, 0, 1, 1], [], []>} : vector<7x896xbf16>, vector<896x448xbf16>, vector<7x448xf32> -> vector<7x448xf32>
    %c1_59 = arith.constant 1 : index
    %c0_60 = arith.constant 0 : index
    %c0_61 = arith.constant 0 : index
    %78 = vector.load %arg9[%c1_59, %c0_60, %c0_61] : memref<2x896x448xbf16, #tpu.memory_space<vmem>>, vector<1x896x448xbf16>
    %79 = vector.shape_cast %78 : vector<1x896x448xbf16> to vector<896x448xbf16>
    %cst_62 = arith.constant dense<0.000000e+00> : vector<7x448xf32>
    %80 = tpu.matmul %74, %79, %cst_62 {dimension_numbers = #tpu.dot_dimension_numbers<[1], [0], [0], [1], [0, 0, 1, 1], [], []>} : vector<7x896xbf16>, vector<896x448xbf16>, vector<7x448xf32> -> vector<7x448xf32>
    %81 = arith.maximumf %77, %80 : vector<7x448xf32>
    %c0_63 = arith.constant 0 : index
    %c0_64 = arith.constant 0 : index
    %82 = vector.load %arg11[%c0_63, %c0_64] : memref<1x128xf32, #tpu.memory_space<vmem>>, vector<1x128xf32>
    %83 = vector.extract_strided_slice %81 {offsets = [0, 0], sizes = [1, 448], strides = [1, 1]} : vector<7x448xf32> to vector<1x448xf32>
    %84 = arith.truncf %83 : vector<1x448xf32> to vector<1x448xbf16>
    %c0_65 = arith.constant 0 : index
    %c0_66 = arith.constant 0 : index
    %c0_67 = arith.constant 0 : index
    %85 = vector.load %arg10[%c0_65, %c0_66, %c0_67] : memref<7x448x128xbf16, #tpu.memory_space<vmem>>, vector<1x448x128xbf16>
    %86 = vector.shape_cast %85 : vector<1x448x128xbf16> to vector<448x128xbf16>
    %cst_68 = arith.constant dense<0.000000e+00> : vector<1x128xf32>
    %87 = tpu.matmul %84, %86, %cst_68 {dimension_numbers = #tpu.dot_dimension_numbers<[1], [0], [0], [1], [0, 0, 1, 1], [], []>} : vector<1x448xbf16>, vector<448x128xbf16>, vector<1x128xf32> -> vector<1x128xf32>
    %88 = arith.addf %82, %87 : vector<1x128xf32>
    %89 = vector.extract_strided_slice %81 {offsets = [1, 0], sizes = [1, 448], strides = [1, 1]} : vector<7x448xf32> to vector<1x448xf32>
    %90 = arith.truncf %89 : vector<1x448xf32> to vector<1x448xbf16>
    %c1_69 = arith.constant 1 : index
    %c0_70 = arith.constant 0 : index
    %c0_71 = arith.constant 0 : index
    %91 = vector.load %arg10[%c1_69, %c0_70, %c0_71] : memref<7x448x128xbf16, #tpu.memory_space<vmem>>, vector<1x448x128xbf16>
    %92 = vector.shape_cast %91 : vector<1x448x128xbf16> to vector<448x128xbf16>
    %cst_72 = arith.constant dense<0.000000e+00> : vector<1x128xf32>
    %93 = tpu.matmul %90, %92, %cst_72 {dimension_numbers = #tpu.dot_dimension_numbers<[1], [0], [0], [1], [0, 0, 1, 1], [], []>} : vector<1x448xbf16>, vector<448x128xbf16>, vector<1x128xf32> -> vector<1x128xf32>
    %94 = arith.addf %88, %93 : vector<1x128xf32>
    %95 = vector.extract_strided_slice %81 {offsets = [2, 0], sizes = [1, 448], strides = [1, 1]} : vector<7x448xf32> to vector<1x448xf32>
    %96 = arith.truncf %95 : vector<1x448xf32> to vector<1x448xbf16>
    %c2_73 = arith.constant 2 : index
    %c0_74 = arith.constant 0 : index
    %c0_75 = arith.constant 0 : index
    %97 = vector.load %arg10[%c2_73, %c0_74, %c0_75] : memref<7x448x128xbf16, #tpu.memory_space<vmem>>, vector<1x448x128xbf16>
    %98 = vector.shape_cast %97 : vector<1x448x128xbf16> to vector<448x128xbf16>
    %cst_76 = arith.constant dense<0.000000e+00> : vector<1x128xf32>
    %99 = tpu.matmul %96, %98, %cst_76 {dimension_numbers = #tpu.dot_dimension_numbers<[1], [0], [0], [1], [0, 0, 1, 1], [], []>} : vector<1x448xbf16>, vector<448x128xbf16>, vector<1x128xf32> -> vector<1x128xf32>
    %100 = arith.addf %94, %99 : vector<1x128xf32>
    %101 = vector.extract_strided_slice %81 {offsets = [3, 0], sizes = [1, 448], strides = [1, 1]} : vector<7x448xf32> to vector<1x448xf32>
    %102 = arith.truncf %101 : vector<1x448xf32> to vector<1x448xbf16>
    %c3 = arith.constant 3 : index
    %c0_77 = arith.constant 0 : index
    %c0_78 = arith.constant 0 : index
    %103 = vector.load %arg10[%c3, %c0_77, %c0_78] : memref<7x448x128xbf16, #tpu.memory_space<vmem>>, vector<1x448x128xbf16>
    %104 = vector.shape_cast %103 : vector<1x448x128xbf16> to vector<448x128xbf16>
    %cst_79 = arith.constant dense<0.000000e+00> : vector<1x128xf32>
    %105 = tpu.matmul %102, %104, %cst_79 {dimension_numbers = #tpu.dot_dimension_numbers<[1], [0], [0], [1], [0, 0, 1, 1], [], []>} : vector<1x448xbf16>, vector<448x128xbf16>, vector<1x128xf32> -> vector<1x128xf32>
    %106 = arith.addf %100, %105 : vector<1x128xf32>
    %107 = vector.extract_strided_slice %81 {offsets = [4, 0], sizes = [1, 448], strides = [1, 1]} : vector<7x448xf32> to vector<1x448xf32>
    %108 = arith.truncf %107 : vector<1x448xf32> to vector<1x448xbf16>
    %c4 = arith.constant 4 : index
    %c0_80 = arith.constant 0 : index
    %c0_81 = arith.constant 0 : index
    %109 = vector.load %arg10[%c4, %c0_80, %c0_81] : memref<7x448x128xbf16, #tpu.memory_space<vmem>>, vector<1x448x128xbf16>
    %110 = vector.shape_cast %109 : vector<1x448x128xbf16> to vector<448x128xbf16>
    %cst_82 = arith.constant dense<0.000000e+00> : vector<1x128xf32>
    %111 = tpu.matmul %108, %110, %cst_82 {dimension_numbers = #tpu.dot_dimension_numbers<[1], [0], [0], [1], [0, 0, 1, 1], [], []>} : vector<1x448xbf16>, vector<448x128xbf16>, vector<1x128xf32> -> vector<1x128xf32>
    %112 = arith.addf %106, %111 : vector<1x128xf32>
    %113 = vector.extract_strided_slice %81 {offsets = [5, 0], sizes = [1, 448], strides = [1, 1]} : vector<7x448xf32> to vector<1x448xf32>
    %114 = arith.truncf %113 : vector<1x448xf32> to vector<1x448xbf16>
    %c5 = arith.constant 5 : index
    %c0_83 = arith.constant 0 : index
    %c0_84 = arith.constant 0 : index
    %115 = vector.load %arg10[%c5, %c0_83, %c0_84] : memref<7x448x128xbf16, #tpu.memory_space<vmem>>, vector<1x448x128xbf16>
    %116 = vector.shape_cast %115 : vector<1x448x128xbf16> to vector<448x128xbf16>
    %cst_85 = arith.constant dense<0.000000e+00> : vector<1x128xf32>
    %117 = tpu.matmul %114, %116, %cst_85 {dimension_numbers = #tpu.dot_dimension_numbers<[1], [0], [0], [1], [0, 0, 1, 1], [], []>} : vector<1x448xbf16>, vector<448x128xbf16>, vector<1x128xf32> -> vector<1x128xf32>
    %118 = arith.addf %112, %117 : vector<1x128xf32>
    %119 = vector.extract_strided_slice %81 {offsets = [6, 0], sizes = [1, 448], strides = [1, 1]} : vector<7x448xf32> to vector<1x448xf32>
    %120 = arith.truncf %119 : vector<1x448xf32> to vector<1x448xbf16>
    %c6 = arith.constant 6 : index
    %c0_86 = arith.constant 0 : index
    %c0_87 = arith.constant 0 : index
    %121 = vector.load %arg10[%c6, %c0_86, %c0_87] : memref<7x448x128xbf16, #tpu.memory_space<vmem>>, vector<1x448x128xbf16>
    %122 = vector.shape_cast %121 : vector<1x448x128xbf16> to vector<448x128xbf16>
    %cst_88 = arith.constant dense<0.000000e+00> : vector<1x128xf32>
    %123 = tpu.matmul %120, %122, %cst_88 {dimension_numbers = #tpu.dot_dimension_numbers<[1], [0], [0], [1], [0, 0, 1, 1], [], []>} : vector<1x448xbf16>, vector<448x128xbf16>, vector<1x128xf32> -> vector<1x128xf32>
    %124 = arith.addf %118, %123 : vector<1x128xf32>
    %125 = arith.truncf %124 : vector<1x128xf32> to vector<1x128xbf16>
    %c0_89 = arith.constant 0 : index
    %c0_90 = arith.constant 0 : index
    %126 = vector.load %arg12[%c0_89, %c0_90] : memref<128x64xbf16, #tpu.memory_space<vmem>>, vector<128x64xbf16>
    %cst_91 = arith.constant dense<0.000000e+00> : vector<1x64xf32>
    %127 = tpu.matmul %125, %126, %cst_91 {dimension_numbers = #tpu.dot_dimension_numbers<[1], [0], [0], [1], [0, 0, 1, 1], [], []>} : vector<1x128xbf16>, vector<128x64xbf16>, vector<1x64xf32> -> vector<1x64xf32>
    %c0_92 = arith.constant 0 : index
    %c0_93 = arith.constant 0 : index
    %128 = vector.load %arg13[%c0_92, %c0_93] : memref<1x64xf32, #tpu.memory_space<vmem>>, vector<1x64xf32>
    %129 = arith.addf %127, %128 : vector<1x64xf32>
    %130 = arith.truncf %129 : vector<1x64xf32> to vector<1x64xbf16>
    %c0_94 = arith.constant 0 : index
    %c0_95 = arith.constant 0 : index
    %131 = vector.load %arg14[%c0_94, %c0_95] : memref<64x128xbf16, #tpu.memory_space<vmem>>, vector<64x128xbf16>
    %cst_96 = arith.constant dense<0.000000e+00> : vector<1x128xf32>
    %132 = tpu.matmul %130, %131, %cst_96 {dimension_numbers = #tpu.dot_dimension_numbers<[1], [0], [0], [1], [0, 0, 1, 1], [], []>} : vector<1x64xbf16>, vector<64x128xbf16>, vector<1x128xf32> -> vector<1x128xf32>
    %c0_97 = arith.constant 0 : index
    %c0_98 = arith.constant 0 : index
    %133 = vector.load %arg15[%c0_97, %c0_98] : memref<1x128xf32, #tpu.memory_space<vmem>>, vector<1x128xf32>
    %134 = arith.addf %132, %133 : vector<1x128xf32>
    %135 = vector.shape_cast %134 : vector<1x128xf32> to vector<1x128xf32>
    %136 = vector.broadcast %135 : vector<1x128xf32> to vector<8x128xf32>
    %c0_99 = arith.constant 0 : index
    %c0_100 = arith.constant 0 : index
    %c0_101 = arith.constant 0 : index
    %137 = vector.load %arg16[%c0_99, %c0_100, %c0_101] : memref<1x8x128xf32, #tpu.memory_space<vmem>>, vector<1x8x128xf32>
    %138 = vector.shape_cast %137 : vector<1x8x128xf32> to vector<8x128xf32>
    %139 = vector.shape_cast %136 : vector<8x128xf32> to vector<1x8x128xf32>
    tpu.vector_store %arg16[%c0_99, %c0_100, %c0_101], %139 {strides = array<i32>} : memref<1x8x128xf32, #tpu.memory_space<vmem>>, vector<1x8x128xf32>,
    return
  }
  func.func @transform_0(%arg0: i32) -> (i32, i32, i32) {
    %c0_i32 = arith.constant 0 : i32
    %c0_i32_0 = arith.constant 0 : i32
    %c0_i32_1 = arith.constant 0 : i32
    return %arg0, %c0_i32, %c0_i32_0 : i32, i32, i32
  }
  func.func @transform_1(%arg0: i32) -> (i32, i32, i32) {
    %c0_i32 = arith.constant 0 : i32
    %c0_i32_0 = arith.constant 0 : i32
    %c0_i32_1 = arith.constant 0 : i32
    %c0_i32_2 = arith.constant 0 : i32
    return %c0_i32, %c0_i32_0, %c0_i32_1 : i32, i32, i32
  }
  func.func @transform_2(%arg0: i32) -> (i32, i32) {
    %c0_i32 = arith.constant 0 : i32
    %c0_i32_0 = arith.constant 0 : i32
    %c0_i32_1 = arith.constant 0 : i32
    return %c0_i32, %c0_i32_0 : i32, i32
  }
  func.func @transform_3(%arg0: i32) -> (i32, i32, i32) {
    %c0_i32 = arith.constant 0 : i32
    %c0_i32_0 = arith.constant 0 : i32
    %c0_i32_1 = arith.constant 0 : i32
    %c0_i32_2 = arith.constant 0 : i32
    return %c0_i32, %c0_i32_0, %c0_i32_1 : i32, i32, i32
  }
  func.func @transform_4(%arg0: i32) -> (i32, i32, i32) {
    %c0_i32 = arith.constant 0 : i32
    %c0_i32_0 = arith.constant 0 : i32
    %c0_i32_1 = arith.constant 0 : i32
    %c0_i32_2 = arith.constant 0 : i32
    return %c0_i32, %c0_i32_0, %c0_i32_1 : i32, i32, i32
  }
  func.func @transform_5(%arg0: i32) -> (i32, i32, i32) {
    %c0_i32 = arith.constant 0 : i32
    %c0_i32_0 = arith.constant 0 : i32
    %c0_i32_1 = arith.constant 0 : i32
    %c0_i32_2 = arith.constant 0 : i32
    return %c0_i32, %c0_i32_0, %c0_i32_1 : i32, i32, i32
  }
  func.func @transform_6(%arg0: i32) -> (i32, i32) {
    %c0_i32 = arith.constant 0 : i32
    %c0_i32_0 = arith.constant 0 : i32
    %c0_i32_1 = arith.constant 0 : i32
    return %c0_i32, %c0_i32_0 : i32, i32
  }
  func.func @transform_7(%arg0: i32) -> (i32, i32, i32) {
    %c0_i32 = arith.constant 0 : i32
    %c0_i32_0 = arith.constant 0 : i32
    %c0_i32_1 = arith.constant 0 : i32
    %c0_i32_2 = arith.constant 0 : i32
    return %c0_i32, %c0_i32_0, %c0_i32_1 : i32, i32, i32
  }
  func.func @transform_8(%arg0: i32) -> (i32, i32, i32) {
    %c0_i32 = arith.constant 0 : i32
    %c0_i32_0 = arith.constant 0 : i32
    %c0_i32_1 = arith.constant 0 : i32
    %c0_i32_2 = arith.constant 0 : i32
    return %c0_i32, %c0_i32_0, %c0_i32_1 : i32, i32, i32
  }
  func.func @transform_9(%arg0: i32) -> (i32, i32, i32) {
    %c0_i32 = arith.constant 0 : i32
    %c0_i32_0 = arith.constant 0 : i32
    %c0_i32_1 = arith.constant 0 : i32
    %c0_i32_2 = arith.constant 0 : i32
    return %c0_i32, %c0_i32_0, %c0_i32_1 : i32, i32, i32
  }
  func.func @transform_10(%arg0: i32) -> (i32, i32) {
    %c0_i32 = arith.constant 0 : i32
    %c0_i32_0 = arith.constant 0 : i32
    %c0_i32_1 = arith.constant 0 : i32
    return %c0_i32, %c0_i32_0 : i32, i32
  }
  func.func @transform_11(%arg0: i32) -> (i32, i32) {
    %c0_i32 = arith.constant 0 : i32
    %c0_i32_0 = arith.constant 0 : i32
    %c0_i32_1 = arith.constant 0 : i32
    return %c0_i32, %c0_i32_0 : i32, i32
  }
  func.func @transform_12(%arg0: i32) -> (i32, i32) {
    %c0_i32 = arith.constant 0 : i32
    %c0_i32_0 = arith.constant 0 : i32
    %c0_i32_1 = arith.constant 0 : i32
    return %c0_i32, %c0_i32_0 : i32, i32
  }
  func.func @transform_13(%arg0: i32) -> (i32, i32) {
    %c0_i32 = arith.constant 0 : i32
    %c0_i32_0 = arith.constant 0 : i32
    %c0_i32_1 = arith.constant 0 : i32
    return %c0_i32, %c0_i32_0 : i32, i32
  }
  func.func @transform_14(%arg0: i32) -> (i32, i32) {
    %c0_i32 = arith.constant 0 : i32
    %c0_i32_0 = arith.constant 0 : i32
    %c0_i32_1 = arith.constant 0 : i32
    return %c0_i32, %c0_i32_0 : i32, i32
  }
  func.func @transform_15(%arg0: i32) -> (i32, i32, i32) {
    %c0_i32 = arith.constant 0 : i32
    %c0_i32_0 = arith.constant 0 : i32
    %c0_i32_1 = arith.constant 0 : i32
    return %arg0, %c0_i32, %c0_i32_0 : i32, i32, i32
  }
}

</mosaic_0001>

<bundles_post_ra>
// kernel: mnist_net_forward.1
= control target key start
LH: loop header
LB: loop body
LE: loop exit
PB: predicated region body
PF: predicated region fallthrough
CT: control target
= control target key end

     0   :  { %s28233_s0 = inlined_call_operand.vmem [shape: f32[2,30,30], index: 0, kind: input, shape index: {}]   ;;  %s28234_s1 = inlined_call_operand.hbm [shape: bf16[3,30,896], index: 1, kind: input, shape index: {}]   ;;  %s28235_s2 = inlined_call_operand.vmem [shape: f32[1,896], index: 2, kind: input, shape index: {}]   ;;  %s28236_s3 = inlined_call_operand.vmem [shape: bf16[2,16,28], index: 3, kind: input, shape index: {}]   ;;  %s28237_s4 = inlined_call_operand.hbm [shape: bf16[2,896,512], index: 4, kind: input, shape index: {}]   ;;  %s28238_s5 = inlined_call_operand.vmem [shape: bf16[3,512,896], index: 5, kind: input, shape index: {}]   ;;  %s28239_s6 = inlined_call_operand.vmem [shape: f32[1,896], index: 6, kind: input, shape index: {}]   ;;  %s28240_s7 = inlined_call_operand.vmem [shape: bf16[2,7,14], index: 7, kind: input, shape index: {}]   ;;  %s28241_s8 = inlined_call_operand.vmem [shape: bf16[2,896,448], index: 8, kind: input, shape index: {}]   ;;  %s28242_s9 = inlined_call_operand.vmem [shape: bf16[7,448,128], index: 9, kind: input, shape index: {}]   ;;  %s28243_s10 = inlined_call_operand.vmem [shape: f32[1,128], index: 10, kind: input, shape index: {}]   ;;  %s28244_s11 = inlined_call_operand.vmem [shape: bf16[128,64], index: 11, kind: input, shape index: {}]   ;;  %s28245_s12 = inlined_call_operand.vmem [shape: f32[1,64], index: 12, kind: input, shape index: {}]   ;;  %s28246_s13 = inlined_call_operand.vmem [shape: bf16[64,128], index: 13, kind: input, shape index: {}]   ;;  %s28247_s14 = inlined_call_operand.vmem [shape: f32[1,128], index: 14, kind: input, shape index: {}]   ;;  %s28248_s15 = inlined_call_operand.vmem [shape: f32[2,8,128], index: 15, kind: output, shape index: {}]  }
   0x1   :  { %28252 = sst [smem:[#allocation9_spill]] %s28248_s15 }
   0x2   :  { %20 = vsyncpa [#allocation3], 0 }
   0x3   :  { %21 = vsyncpa [#allocation5], 0  ;;  %s23414_s18 = smov 0  }
   0x4 LB: > { %28253 = sst [smem:[#allocation8_spill]] %s23323_s18  ;;  %s23325_s19 = smov [#allocation2]   ;;  %s23323_s18 = sphi %s23414_s18, %s27_s18  }
   0x5   : > { %s390_s20 = sshll.u32 %s23325_s19, 4  ;;  %s23420_s21 = sadd.s32 4294967295, %s23323_s18   ;;  %s391_s20 = int_to_ptr.vmem [resolvable:$true] %s390_s20 }
   0x6   : > { %p17013_p0 = scmp.ge.s32.totalorder %s23323_s18, 1  ;;  %p378_p1 = scmp.lt.s32.totalorder %s23323_s18, 3 }
   0x7   : > { %p28249_p3 = scmp.eq.s32.totalorder %s23420_s21, 0  ;;  %s23326_s23 = smov [#allocation4]  }
   0x8   : > { %p23424_p2 = pnand %p17013_p0, %p378_p1  ;;  %s409_s24 = sshll.u32 %s23326_s23, 4  ;;  %s23437_s24 = int_to_ptr.vmem [resolvable:$true] %s409_s24 }
   0x9   : > { %s23253_s28 = scalar_lea.hbm %s28234_s1, 5376 }
   0xa   : > { %s28254_s22 = scalar_select %p23424_p2, 1, 0 }
   0xb   : > { %p20651_p4 = pneg %p23424_p2  ;;  %p23254_p6 = scmp.ne.s32.totalorder %s28234_s1, %s23253_s28 }
   0xc   : > { %p23260_p10 = scmp.lt.u32.totalorder %s23253_s28, %s28234_s1 }
   0xd   : > { %p23433_p5 = pnand %p28249_p3, %p20651_p4 }
   0xf   : > { %p23255_p7 = pneg %p23433_p5 }
  0x11   : > { %p23256_p8 = pnand %p23255_p7, %p23254_p6 }
  0x13   : > { %p23257_p9 = pneg %p23256_p8 }
  0x15   : > { %p23262_p11 = pnand %p23260_p10, %p23257_p9 }
  0x17   : > { %23265 = shalt.err (!%p23262_p11)
}
  0x18   : > { %s23266_s19 = scalar_lea.vmem %s391_s20, 5376  ;;  %p23274_p1 = scmp.lt.s32.totalorder %s391_s20, %s391_s20 }
  0x19   : > { %p23267_p12 = scmp.ne.s32.totalorder %s391_s20, %s23266_s19  ;;  %p23275_p4 = scmp.lt.s32.totalorder %s23266_s19, %s23266_s19 }
  0x1b   : > { %p23269_p13 = pnand %p23267_p12, %p23255_p7  ;;  %p23276_p3 = por %p23275_p4, %p23274_p1 }
  0x1d   : > { %p23270_p0 = pneg %p23269_p13 }
  0x1f   : > { %p23277_p2 = pnand %p23276_p3, %p23270_p0 }
  0x21   : > { %23280 = shalt.err (!%p23277_p2)
}
  0x22   : > { %s23327_s23 = smov 448   ;;  %s23328_s26 = smov 28  }
  0x23   : > { %20654 = dma.hbm_to_vmem [thread:$0]  (!%p23433_p5), %s28234_s1, 5376, %s391_s20, [#allocation3], %s23327_s23, %s23327_s23, %s23328_s26  }
  0x24   : > { %s23281_s16 = scalar_lea.hbm %s28237_s4, 57344 }
  0x25   : > { %p23282_p6 = scmp.ne.s32.totalorder %s28237_s4, %s23281_s16  ;;  %p23288_p8 = scmp.lt.u32.totalorder %s23281_s16, %s28237_s4 }
  0x27   : > { %p23284_p2 = pnand %p23282_p6, %p23255_p7 }
  0x29   : > { %p23285_p3 = pneg %p23284_p2 }
  0x2b   : > { %p23290_p9 = pnand %p23288_p8, %p23285_p3 }
  0x2d   : > { %23293 = shalt.err (!%p23290_p9)
}
  0x2e   : > { %s23294_s20 = scalar_lea.vmem %s23437_s24, 57344  ;;  %p23302_p13 = scmp.lt.s32.totalorder %s23437_s24, %s23437_s24 }
  0x2f   : > { %p23295_p10 = scmp.ne.s32.totalorder %s23437_s24, %s23294_s20  ;;  %p23303_p0 = scmp.lt.s32.totalorder %s23294_s20, %s23294_s20 }
  0x31   : > { %p23297_p11 = pnand %p23295_p10, %p23255_p7  ;;  %p23304_p1 = por %p23303_p0, %p23302_p13 }
  0x33   : > { %p23298_p12 = pneg %p23297_p11 }
  0x35   : > { %p23305_p4 = pnand %p23304_p1, %p23298_p12 }
  0x37   : > { %23308 = shalt.err (!%p23305_p4)
}
  0x38   : > { %s23329_s15 = smov 256   ;;  %s23330_s18 = smov 16  }
  0x39   : > { %20657 = dma.hbm_to_vmem [thread:$0]  (!%p23433_p5), %s28237_s4, 57344, %s23437_s24, [#allocation5], %s23329_s15, %s23329_s15, %s23330_s18  }
  0x3a   : > { %p28256_p6 = scmp.ne.s32.totalorder %s28254_s22, 0 }
  0x3b   : > { %p28257_p7 = scmp.eq.s32.totalorder (!%p28256_p6), %s23420_s21, 0 }
  0x3c   : > { %463 = sbr.rel (%p28256_p6) target bundleno = 4052 (0xfd4), region = 80 }
  0x43   : > { %23314 = dma.done.wait (%p28257_p7), [#allocation3], 5376   ;;  %p28258_p2 = pmov %p28257_p7 }
  0x45   : > { %23316 = vsyncadd (%p28258_p2), [#allocation3], 4294961920  ;;  %p28259_p3 = pmov %p28258_p2 }
  0x46   : > { %p28260_p8 = pmov %p28258_p2 }
  0x47   : > { %23318 = dma.done.wait (%p28259_p3), [#allocation5], 57344  }
  0x48   : > { %23320 = vsyncadd (%p28260_p8), [#allocation5], 4294909952  ;;  %p514_p9 = scmp.lt.s32.totalorder %s23420_s21, 1  ;;  %v23331_v0 = vmov 0   ;;  %v20679_v1 = vld [vmem:[#allocation2 + $0x74] ss:$28 sps:$4 sm:$0xff]  }
  0x49   : > { %705 = vmatprep.mubr.bf16.mxu0 %v23331_v0  ;;  %758 = vmatprep.mubr.bf16.mxu1 %v23331_v0  ;;  %v20681_v2 = vld [vmem:[#allocation2 + $0x7c] ss:$28 sps:$4 sm:$0xff]   ;;  %v20683_v3 = vld [vmem:[#allocation2 + $0x70] ss:$28 sps:$4 sm:$0xff]   ;;  %vm651_vm0 = vcmask 1046528   ;;  %vm644_vm2 = vcmask 244736  }
  0x4a   : > { %s28264_s21 = smov (!%p514_p9, %s23420_s21), 1  ;;  %673 = vmatprep.subr.bf16.mxu0 %v20679_v1  ;;  %v20684_v4 = vld [vmem:[#allocation2 + $0x78] ss:$28 sps:$4 sm:$0xff]   ;;  %726 = vmatprep.subr.bf16.mxu1 %v20681_v2  ;;  %v20685_v5 = vld [vmem:[#allocation2 + $0xac] ss:$28 sps:$4 sm:$0x7f]  }
  0x4b   : > { %s19989_s22 = sshll.u32 %s28264_s21, 5  ;;  %674 = vmatpush1.bf16.msra.mxu0 %v20683_v3  ;;  %727 = vmatpush1.bf16.msra.mxu1 %v20684_v4  ;;  %v20687_v6 = vld [vmem:[#allocation2 + $0xb4] ss:$28 sps:$4 sm:$0x7f]   ;;  %v20693_v17 = vld [vmem:[#allocation2 + $0x84] ss:$28 sps:$4 sm:$0xff]  }
  0x4c   : > { %s518_s27 = scalar_lea.vmem %s28233_s0, %s19989_s22  ;;  %17037 = vmatprep.subr.msk.bf16.mxu0 %vm651_vm0, %v20685_v5  ;;  %v20689_v8 = vld [vmem:[#allocation2 + $0xa8] ss:$28 sps:$4 sm:$0x7f]   ;;  %v20690_v9 = vld [vmem:[#allocation2 + $0xb0] ss:$28 sps:$4 sm:$0x7f]   ;;  %17040 = vmatprep.subr.msk.bf16.mxu1 %vm651_vm0, %v20687_v6 }
  0x4d   : > { %v524_v7 = vld [vmem:[%s518_s27] sm:$0xff]  ;;  %v525_v10 = vld [vmem:[%s518_s27 + $0x8] sm:$0xff]  ;;  %v526_v11 = vld [vmem:[%s518_s27 + $0x10] sm:$0xff]  ;;  %v653_v13 = vsel %vm651_vm0, %v20689_v8, 0  ;;  %v659_v14 = vsel %vm651_vm0, %v20690_v9, 0  ;;  %vm23333_vm3 = vmmov 0  }
  0x4e   : > { %v527_v12 = vld [vmem:[%s518_s27 + $0x18] sm:$0x3f]  ;;  %v23510_v15 = vpack.c.bf16 %v525_v10, %v524_v7  ;;  %v20694_v21 = vld [vmem:[#allocation2 + $0x88] ss:$28 sps:$4 sm:$0xff]   ;;  %vm563_vm1 = vsmask.f32 7424 }
  0x4f   : > { %v23512_v16 = vpack.c.bf16 %v527_v12, %v526_v11  ;;  %676 = vmatpush1.bf16.msra.mxu0 %v653_v13  ;;  %729 = vmatpush1.bf16.msra.mxu1 %v659_v14  ;;  %v20691_v24 = vld [vmem:[#allocation2 + $0x80] ss:$28 sps:$4 sm:$0xff]   ;;  %v20698_v27 = vld [vmem:[#allocation2 + $0xb8] ss:$28 sps:$4 sm:$0x7f]   ;;  %v23332_v10 = vmov 0.0   ;;  %v1532_v11 = vlaneseq }
  0x50   : > { %v565_v18 = vshrl.u32 %v23510_v15, 16  ;;  %v567_v19 = vshll.u32 %v23510_v15, 16  ;;  %779 = vmatprep.subr.bf16.mxu0 %v20693_v17  ;;  %20312 = vmatprep.subr.bf16.mxu1 %v20694_v21  ;;  %v20695_v26 = vld [vmem:[#allocation2 + $0xbc] ss:$28 sps:$4 sm:$0x7f]   ;;  %v665_v31 = vsel %vm651_vm0, %v20698_v27, 0 }
  0x51   : > { %v572_v20 = vshll.u32 %v23512_v16, 16  ;;  %v20697_v29 = vld [vmem:[#allocation2 + $0xc0] ss:$28 sps:$4 sm:$0x7f]   ;;  %v576_v30 = vshrl.u32 %v23512_v16, 16  ;;  %v1199_v58 = vrot.slane %v23510_v15, 1 }
  0x52   : > { %v569_v22 = vrot.slane %v567_v19, 1  ;;  %v20701_v32 = vld [vmem:[#allocation2 + $0xc] ss:$28 sps:$4 sm:$0xff]   ;;  %v20704_v33 = vld [vmem:[#allocation2 + $0x4] ss:$28 sps:$4 sm:$0xff]   ;;  %v671_v34 = vsel %vm651_vm0, %v20697_v29, 0 }
  0x53   : > { %v574_v23 = vrot.slane %v572_v20, 1  ;;  %v20699_v36 = vld [vmem:[#allocation2 + $0x8] ss:$28 sps:$4 sm:$0xff]   ;;  %v20702_v37 = vld [vmem:[#allocation2] ss:$28 sps:$4 sm:$0xff]   ;;  %v1200_v59 = vrot.slane %v23512_v16, 1 }
  0x54   : > { %v570_v25 = vor.u32 %v569_v22, %v565_v18  ;;  %v20705_v38 = vld [vmem:[#allocation2 + $0x44] ss:$28 sps:$4 sm:$0x7f]   ;;  %v20710_v40 = vld [vmem:[#allocation2 + $0x38] ss:$28 sps:$4 sm:$0x7f]  }
  0x55   : > { %v578_v35 = vor.u32 %v576_v30, %v574_v23  ;;  %v20707_v39 = vld [vmem:[#allocation2 + $0x40] ss:$28 sps:$4 sm:$0x7f]   ;;  %v951_v43 = vsel %vm651_vm0, %v20710_v40, 0  ;;  %v20711_v44 = vld [vmem:[#allocation2 + $0x18] ss:$28 sps:$4 sm:$0xff]   ;;  %v1201_v63 = vsel %vm651_vm0, %v1199_v58, %v1200_v59 }
  0x56   : > { %v575_v28 = vsel %vm563_vm1, %v570_v25, %v574_v23  ;;  %v20708_v41 = vld [vmem:[#allocation2 + $0x3c] ss:$28 sps:$4 sm:$0x7f]   ;;  %v957_v42 = vsel %vm651_vm0, %v20707_v39, 0  ;;  %v20714_v45 = vld [vmem:[#allocation2 + $0x14] ss:$28 sps:$4 sm:$0xff]  }
  0x57   : > { %17038 = vmatmul.mubr.msk.bf16.vlgmr.msra.gmra.mrb[0].mxu0 %vm644_vm2, %v575_v28  ;;  %17041 = vmatmul.mubr.msk.bf16.vlgmr.msra.gmra.mrb[0].mxu1 %vm644_vm2, %v575_v28  ;;  %v20715_v46 = vld [vmem:[#allocation2 + $0x50] ss:$28 sps:$4 sm:$0x7f]   ;;  %v20723_v51 = vld [vmem:[#allocation2 + $0x48] ss:$28 sps:$4 sm:$0x7f]  }
  0x58   : > { %780 = vmatpush1.bf16.msra.mxu0 %v20691_v24  ;;  %715 = vmatprep.mubr.bf16.mxu0 %v23331_v0  ;;  %v20718_v47 = vld [vmem:[#allocation2 + $0xec] ss:$28 sps:$4 sm:$0xff]   ;;  %v969_v49 = vsel %vm651_vm0, %v20715_v46, 0  ;;  %v20727_v52 = vld [vmem:[#allocation2 + $0xe4] ss:$28 sps:$4 sm:$0xff]   ;;  %v963_v53 = vsel %vm651_vm0, %v20723_v51, 0 }
  0x59   : > { %768 = vmatprep.mubr.bf16.mxu1 %v23331_v0  ;;  %20313 = vmatpush3.bf16.msra.mxu1 %v20694_v21  ;;  %v20712_v48 = vld [vmem:[#allocation2 + $0x10] ss:$28 sps:$4 sm:$0xff]   ;;  %v20716_v54 = vld [vmem:[#allocation2 + $0xe8] ss:$28 sps:$4 sm:$0xff]   ;;  %v20728_v57 = vld [vmem:[#allocation2 + $0xf8] ss:$28 sps:$4 sm:$0xff]  }
  0x5a   : > { %17043 = vmatprep.subr.msk.bf16.mxu0 %vm651_vm0, %v20695_v26  ;;  %20640 = vmatprep.subr.msk.bf16.mxu1 %vm651_vm0, %v20697_v29  ;;  %v20719_v50 = vld [vmem:[#allocation2 + $0x4c] ss:$28 sps:$4 sm:$0x7f]   ;;  %v20721_v55 = vld [vmem:[#allocation2 + $0x124] ss:$28 sps:$4 sm:$0x7f]  }
  0x5b   : > { %v20724_v56 = vld [vmem:[#allocation2 + $0x120] ss:$28 sps:$4 sm:$0x7f]   ;;  %v20732_v62 = vld [vmem:[#allocation2 + $0x118] ss:$28 sps:$4 sm:$0x7f]  }
  0x5c   : > { %782 = vmatpush1.bf16.msra.mxu0 %v665_v31  ;;  %v1280_v60 = vsel %vm651_vm0, %v20724_v56, 0  ;;  %v20725_v61 = vld [vmem:[#allocation2 + $0xe0] ss:$28 sps:$4 sm:$0xff]   ;;  %v20731_v2 = vld [vmem:[#allocation2 + $0x130] ss:$28 sps:$4 sm:$0x7f]  }
  0x5d   : > { %20315 = vmatpush3.bf16.msra.mxu1 %v671_v34  ;;  %971 = vmatprep.subr.bf16.mxu0 %v20704_v33  ;;  %v20729_v1 = vld [vmem:[#allocation2 + $0x11c] ss:$28 sps:$4 sm:$0x7f]   ;;  %v20735_v3 = vld [vmem:[#allocation2 + $0xf4] ss:$28 sps:$4 sm:$0xff]   ;;  %v1274_v4 = vsel %vm651_vm0, %v20732_v62, 0 }
  0x5e   : > { %1024 = vmatprep.subr.bf16.mxu1 %v20701_v32  ;;  %v1292_v5 = vsel %vm651_vm0, %v20731_v2, 0  ;;  %v20733_v6 = vld [vmem:[#allocation2 + $0xf0] ss:$28 sps:$4 sm:$0xff]   ;;  %v20738_v8 = vld [vmem:[#allocation2 + $0x128] ss:$28 sps:$4 sm:$0x7f]  }
  0x5f   : > { %17039 = vmatmul.mubr.msk.bf16.gmra.mrb[4].mxu0 %vm644_vm2, %v578_v35  ;;  %17042 = vmatmul.mubr.msk.bf16.gmra.mrb[4].mxu1 %vm644_vm2, %v578_v35  ;;  %v20736_v7 = vld [vmem:[#allocation2 + $0x12c] ss:$28 sps:$4 sm:$0x7f]   ;;  %v1286_v9 = vsel %vm651_vm0, %v20738_v8, 0  ;;  %v23593_v12 = vshrl.u32 %v1532_v11, 7  ;;  %v23598_v13 = vld [vmem:[%s28235_s2] sm:$0xff] }
  0x60   : > { %811 = vmatprep.mubr.bf16.mxu0 %v23331_v0  ;;  %20316 = vmatprep.mubr.msk.bf16.mxu1 %vm644_vm2, %v575_v28  ;;  %vm1648_vm4 = vcmask 1045504   ;;  %vm1644_vm5 = vcmask 228352   ;;  %vm10808_vm6 = vcmask 113664   ;;  %vm14756_vm7 = vcmask 523264   ;;  %s17022_s17 = sshll.u32 %s28264_s21, 3  ;;  %s28261_s15 = sld [smem:[#allocation9_spill]] }
  0x61   : > { %v1542_v14 = vsub.s32 2, %v23593_v12  ;;  %v1538_v39 = vsub.s32 1, %v23593_v12 }
  0x66   : > { %s522_s18 = scalar_lea.vmem %s28261_s15, %s17022_s17 }
  0x67   : > { %17044 = vmatmul.mubr.msk.bf16.vlgmr.msra.gmra.mrb[8].mxu0 %vm644_vm2, %v575_v28  ;;  %20317 = vmatmul.mubr.msk.bf16.vlgmr.msra.gmra.mrb[8].mxu1 %vm644_vm2, %v578_v35 }
  0x68   : > { %1025 = vmatpush1.bf16.msra.mxu1 %v20699_v36  ;;  %972 = vmatpush1.bf16.msra.mxu0 %v20702_v37  ;;  %v1558_v36 = vsub.s32 6, %v23593_v12 }
  0x69   : > { %17065 = vmatprep.subr.msk.bf16.mxu1 %vm651_vm0, %v20705_v38  ;;  %821 = vmatprep.mubr.bf16.mxu0 %v23331_v0 }
  0x6a   : > { %1056 = vmatprep.mubr.bf16.mxu1 %v23331_v0  ;;  %17062 = vmatprep.subr.msk.bf16.mxu0 %vm651_vm0, %v20708_v41 }
  0x6c   : > { %1027 = vmatpush1.bf16.msra.mxu1 %v957_v42  ;;  %974 = vmatpush1.bf16.msra.mxu0 %v951_v43 }
  0x6d   : > { %20320 = vmatprep.subr.bf16.mxu1 %v20711_v44  ;;  %1077 = vmatprep.subr.bf16.mxu0 %v20714_v45 }
  0x6f   : > { %17045 = vmatmul.mubr.msk.bf16.gmra.mrb[12].mxu0 %vm644_vm2, %v578_v35  ;;  %17066 = vmatmul.mubr.msk.bf16.vlgmr.msra.gmra.mrb[0].mxu1 %vm644_vm2, %v23510_v15  ;;  %v23613_v35 = vsub.s32 0, %v23593_v12 }
  0x70   : > { %1003 = vmatprep.mubr.bf16.mxu0 %v23331_v0  ;;  %1066 = vmatprep.mubr.bf16.mxu1 %v23331_v0 }
  0x71   : > { %20321 = vmatpush3.bf16.msra.mxu1 %v20711_v44  ;;  %v1535_v45 = vrot.slane %v23598_v13, %v23613_v35 }
  0x72   : > { %20641 = vmatprep.subr.msk.bf16.mxu1 %vm651_vm0, %v20715_v46  ;;  %v1559_v46 = vrot.slane %v23598_v13, %v1558_v36 }
  0x75   : > { %20323 = vmatpush3.bf16.msra.mxu1 %v969_v49  ;;  %v1539_v49 = vrot.slane %v23598_v13, %v1538_v39 }
  0x76   : > { %1347 = vmatprep.subr.bf16.mxu1 %v20718_v47 }
  0x77   : > { %17063 = vmatmul.mubr.msk.bf16.vlgmr.msra.gmra.mrb[0].mxu0 %vm644_vm2, %v23510_v15  ;;  %17067 = vmatmul.mubr.msk.bf16.gmra.mrb[4].mxu1 %vm644_vm2, %v23512_v16 }
  0x78   : > { %1078 = vmatpush1.bf16.msra.mxu0 %v20712_v48  ;;  %1013 = vmatprep.mubr.bf16.mxu0 %v23331_v0 }
  0x79   : > { %20324 = vmatprep.mubr.msk.bf16.mxu1 %vm644_vm2, %v23510_v15  ;;  %17068 = vmatprep.subr.msk.bf16.mxu0 %vm651_vm0, %v20719_v50 }
  0x7c   : > { %1080 = vmatpush1.bf16.msra.mxu0 %v963_v53 }
  0x7d   : > { %1294 = vmatprep.subr.bf16.mxu0 %v20727_v52 }
  0x7f   : > { %17064 = vmatmul.mubr.msk.bf16.gmra.mrb[4].mxu0 %vm644_vm2, %v23512_v16  ;;  %20325 = vmatmul.mubr.msk.bf16.vlgmr.msra.gmra.mrb[8].mxu1 %vm644_vm2, %v23512_v16 }
  0x80   : > { %1348 = vmatpush1.bf16.msra.mxu1 %v20716_v54  ;;  %1109 = vmatprep.mubr.bf16.mxu0 %v23331_v0 }
  0x81   : > { %17090 = vmatprep.subr.msk.bf16.mxu1 %vm651_vm0, %v20721_v55  ;;  %1379 = vmatprep.mubr.bf16.mxu1 %v23331_v0 }
  0x84   : > { %1350 = vmatpush1.bf16.msra.mxu1 %v1280_v60 }
  0x85   : > { %20328 = vmatprep.subr.bf16.mxu1 %v20728_v57 }
  0x87   : > { %17069 = vmatmul.mubr.msk.bf16.vlgmr.msra.gmra.mrb[8].mxu0 %vm644_vm2, %v23510_v15  ;;  %17091 = vmatmul.mubr.msk.bf16.vlgmr.msra.gmra.mrb[0].mxu1 %vm644_vm2, %v1201_v63  ;;  %v1546_v15 = vsub.s32 3, %v23593_v12 }
  0x88   : > { %1295 = vmatpush1.bf16.msra.mxu0 %v20725_v61  ;;  %1119 = vmatprep.mubr.bf16.mxu0 %v23331_v0 }
  0x89   : > { %1389 = vmatprep.mubr.bf16.mxu1 %v23331_v0  ;;  %20329 = vmatpush3.bf16.msra.mxu1 %v20728_v57  ;;  %v1547_v17 = vrot.slane %v23598_v13, %v1546_v15 }
  0x8a   : > { %17087 = vmatprep.subr.msk.bf16.mxu0 %vm651_vm0, %v20729_v1  ;;  %20642 = vmatprep.subr.msk.bf16.mxu1 %vm651_vm0, %v20731_v2 }
  0x8c   : > { %1297 = vmatpush1.bf16.msra.mxu0 %v1274_v4 }
  0x8d   : > { %20331 = vmatpush3.bf16.msra.mxu1 %v1292_v5  ;;  %1400 = vmatprep.subr.bf16.mxu0 %v20735_v3 }
  0x8f   : > { %17070 = vmatmul.mubr.msk.bf16.gmra.mrb[12].mxu0 %vm644_vm2, %v23512_v16  ;;  %17092 = vmatmul.mubr.msk.bf16.gmra.mrb[4].mxu1 %vm644_vm2, %v1200_v59  ;;  %v1543_v16 = vrot.slane %v23598_v13, %v1542_v14 }
  0x90   : > { %1326 = vmatprep.mubr.bf16.mxu0 %v23331_v0  ;;  %20332 = vmatprep.mubr.msk.bf16.mxu1 %vm644_vm2, %v1201_v63 }
  0x97   : > { %17088 = vmatmul.mubr.msk.bf16.vlgmr.msra.gmra.mrb[0].mxu0 %vm644_vm2, %v1201_v63  ;;  %20333 = vmatmul.mubr.msk.bf16.vlgmr.msra.gmra.mrb[8].mxu1 %vm644_vm2, %v1200_v59 }
  0x98   : > { %1401 = vmatpush1.bf16.msra.mxu0 %v20733_v6  ;;  %1336 = vmatprep.mubr.bf16.mxu0 %v23331_v0 }
  0x99   : > { %17093 = vmatprep.subr.msk.bf16.mxu0 %vm651_vm0, %v20736_v7  ;;  %1702 = vmatprep.mubr.bf16.mxu1 %v23331_v0 }
  0x9c   : > { %1403 = vmatpush1.bf16.msra.mxu0 %v1286_v9 }
  0x9d   : > { %20336 = vmatprep.subr.bf16.mxu0 %v23332_v10 }
  0x9f   : > { %17089 = vmatmul.mubr.msk.bf16.gmra.mrb[4].mxu0 %vm644_vm2, %v1200_v59 }
  0xa0   : > { %1432 = vmatprep.mubr.bf16.mxu0 %v23331_v0 }
  0xa7   : > { %17094 = vmatmul.mubr.msk.bf16.vlgmr.msra.gmra.mrb[8].mxu0 %vm644_vm2, %v1201_v63 }
  0xa8   : > { %1442 = vmatprep.mubr.bf16.mxu0 %v23331_v0 }
  0xaf   : > { %17095 = vmatmul.mubr.msk.bf16.gmra.mrb[12].mxu0 %vm644_vm2, %v1200_v59 }
  0xb0   : > { %20340 = vmatprep.mubr.msk.bf16.mxu0 %vm23333_vm3, %v23332_v10 }
 0x15a   : > { %v1381_v18 = vpop.f32.mrb[0].mxu1 }
 0x15b   : > { %v1569_v19 = vadd.f32 %v1543_v16, %v1381_v18  ;;  %v1383_v20 = vpop.f32.mrb[1].mxu1 }
 0x15c   : > { %v1570_v21 = vadd.f32 %v1547_v17, %v1383_v20  ;;  %v1385_v22 = vpop.f32.mrb[2].mxu1 }
 0x15d   : > { %v1576_v23 = vadd.f32 %v1543_v16, %v1385_v22  ;;  %v1387_v24 = vpop.f32.mrb[3].mxu1  ;;  %v1597_v26 = vmax.f32 %v1569_v19, 0.0 }
 0x15e   : > { %v1577_v25 = vadd.f32 %v1547_v17, %v1387_v24  ;;  %v1598_v28 = vmax.f32 %v1570_v21, 0.0 }
 0x15f   : > { %v1604_v27 = vmax.f32 %v1576_v23, 0.0 }
 0x160   : > { %v1605_v29 = vmax.f32 %v1577_v25, 0.0  ;;  %v1550_v25 = vsub.s32 4, %v23593_v12 }
 0x161   : > { %v23608_v30 = vpack.c.bf16 %v1604_v27, %v1597_v26 }
 0x162   : > { %v23610_v31 = vpack.c.bf16 %v1605_v29, %v1598_v28  ;;  %v1391_v32 = vpop.f32.mrb[4].mxu1  ;;  %v1554_v28 = vsub.s32 5, %v23593_v12 }
 0x163   : > { %v1583_v33 = vadd.f32 %v1543_v16, %v1391_v32  ;;  %v1393_v34 = vpop.f32.mrb[5].mxu1 }
 0x164   : > { %v1584_v37 = vadd.f32 %v1547_v17, %v1393_v34  ;;  %v1395_v38 = vpop.f32.mrb[6].mxu1 }
 0x165   : > { %v1590_v40 = vadd.f32 %v1543_v16, %v1395_v38  ;;  %v1397_v41 = vpop.f32.mrb[7].mxu1  ;;  %v1611_v43 = vmax.f32 %v1583_v33, 0.0  ;;  %v23644_v33 = vld [vmem:[%s28236_s3] sm:$0xff]  }
 0x166   : > { %v1591_v42 = vadd.f32 %v1547_v17, %v1397_v41  ;;  %v1612_v47 = vmax.f32 %v1584_v37, 0.0  ;;  %v1551_v41 = vrot.slane %v23598_v13, %v1550_v25 }
 0x167   : > { %v1618_v44 = vmax.f32 %v1590_v40, 0.0 }
 0x168   : > { %v1619_v48 = vmax.f32 %v1591_v42, 0.0 }
 0x169   : > { %v23625_v50 = vpack.c.bf16 %v1618_v44, %v1611_v43  ;;  %v1555_v44 = vrot.slane %v23598_v13, %v1554_v28 }
 0x16a   : > { %v23627_v51 = vpack.c.bf16 %v1619_v48, %v1612_v47  ;;  %v1328_v52 = vpop.f32.mrb[0].mxu0  ;;  %v20334_v53 = vpop.f32.mrb[8].mxu1 }
 0x16b   : > { %v1567_v54 = vadd.f32 %v1535_v45, %v1328_v52  ;;  %v1587_v55 = vadd.f32 %v20334_v53, %v1559_v46  ;;  %v1330_v56 = vpop.f32.mrb[1].mxu0  ;;  %v1487_v57 = vpop.f32.mrb[9].mxu1 }
 0x16c   : > { %v1568_v58 = vadd.f32 %v1539_v49, %v1330_v56  ;;  %v1573_v59 = vadd.f32 %v1559_v46, %v1487_v57  ;;  %v1332_v60 = vpop.f32.mrb[2].mxu0  ;;  %v20335_v61 = vpop.f32.mrb[10].mxu1  ;;  %v23670_v56 = vld [vmem:[%s28236_s3 + $0x8] sm:$0xff]  }
 0x16d   : > { %v1574_v62 = vadd.f32 %v1535_v45, %v1332_v60  ;;  %v1594_v63 = vadd.f32 %v20335_v61, %v1559_v46  ;;  %v1334_v1 = vpop.f32.mrb[3].mxu0  ;;  %v1490_v2 = vpop.f32.mrb[11].mxu1  ;;  %v1595_v3 = vmax.f32 %v1567_v54, 0.0  ;;  %v1615_v4 = vmax.f32 %v1587_v55, 0.0 }
 0x16e   : > { %v1575_v5 = vadd.f32 %v1539_v49, %v1334_v1  ;;  %v1580_v6 = vadd.f32 %v1559_v46, %v1490_v2  ;;  %v1596_v7 = vmax.f32 %v1568_v58, 0.0  ;;  %v1601_v11 = vmax.f32 %v1573_v59, 0.0 }
 0x16f   : > { %v1602_v8 = vmax.f32 %v1574_v62, 0.0  ;;  %v1622_v9 = vmax.f32 %v1594_v63, 0.0  ;;  %v1656_v60 = vsel %vm1648_vm4, %v23625_v50, 0 }
 0x170   : > { %v1603_v16 = vmax.f32 %v1575_v5, 0.0  ;;  %v1608_v17 = vmax.f32 %v1580_v6, 0.0 }
 0x171   : > { %v23629_v18 = vpack.c.bf16 %v1602_v8, %v1595_v3  ;;  %v1636_v19 = vpack.c.bf16 %v1622_v9, %v1615_v4  ;;  %v20744_v9 = vld [vmem:[#allocation4 + $0x8] ss:$16 sps:$4 sm:$0xff]  }
 0x172   : > { %v23631_v20 = vpack.c.bf16 %v1603_v16, %v1596_v7  ;;  %v23633_v21 = vpack.c.bf16 %v1608_v17, %v1601_v11  ;;  %v1338_v22 = vpop.f32.mrb[4].mxu0  ;;  %v20752_v16 = vld [vmem:[#allocation4 + $0x2c] ss:$16 sps:$4 sm:$0xff]  }
 0x173   : > { %v1581_v23 = vadd.f32 %v1535_v45, %v1338_v22  ;;  %v1340_v24 = vpop.f32.mrb[5].mxu0  ;;  %v1668_v40 = vsel %vm1648_vm4, %v1636_v19, 0  ;;  %v20750_v22 = vld [vmem:[#allocation4 + $0x28] ss:$16 sps:$4 sm:$0xff]  }
 0x174   : > { %v1582_v26 = vadd.f32 %v1539_v49, %v1340_v24  ;;  %v1342_v27 = vpop.f32.mrb[6].mxu0  ;;  %1670 = vmatprep.subr.bf16.mxu1 %v23631_v20  ;;  %20337 = vmatpush3.bf16.msra.mxu0 %v23633_v21  ;;  %v20758_v24 = vld [vmem:[#allocation4 + $0x4c] ss:$16 sps:$4 sm:$0xff]  }
 0x175   : > { %v1588_v29 = vadd.f32 %v1535_v45, %v1342_v27  ;;  %v1344_v32 = vpop.f32.mrb[7].mxu0  ;;  %1671 = vmatpush1.bf16.msra.mxu1 %v23629_v18  ;;  %20338 = vmatprep.subr.bf16.mxu0 %v23332_v10  ;;  %v1609_v37 = vmax.f32 %v1581_v23, 0.0  ;;  %v20764_v27 = vld [vmem:[#allocation4 + $0x6c] ss:$16 sps:$4 sm:$0xff]  }
 0x176   : > { %v1589_v34 = vadd.f32 %v1539_v49, %v1344_v32  ;;  %v1610_v42 = vmax.f32 %v1582_v26, 0.0  ;;  %v20756_v26 = vld [vmem:[#allocation4 + $0x48] ss:$16 sps:$4 sm:$0xff]   ;;  %v20770_v32 = vld [vmem:[#allocation4 + $0x8c] ss:$16 sps:$4 sm:$0xff]  }
 0x177   : > { %v1616_v38 = vmax.f32 %v1588_v29, 0.0  ;;  %v20762_v29 = vld [vmem:[#allocation4 + $0x68] ss:$16 sps:$4 sm:$0xff]  }
 0x178   : > { %v1617_v43 = vmax.f32 %v1589_v34, 0.0  ;;  %20339 = vmatpush3.bf16.msra.mxu0 %v1668_v40  ;;  %v20776_v34 = vld [vmem:[#allocation4 + $0xac] ss:$16 sps:$4 sm:$0xff]  }
 0x179   : > { %v1630_v45 = vpack.c.bf16 %v1616_v38, %v1609_v37  ;;  %1894 = vmatprep.subr.bf16.mxu0 %v23610_v31  ;;  %v20741_v37 = vld [vmem:[#allocation4] ss:$16 sps:$4 sm:$0xff]   ;;  %v20782_v38 = vld [vmem:[#allocation4 + $0xcc] ss:$16 sps:$4 sm:$0xff]  }
 0x17a   : > { %v23654_v46 = vpack.c.bf16 %v1617_v43, %v1610_v42  ;;  %v1434_v47 = vpop.f32.mrb[8].mxu0  ;;  %v20747_v42 = vld [vmem:[#allocation4 + $0x20] ss:$16 sps:$4 sm:$0xff]   ;;  %v20788_v43 = vld [vmem:[#allocation4 + $0xec] ss:$16 sps:$4 sm:$0xff]  }
 0x17b   : > { %v1571_v48 = vadd.f32 %v1551_v41, %v1434_v47  ;;  %v1436_v49 = vpop.f32.mrb[9].mxu0  ;;  %20341 = vmatmul.mubr.msk.bf16.vlgmr.msra.gmra.mrb[16].mxu0 %vm1644_vm5, %v23644_v33  ;;  %v23659_v52 = vsel %vm1648_vm4, %v1630_v45, 0  ;;  %v20786_v45 = vld [vmem:[#allocation4 + $0xe8] ss:$16 sps:$4 sm:$0xff]   ;;  %v20761_v47 = vld [vmem:[#allocation4 + $0x64] ss:$16 sps:$4 sm:$0xff]  }
 0x17c   : > { %v1572_v53 = vadd.f32 %v1555_v44, %v1436_v49  ;;  %v1438_v54 = vpop.f32.mrb[10].mxu0  ;;  %17099 = vmatprep.subr.msk.bf16.mxu1 %vm1648_vm4, %v23654_v46  ;;  %1895 = vmatpush1.bf16.msra.mxu0 %v23608_v30  ;;  %v20767_v49 = vld [vmem:[#allocation4 + $0x84] ss:$16 sps:$4 sm:$0xff]  }
 0x17d   : > { %v1578_v13 = vadd.f32 %v1551_v41, %v1438_v54  ;;  %v1440_v55 = vpop.f32.mrb[11].mxu0  ;;  %1673 = vmatpush1.bf16.msra.mxu1 %v23659_v52  ;;  %17111 = vmatprep.subr.msk.bf16.mxu0 %vm1648_vm4, %v23627_v51  ;;  %v1599_v58 = vmax.f32 %v1571_v48, 0.0  ;;  %v20759_v48 = vld [vmem:[#allocation4 + $0x60] ss:$16 sps:$4 sm:$0xff]  }
 0x17e   : > { %v1579_v57 = vadd.f32 %v1555_v44, %v1440_v55  ;;  %1713 = vmatprep.subr.bf16.mxu1 %v23610_v31  ;;  %1926 = vmatprep.mubr.bf16.mxu0 %v23331_v0  ;;  %v1600_v61 = vmax.f32 %v1572_v53, 0.0  ;;  %v20773_v53 = vld [vmem:[#allocation4 + $0xa4] ss:$16 sps:$4 sm:$0xff]   ;;  %v20771_v54 = vld [vmem:[#allocation4 + $0xa0] ss:$16 sps:$4 sm:$0xff]  }
 0x17f   : > { %v1606_v59 = vmax.f32 %v1578_v13, 0.0  ;;  %v20779_v13 = vld [vmem:[#allocation4 + $0xc4] ss:$16 sps:$4 sm:$0xff]   ;;  %v20777_v55 = vld [vmem:[#allocation4 + $0xc0] ss:$16 sps:$4 sm:$0xff]  }
 0x180   : > { %v1607_v62 = vmax.f32 %v1579_v57, 0.0  ;;  %17100 = vmatmul.mubr.msk.bf16.vlgmr.msra.gmra.mrb[12].mxu1 %vm1644_vm5, %v23644_v33  ;;  %1897 = vmatpush1.bf16.msra.mxu0 %v1656_v60  ;;  %v20783_v57 = vld [vmem:[#allocation4 + $0xe0] ss:$16 sps:$4 sm:$0xff]  }
 0x181   : > { %v1627_v63 = vpack.c.bf16 %v1606_v59, %v1599_v58  ;;  %1714 = vmatpush1.bf16.msra.mxu1 %v23608_v30  ;;  %20344 = vmatprep.subr.bf16.mxu0 %v23332_v10  ;;  %v20746_v30 = vld [vmem:[#allocation4 + $0xc] ss:$16 sps:$4 sm:$0xff]   ;;  %v20791_v58 = vld [vmem:[#allocation4 + $0x104] ss:$16 sps:$4 sm:$0xff]  }
 0x182   : > { %v1628_v1 = vpack.c.bf16 %v1607_v62, %v1600_v61  ;;  %v1444_v31 = vpop.f32.mrb[12].mxu0  ;;  %17101 = vmatprep.subr.msk.bf16.mxu1 %vm1648_vm4, %v23627_v51  ;;  %1745 = vmatprep.mubr.bf16.mxu1 %v23331_v0  ;;  %v20794_v59 = vld [vmem:[#allocation4 + $0x10c] ss:$16 sps:$4 sm:$0xff]   ;;  %v20792_v61 = vld [vmem:[#allocation4 + $0x108] ss:$16 sps:$4 sm:$0xff]  }
 0x183   : > { %v1585_v2 = vadd.f32 %v1551_v41, %v1444_v31  ;;  %v1446_v50 = vpop.f32.mrb[13].mxu0  ;;  %17112 = vmatmul.mubr.msk.bf16.vlgmr.msra.gmra.mrb[20].mxu0 %vm1644_vm5, %v23670_v56  ;;  %v20797_v62 = vld [vmem:[#allocation4 + $0x124] ss:$16 sps:$4 sm:$0xff]   ;;  %v20798_v31 = vld [vmem:[#allocation4 + $0x128] ss:$16 sps:$4 sm:$0xff]  }
 0x184   : > { %v1586_v3 = vadd.f32 %v1555_v44, %v1446_v50  ;;  %v1448_v4 = vpop.f32.mrb[14].mxu0  ;;  %20345 = vmatpush3.bf16.msra.mxu0 %v23633_v21  ;;  %20348 = vmatprep.mubr.msk.bf16.mxu0 %vm23333_vm3, %v23332_v10  ;;  %v20806_v50 = vld [vmem:[#allocation4 + $0x14c] ss:$16 sps:$4 sm:$0xff]  }
 0x185   : > { %v1592_v5 = vadd.f32 %v1551_v41, %v1448_v4  ;;  %v1450_v6 = vpop.f32.mrb[15].mxu0  ;;  %1716 = vmatpush1.bf16.msra.mxu1 %v1656_v60  ;;  %20346 = vmatprep.subr.bf16.mxu0 %v23332_v10  ;;  %v1613_v51 = vmax.f32 %v1585_v2, 0.0  ;;  %v20780_v41 = vld [vmem:[#allocation4 + $0xc8] ss:$16 sps:$4 sm:$0xff]   ;;  %v20789_v60 = vld [vmem:[#allocation4 + $0x100] ss:$16 sps:$4 sm:$0xff]  }
 0x186   : > { %v1614_v7 = vmax.f32 %v1586_v3, 0.0  ;;  %v1593_v8 = vadd.f32 %v1555_v44, %v1450_v6  ;;  %1756 = vmatprep.subr.bf16.mxu1 %v1628_v1  ;;  %v20755_v44 = vld [vmem:[#allocation4 + $0x44] ss:$16 sps:$4 sm:$0xff]   ;;  %v20801_v3 = vld [vmem:[#allocation4 + $0x140] ss:$16 sps:$4 sm:$0xff]  }
 0x187   : > { %v1620_v11 = vmax.f32 %v1592_v5, 0.0  ;;  %v20803_v2 = vld [vmem:[#allocation4 + $0x144] ss:$16 sps:$4 sm:$0xff]   ;;  %v20804_v4 = vld [vmem:[#allocation4 + $0x148] ss:$16 sps:$4 sm:$0xff]  }
 0x188   : > { %v1621_v17 = vmax.f32 %v1593_v8, 0.0  ;;  %17102 = vmatmul.mubr.msk.bf16.vlgmr.msra.gmra.mrb[16].mxu1 %vm1644_vm5, %v23644_v33  ;;  %20347 = vmatpush3.bf16.msra.mxu0 %v1668_v40  ;;  %v20749_v40 = vld [vmem:[#allocation4 + $0x24] ss:$16 sps:$4 sm:$0xff]   ;;  %v20812_v5 = vld [vmem:[#allocation4 + $0x16c] ss:$16 sps:$4 sm:$0xff]  }
 0x189   : > { %v1634_v19 = vpack.c.bf16 %v1620_v11, %v1613_v51  ;;  %1757 = vmatpush1.bf16.msra.mxu1 %v1627_v63  ;;  %1788 = vmatprep.mubr.bf16.mxu1 %v23331_v0  ;;  %v20807_v6 = vld [vmem:[#allocation4 + $0x160] ss:$16 sps:$4 sm:$0xff]   ;;  %v20810_v51 = vld [vmem:[#allocation4 + $0x168] ss:$16 sps:$4 sm:$0xff]   ;;  %v20818_v8 = vld [vmem:[#allocation4 + $0x18c] ss:$16 sps:$4 sm:$0xff]  }
 0x18a   : > { %v1635_v21 = vpack.c.bf16 %v1621_v17, %v1614_v7  ;;  %3558 = vmatprep.subr.bf16.mxu0 %v20746_v30  ;;  %v20809_v30 = vld [vmem:[#allocation4 + $0x164] ss:$16 sps:$4 sm:$0xff]   ;;  %v20816_v11 = vld [vmem:[#allocation4 + $0x188] ss:$16 sps:$4 sm:$0xff]   ;;  %v20824_v17 = vld [vmem:[#allocation4 + $0x1ac] ss:$16 sps:$4 sm:$0xff]  }
 0x18b   : > { %v1662_v23 = vsel %vm1648_vm4, %v1634_v19, 0  ;;  %20349 = vmatmul.mubr.msk.bf16.vlgmr.msra.gmra.mrb[24].mxu0 %vm1644_vm5, %v23670_v56  ;;  %v20815_v7 = vld [vmem:[#allocation4 + $0x184] ss:$16 sps:$4 sm:$0xff]   ;;  %v20819_v19 = vld [vmem:[#allocation4 + $0x1a0] ss:$16 sps:$4 sm:$0xff]  }
 0x18c   : > { %17103 = vmatprep.subr.msk.bf16.mxu1 %vm1648_vm4, %v1635_v21  ;;  %3559 = vmatpush1.bf16.msra.mxu0 %v20744_v9  ;;  %v20813_v9 = vld [vmem:[#allocation4 + $0x180] ss:$16 sps:$4 sm:$0xff]  }
 0x18d   : > { %1759 = vmatpush1.bf16.msra.mxu1 %v1662_v23  ;;  %3560 = vmatprep.subr.bf16.mxu0 %v20752_v16  ;;  %v20821_v16 = vld [vmem:[#allocation4 + $0x1a4] ss:$16 sps:$4 sm:$0xff]  }
 0x18e   : > { %1851 = vmatprep.subr.bf16.mxu1 %v23631_v20  ;;  %v20768_v20 = vld [vmem:[#allocation4 + $0x88] ss:$16 sps:$4 sm:$0xff]  }
 0x190   : > { %17104 = vmatmul.mubr.msk.bf16.vlgmr.msra.gmra.mrb[20].mxu1 %vm1644_vm5, %v23644_v33  ;;  %3561 = vmatpush1.bf16.msra.mxu0 %v20750_v22  ;;  %v20743_v33 = vld [vmem:[#allocation4 + $0x4] ss:$16 sps:$4 sm:$0xff]  }
 0x191   : > { %1852 = vmatpush1.bf16.msra.mxu1 %v23629_v18  ;;  %1883 = vmatprep.mubr.bf16.mxu1 %v23331_v0  ;;  %v20774_v18 = vld [vmem:[#allocation4 + $0xa8] ss:$16 sps:$4 sm:$0xff]   ;;  %v20827_v22 = vld [vmem:[#allocation4 + $0x1c4] ss:$16 sps:$4 sm:$0xff]  }
 0x192   : > { %17109 = vmatprep.subr.msk.bf16.mxu1 %vm1648_vm4, %v23654_v46  ;;  %3562 = vmatprep.subr.bf16.mxu0 %v20758_v24  ;;  %v20753_v46 = vld [vmem:[#allocation4 + $0x40] ss:$16 sps:$4 sm:$0xff]  }
 0x193   : > { %v20825_v24 = vld [vmem:[#allocation4 + $0x1c0] ss:$16 sps:$4 sm:$0xff]  }
 0x194   : > { %3563 = vmatpush1.bf16.msra.mxu0 %v20756_v26  ;;  %v20828_v26 = vld [vmem:[#allocation4 + $0x1c8] ss:$16 sps:$4 sm:$0xff]  }
 0x195   : > { %1854 = vmatpush1.bf16.msra.mxu1 %v23659_v52  ;;  %3564 = vmatprep.subr.bf16.mxu0 %v20764_v27  ;;  %v20765_v52 = vld [vmem:[#allocation4 + $0x80] ss:$16 sps:$4 sm:$0xff]   ;;  %v20833_v27 = vld [vmem:[#allocation4 + $0x1e4] ss:$16 sps:$4 sm:$0xff]  }
 0x196   : > { %1937 = vmatprep.subr.bf16.mxu1 %v1628_v1  ;;  %v20795_v1 = vld [vmem:[#allocation4 + $0x120] ss:$16 sps:$4 sm:$0xff]  }
 0x198   : > { %17110 = vmatmul.mubr.msk.bf16.vlgmr.msra.gmra.mrb[24].mxu1 %vm1644_vm5, %v23670_v56  ;;  %3565 = vmatpush1.bf16.msra.mxu0 %v20762_v29  ;;  %v20836_v29 = vld [vmem:[#allocation4 + $0x1ec] ss:$16 sps:$4 sm:$0xff]  }
 0x199   : > { %1938 = vmatpush1.bf16.msra.mxu1 %v1627_v63  ;;  %1969 = vmatprep.mubr.bf16.mxu1 %v23331_v0  ;;  %v20800_v63 = vld [vmem:[#allocation4 + $0x12c] ss:$16 sps:$4 sm:$0xff]  }
 0x19a   : > { %17113 = vmatprep.subr.msk.bf16.mxu1 %vm1648_vm4, %v1635_v21  ;;  %3566 = vmatprep.subr.bf16.mxu0 %v20770_v32  ;;  %v20822_v21 = vld [vmem:[#allocation4 + $0x1a8] ss:$16 sps:$4 sm:$0xff]   ;;  %v20831_v32 = vld [vmem:[#allocation4 + $0x1e0] ss:$16 sps:$4 sm:$0xff]  }
 0x19c   : > { %3567 = vmatpush1.bf16.msra.mxu0 %v20768_v20  ;;  %v20834_v20 = vld [vmem:[#allocation4 + $0x1e8] ss:$16 sps:$4 sm:$0xff]  }
 0x19d   : > { %1940 = vmatpush1.bf16.msra.mxu1 %v1662_v23  ;;  %3568 = vmatprep.subr.bf16.mxu0 %v20776_v34  ;;  %v20830_v23 = vld [vmem:[#allocation4 + $0x1cc] ss:$16 sps:$4 sm:$0xff]   ;;  %v20839_v34 = vld [vmem:[#allocation4 + $0x204] ss:$16 sps:$4 sm:$0xff]  }
 0x19e   : > { %3386 = vmatprep.subr.bf16.mxu1 %v20743_v33  ;;  %v20842_v33 = vld [vmem:[#allocation4 + $0x20c] ss:$16 sps:$4 sm:$0xff]  }
 0x1a0   : > { %17114 = vmatmul.mubr.msk.bf16.vlgmr.msra.gmra.mrb[28].mxu1 %vm1644_vm5, %v23670_v56  ;;  %3569 = vmatpush1.bf16.msra.mxu0 %v20774_v18  ;;  %v20785_v56 = vld [vmem:[#allocation4 + $0xe4] ss:$16 sps:$4 sm:$0xff]  }
 0x1a1   : > { %3387 = vmatpush1.bf16.msra.mxu1 %v20741_v37  ;;  %3570 = vmatprep.subr.bf16.mxu0 %v20782_v38 }
 0x1a2   : > { %3388 = vmatprep.subr.bf16.mxu1 %v20749_v40 }
 0x1a4   : > { %3571 = vmatpush1.bf16.msra.mxu0 %v20780_v41 }
 0x1a5   : > { %3389 = vmatpush1.bf16.msra.mxu1 %v20747_v42  ;;  %3572 = vmatprep.subr.bf16.mxu0 %v20788_v43 }
 0x1a6   : > { %3390 = vmatprep.subr.bf16.mxu1 %v20755_v44 }
 0x1a8   : > { %3573 = vmatpush1.bf16.msra.mxu0 %v20786_v45 }
 0x1a9   : > { %3391 = vmatpush1.bf16.msra.mxu1 %v20753_v46  ;;  %3574 = vmatprep.subr.bf16.mxu0 %v20794_v59 }
 0x1aa   : > { %3392 = vmatprep.subr.bf16.mxu1 %v20761_v47 }
 0x1ac   : > { %3575 = vmatpush1.bf16.msra.mxu0 %v20792_v61 }
 0x1ad   : > { %3393 = vmatpush1.bf16.msra.mxu1 %v20759_v48  ;;  %3576 = vmatprep.subr.bf16.mxu0 %v20800_v63 }
 0x1ae   : > { %3394 = vmatprep.subr.bf16.mxu1 %v20767_v49 }
 0x1b0   : > { %3577 = vmatpush1.bf16.msra.mxu0 %v20798_v31 }
 0x1b1   : > { %3395 = vmatpush1.bf16.msra.mxu1 %v20765_v52  ;;  %3578 = vmatprep.subr.bf16.mxu0 %v20806_v50 }
 0x1b2   : > { %3396 = vmatprep.subr.bf16.mxu1 %v20773_v53 }
 0x1b4   : > { %3579 = vmatpush1.bf16.msra.mxu0 %v20804_v4 }
 0x1b5   : > { %3397 = vmatpush1.bf16.msra.mxu1 %v20771_v54  ;;  %3580 = vmatprep.subr.bf16.mxu0 %v20812_v5 }
 0x1b6   : > { %3398 = vmatprep.subr.bf16.mxu1 %v20779_v13 }
 0x1b8   : > { %3581 = vmatpush1.bf16.msra.mxu0 %v20810_v51 }
 0x1b9   : > { %3399 = vmatpush1.bf16.msra.mxu1 %v20777_v55  ;;  %3582 = vmatprep.subr.bf16.mxu0 %v20818_v8 }
 0x1ba   : > { %3400 = vmatprep.subr.bf16.mxu1 %v20785_v56 }
 0x1bc   : > { %3583 = vmatpush1.bf16.msra.mxu0 %v20816_v11 }
 0x1bd   : > { %3401 = vmatpush1.bf16.msra.mxu1 %v20783_v57  ;;  %3584 = vmatprep.subr.bf16.mxu0 %v20824_v17  ;;  %v20837_v17 = vld [vmem:[#allocation4 + $0x200] ss:$16 sps:$4 sm:$0xff]  }
 0x1be   : > { %3402 = vmatprep.subr.bf16.mxu1 %v20791_v58 }
 0x1c0   : > { %3585 = vmatpush1.bf16.msra.mxu0 %v20822_v21 }
 0x1c1   : > { %3403 = vmatpush1.bf16.msra.mxu1 %v20789_v60  ;;  %3586 = vmatprep.subr.bf16.mxu0 %v20830_v23 }
 0x1c2   : > { %3404 = vmatprep.subr.bf16.mxu1 %v20797_v62 }
 0x1c4   : > { %3587 = vmatpush1.bf16.msra.mxu0 %v20828_v26  ;;  %v20848_v26 = vld [vmem:[#allocation4 + $0x22c] ss:$16 sps:$4 sm:$0xff]  }
 0x1c5   : > { %3405 = vmatpush1.bf16.msra.mxu1 %v20795_v1  ;;  %3588 = vmatprep.subr.bf16.mxu0 %v20836_v29 }
 0x1c6   : > { %3406 = vmatprep.subr.bf16.mxu1 %v20803_v2 }
 0x1c8   : > { %3589 = vmatpush1.bf16.msra.mxu0 %v20834_v20  ;;  %v20846_v20 = vld [vmem:[#allocation4 + $0x228] ss:$16 sps:$4 sm:$0xff]  }
 0x1c9   : > { %3407 = vmatpush1.bf16.msra.mxu1 %v20801_v3  ;;  %3601 = vmatprep.subr.bf16.mxu0 %v20842_v33 }
 0x1ca   : > { %3408 = vmatprep.subr.bf16.mxu1 %v20809_v30 }
 0x1cd   : > { %3409 = vmatpush1.bf16.msra.mxu1 %v20807_v6 }
 0x1ce   : > { %3410 = vmatprep.subr.bf16.mxu1 %v20815_v7 }
 0x1d1   : > { %3411 = vmatpush1.bf16.msra.mxu1 %v20813_v9 }
 0x1d2   : > { %3412 = vmatprep.subr.bf16.mxu1 %v20821_v16 }
 0x1d5   : > { %3413 = vmatpush1.bf16.msra.mxu1 %v20819_v19  ;;  %v20840_v19 = vld [vmem:[#allocation4 + $0x208] ss:$16 sps:$4 sm:$0xff]  }
 0x1d6   : > { %3414 = vmatprep.subr.bf16.mxu1 %v20827_v22 }
 0x1d9   : > { %3415 = vmatpush1.bf16.msra.mxu1 %v20825_v24  ;;  %v20845_v24 = vld [vmem:[#allocation4 + $0x224] ss:$16 sps:$4 sm:$0xff]  }
 0x1da   : > { %3416 = vmatprep.subr.bf16.mxu1 %v20833_v27 }
 0x1dd   : > { %3417 = vmatpush1.bf16.msra.mxu1 %v20831_v32  ;;  %v20843_v32 = vld [vmem:[#allocation4 + $0x220] ss:$16 sps:$4 sm:$0xff]  }
 0x1de   : > { %3429 = vmatprep.subr.bf16.mxu1 %v20839_v34 }
 0x24e   : > { %v1833_v18 = vpop.f32.mrb[16].mxu0 }
 0x24f   : > { %v20342_v37 = vpop.f32.mrb[17].mxu0 }
 0x250   : > { %v1836_v38 = vpop.f32.mrb[18].mxu0 }
 0x251   : > { %v20343_v40 = vpop.f32.mrb[19].mxu0 }
 0x252   : > { %v20854_v40 = vld [vmem:[#allocation4 + $0x24c] ss:$16 sps:$4 sm:$0xff]  }
 0x253   : > { %v1704_v41 = vpop.f32.mrb[12].mxu1 }
 0x254   : > { %v1706_v42 = vpop.f32.mrb[13].mxu1 }
 0x255   : > { %v1708_v43 = vpop.f32.mrb[14].mxu1 }
 0x256   : > { %v1710_v44 = vpop.f32.mrb[15].mxu1  ;;  %v1928_v45 = vpop.f32.mrb[20].mxu0 }
 0x257   : > { %v1930_v46 = vpop.f32.mrb[21].mxu0 }
 0x258   : > { %v1932_v47 = vpop.f32.mrb[22].mxu0 }
 0x259   : > { %v1934_v48 = vpop.f32.mrb[23].mxu0 }
 0x25b   : > { %v1747_v49 = vpop.f32.mrb[16].mxu1 }
 0x25c   : > { %v2023_v52 = vmax.f32 %v1747_v49, %v1928_v45  ;;  %v1749_v53 = vpop.f32.mrb[17].mxu1  ;;  %v20858_v49 = vld [vmem:[#allocation4 + $0x268] ss:$16 sps:$4 sm:$0xff]  }
 0x25d   : > { %v2024_v54 = vmax.f32 %v1749_v53, %v1930_v46  ;;  %v1751_v13 = vpop.f32.mrb[18].mxu1  ;;  %v20857_v46 = vld [vmem:[#allocation4 + $0x264] ss:$16 sps:$4 sm:$0xff]   ;;  %v20866_v53 = vld [vmem:[#allocation4 + $0x28c] ss:$16 sps:$4 sm:$0xff]  }
 0x25e   : > { %v2030_v55 = vmax.f32 %v1751_v13, %v1932_v47  ;;  %v1753_v56 = vpop.f32.mrb[19].mxu1  ;;  %v2014_v57 = vpop.f32.mrb[24].mxu0  ;;  %v20860_v47 = vld [vmem:[#allocation4 + $0x26c] ss:$16 sps:$4 sm:$0xff]   ;;  %v20864_v13 = vld [vmem:[#allocation4 + $0x288] ss:$16 sps:$4 sm:$0xff]  }
 0x25f   : > { %v2031_v58 = vmax.f32 %v1753_v56, %v1934_v48  ;;  %v2027_v59 = vmax.f32 %v1833_v18, %v2014_v57  ;;  %v20350_v60 = vpop.f32.mrb[25].mxu0  ;;  %v20855_v48 = vld [vmem:[#allocation4 + $0x260] ss:$16 sps:$4 sm:$0xff]   ;;  %v20872_v56 = vld [vmem:[#allocation4 + $0x2ac] ss:$16 sps:$4 sm:$0xff]  }
 0x260   : > { %v23710_v61 = vpack.c.bf16 %v2030_v55, %v2023_v52  ;;  %v2017_v62 = vpop.f32.mrb[26].mxu0  ;;  %v20863_v52 = vld [vmem:[#allocation4 + $0x284] ss:$16 sps:$4 sm:$0xff]   ;;  %v20867_v57 = vld [vmem:[#allocation4 + $0x2a0] ss:$16 sps:$4 sm:$0xff]  }
 0x261   : > { %v23712_v63 = vpack.c.bf16 %v2031_v58, %v2024_v54  ;;  %v2034_v1 = vmax.f32 %v1836_v38, %v2017_v62  ;;  %v20351_v31 = vpop.f32.mrb[27].mxu0  ;;  %v20851_v38 = vld [vmem:[#allocation4 + $0x244] ss:$16 sps:$4 sm:$0xff]   ;;  %v20861_v54 = vld [vmem:[#allocation4 + $0x280] ss:$16 sps:$4 sm:$0xff]  }
 0x262   : > { %v20869_v55 = vld [vmem:[#allocation4 + $0x2a4] ss:$16 sps:$4 sm:$0xff]   ;;  %v20870_v58 = vld [vmem:[#allocation4 + $0x2a8] ss:$16 sps:$4 sm:$0xff]   ;;  %v20878_v60 = vld [vmem:[#allocation4 + $0x2cc] ss:$16 sps:$4 sm:$0xff]  }
 0x263   : > { %v1790_v2 = vpop.f32.mrb[20].mxu1  ;;  %v23714_v50 = vpack.c.bf16 %v2034_v1, %v2027_v59  ;;  %v20875_v59 = vld [vmem:[#allocation4 + $0x2c4] ss:$16 sps:$4 sm:$0xff]   ;;  %v20873_v62 = vld [vmem:[#allocation4 + $0x2c0] ss:$16 sps:$4 sm:$0xff]  }
 0x264   : > { %v1792_v3 = vpop.f32.mrb[21].mxu1  ;;  %v20876_v1 = vld [vmem:[#allocation4 + $0x2c8] ss:$16 sps:$4 sm:$0xff]   ;;  %v20881_v31 = vld [vmem:[#allocation4 + $0x2e4] ss:$16 sps:$4 sm:$0xff]  }
 0x265   : > { %v1794_v4 = vpop.f32.mrb[22].mxu1 }
 0x266   : > { %v1796_v30 = vpop.f32.mrb[23].mxu1 }
 0x26b   : > { %v1885_v5 = vpop.f32.mrb[24].mxu1 }
 0x26c   : > { %v2021_v6 = vmax.f32 %v1704_v41, %v1885_v5  ;;  %v1887_v51 = vpop.f32.mrb[25].mxu1  ;;  %v20890_v5 = vld [vmem:[#allocation4 + $0x30c] ss:$16 sps:$4 sm:$0xff]  }
 0x26d   : > { %v2022_v7 = vmax.f32 %v1706_v42, %v1887_v51  ;;  %v1889_v8 = vpop.f32.mrb[26].mxu1  ;;  %v20849_v42 = vld [vmem:[#allocation4 + $0x240] ss:$16 sps:$4 sm:$0xff]   ;;  %v20888_v51 = vld [vmem:[#allocation4 + $0x308] ss:$16 sps:$4 sm:$0xff]  }
 0x26e   : > { %v2028_v9 = vmax.f32 %v1708_v43, %v1889_v8  ;;  %v1891_v11 = vpop.f32.mrb[27].mxu1  ;;  %v20852_v43 = vld [vmem:[#allocation4 + $0x248] ss:$16 sps:$4 sm:$0xff]   ;;  %v20896_v8 = vld [vmem:[#allocation4 + $0x32c] ss:$16 sps:$4 sm:$0xff]  }
 0x26f   : > { %v2029_v16 = vmax.f32 %v1710_v44, %v1891_v11  ;;  %v20894_v11 = vld [vmem:[#allocation4 + $0x328] ss:$16 sps:$4 sm:$0xff]  }
 0x270   : > { %v23716_v21 = vpack.c.bf16 %v2028_v9, %v2021_v6  ;;  %v20885_v6 = vld [vmem:[#allocation4 + $0x300] ss:$16 sps:$4 sm:$0xff]  }
 0x271   : > { %v23718_v22 = vpack.c.bf16 %v2029_v16, %v2022_v7  ;;  %v20893_v7 = vld [vmem:[#allocation4 + $0x324] ss:$16 sps:$4 sm:$0xff]   ;;  %v20891_v9 = vld [vmem:[#allocation4 + $0x320] ss:$16 sps:$4 sm:$0xff]  }
 0x272   : > { %v20899_v16 = vld [vmem:[#allocation4 + $0x344] ss:$16 sps:$4 sm:$0xff]  }
 0x273   : > { %v1971_v23 = vpop.f32.mrb[28].mxu1  ;;  %3418 = vmatprep.mubr.bf16.mxu1 %v23718_v22  ;;  %3590 = vmatprep.mubr.bf16.mxu0 %v23718_v22 }
 0x274   : > { %v2025_v27 = vmax.f32 %v1790_v2, %v1971_v23  ;;  %v1973_v29 = vpop.f32.mrb[29].mxu1  ;;  %3419 = vmatmul.mubr.bf16.vlgmr.msra.gmra.mrb[32].mxu1 %v23716_v21  ;;  %3591 = vmatmul.mubr.bf16.vlgmr.msra.gmra.mrb[28].mxu0 %v23716_v21  ;;  %v20884_v2 = vld [vmem:[#allocation4 + $0x2ec] ss:$16 sps:$4 sm:$0xff]   ;;  %v20900_v23 = vld [vmem:[#allocation4 + $0x348] ss:$16 sps:$4 sm:$0xff]  }
 0x275   : > { %v2026_v34 = vmax.f32 %v1792_v3, %v1973_v29  ;;  %3430 = vmatpush1.bf16.msra.mxu1 %v20837_v17  ;;  %3602 = vmatpush1.bf16.msra.mxu0 %v20840_v19  ;;  %v1975_v33 = vpop.f32.mrb[30].mxu1  ;;  %v20879_v3 = vld [vmem:[#allocation4 + $0x2e0] ss:$16 sps:$4 sm:$0xff]   ;;  %v20902_v17 = vld [vmem:[#allocation4 + $0x34c] ss:$16 sps:$4 sm:$0xff]  }
 0x276   : > { %v2032_v18 = vmax.f32 %v1794_v4, %v1975_v33  ;;  %3461 = vmatprep.mubr.bf16.mxu1 %v23712_v63  ;;  %3633 = vmatprep.mubr.bf16.mxu0 %v23712_v63  ;;  %v1977_v37 = vpop.f32.mrb[31].mxu1  ;;  %v20882_v4 = vld [vmem:[#allocation4 + $0x2e8] ss:$16 sps:$4 sm:$0xff]   ;;  %v20897_v19 = vld [vmem:[#allocation4 + $0x340] ss:$16 sps:$4 sm:$0xff]  }
 0x277   : > { %v2033_v41 = vmax.f32 %v1796_v30, %v1977_v37  ;;  %3431 = vmatprep.subr.bf16.mxu1 %v20845_v24  ;;  %3603 = vmatprep.subr.bf16.mxu0 %v20848_v26  ;;  %v20887_v30 = vld [vmem:[#allocation4 + $0x304] ss:$16 sps:$4 sm:$0xff]   ;;  %v20908_v26 = vld [vmem:[#allocation4 + $0x36c] ss:$16 sps:$4 sm:$0xff]   ;;  %v20906_v29 = vld [vmem:[#allocation4 + $0x368] ss:$16 sps:$4 sm:$0xff]  }
 0x278   : > { %v23726_v44 = vpack.c.bf16 %v2032_v18, %v2025_v27  ;;  %v20905_v24 = vld [vmem:[#allocation4 + $0x364] ss:$16 sps:$4 sm:$0xff]   ;;  %v20903_v27 = vld [vmem:[#allocation4 + $0x360] ss:$16 sps:$4 sm:$0xff]   ;;  %v20912_v33 = vld [vmem:[#allocation4 + $0x388] ss:$16 sps:$4 sm:$0xff]  }
 0x279   : > { %v23728_v45 = vpack.c.bf16 %v2033_v41, %v2026_v34  ;;  %3432 = vmatpush1.bf16.msra.mxu1 %v20843_v32  ;;  %3604 = vmatpush1.bf16.msra.mxu0 %v20846_v20  ;;  %v20911_v32 = vld [vmem:[#allocation4 + $0x384] ss:$16 sps:$4 sm:$0xff]   ;;  %v20914_v20 = vld [vmem:[#allocation4 + $0x38c] ss:$16 sps:$4 sm:$0xff]   ;;  %v20909_v34 = vld [vmem:[#allocation4 + $0x380] ss:$16 sps:$4 sm:$0xff]  }
 0x27a   : > { %3433 = vmatprep.subr.bf16.mxu1 %v20851_v38  ;;  %3605 = vmatprep.subr.bf16.mxu0 %v20854_v40  ;;  %v20917_v18 = vld [vmem:[#allocation4 + $0x3a4] ss:$16 sps:$4 sm:$0xff]   ;;  %v20920_v37 = vld [vmem:[#allocation4 + $0x3ac] ss:$16 sps:$4 sm:$0xff]   ;;  %v20915_v38 = vld [vmem:[#allocation4 + $0x3a0] ss:$16 sps:$4 sm:$0xff]  }
 0x27b   : > { %v20918_v40 = vld [vmem:[#allocation4 + $0x3a8] ss:$16 sps:$4 sm:$0xff]   ;;  %v20923_v41 = vld [vmem:[#allocation4 + $0x3c4] ss:$16 sps:$4 sm:$0xff]  }
 0x27d   : > { %3434 = vmatpush1.bf16.msra.mxu1 %v20849_v42  ;;  %3606 = vmatpush1.bf16.msra.mxu0 %v20852_v43  ;;  %v20926_v42 = vld [vmem:[#allocation4 + $0x3cc] ss:$16 sps:$4 sm:$0xff]   ;;  %v20921_v43 = vld [vmem:[#allocation4 + $0x3c0] ss:$16 sps:$4 sm:$0xff]  }
 0x27e   : > { %3435 = vmatprep.subr.bf16.mxu1 %v20857_v46  ;;  %3607 = vmatprep.subr.bf16.mxu0 %v20860_v47  ;;  %v20924_v46 = vld [vmem:[#allocation4 + $0x3c8] ss:$16 sps:$4 sm:$0xff]   ;;  %v20929_v47 = vld [vmem:[#allocation4 + $0x3e4] ss:$16 sps:$4 sm:$0xff]  }
 0x281   : > { %3436 = vmatpush1.bf16.msra.mxu1 %v20855_v48  ;;  %3608 = vmatpush1.bf16.msra.mxu0 %v20858_v49  ;;  %v20932_v48 = vld [vmem:[#allocation4 + $0x3ec] ss:$16 sps:$4 sm:$0xff]   ;;  %v20927_v49 = vld [vmem:[#allocation4 + $0x3e0] ss:$16 sps:$4 sm:$0xff]  }
 0x282   : > { %3437 = vmatprep.subr.bf16.mxu1 %v20863_v52  ;;  %3609 = vmatprep.subr.bf16.mxu0 %v20866_v53  ;;  %v20930_v52 = vld [vmem:[#allocation4 + $0x3e8] ss:$16 sps:$4 sm:$0xff]   ;;  %v20935_v53 = vld [vmem:[#allocation4 + $0x404] ss:$16 sps:$4 sm:$0xff]  }
 0x285   : > { %3438 = vmatpush1.bf16.msra.mxu1 %v20861_v54  ;;  %3610 = vmatpush1.bf16.msra.mxu0 %v20864_v13  ;;  %v20938_v54 = vld [vmem:[#allocation4 + $0x40c] ss:$16 sps:$4 sm:$0xff]   ;;  %v20933_v13 = vld [vmem:[#allocation4 + $0x400] ss:$16 sps:$4 sm:$0xff]  }
 0x286   : > { %3439 = vmatprep.subr.bf16.mxu1 %v20869_v55  ;;  %3611 = vmatprep.subr.bf16.mxu0 %v20872_v56  ;;  %v20936_v55 = vld [vmem:[#allocation4 + $0x408] ss:$16 sps:$4 sm:$0xff]   ;;  %v20939_v56 = vld [vmem:[#allocation4 + $0x420] ss:$16 sps:$4 sm:$0xff]  }
 0x289   : > { %3440 = vmatpush1.bf16.msra.mxu1 %v20867_v57  ;;  %3612 = vmatpush1.bf16.msra.mxu0 %v20870_v58  ;;  %v20941_v57 = vld [vmem:[#allocation4 + $0x424] ss:$16 sps:$4 sm:$0xff]   ;;  %v20944_v58 = vld [vmem:[#allocation4 + $0x42c] ss:$16 sps:$4 sm:$0xff]  }
 0x28a   : > { %3441 = vmatprep.subr.bf16.mxu1 %v20875_v59  ;;  %3613 = vmatprep.subr.bf16.mxu0 %v20878_v60  ;;  %v20942_v59 = vld [vmem:[#allocation4 + $0x428] ss:$16 sps:$4 sm:$0xff]   ;;  %v20947_v60 = vld [vmem:[#allocation4 + $0x444] ss:$16 sps:$4 sm:$0xff]  }
 0x28d   : > { %3442 = vmatpush1.bf16.msra.mxu1 %v20873_v62  ;;  %3614 = vmatpush1.bf16.msra.mxu0 %v20876_v1  ;;  %v20950_v62 = vld [vmem:[#allocation4 + $0x44c] ss:$16 sps:$4 sm:$0xff]   ;;  %v20945_v1 = vld [vmem:[#allocation4 + $0x440] ss:$16 sps:$4 sm:$0xff]  }
 0x28e   : > { %3443 = vmatprep.subr.bf16.mxu1 %v20881_v31  ;;  %3615 = vmatprep.subr.bf16.mxu0 %v20884_v2  ;;  %v20948_v31 = vld [vmem:[#allocation4 + $0x448] ss:$16 sps:$4 sm:$0xff]   ;;  %v20953_v2 = vld [vmem:[#allocation4 + $0x464] ss:$16 sps:$4 sm:$0xff]  }
 0x291   : > { %3444 = vmatpush1.bf16.msra.mxu1 %v20879_v3  ;;  %3616 = vmatpush1.bf16.msra.mxu0 %v20882_v4  ;;  %v20951_v3 = vld [vmem:[#allocation4 + $0x460] ss:$16 sps:$4 sm:$0xff]   ;;  %v20956_v4 = vld [vmem:[#allocation4 + $0x46c] ss:$16 sps:$4 sm:$0xff]  }
 0x292   : > { %3445 = vmatprep.subr.bf16.mxu1 %v20887_v30  ;;  %3617 = vmatprep.subr.bf16.mxu0 %v20890_v5  ;;  %v20954_v30 = vld [vmem:[#allocation4 + $0x468] ss:$16 sps:$4 sm:$0xff]   ;;  %v20959_v5 = vld [vmem:[#allocation4 + $0x484] ss:$16 sps:$4 sm:$0xff]  }
 0x295   : > { %3446 = vmatpush1.bf16.msra.mxu1 %v20885_v6  ;;  %3618 = vmatpush1.bf16.msra.mxu0 %v20888_v51  ;;  %v20957_v6 = vld [vmem:[#allocation4 + $0x480] ss:$16 sps:$4 sm:$0xff]   ;;  %v20962_v51 = vld [vmem:[#allocation4 + $0x48c] ss:$16 sps:$4 sm:$0xff]  }
 0x296   : > { %3447 = vmatprep.subr.bf16.mxu1 %v20893_v7  ;;  %3619 = vmatprep.subr.bf16.mxu0 %v20896_v8  ;;  %v20960_v7 = vld [vmem:[#allocation4 + $0x488] ss:$16 sps:$4 sm:$0xff]   ;;  %v20965_v8 = vld [vmem:[#allocation4 + $0x4a4] ss:$16 sps:$4 sm:$0xff]  }
 0x299   : > { %3448 = vmatpush1.bf16.msra.mxu1 %v20891_v9  ;;  %3620 = vmatpush1.bf16.msra.mxu0 %v20894_v11  ;;  %v20963_v9 = vld [vmem:[#allocation4 + $0x4a0] ss:$16 sps:$4 sm:$0xff]   ;;  %v20968_v11 = vld [vmem:[#allocation4 + $0x4ac] ss:$16 sps:$4 sm:$0xff]  }
 0x29a   : > { %3449 = vmatprep.subr.bf16.mxu1 %v20899_v16  ;;  %3621 = vmatprep.subr.bf16.mxu0 %v20902_v17  ;;  %v20966_v16 = vld [vmem:[#allocation4 + $0x4a8] ss:$16 sps:$4 sm:$0xff]   ;;  %v20971_v17 = vld [vmem:[#allocation4 + $0x4c4] ss:$16 sps:$4 sm:$0xff]  }
 0x29d   : > { %3450 = vmatpush1.bf16.msra.mxu1 %v20897_v19  ;;  %3622 = vmatpush1.bf16.msra.mxu0 %v20900_v23  ;;  %v20969_v19 = vld [vmem:[#allocation4 + $0x4c0] ss:$16 sps:$4 sm:$0xff]   ;;  %v20974_v23 = vld [vmem:[#allocation4 + $0x4cc] ss:$16 sps:$4 sm:$0xff]  }
 0x29e   : > { %3451 = vmatprep.subr.bf16.mxu1 %v20905_v24  ;;  %3623 = vmatprep.subr.bf16.mxu0 %v20908_v26  ;;  %v20972_v24 = vld [vmem:[#allocation4 + $0x4c8] ss:$16 sps:$4 sm:$0xff]   ;;  %v20977_v26 = vld [vmem:[#allocation4 + $0x4e4] ss:$16 sps:$4 sm:$0xff]  }
 0x2a1   : > { %3452 = vmatpush1.bf16.msra.mxu1 %v20903_v27  ;;  %3624 = vmatpush1.bf16.msra.mxu0 %v20906_v29  ;;  %v20975_v27 = vld [vmem:[#allocation4 + $0x4e0] ss:$16 sps:$4 sm:$0xff]   ;;  %v20980_v29 = vld [vmem:[#allocation4 + $0x4ec] ss:$16 sps:$4 sm:$0xff]  }
 0x2a2   : > { %3453 = vmatprep.subr.bf16.mxu1 %v20911_v32  ;;  %3625 = vmatprep.subr.bf16.mxu0 %v20914_v20  ;;  %v20978_v32 = vld [vmem:[#allocation4 + $0x4e8] ss:$16 sps:$4 sm:$0xff]   ;;  %v20983_v20 = vld [vmem:[#allocation4 + $0x504] ss:$16 sps:$4 sm:$0xff]  }
 0x2a5   : > { %3454 = vmatpush1.bf16.msra.mxu1 %v20909_v34  ;;  %3626 = vmatpush1.bf16.msra.mxu0 %v20912_v33  ;;  %v20981_v34 = vld [vmem:[#allocation4 + $0x500] ss:$16 sps:$4 sm:$0xff]   ;;  %v20986_v33 = vld [vmem:[#allocation4 + $0x50c] ss:$16 sps:$4 sm:$0xff]  }
 0x2a6   : > { %3455 = vmatprep.subr.bf16.mxu1 %v20917_v18  ;;  %3627 = vmatprep.subr.bf16.mxu0 %v20920_v37  ;;  %v20984_v18 = vld [vmem:[#allocation4 + $0x508] ss:$16 sps:$4 sm:$0xff]   ;;  %v20989_v37 = vld [vmem:[#allocation4 + $0x524] ss:$16 sps:$4 sm:$0xff]  }
 0x2a9   : > { %3456 = vmatpush1.bf16.msra.mxu1 %v20915_v38  ;;  %3628 = vmatpush1.bf16.msra.mxu0 %v20918_v40  ;;  %v20987_v38 = vld [vmem:[#allocation4 + $0x520] ss:$16 sps:$4 sm:$0xff]   ;;  %v20992_v40 = vld [vmem:[#allocation4 + $0x52c] ss:$16 sps:$4 sm:$0xff]  }
 0x2aa   : > { %3457 = vmatprep.subr.bf16.mxu1 %v20923_v41  ;;  %3629 = vmatprep.subr.bf16.mxu0 %v20926_v42  ;;  %v20990_v41 = vld [vmem:[#allocation4 + $0x528] ss:$16 sps:$4 sm:$0xff]   ;;  %v20995_v42 = vld [vmem:[#allocation4 + $0x544] ss:$16 sps:$4 sm:$0xff]  }
 0x2ad   : > { %3458 = vmatpush1.bf16.msra.mxu1 %v20921_v43  ;;  %3630 = vmatpush1.bf16.msra.mxu0 %v20924_v46  ;;  %v20993_v43 = vld [vmem:[#allocation4 + $0x540] ss:$16 sps:$4 sm:$0xff]   ;;  %v20998_v46 = vld [vmem:[#allocation4 + $0x54c] ss:$16 sps:$4 sm:$0xff]  }
 0x2ae   : > { %3459 = vmatprep.subr.bf16.mxu1 %v20929_v47  ;;  %3631 = vmatprep.subr.bf16.mxu0 %v20932_v48  ;;  %v20996_v47 = vld [vmem:[#allocation4 + $0x548] ss:$16 sps:$4 sm:$0xff]   ;;  %v21001_v48 = vld [vmem:[#allocation4 + $0x564] ss:$16 sps:$4 sm:$0xff]  }
 0x2b1   : > { %3460 = vmatpush1.bf16.msra.mxu1 %v20927_v49  ;;  %3632 = vmatpush1.bf16.msra.mxu0 %v20930_v52  ;;  %v20999_v49 = vld [vmem:[#allocation4 + $0x560] ss:$16 sps:$4 sm:$0xff]   ;;  %v21004_v52 = vld [vmem:[#allocation4 + $0x56c] ss:$16 sps:$4 sm:$0xff]  }
 0x2b2   : > { %3472 = vmatprep.subr.bf16.mxu1 %v20935_v53  ;;  %3644 = vmatprep.subr.bf16.mxu0 %v20938_v54  ;;  %v21002_v53 = vld [vmem:[#allocation4 + $0x568] ss:$16 sps:$4 sm:$0xff]   ;;  %v21007_v54 = vld [vmem:[#allocation4 + $0x584] ss:$16 sps:$4 sm:$0xff]  }
 0x2b4   : > { %3462 = vmatmul.mubr.bf16.vlgmr.msra.gmra.mrb[32].mxu1 %v23710_v61  ;;  %3634 = vmatmul.mubr.bf16.vlgmr.msra.gmra.mrb[28].mxu0 %v23710_v61 }
 0x2b5   : > { %3473 = vmatpush1.bf16.msra.mxu1 %v20933_v13  ;;  %3504 = vmatprep.mubr.bf16.mxu1 %v23728_v45  ;;  %v21005_v13 = vld [vmem:[#allocation4 + $0x580] ss:$16 sps:$4 sm:$0xff]  }
 0x2b6   : > { %3645 = vmatpush1.bf16.msra.mxu0 %v20936_v55  ;;  %3676 = vmatprep.mubr.bf16.mxu0 %v23728_v45  ;;  %v21010_v55 = vld [vmem:[#allocation4 + $0x58c] ss:$16 sps:$4 sm:$0xff]  }
 0x2b7   : > { %3474 = vmatprep.subr.bf16.mxu1 %v20941_v57  ;;  %3646 = vmatprep.subr.bf16.mxu0 %v20944_v58  ;;  %v21013_v57 = vld [vmem:[#allocation4 + $0x5a4] ss:$16 sps:$4 sm:$0xff]   ;;  %v21011_v58 = vld [vmem:[#allocation4 + $0x5a0] ss:$16 sps:$4 sm:$0xff]  }
 0x2b9   : > { %3475 = vmatpush1.bf16.msra.mxu1 %v20939_v56  ;;  %v21008_v56 = vld [vmem:[#allocation4 + $0x588] ss:$16 sps:$4 sm:$0xff]  }
 0x2ba   : > { %3647 = vmatpush1.bf16.msra.mxu0 %v20942_v59  ;;  %3476 = vmatprep.subr.bf16.mxu1 %v20947_v60  ;;  %v21016_v59 = vld [vmem:[#allocation4 + $0x5ac] ss:$16 sps:$4 sm:$0xff]   ;;  %v21014_v60 = vld [vmem:[#allocation4 + $0x5a8] ss:$16 sps:$4 sm:$0xff]  }
 0x2bb   : > { %3648 = vmatprep.subr.bf16.mxu0 %v20950_v62  ;;  %v21019_v62 = vld [vmem:[#allocation4 + $0x5c4] ss:$16 sps:$4 sm:$0xff]  }
 0x2bd   : > { %3477 = vmatpush1.bf16.msra.mxu1 %v20945_v1  ;;  %v21017_v1 = vld [vmem:[#allocation4 + $0x5c0] ss:$16 sps:$4 sm:$0xff]  }
 0x2be   : > { %3649 = vmatpush1.bf16.msra.mxu0 %v20948_v31  ;;  %3478 = vmatprep.subr.bf16.mxu1 %v20953_v2  ;;  %v21022_v31 = vld [vmem:[#allocation4 + $0x5cc] ss:$16 sps:$4 sm:$0xff]   ;;  %v21020_v2 = vld [vmem:[#allocation4 + $0x5c8] ss:$16 sps:$4 sm:$0xff]  }
 0x2bf   : > { %3650 = vmatprep.subr.bf16.mxu0 %v20956_v4  ;;  %v21023_v4 = vld [vmem:[#allocation4 + $0x5e0] ss:$16 sps:$4 sm:$0xff]  }
 0x2c1   : > { %3479 = vmatpush1.bf16.msra.mxu1 %v20951_v3  ;;  %v21025_v3 = vld [vmem:[#allocation4 + $0x5e4] ss:$16 sps:$4 sm:$0xff]  }
 0x2c2   : > { %3651 = vmatpush1.bf16.msra.mxu0 %v20954_v30  ;;  %3480 = vmatprep.subr.bf16.mxu1 %v20959_v5  ;;  %v21028_v30 = vld [vmem:[#allocation4 + $0x5ec] ss:$16 sps:$4 sm:$0xff]   ;;  %v21026_v5 = vld [vmem:[#allocation4 + $0x5e8] ss:$16 sps:$4 sm:$0xff]  }
 0x2c3   : > { %3652 = vmatprep.subr.bf16.mxu0 %v20962_v51  ;;  %v21034_v51 = vld [vmem:[#allocation4 + $0x70c] ss:$16 sps:$4 sm:$0xff]  }
 0x2c5   : > { %3481 = vmatpush1.bf16.msra.mxu1 %v20957_v6  ;;  %v21031_v6 = vld [vmem:[#allocation4 + $0x604] ss:$16 sps:$4 sm:$0xff]  }
 0x2c6   : > { %3653 = vmatpush1.bf16.msra.mxu0 %v20960_v7  ;;  %3482 = vmatprep.subr.bf16.mxu1 %v20965_v8  ;;  %v21029_v7 = vld [vmem:[#allocation4 + $0x600] ss:$16 sps:$4 sm:$0xff]   ;;  %v21032_v8 = vld [vmem:[#allocation4 + $0x708] ss:$16 sps:$4 sm:$0xff]  }
 0x2c7   : > { %3654 = vmatprep.subr.bf16.mxu0 %v20968_v11  ;;  %v21040_v11 = vld [vmem:[#allocation4 + $0x72c] ss:$16 sps:$4 sm:$0xff]  }
 0x2c9   : > { %3483 = vmatpush1.bf16.msra.mxu1 %v20963_v9  ;;  %v21037_v9 = vld [vmem:[#allocation4 + $0x624] ss:$16 sps:$4 sm:$0xff]  }
 0x2ca   : > { %3655 = vmatpush1.bf16.msra.mxu0 %v20966_v16  ;;  %3484 = vmatprep.subr.bf16.mxu1 %v20971_v17  ;;  %v21035_v16 = vld [vmem:[#allocation4 + $0x620] ss:$16 sps:$4 sm:$0xff]   ;;  %v21038_v17 = vld [vmem:[#allocation4 + $0x728] ss:$16 sps:$4 sm:$0xff]  }
 0x2cb   : > { %3656 = vmatprep.subr.bf16.mxu0 %v20974_v23  ;;  %v21046_v23 = vld [vmem:[#allocation4 + $0x74c] ss:$16 sps:$4 sm:$0xff]  }
 0x2cd   : > { %3485 = vmatpush1.bf16.msra.mxu1 %v20969_v19  ;;  %v21043_v19 = vld [vmem:[#allocation4 + $0x644] ss:$16 sps:$4 sm:$0xff]  }
 0x2ce   : > { %3657 = vmatpush1.bf16.msra.mxu0 %v20972_v24  ;;  %3486 = vmatprep.subr.bf16.mxu1 %v20977_v26  ;;  %v21041_v24 = vld [vmem:[#allocation4 + $0x640] ss:$16 sps:$4 sm:$0xff]   ;;  %v21044_v26 = vld [vmem:[#allocation4 + $0x748] ss:$16 sps:$4 sm:$0xff]  }
 0x2cf   : > { %3658 = vmatprep.subr.bf16.mxu0 %v20980_v29  ;;  %v21047_v29 = vld [vmem:[#allocation4 + $0x660] ss:$16 sps:$4 sm:$0xff]  }
 0x2d1   : > { %3487 = vmatpush1.bf16.msra.mxu1 %v20975_v27  ;;  %v21049_v27 = vld [vmem:[#allocation4 + $0x664] ss:$16 sps:$4 sm:$0xff]  }
 0x2d2   : > { %3659 = vmatpush1.bf16.msra.mxu0 %v20978_v32  ;;  %3488 = vmatprep.subr.bf16.mxu1 %v20983_v20  ;;  %v21052_v32 = vld [vmem:[#allocation4 + $0x76c] ss:$16 sps:$4 sm:$0xff]   ;;  %v21050_v20 = vld [vmem:[#allocation4 + $0x768] ss:$16 sps:$4 sm:$0xff]  }
 0x2d3   : > { %3660 = vmatprep.subr.bf16.mxu0 %v20986_v33  ;;  %v21053_v33 = vld [vmem:[#allocation4 + $0x680] ss:$16 sps:$4 sm:$0xff]  }
 0x2d5   : > { %3489 = vmatpush1.bf16.msra.mxu1 %v20981_v34  ;;  %v21055_v34 = vld [vmem:[#allocation4 + $0x684] ss:$16 sps:$4 sm:$0xff]  }
 0x2d6   : > { %3661 = vmatpush1.bf16.msra.mxu0 %v20984_v18  ;;  %3490 = vmatprep.subr.bf16.mxu1 %v20989_v37  ;;  %v21058_v18 = vld [vmem:[#allocation4 + $0x78c] ss:$16 sps:$4 sm:$0xff]   ;;  %v21056_v37 = vld [vmem:[#allocation4 + $0x788] ss:$16 sps:$4 sm:$0xff]  }
 0x2d7   : > { %3662 = vmatprep.subr.bf16.mxu0 %v20992_v40  ;;  %v21059_v40 = vld [vmem:[#allocation4 + $0x6a0] ss:$16 sps:$4 sm:$0xff]  }
 0x2d9   : > { %3491 = vmatpush1.bf16.msra.mxu1 %v20987_v38  ;;  %v21061_v38 = vld [vmem:[#allocation4 + $0x6a4] ss:$16 sps:$4 sm:$0xff]  }
 0x2da   : > { %3663 = vmatpush1.bf16.msra.mxu0 %v20990_v41  ;;  %3492 = vmatprep.subr.bf16.mxu1 %v20995_v42  ;;  %v21064_v41 = vld [vmem:[#allocation4 + $0x7ac] ss:$16 sps:$4 sm:$0xff]   ;;  %v21062_v42 = vld [vmem:[#allocation4 + $0x7a8] ss:$16 sps:$4 sm:$0xff]  }
 0x2db   : > { %3664 = vmatprep.subr.bf16.mxu0 %v20998_v46  ;;  %v21065_v46 = vld [vmem:[#allocation4 + $0x6c0] ss:$16 sps:$4 sm:$0xff]  }
 0x2dd   : > { %3493 = vmatpush1.bf16.msra.mxu1 %v20993_v43  ;;  %v21067_v43 = vld [vmem:[#allocation4 + $0x6c4] ss:$16 sps:$4 sm:$0xff]  }
 0x2de   : > { %3665 = vmatpush1.bf16.msra.mxu0 %v20996_v47  ;;  %3494 = vmatprep.subr.bf16.mxu1 %v21001_v48  ;;  %v21070_v47 = vld [vmem:[#allocation4 + $0x7cc] ss:$16 sps:$4 sm:$0xff]   ;;  %v21068_v48 = vld [vmem:[#allocation4 + $0x7c8] ss:$16 sps:$4 sm:$0xff]  }
 0x2df   : > { %3666 = vmatprep.subr.bf16.mxu0 %v21004_v52  ;;  %v21071_v52 = vld [vmem:[#allocation4 + $0x6e0] ss:$16 sps:$4 sm:$0xff]  }
 0x2e1   : > { %3495 = vmatpush1.bf16.msra.mxu1 %v20999_v49  ;;  %v21073_v49 = vld [vmem:[#allocation4 + $0x6e4] ss:$16 sps:$4 sm:$0xff]  }
 0x2e2   : > { %3667 = vmatpush1.bf16.msra.mxu0 %v21002_v53  ;;  %3496 = vmatprep.subr.bf16.mxu1 %v21007_v54  ;;  %v21076_v53 = vld [vmem:[#allocation4 + $0x7ec] ss:$16 sps:$4 sm:$0xff]   ;;  %v21074_v54 = vld [vmem:[#allocation4 + $0x7e8] ss:$16 sps:$4 sm:$0xff]  }
 0x2e3   : > { %3668 = vmatprep.subr.bf16.mxu0 %v21010_v55  ;;  %v21082_v55 = vld [vmem:[#allocation4 + $0x80c] ss:$16 sps:$4 sm:$0xff]  }
 0x2e5   : > { %3497 = vmatpush1.bf16.msra.mxu1 %v21005_v13  ;;  %v21079_v13 = vld [vmem:[#allocation4 + $0x60c] ss:$16 sps:$4 sm:$0xff]  }
 0x2e6   : > { %3669 = vmatpush1.bf16.msra.mxu0 %v21008_v56  ;;  %3498 = vmatprep.subr.bf16.mxu1 %v21013_v57  ;;  %v21077_v56 = vld [vmem:[#allocation4 + $0x608] ss:$16 sps:$4 sm:$0xff]  }
 0x2e7   : > { %3670 = vmatprep.subr.bf16.mxu0 %v21016_v59  ;;  %v21080_v57 = vld [vmem:[#allocation4 + $0x808] ss:$16 sps:$4 sm:$0xff]  }
 0x2e8   : > { %v21083_v59 = vld [vmem:[#allocation4 + $0x628] ss:$16 sps:$4 sm:$0xff]  }
 0x2e9   : > { %3499 = vmatpush1.bf16.msra.mxu1 %v21011_v58  ;;  %v21085_v58 = vld [vmem:[#allocation4 + $0x62c] ss:$16 sps:$4 sm:$0xff]  }
 0x2ea   : > { %3671 = vmatpush1.bf16.msra.mxu0 %v21014_v60  ;;  %3500 = vmatprep.subr.bf16.mxu1 %v21019_v62  ;;  %v21088_v60 = vld [vmem:[#allocation4 + $0x82c] ss:$16 sps:$4 sm:$0xff]   ;;  %v21086_v62 = vld [vmem:[#allocation4 + $0x828] ss:$16 sps:$4 sm:$0xff]  }
 0x2eb   : > { %3672 = vmatprep.subr.bf16.mxu0 %v21022_v31  ;;  %v21089_v31 = vld [vmem:[#allocation4 + $0x648] ss:$16 sps:$4 sm:$0xff]  }
 0x2ed   : > { %3501 = vmatpush1.bf16.msra.mxu1 %v21017_v1  ;;  %v21091_v1 = vld [vmem:[#allocation4 + $0x64c] ss:$16 sps:$4 sm:$0xff]  }
 0x2ee   : > { %3673 = vmatpush1.bf16.msra.mxu0 %v21020_v2  ;;  %3502 = vmatprep.subr.bf16.mxu1 %v21025_v3  ;;  %v21094_v2 = vld [vmem:[#allocation4 + $0x84c] ss:$16 sps:$4 sm:$0xff]   ;;  %v21092_v3 = vld [vmem:[#allocation4 + $0x848] ss:$16 sps:$4 sm:$0xff]  }
 0x2ef   : > { %3674 = vmatprep.subr.bf16.mxu0 %v21028_v30  ;;  %v21095_v30 = vld [vmem:[#allocation4 + $0x668] ss:$16 sps:$4 sm:$0xff]  }
 0x2f1   : > { %3503 = vmatpush1.bf16.msra.mxu1 %v21023_v4  ;;  %v21097_v4 = vld [vmem:[#allocation4 + $0x66c] ss:$16 sps:$4 sm:$0xff]  }
 0x2f2   : > { %3675 = vmatpush1.bf16.msra.mxu0 %v21026_v5  ;;  %3515 = vmatprep.subr.bf16.mxu1 %v21031_v6  ;;  %v21100_v5 = vld [vmem:[#allocation4 + $0x86c] ss:$16 sps:$4 sm:$0xff]   ;;  %v21098_v6 = vld [vmem:[#allocation4 + $0x868] ss:$16 sps:$4 sm:$0xff]  }
 0x2f3   : > { %5247 = vmatprep.subr.bf16.mxu0 %v21034_v51  ;;  %v21103_v51 = vld [vmem:[#allocation4 + $0x68c] ss:$16 sps:$4 sm:$0xff]  }
 0x2f4   : > { %3505 = vmatmul.mubr.bf16.vlgmr.msra.gmra.mrb[32].mxu1 %v23726_v44 }
 0x2f5   : > { %3677 = vmatmul.mubr.bf16.vlgmr.msra.gmra.mrb[28].mxu0 %v23726_v44  ;;  %3516 = vmatpush1.bf16.msra.mxu1 %v21029_v7  ;;  %v21101_v7 = vld [vmem:[#allocation4 + $0x688] ss:$16 sps:$4 sm:$0xff]  }
 0x2f6   : > { %5248 = vmatpush1.bf16.msra.mxu0 %v21032_v8  ;;  %5279 = vmatprep.mubr.bf16.mxu0 %v23718_v22  ;;  %v21106_v8 = vld [vmem:[#allocation4 + $0x88c] ss:$16 sps:$4 sm:$0xff]  }
 0x2f7   : > { %3517 = vmatprep.subr.bf16.mxu1 %v21037_v9  ;;  %5249 = vmatprep.subr.bf16.mxu0 %v21040_v11  ;;  %v21104_v9 = vld [vmem:[#allocation4 + $0x888] ss:$16 sps:$4 sm:$0xff]   ;;  %v21109_v11 = vld [vmem:[#allocation4 + $0x6ac] ss:$16 sps:$4 sm:$0xff]  }
 0x2f8   : > { %3547 = vmatprep.mubr.bf16.mxu1 %v23331_v0 }
 0x2f9   : > { %3518 = vmatpush1.bf16.msra.mxu1 %v21035_v16  ;;  %v21107_v16 = vld [vmem:[#allocation4 + $0x6a8] ss:$16 sps:$4 sm:$0xff]  }
 0x2fa   : > { %5250 = vmatpush1.bf16.msra.mxu0 %v21038_v17  ;;  %3519 = vmatprep.subr.bf16.mxu1 %v21043_v19  ;;  %v21112_v17 = vld [vmem:[#allocation4 + $0x8ac] ss:$16 sps:$4 sm:$0xff]   ;;  %v21110_v19 = vld [vmem:[#allocation4 + $0x8a8] ss:$16 sps:$4 sm:$0xff]  }
 0x2fb   : > { %5251 = vmatprep.subr.bf16.mxu0 %v21046_v23  ;;  %v21115_v23 = vld [vmem:[#allocation4 + $0x6cc] ss:$16 sps:$4 sm:$0xff]  }
 0x2fd   : > { %3520 = vmatpush1.bf16.msra.mxu1 %v21041_v24  ;;  %v21113_v24 = vld [vmem:[#allocation4 + $0x6c8] ss:$16 sps:$4 sm:$0xff]  }
 0x2fe   : > { %5252 = vmatpush1.bf16.msra.mxu0 %v21044_v26  ;;  %3521 = vmatprep.subr.bf16.mxu1 %v21049_v27  ;;  %v21118_v26 = vld [vmem:[#allocation4 + $0x8cc] ss:$16 sps:$4 sm:$0xff]   ;;  %v21116_v27 = vld [vmem:[#allocation4 + $0x8c8] ss:$16 sps:$4 sm:$0xff]  }
 0x2ff   : > { %5253 = vmatprep.subr.bf16.mxu0 %v21052_v32  ;;  %v21119_v32 = vld [vmem:[#allocation4 + $0x6e8] ss:$16 sps:$4 sm:$0xff]  }
 0x301   : > { %3522 = vmatpush1.bf16.msra.mxu1 %v21047_v29  ;;  %v21121_v29 = vld [vmem:[#allocation4 + $0x6ec] ss:$16 sps:$4 sm:$0xff]  }
 0x302   : > { %5254 = vmatpush1.bf16.msra.mxu0 %v21050_v20  ;;  %3523 = vmatprep.subr.bf16.mxu1 %v21055_v34  ;;  %v21124_v20 = vld [vmem:[#allocation4 + $0x8ec] ss:$16 sps:$4 sm:$0xff]   ;;  %v21122_v34 = vld [vmem:[#allocation4 + $0x8e8] ss:$16 sps:$4 sm:$0xff]  }
 0x303   : > { %5255 = vmatprep.subr.bf16.mxu0 %v21058_v18  ;;  %v21130_v18 = vld [vmem:[#allocation4 + $0x90c] ss:$16 sps:$4 sm:$0xff]  }
 0x305   : > { %3524 = vmatpush1.bf16.msra.mxu1 %v21053_v33  ;;  %v21127_v33 = vld [vmem:[#allocation4 + $0x704] ss:$16 sps:$4 sm:$0xff]  }
 0x306   : > { %5256 = vmatpush1.bf16.msra.mxu0 %v21056_v37  ;;  %3525 = vmatprep.subr.bf16.mxu1 %v21061_v38  ;;  %v21125_v37 = vld [vmem:[#allocation4 + $0x700] ss:$16 sps:$4 sm:$0xff]   ;;  %v21128_v38 = vld [vmem:[#allocation4 + $0x908] ss:$16 sps:$4 sm:$0xff]  }
 0x307   : > { %5257 = vmatprep.subr.bf16.mxu0 %v21064_v41  ;;  %v21136_v41 = vld [vmem:[#allocation4 + $0x92c] ss:$16 sps:$4 sm:$0xff]  }
 0x309   : > { %3526 = vmatpush1.bf16.msra.mxu1 %v21059_v40  ;;  %v21133_v40 = vld [vmem:[#allocation4 + $0x724] ss:$16 sps:$4 sm:$0xff]  }
 0x30a   : > { %5258 = vmatpush1.bf16.msra.mxu0 %v21062_v42  ;;  %3527 = vmatprep.subr.bf16.mxu1 %v21067_v43  ;;  %v21131_v42 = vld [vmem:[#allocation4 + $0x720] ss:$16 sps:$4 sm:$0xff]   ;;  %v21134_v43 = vld [vmem:[#allocation4 + $0x928] ss:$16 sps:$4 sm:$0xff]  }
 0x30b   : > { %5259 = vmatprep.subr.bf16.mxu0 %v21070_v47  ;;  %v21137_v47 = vld [vmem:[#allocation4 + $0x740] ss:$16 sps:$4 sm:$0xff]  }
 0x30d   : > { %3528 = vmatpush1.bf16.msra.mxu1 %v21065_v46  ;;  %v21139_v46 = vld [vmem:[#allocation4 + $0x744] ss:$16 sps:$4 sm:$0xff]  }
 0x30e   : > { %5260 = vmatpush1.bf16.msra.mxu0 %v21068_v48  ;;  %3529 = vmatprep.subr.bf16.mxu1 %v21073_v49  ;;  %v21142_v48 = vld [vmem:[#allocation4 + $0x94c] ss:$16 sps:$4 sm:$0xff]   ;;  %v21140_v49 = vld [vmem:[#allocation4 + $0x948] ss:$16 sps:$4 sm:$0xff]  }
 0x30f   : > { %5261 = vmatprep.subr.bf16.mxu0 %v21076_v53  ;;  %v21143_v53 = vld [vmem:[#allocation4 + $0x760] ss:$16 sps:$4 sm:$0xff]  }
 0x311   : > { %3530 = vmatpush1.bf16.msra.mxu1 %v21071_v52  ;;  %v21145_v52 = vld [vmem:[#allocation4 + $0x764] ss:$16 sps:$4 sm:$0xff]  }
 0x312   : > { %5262 = vmatpush1.bf16.msra.mxu0 %v21074_v54  ;;  %3687 = vmatprep.subr.bf16.mxu1 %v21079_v13  ;;  %v21148_v54 = vld [vmem:[#allocation4 + $0x96c] ss:$16 sps:$4 sm:$0xff]   ;;  %v21151_v13 = vld [vmem:[#allocation4 + $0x784] ss:$16 sps:$4 sm:$0xff]  }
 0x313   : > { %5263 = vmatprep.subr.bf16.mxu0 %v21082_v55  ;;  %v21149_v55 = vld [vmem:[#allocation4 + $0x780] ss:$16 sps:$4 sm:$0xff]  }
 0x314   : > { %3548 = vmatmul.mubr.bf16.vlgmr.msra.gmra.mrb[32].mxu1 %v23714_v50 }
 0x315   : > { %3688 = vmatpush1.bf16.msra.mxu1 %v21077_v56  ;;  %3719 = vmatprep.mubr.bf16.mxu1 %v23331_v0  ;;  %v21154_v56 = vld [vmem:[#allocation4 + $0x98c] ss:$16 sps:$4 sm:$0xff]  }
 0x316   : > { %5264 = vmatpush1.bf16.msra.mxu0 %v21080_v57  ;;  %3689 = vmatprep.subr.bf16.mxu1 %v21085_v58  ;;  %v21152_v57 = vld [vmem:[#allocation4 + $0x988] ss:$16 sps:$4 sm:$0xff]   ;;  %v21157_v58 = vld [vmem:[#allocation4 + $0x7a4] ss:$16 sps:$4 sm:$0xff]  }
 0x317   : > { %5265 = vmatprep.subr.bf16.mxu0 %v21088_v60  ;;  %v21160_v60 = vld [vmem:[#allocation4 + $0x9ac] ss:$16 sps:$4 sm:$0xff]  }
 0x319   : > { %3690 = vmatpush1.bf16.msra.mxu1 %v21083_v59  ;;  %v21155_v59 = vld [vmem:[#allocation4 + $0x7a0] ss:$16 sps:$4 sm:$0xff]  }
 0x31a   : > { %5266 = vmatpush1.bf16.msra.mxu0 %v21086_v62  ;;  %3691 = vmatprep.subr.bf16.mxu1 %v21091_v1  ;;  %v21158_v62 = vld [vmem:[#allocation4 + $0x9a8] ss:$16 sps:$4 sm:$0xff]   ;;  %v21163_v1 = vld [vmem:[#allocation4 + $0x7c4] ss:$16 sps:$4 sm:$0xff]  }
 0x31b   : > { %5267 = vmatprep.subr.bf16.mxu0 %v21094_v2  ;;  %v21161_v2 = vld [vmem:[#allocation4 + $0x7c0] ss:$16 sps:$4 sm:$0xff]  }
 0x31d   : > { %3692 = vmatpush1.bf16.msra.mxu1 %v21089_v31  ;;  %v21166_v31 = vld [vmem:[#allocation4 + $0x9cc] ss:$16 sps:$4 sm:$0xff]  }
 0x31e   : > { %5268 = vmatpush1.bf16.msra.mxu0 %v21092_v3  ;;  %3693 = vmatprep.subr.bf16.mxu1 %v21097_v4  ;;  %v21164_v3 = vld [vmem:[#allocation4 + $0x9c8] ss:$16 sps:$4 sm:$0xff]   ;;  %v21169_v4 = vld [vmem:[#allocation4 + $0x7e4] ss:$16 sps:$4 sm:$0xff]  }
 0x31f   : > { %5269 = vmatprep.subr.bf16.mxu0 %v21100_v5  ;;  %v21167_v5 = vld [vmem:[#allocation4 + $0x7e0] ss:$16 sps:$4 sm:$0xff]  }
 0x321   : > { %3694 = vmatpush1.bf16.msra.mxu1 %v21095_v30  ;;  %v21172_v30 = vld [vmem:[#allocation4 + $0x9ec] ss:$16 sps:$4 sm:$0xff]  }
 0x322   : > { %5270 = vmatpush1.bf16.msra.mxu0 %v21098_v6  ;;  %3695 = vmatprep.subr.bf16.mxu1 %v21103_v51  ;;  %v21170_v6 = vld [vmem:[#allocation4 + $0x9e8] ss:$16 sps:$4 sm:$0xff]   ;;  %v21175_v51 = vld [vmem:[#allocation4 + $0x804] ss:$16 sps:$4 sm:$0xff]  }
 0x323   : > { %5271 = vmatprep.subr.bf16.mxu0 %v21106_v8  ;;  %v21178_v8 = vld [vmem:[#allocation4 + $0xa0c] ss:$16 sps:$4 sm:$0xff]  }
 0x325   : > { %3696 = vmatpush1.bf16.msra.mxu1 %v21101_v7  ;;  %v21173_v7 = vld [vmem:[#allocation4 + $0x800] ss:$16 sps:$4 sm:$0xff]  }
 0x326   : > { %5272 = vmatpush1.bf16.msra.mxu0 %v21104_v9  ;;  %3697 = vmatprep.subr.bf16.mxu1 %v21109_v11  ;;  %v21176_v9 = vld [vmem:[#allocation4 + $0xa08] ss:$16 sps:$4 sm:$0xff]   ;;  %v21181_v11 = vld [vmem:[#allocation4 + $0x824] ss:$16 sps:$4 sm:$0xff]  }
 0x327   : > { %5273 = vmatprep.subr.bf16.mxu0 %v21112_v17  ;;  %v21179_v17 = vld [vmem:[#allocation4 + $0x820] ss:$16 sps:$4 sm:$0xff]  }
 0x329   : > { %3698 = vmatpush1.bf16.msra.mxu1 %v21107_v16  ;;  %v21184_v16 = vld [vmem:[#allocation4 + $0xa2c] ss:$16 sps:$4 sm:$0xff]  }
 0x32a   : > { %5274 = vmatpush1.bf16.msra.mxu0 %v21110_v19  ;;  %3699 = vmatprep.subr.bf16.mxu1 %v21115_v23  ;;  %v21182_v19 = vld [vmem:[#allocation4 + $0xa28] ss:$16 sps:$4 sm:$0xff]   ;;  %v21187_v23 = vld [vmem:[#allocation4 + $0x844] ss:$16 sps:$4 sm:$0xff]  }
 0x32b   : > { %5275 = vmatprep.subr.bf16.mxu0 %v21118_v26  ;;  %v21185_v26 = vld [vmem:[#allocation4 + $0x840] ss:$16 sps:$4 sm:$0xff]  }
 0x32d   : > { %3700 = vmatpush1.bf16.msra.mxu1 %v21113_v24  ;;  %v21190_v24 = vld [vmem:[#allocation4 + $0xa4c] ss:$16 sps:$4 sm:$0xff]  }
 0x32e   : > { %5276 = vmatpush1.bf16.msra.mxu0 %v21116_v27  ;;  %3701 = vmatprep.subr.bf16.mxu1 %v21121_v29  ;;  %v21188_v27 = vld [vmem:[#allocation4 + $0xa48] ss:$16 sps:$4 sm:$0xff]   ;;  %v21193_v29 = vld [vmem:[#allocation4 + $0x864] ss:$16 sps:$4 sm:$0xff]  }
 0x32f   : > { %5277 = vmatprep.subr.bf16.mxu0 %v21124_v20  ;;  %v21191_v20 = vld [vmem:[#allocation4 + $0x860] ss:$16 sps:$4 sm:$0xff]  }
 0x331   : > { %3702 = vmatpush1.bf16.msra.mxu1 %v21119_v32  ;;  %v21196_v32 = vld [vmem:[#allocation4 + $0xa6c] ss:$16 sps:$4 sm:$0xff]  }
 0x332   : > { %5278 = vmatpush1.bf16.msra.mxu0 %v21122_v34  ;;  %5075 = vmatprep.subr.bf16.mxu1 %v21127_v33  ;;  %v21194_v34 = vld [vmem:[#allocation4 + $0xa68] ss:$16 sps:$4 sm:$0xff]   ;;  %v21199_v33 = vld [vmem:[#allocation4 + $0x884] ss:$16 sps:$4 sm:$0xff]  }
 0x333   : > { %5290 = vmatprep.subr.bf16.mxu0 %v21130_v18  ;;  %v21202_v18 = vld [vmem:[#allocation4 + $0xa8c] ss:$16 sps:$4 sm:$0xff]  }
 0x334   : > { %3720 = vmatmul.mubr.bf16.vlgmr.msra.gmra.mrb[36].mxu1 %v23714_v50 }
 0x335   : > { %5280 = vmatmul.mubr.bf16.vlgmr.msra.gmra.mrb[32].mxu0 %v23716_v21  ;;  %5076 = vmatpush1.bf16.msra.mxu1 %v21125_v37  ;;  %v21197_v37 = vld [vmem:[#allocation4 + $0x880] ss:$16 sps:$4 sm:$0xff]  }
 0x336   : > { %5107 = vmatprep.mubr.bf16.mxu1 %v23718_v22  ;;  %5291 = vmatpush1.bf16.msra.mxu0 %v21128_v38  ;;  %v21146_v22 = vld [vmem:[#allocation4 + $0x968] ss:$16 sps:$4 sm:$0xff]  }
 0x337   : > { %5322 = vmatprep.mubr.bf16.mxu0 %v23712_v63  ;;  %5077 = vmatprep.subr.bf16.mxu1 %v21133_v40  ;;  %v21200_v38 = vld [vmem:[#allocation4 + $0xa88] ss:$16 sps:$4 sm:$0xff]   ;;  %v21205_v40 = vld [vmem:[#allocation4 + $0x8a4] ss:$16 sps:$4 sm:$0xff]  }
 0x338   : > { %5292 = vmatprep.subr.bf16.mxu0 %v21136_v41  ;;  %v21208_v41 = vld [vmem:[#allocation4 + $0xaac] ss:$16 sps:$4 sm:$0xff]  }
 0x339   : > { %5078 = vmatpush1.bf16.msra.mxu1 %v21131_v42  ;;  %v21203_v42 = vld [vmem:[#allocation4 + $0x8a0] ss:$16 sps:$4 sm:$0xff]  }
 0x33a   : > { %5293 = vmatpush1.bf16.msra.mxu0 %v21134_v43  ;;  %5079 = vmatprep.subr.bf16.mxu1 %v21139_v46  ;;  %v21206_v43 = vld [vmem:[#allocation4 + $0xaa8] ss:$16 sps:$4 sm:$0xff]   ;;  %v21211_v46 = vld [vmem:[#allocation4 + $0x8c4] ss:$16 sps:$4 sm:$0xff]  }
 0x33b   : > { %5294 = vmatprep.subr.bf16.mxu0 %v21142_v48  ;;  %v21209_v48 = vld [vmem:[#allocation4 + $0x8c0] ss:$16 sps:$4 sm:$0xff]  }
 0x33d   : > { %5080 = vmatpush1.bf16.msra.mxu1 %v21137_v47  ;;  %v21214_v47 = vld [vmem:[#allocation4 + $0xacc] ss:$16 sps:$4 sm:$0xff]  }
 0x33e   : > { %5295 = vmatpush1.bf16.msra.mxu0 %v21140_v49  ;;  %5081 = vmatprep.subr.bf16.mxu1 %v21145_v52  ;;  %v21212_v49 = vld [vmem:[#allocation4 + $0xac8] ss:$16 sps:$4 sm:$0xff]   ;;  %v21217_v52 = vld [vmem:[#allocation4 + $0x8e4] ss:$16 sps:$4 sm:$0xff]  }
 0x33f   : > { %5296 = vmatprep.subr.bf16.mxu0 %v21148_v54  ;;  %v21215_v54 = vld [vmem:[#allocation4 + $0x8e0] ss:$16 sps:$4 sm:$0xff]  }
 0x341   : > { %5082 = vmatpush1.bf16.msra.mxu1 %v21143_v53  ;;  %v21220_v53 = vld [vmem:[#allocation4 + $0xaec] ss:$16 sps:$4 sm:$0xff]  }
 0x342   : > { %5297 = vmatpush1.bf16.msra.mxu0 %v21146_v22  ;;  %5083 = vmatprep.subr.bf16.mxu1 %v21151_v13  ;;  %v21218_v22 = vld [vmem:[#allocation4 + $0xae8] ss:$16 sps:$4 sm:$0xff]   ;;  %v21223_v13 = vld [vmem:[#allocation4 + $0x904] ss:$16 sps:$4 sm:$0xff]  }
 0x343   : > { %5298 = vmatprep.subr.bf16.mxu0 %v21154_v56  ;;  %v21221_v56 = vld [vmem:[#allocation4 + $0x900] ss:$16 sps:$4 sm:$0xff]  }
 0x345   : > { %5084 = vmatpush1.bf16.msra.mxu1 %v21149_v55  ;;  %v21226_v55 = vld [vmem:[#allocation4 + $0xb0c] ss:$16 sps:$4 sm:$0xff]  }
 0x346   : > { %5299 = vmatpush1.bf16.msra.mxu0 %v21152_v57  ;;  %5085 = vmatprep.subr.bf16.mxu1 %v21157_v58  ;;  %v21224_v57 = vld [vmem:[#allocation4 + $0xb08] ss:$16 sps:$4 sm:$0xff]   ;;  %v21229_v58 = vld [vmem:[#allocation4 + $0x924] ss:$16 sps:$4 sm:$0xff]  }
 0x347   : > { %5300 = vmatprep.subr.bf16.mxu0 %v21160_v60  ;;  %v21230_v60 = vld [vmem:[#allocation4 + $0xb28] ss:$16 sps:$4 sm:$0xff]  }
 0x349   : > { %5086 = vmatpush1.bf16.msra.mxu1 %v21155_v59  ;;  %v21227_v59 = vld [vmem:[#allocation4 + $0x920] ss:$16 sps:$4 sm:$0xff]  }
 0x34a   : > { %5301 = vmatpush1.bf16.msra.mxu0 %v21158_v62  ;;  %5087 = vmatprep.subr.bf16.mxu1 %v21163_v1  ;;  %v21232_v62 = vld [vmem:[#allocation4 + $0xb2c] ss:$16 sps:$4 sm:$0xff]   ;;  %v21235_v1 = vld [vmem:[#allocation4 + $0x944] ss:$16 sps:$4 sm:$0xff]  }
 0x34b   : > { %5302 = vmatprep.subr.bf16.mxu0 %v21166_v31  ;;  %v21238_v31 = vld [vmem:[#allocation4 + $0xb4c] ss:$16 sps:$4 sm:$0xff]  }
 0x34d   : > { %5088 = vmatpush1.bf16.msra.mxu1 %v21161_v2  ;;  %v21233_v2 = vld [vmem:[#allocation4 + $0x940] ss:$16 sps:$4 sm:$0xff]  }
 0x34e   : > { %5303 = vmatpush1.bf16.msra.mxu0 %v21164_v3  ;;  %5089 = vmatprep.subr.bf16.mxu1 %v21169_v4  ;;  %v21236_v3 = vld [vmem:[#allocation4 + $0xb48] ss:$16 sps:$4 sm:$0xff]   ;;  %v21241_v4 = vld [vmem:[#allocation4 + $0x964] ss:$16 sps:$4 sm:$0xff]  }
 0x34f   : > { %5304 = vmatprep.subr.bf16.mxu0 %v21172_v30  ;;  %v21244_v30 = vld [vmem:[#allocation4 + $0xb6c] ss:$16 sps:$4 sm:$0xff]  }
 0x351   : > { %5090 = vmatpush1.bf16.msra.mxu1 %v21167_v5  ;;  %v21242_v5 = vld [vmem:[#allocation4 + $0xb68] ss:$16 sps:$4 sm:$0xff]  }
 0x352   : > { %5305 = vmatpush1.bf16.msra.mxu0 %v21170_v6  ;;  %5091 = vmatprep.subr.bf16.mxu1 %v21175_v51  ;;  %v21247_v6 = vld [vmem:[#allocation4 + $0x984] ss:$16 sps:$4 sm:$0xff]   ;;  %v21250_v51 = vld [vmem:[#allocation4 + $0xb8c] ss:$16 sps:$4 sm:$0xff]  }
 0x353   : > { %5306 = vmatprep.subr.bf16.mxu0 %v21178_v8  ;;  %v21253_v8 = vld [vmem:[#allocation4 + $0x9a4] ss:$16 sps:$4 sm:$0xff]  }
 0x355   : > { %5092 = vmatpush1.bf16.msra.mxu1 %v21173_v7  ;;  %v21248_v7 = vld [vmem:[#allocation4 + $0xb88] ss:$16 sps:$4 sm:$0xff]  }
 0x356   : > { %5307 = vmatpush1.bf16.msra.mxu0 %v21176_v9  ;;  %5093 = vmatprep.subr.bf16.mxu1 %v21181_v11  ;;  %v21256_v9 = vld [vmem:[#allocation4 + $0xbac] ss:$16 sps:$4 sm:$0xff]   ;;  %v21251_v11 = vld [vmem:[#allocation4 + $0x9a0] ss:$16 sps:$4 sm:$0xff]  }
 0x357   : > { %5308 = vmatprep.subr.bf16.mxu0 %v21184_v16  ;;  %v21254_v16 = vld [vmem:[#allocation4 + $0xba8] ss:$16 sps:$4 sm:$0xff]  }
 0x359   : > { %5094 = vmatpush1.bf16.msra.mxu1 %v21179_v17  ;;  %v21259_v17 = vld [vmem:[#allocation4 + $0x9c4] ss:$16 sps:$4 sm:$0xff]  }
 0x35a   : > { %5309 = vmatpush1.bf16.msra.mxu0 %v21182_v19  ;;  %5095 = vmatprep.subr.bf16.mxu1 %v21187_v23  ;;  %v21262_v19 = vld [vmem:[#allocation4 + $0xbcc] ss:$16 sps:$4 sm:$0xff]   ;;  %v21257_v23 = vld [vmem:[#allocation4 + $0x9c0] ss:$16 sps:$4 sm:$0xff]  }
 0x35b   : > { %5310 = vmatprep.subr.bf16.mxu0 %v21190_v24  ;;  %v21260_v24 = vld [vmem:[#allocation4 + $0xbc8] ss:$16 sps:$4 sm:$0xff]  }
 0x35d   : > { %5096 = vmatpush1.bf16.msra.mxu1 %v21185_v26  ;;  %v21265_v26 = vld [vmem:[#allocation4 + $0x9e4] ss:$16 sps:$4 sm:$0xff]  }
 0x35e   : > { %5311 = vmatpush1.bf16.msra.mxu0 %v21188_v27  ;;  %5097 = vmatprep.subr.bf16.mxu1 %v21193_v29  ;;  %v21263_v27 = vld [vmem:[#allocation4 + $0x9e0] ss:$16 sps:$4 sm:$0xff]   ;;  %v21268_v29 = vld [vmem:[#allocation4 + $0xbec] ss:$16 sps:$4 sm:$0xff]  }
 0x35f   : > { %5312 = vmatprep.subr.bf16.mxu0 %v21196_v32  ;;  %v21266_v32 = vld [vmem:[#allocation4 + $0xbe8] ss:$16 sps:$4 sm:$0xff]  }
 0x361   : > { %5098 = vmatpush1.bf16.msra.mxu1 %v21191_v20  ;;  %v21271_v20 = vld [vmem:[#allocation4 + $0xa04] ss:$16 sps:$4 sm:$0xff]  }
 0x362   : > { %5313 = vmatpush1.bf16.msra.mxu0 %v21194_v34  ;;  %5099 = vmatprep.subr.bf16.mxu1 %v21199_v33  ;;  %v21274_v34 = vld [vmem:[#allocation4 + $0xc0c] ss:$16 sps:$4 sm:$0xff]   ;;  %v21269_v33 = vld [vmem:[#allocation4 + $0xa00] ss:$16 sps:$4 sm:$0xff]  }
 0x363   : > { %5314 = vmatprep.subr.bf16.mxu0 %v21202_v18  ;;  %v21272_v18 = vld [vmem:[#allocation4 + $0xc08] ss:$16 sps:$4 sm:$0xff]  }
 0x365   : > { %5100 = vmatpush1.bf16.msra.mxu1 %v21197_v37  ;;  %v21277_v37 = vld [vmem:[#allocation4 + $0xa24] ss:$16 sps:$4 sm:$0xff]  }
 0x366   : > { %5315 = vmatpush1.bf16.msra.mxu0 %v21200_v38  ;;  %5101 = vmatprep.subr.bf16.mxu1 %v21205_v40  ;;  %v21280_v38 = vld [vmem:[#allocation4 + $0xc2c] ss:$16 sps:$4 sm:$0xff]   ;;  %v21275_v40 = vld [vmem:[#allocation4 + $0xa20] ss:$16 sps:$4 sm:$0xff]  }
 0x367   : > { %5316 = vmatprep.subr.bf16.mxu0 %v21208_v41  ;;  %v21278_v41 = vld [vmem:[#allocation4 + $0xc28] ss:$16 sps:$4 sm:$0xff]  }
 0x369   : > { %5102 = vmatpush1.bf16.msra.mxu1 %v21203_v42  ;;  %v21283_v42 = vld [vmem:[#allocation4 + $0xa44] ss:$16 sps:$4 sm:$0xff]  }
 0x36a   : > { %5317 = vmatpush1.bf16.msra.mxu0 %v21206_v43  ;;  %5103 = vmatprep.subr.bf16.mxu1 %v21211_v46  ;;  %v21286_v43 = vld [vmem:[#allocation4 + $0xc4c] ss:$16 sps:$4 sm:$0xff]   ;;  %v21281_v46 = vld [vmem:[#allocation4 + $0xa40] ss:$16 sps:$4 sm:$0xff]  }
 0x36b   : > { %5318 = vmatprep.subr.bf16.mxu0 %v21214_v47  ;;  %v21284_v47 = vld [vmem:[#allocation4 + $0xc48] ss:$16 sps:$4 sm:$0xff]  }
 0x36d   : > { %5104 = vmatpush1.bf16.msra.mxu1 %v21209_v48  ;;  %v21289_v48 = vld [vmem:[#allocation4 + $0xa64] ss:$16 sps:$4 sm:$0xff]  }
 0x36e   : > { %5319 = vmatpush1.bf16.msra.mxu0 %v21212_v49  ;;  %5105 = vmatprep.subr.bf16.mxu1 %v21217_v52  ;;  %v21292_v49 = vld [vmem:[#allocation4 + $0xc6c] ss:$16 sps:$4 sm:$0xff]   ;;  %v21287_v52 = vld [vmem:[#allocation4 + $0xa60] ss:$16 sps:$4 sm:$0xff]  }
 0x36f   : > { %5320 = vmatprep.subr.bf16.mxu0 %v21220_v53  ;;  %v21290_v53 = vld [vmem:[#allocation4 + $0xc68] ss:$16 sps:$4 sm:$0xff]  }
 0x371   : > { %5106 = vmatpush1.bf16.msra.mxu1 %v21215_v54  ;;  %v21295_v54 = vld [vmem:[#allocation4 + $0xa84] ss:$16 sps:$4 sm:$0xff]  }
 0x372   : > { %5321 = vmatpush1.bf16.msra.mxu0 %v21218_v22  ;;  %5118 = vmatprep.subr.bf16.mxu1 %v21223_v13  ;;  %v21298_v22 = vld [vmem:[#allocation4 + $0xc8c] ss:$16 sps:$4 sm:$0xff]   ;;  %v21293_v13 = vld [vmem:[#allocation4 + $0xa80] ss:$16 sps:$4 sm:$0xff]  }
 0x373   : > { %5333 = vmatprep.subr.bf16.mxu0 %v21226_v55  ;;  %v21296_v55 = vld [vmem:[#allocation4 + $0xc88] ss:$16 sps:$4 sm:$0xff]  }
 0x374   : > { %5108 = vmatmul.mubr.bf16.vlgmr.msra.gmra.mrb[40].mxu1 %v23716_v21  ;;  %v21239_v21 = vld [vmem:[#allocation4 + $0x960] ss:$16 sps:$4 sm:$0xff]  }
 0x375   : > { %5323 = vmatmul.mubr.bf16.vlgmr.msra.gmra.mrb[32].mxu0 %v23710_v61  ;;  %5119 = vmatpush1.bf16.msra.mxu1 %v21221_v56  ;;  %v21301_v56 = vld [vmem:[#allocation4 + $0xaa4] ss:$16 sps:$4 sm:$0xff]  }
 0x376   : > { %5150 = vmatprep.mubr.bf16.mxu1 %v23712_v63  ;;  %5334 = vmatpush1.bf16.msra.mxu0 %v21224_v57  ;;  %v21245_v63 = vld [vmem:[#allocation4 + $0x980] ss:$16 sps:$4 sm:$0xff]   ;;  %v21304_v57 = vld [vmem:[#allocation4 + $0xcac] ss:$16 sps:$4 sm:$0xff]  }
 0x377   : > { %5365 = vmatprep.mubr.bf16.mxu0 %v23728_v45  ;;  %5120 = vmatprep.subr.bf16.mxu1 %v21229_v58  ;;  %v21299_v58 = vld [vmem:[#allocation4 + $0xaa0] ss:$16 sps:$4 sm:$0xff]  }
 0x378   : > { %5335 = vmatprep.subr.bf16.mxu0 %v21232_v62  ;;  %v21310_v62 = vld [vmem:[#allocation4 + $0xccc] ss:$16 sps:$4 sm:$0xff]  }
 0x379   : > { %5121 = vmatpush1.bf16.msra.mxu1 %v21227_v59  ;;  %v21302_v59 = vld [vmem:[#allocation4 + $0xca8] ss:$16 sps:$4 sm:$0xff]  }
 0x37a   : > { %5336 = vmatpush1.bf16.msra.mxu0 %v21230_v60  ;;  %5122 = vmatprep.subr.bf16.mxu1 %v21235_v1  ;;  %v21307_v60 = vld [vmem:[#allocation4 + $0xac4] ss:$16 sps:$4 sm:$0xff]   ;;  %v21305_v1 = vld [vmem:[#allocation4 + $0xac0] ss:$16 sps:$4 sm:$0xff]  }
 0x37b   : > { %5337 = vmatprep.subr.bf16.mxu0 %v21238_v31  ;;  %v21308_v31 = vld [vmem:[#allocation4 + $0xcc8] ss:$16 sps:$4 sm:$0xff]  }
 0x37d   : > { %5123 = vmatpush1.bf16.msra.mxu1 %v21233_v2  ;;  %v21313_v2 = vld [vmem:[#allocation4 + $0xae4] ss:$16 sps:$4 sm:$0xff]  }
 0x37e   : > { %5338 = vmatpush1.bf16.msra.mxu0 %v21236_v3  ;;  %5124 = vmatprep.subr.bf16.mxu1 %v21241_v4  ;;  %v21316_v3 = vld [vmem:[#allocation4 + $0xcec] ss:$16 sps:$4 sm:$0xff]   ;;  %v21311_v4 = vld [vmem:[#allocation4 + $0xae0] ss:$16 sps:$4 sm:$0xff]  }
 0x37f   : > { %5339 = vmatprep.subr.bf16.mxu0 %v21244_v30  ;;  %v21314_v30 = vld [vmem:[#allocation4 + $0xce8] ss:$16 sps:$4 sm:$0xff]  }
 0x381   : > { %5125 = vmatpush1.bf16.msra.mxu1 %v21239_v21  ;;  %v21319_v21 = vld [vmem:[#allocation4 + $0xb04] ss:$16 sps:$4 sm:$0xff]  }
 0x382   : > { %5340 = vmatpush1.bf16.msra.mxu0 %v21242_v5  ;;  %5126 = vmatprep.subr.bf16.mxu1 %v21247_v6  ;;  %v21322_v5 = vld [vmem:[#allocation4 + $0xd0c] ss:$16 sps:$4 sm:$0xff]   ;;  %v21317_v6 = vld [vmem:[#allocation4 + $0xb00] ss:$16 sps:$4 sm:$0xff]  }
 0x383   : > { %5341 = vmatprep.subr.bf16.mxu0 %v21250_v51  ;;  %v21320_v51 = vld [vmem:[#allocation4 + $0xd08] ss:$16 sps:$4 sm:$0xff]  }
 0x385   : > { %5127 = vmatpush1.bf16.msra.mxu1 %v21245_v63  ;;  %v21325_v63 = vld [vmem:[#allocation4 + $0xb24] ss:$16 sps:$4 sm:$0xff]  }
 0x386   : > { %5342 = vmatpush1.bf16.msra.mxu0 %v21248_v7  ;;  %5128 = vmatprep.subr.bf16.mxu1 %v21253_v8  ;;  %v21328_v7 = vld [vmem:[#allocation4 + $0xd2c] ss:$16 sps:$4 sm:$0xff]   ;;  %v21323_v8 = vld [vmem:[#allocation4 + $0xb20] ss:$16 sps:$4 sm:$0xff]  }
 0x387   : > { %5343 = vmatprep.subr.bf16.mxu0 %v21256_v9  ;;  %v21326_v9 = vld [vmem:[#allocation4 + $0xd28] ss:$16 sps:$4 sm:$0xff]  }
 0x389   : > { %5129 = vmatpush1.bf16.msra.mxu1 %v21251_v11  ;;  %v21331_v11 = vld [vmem:[#allocation4 + $0xb44] ss:$16 sps:$4 sm:$0xff]  }
 0x38a   : > { %5344 = vmatpush1.bf16.msra.mxu0 %v21254_v16  ;;  %5130 = vmatprep.subr.bf16.mxu1 %v21259_v17  ;;  %v21334_v16 = vld [vmem:[#allocation4 + $0xd4c] ss:$16 sps:$4 sm:$0xff]   ;;  %v21329_v17 = vld [vmem:[#allocation4 + $0xb40] ss:$16 sps:$4 sm:$0xff]  }
 0x38b   : > { %5345 = vmatprep.subr.bf16.mxu0 %v21262_v19  ;;  %v21332_v19 = vld [vmem:[#allocation4 + $0xd48] ss:$16 sps:$4 sm:$0xff]  }
 0x38d   : > { %5131 = vmatpush1.bf16.msra.mxu1 %v21257_v23  ;;  %v21337_v23 = vld [vmem:[#allocation4 + $0xb64] ss:$16 sps:$4 sm:$0xff]  }
 0x38e   : > { %5346 = vmatpush1.bf16.msra.mxu0 %v21260_v24  ;;  %5132 = vmatprep.subr.bf16.mxu1 %v21265_v26  ;;  %v21335_v24 = vld [vmem:[#allocation4 + $0xb60] ss:$16 sps:$4 sm:$0xff]   ;;  %v21338_v26 = vld [vmem:[#allocation4 + $0xd68] ss:$16 sps:$4 sm:$0xff]  }
 0x38f   : > { %5347 = vmatprep.subr.bf16.mxu0 %v21268_v29  ;;  %v21341_v29 = vld [vmem:[#allocation4 + $0xb80] ss:$16 sps:$4 sm:$0xff]  }
 0x391   : > { %5133 = vmatpush1.bf16.msra.mxu1 %v21263_v27  ;;  %v21343_v27 = vld [vmem:[#allocation4 + $0xb84] ss:$16 sps:$4 sm:$0xff]  }
 0x392   : > { %5348 = vmatpush1.bf16.msra.mxu0 %v21266_v32  ;;  %5134 = vmatprep.subr.bf16.mxu1 %v21271_v20  ;;  %v21344_v32 = vld [vmem:[#allocation4 + $0xd88] ss:$16 sps:$4 sm:$0xff]   ;;  %v21349_v20 = vld [vmem:[#allocation4 + $0xba4] ss:$16 sps:$4 sm:$0xff]  }
 0x393   : > { %5349 = vmatprep.subr.bf16.mxu0 %v21274_v34  ;;  %v21352_v34 = vld [vmem:[#allocation4 + $0xdac] ss:$16 sps:$4 sm:$0xff]  }
 0x395   : > { %5135 = vmatpush1.bf16.msra.mxu1 %v21269_v33  ;;  %v21347_v33 = vld [vmem:[#allocation4 + $0xba0] ss:$16 sps:$4 sm:$0xff]  }
 0x396   : > { %5350 = vmatpush1.bf16.msra.mxu0 %v21272_v18  ;;  %5136 = vmatprep.subr.bf16.mxu1 %v21277_v37  ;;  %v21350_v18 = vld [vmem:[#allocation4 + $0xda8] ss:$16 sps:$4 sm:$0xff]   ;;  %v21355_v37 = vld [vmem:[#allocation4 + $0xbc4] ss:$16 sps:$4 sm:$0xff]  }
 0x397   : > { %5351 = vmatprep.subr.bf16.mxu0 %v21280_v38  ;;  %v21358_v38 = vld [vmem:[#allocation4 + $0xdcc] ss:$16 sps:$4 sm:$0xff]  }
 0x399   : > { %5137 = vmatpush1.bf16.msra.mxu1 %v21275_v40 }
 0x39a   : > { %5352 = vmatpush1.bf16.msra.mxu0 %v21278_v41  ;;  %5138 = vmatprep.subr.bf16.mxu1 %v21283_v42  ;;  %v21353_v42 = vld [vmem:[#allocation4 + $0xbc0] ss:$16 sps:$4 sm:$0xff]  }
 0x39b   : > { %5353 = vmatprep.subr.bf16.mxu0 %v21286_v43 }
 0x39d   : > { %5139 = vmatpush1.bf16.msra.mxu1 %v21281_v46  ;;  %v21356_v46 = vld [vmem:[#allocation4 + $0xdc8] ss:$16 sps:$4 sm:$0xff]  }
 0x39e   : > { %5354 = vmatpush1.bf16.msra.mxu0 %v21284_v47  ;;  %5140 = vmatprep.subr.bf16.mxu1 %v21289_v48  ;;  %v21361_v47 = vld [vmem:[#allocation4 + $0xbe4] ss:$16 sps:$4 sm:$0xff]  }
 0x39f   : > { %5355 = vmatprep.subr.bf16.mxu0 %v21292_v49  ;;  %v21364_v49 = vld [vmem:[#allocation4 + $0xdec] ss:$16 sps:$4 sm:$0xff]  }
 0x3a1   : > { %5141 = vmatpush1.bf16.msra.mxu1 %v21287_v52  ;;  %v21359_v52 = vld [vmem:[#allocation4 + $0xbe0] ss:$16 sps:$4 sm:$0xff]  }
 0x3a2   : > { %5356 = vmatpush1.bf16.msra.mxu0 %v21290_v53  ;;  %5142 = vmatprep.subr.bf16.mxu1 %v21295_v54  ;;  %v21362_v53 = vld [vmem:[#allocation4 + $0xde8] ss:$16 sps:$4 sm:$0xff]   ;;  %v21367_v54 = vld [vmem:[#allocation4 + $0xc04] ss:$16 sps:$4 sm:$0xff]  }
 0x3a3   : > { %5357 = vmatprep.subr.bf16.mxu0 %v21298_v22  ;;  %v21365_v22 = vld [vmem:[#allocation4 + $0xc00] ss:$16 sps:$4 sm:$0xff]  }
 0x3a5   : > { %5143 = vmatpush1.bf16.msra.mxu1 %v21293_v13  ;;  %v21370_v13 = vld [vmem:[#allocation4 + $0xc24] ss:$16 sps:$4 sm:$0xff]  }
 0x3a6   : > { %5358 = vmatpush1.bf16.msra.mxu0 %v21296_v55  ;;  %5144 = vmatprep.subr.bf16.mxu1 %v21301_v56  ;;  %v21368_v55 = vld [vmem:[#allocation4 + $0xc20] ss:$16 sps:$4 sm:$0xff]   ;;  %v21373_v56 = vld [vmem:[#allocation4 + $0xc44] ss:$16 sps:$4 sm:$0xff]  }
 0x3a7   : > { %5359 = vmatprep.subr.bf16.mxu0 %v21304_v57  ;;  %v21371_v57 = vld [vmem:[#allocation4 + $0xc40] ss:$16 sps:$4 sm:$0xff]  }
 0x3a9   : > { %5145 = vmatpush1.bf16.msra.mxu1 %v21299_v58  ;;  %v21376_v58 = vld [vmem:[#allocation4 + $0xc64] ss:$16 sps:$4 sm:$0xff]  }
 0x3aa   : > { %5360 = vmatpush1.bf16.msra.mxu0 %v21302_v59  ;;  %5146 = vmatprep.subr.bf16.mxu1 %v21307_v60  ;;  %v21374_v59 = vld [vmem:[#allocation4 + $0xc60] ss:$16 sps:$4 sm:$0xff]   ;;  %v21379_v60 = vld [vmem:[#allocation4 + $0xc84] ss:$16 sps:$4 sm:$0xff]  }
 0x3ab   : > { %5361 = vmatprep.subr.bf16.mxu0 %v21310_v62  ;;  %v21377_v62 = vld [vmem:[#allocation4 + $0xc80] ss:$16 sps:$4 sm:$0xff]  }
 0x3ad   : > { %5147 = vmatpush1.bf16.msra.mxu1 %v21305_v1  ;;  %v21382_v1 = vld [vmem:[#allocation4 + $0xca4] ss:$16 sps:$4 sm:$0xff]  }
 0x3ae   : > { %5362 = vmatpush1.bf16.msra.mxu0 %v21308_v31  ;;  %5148 = vmatprep.subr.bf16.mxu1 %v21313_v2  ;;  %v21380_v31 = vld [vmem:[#allocation4 + $0xca0] ss:$16 sps:$4 sm:$0xff]   ;;  %v21385_v2 = vld [vmem:[#allocation4 + $0xcc4] ss:$16 sps:$4 sm:$0xff]  }
 0x3af   : > { %5363 = vmatprep.subr.bf16.mxu0 %v21316_v3 }
 0x3b1   : > { %5149 = vmatpush1.bf16.msra.mxu1 %v21311_v4 }
 0x3b2   : > { %5364 = vmatpush1.bf16.msra.mxu0 %v21314_v30  ;;  %5161 = vmatprep.subr.bf16.mxu1 %v21319_v21  ;;  %v21383_v21 = vld [vmem:[#allocation4 + $0xcc0] ss:$16 sps:$4 sm:$0xff]  }
 0x3b3   : > { %5376 = vmatprep.subr.bf16.mxu0 %v21322_v5 }
 0x3b4   : > { %5151 = vmatmul.mubr.bf16.vlgmr.msra.gmra.mrb[40].mxu1 %v23710_v61  ;;  %v21340_v61 = vld [vmem:[#allocation4 + $0xd6c] ss:$16 sps:$4 sm:$0xff]  }
 0x3b5   : > { %5366 = vmatmul.mubr.bf16.vlgmr.msra.gmra.mrb[32].mxu0 %v23726_v44  ;;  %5162 = vmatpush1.bf16.msra.mxu1 %v21317_v6  ;;  %v21388_v6 = vld [vmem:[#allocation4 + $0xce4] ss:$16 sps:$4 sm:$0xff]  }
 0x3b6   : > { %5193 = vmatprep.mubr.bf16.mxu1 %v23728_v45  ;;  %5377 = vmatpush1.bf16.msra.mxu0 %v21320_v51  ;;  %v21346_v45 = vld [vmem:[#allocation4 + $0xd8c] ss:$16 sps:$4 sm:$0xff]   ;;  %v21386_v51 = vld [vmem:[#allocation4 + $0xce0] ss:$16 sps:$4 sm:$0xff]  }
 0x3b7   : > { %5163 = vmatprep.subr.bf16.mxu1 %v21325_v63  ;;  %5378 = vmatprep.subr.bf16.mxu0 %v21328_v7  ;;  %v21391_v63 = vld [vmem:[#allocation4 + $0xd04] ss:$16 sps:$4 sm:$0xff]   ;;  %v21389_v7 = vld [vmem:[#allocation4 + $0xd00] ss:$16 sps:$4 sm:$0xff]  }
 0x3b8   : > { %5408 = vmatprep.mubr.bf16.mxu0 %v23331_v0 }
 0x3b9   : > { %5164 = vmatpush1.bf16.msra.mxu1 %v21323_v8  ;;  %v21394_v8 = vld [vmem:[#allocation4 + $0xd24] ss:$16 sps:$4 sm:$0xff]  }
 0x3ba   : > { %5379 = vmatpush1.bf16.msra.mxu0 %v21326_v9  ;;  %5165 = vmatprep.subr.bf16.mxu1 %v21331_v11  ;;  %v21392_v9 = vld [vmem:[#allocation4 + $0xd20] ss:$16 sps:$4 sm:$0xff]   ;;  %v21397_v11 = vld [vmem:[#allocation4 + $0xd44] ss:$16 sps:$4 sm:$0xff]  }
 0x3bb   : > { %5380 = vmatprep.subr.bf16.mxu0 %v21334_v16  ;;  %v21395_v16 = vld [vmem:[#allocation4 + $0xd40] ss:$16 sps:$4 sm:$0xff]  }
 0x3bd   : > { %5166 = vmatpush1.bf16.msra.mxu1 %v21329_v17  ;;  %v21400_v17 = vld [vmem:[#allocation4 + $0xd64] ss:$16 sps:$4 sm:$0xff]  }
 0x3be   : > { %5381 = vmatpush1.bf16.msra.mxu0 %v21332_v19  ;;  %5167 = vmatprep.subr.bf16.mxu1 %v21337_v23  ;;  %v21398_v19 = vld [vmem:[#allocation4 + $0xd60] ss:$16 sps:$4 sm:$0xff]   ;;  %v21403_v23 = vld [vmem:[#allocation4 + $0xd84] ss:$16 sps:$4 sm:$0xff]  }
 0x3bf   : > { %5382 = vmatprep.subr.bf16.mxu0 %v21340_v61  ;;  %v21401_v61 = vld [vmem:[#allocation4 + $0xd80] ss:$16 sps:$4 sm:$0xff]  }
 0x3c1   : > { %5168 = vmatpush1.bf16.msra.mxu1 %v21335_v24  ;;  %v21406_v24 = vld [vmem:[#allocation4 + $0xda4] ss:$16 sps:$4 sm:$0xff]  }
 0x3c2   : > { %5383 = vmatpush1.bf16.msra.mxu0 %v21338_v26  ;;  %5169 = vmatprep.subr.bf16.mxu1 %v21343_v27  ;;  %v21409_v26 = vld [vmem:[#allocation4 + $0xdc4] ss:$16 sps:$4 sm:$0xff]  }
 0x3c3   : > { %5384 = vmatprep.subr.bf16.mxu0 %v21346_v45 }
 0x3c5   : > { %5170 = vmatpush1.bf16.msra.mxu1 %v21341_v29 }
 0x3c6   : > { %5385 = vmatpush1.bf16.msra.mxu0 %v21344_v32  ;;  %5171 = vmatprep.subr.bf16.mxu1 %v21349_v20 }
 0x3c7   : > { %5386 = vmatprep.subr.bf16.mxu0 %v21352_v34  ;;  %v21407_v34 = vld [vmem:[#allocation4 + $0xdc0] ss:$16 sps:$4 sm:$0xff]  }
 0x3c8   : > { %v23752_v40 = vpop.f32.mrb[28].mxu0 }
 0x3c9   : > { %v23754_v41 = vpop.f32.mrb[29].mxu0  ;;  %5172 = vmatpush1.bf16.msra.mxu1 %v21347_v33 }
 0x3ca   : > { %v23756_v43 = vpop.f32.mrb[30].mxu0  ;;  %5387 = vmatpush1.bf16.msra.mxu0 %v21350_v18  ;;  %5173 = vmatprep.subr.bf16.mxu1 %v21355_v37  ;;  %v21412_v37 = vld [vmem:[#allocation4 + $0xde4] ss:$16 sps:$4 sm:$0xff]  }
 0x3cb   : > { %v23758_v48 = vpop.f32.mrb[31].mxu0  ;;  %5388 = vmatprep.subr.bf16.mxu0 %v21358_v38 }
 0x3cd   : > { %5174 = vmatpush1.bf16.msra.mxu1 %v21353_v42  ;;  %v21410_v42 = vld [vmem:[#allocation4 + $0xde0] ss:$16 sps:$4 sm:$0xff]  }
 0x3ce   : > { %5389 = vmatpush1.bf16.msra.mxu0 %v21356_v46  ;;  %5175 = vmatprep.subr.bf16.mxu1 %v21361_v47  ;;  %v21418_v46 = vld [vmem:[%s28238_s5 + $0x70c] ss:$28 sps:$4 sm:$0xff]   ;;  %v21424_v47 = vld [vmem:[%s28238_s5 + $0x744] ss:$28 sps:$4 sm:$0xff]  }
 0x3cf   : > { %5390 = vmatprep.subr.bf16.mxu0 %v21364_v49  ;;  %v21422_v49 = vld [vmem:[%s28238_s5 + $0x740] ss:$28 sps:$4 sm:$0xff]  }
 0x3d1   : > { %5176 = vmatpush1.bf16.msra.mxu1 %v21359_v52  ;;  %v21427_v52 = vld [vmem:[%s28238_s5 + $0x774] ss:$28 sps:$4 sm:$0xff]  }
 0x3d2   : > { %5391 = vmatpush1.bf16.msra.mxu0 %v21362_v53  ;;  %5177 = vmatprep.subr.bf16.mxu1 %v21367_v54  ;;  %v21430_v53 = vld [vmem:[%s28238_s5 + $0x77c] ss:$28 sps:$4 sm:$0xff]   ;;  %v21425_v54 = vld [vmem:[%s28238_s5 + $0x770] ss:$28 sps:$4 sm:$0xff]  }
 0x3d3   : > { %7214 = vmatprep.subr.bf16.mxu0 %v21418_v46  ;;  %v21490_v46 = vld [vmem:[%s28238_s5 + $0x9ac] ss:$28 sps:$4 sm:$0xff]  }
 0x3d5   : > { %5409 = vmatmul.mubr.bf16.vlgmr.msra.gmra.mrb[32].mxu0 %v23714_v50  ;;  %5178 = vmatpush1.bf16.msra.mxu1 %v21365_v22  ;;  %v21428_v22 = vld [vmem:[%s28238_s5 + $0x778] ss:$28 sps:$4 sm:$0xff]  }
 0x3d6   : > { %5179 = vmatprep.subr.bf16.mxu1 %v21370_v13  ;;  %v21433_v13 = vld [vmem:[%s28238_s5 + $0x7ac] ss:$28 sps:$4 sm:$0xff]  }
 0x3d9   : > { %5180 = vmatpush1.bf16.msra.mxu1 %v21368_v55  ;;  %v21436_v55 = vld [vmem:[%s28238_s5 + $0x7b4] ss:$28 sps:$4 sm:$0xff]  }
 0x3da   : > { %5181 = vmatprep.subr.bf16.mxu1 %v21373_v56  ;;  %v21431_v56 = vld [vmem:[%s28238_s5 + $0x7a8] ss:$28 sps:$4 sm:$0xff]  }
 0x3dd   : > { %5182 = vmatpush1.bf16.msra.mxu1 %v21371_v57  ;;  %v21434_v57 = vld [vmem:[%s28238_s5 + $0x7b0] ss:$28 sps:$4 sm:$0xff]  }
 0x3de   : > { %5183 = vmatprep.subr.bf16.mxu1 %v21376_v58  ;;  %v21439_v58 = vld [vmem:[%s28238_s5 + $0x7e4] ss:$28 sps:$4 sm:$0xff]  }
 0x3e1   : > { %5184 = vmatpush1.bf16.msra.mxu1 %v21374_v59  ;;  %v21442_v59 = vld [vmem:[%s28238_s5 + $0x7ec] ss:$28 sps:$4 sm:$0xff]  }
 0x3e2   : > { %5185 = vmatprep.subr.bf16.mxu1 %v21379_v60  ;;  %v21437_v60 = vld [vmem:[%s28238_s5 + $0x7e0] ss:$28 sps:$4 sm:$0xff]  }
 0x3e5   : > { %5186 = vmatpush1.bf16.msra.mxu1 %v21377_v62  ;;  %v21440_v62 = vld [vmem:[%s28238_s5 + $0x7e8] ss:$28 sps:$4 sm:$0xff]  }
 0x3e6   : > { %5187 = vmatprep.subr.bf16.mxu1 %v21382_v1  ;;  %v21445_v1 = vld [vmem:[%s28238_s5 + $0x81c] ss:$28 sps:$4 sm:$0xff]  }
 0x3e7   : > { %v23761_v3 = vpop.f32.mrb[32].mxu1 }
 0x3e8   : > { %v23763_v4 = vpop.f32.mrb[33].mxu1 }
 0x3e9   : > { %v23765_v30 = vpop.f32.mrb[34].mxu1  ;;  %5188 = vmatpush1.bf16.msra.mxu1 %v21380_v31  ;;  %v21448_v31 = vld [vmem:[%s28238_s5 + $0x824] ss:$28 sps:$4 sm:$0xff]  }
 0x3ea   : > { %v23767_v5 = vpop.f32.mrb[35].mxu1  ;;  %5189 = vmatprep.subr.bf16.mxu1 %v21385_v2  ;;  %v21443_v2 = vld [vmem:[%s28238_s5 + $0x818] ss:$28 sps:$4 sm:$0xff]  }
 0x3ed   : > { %5190 = vmatpush1.bf16.msra.mxu1 %v21383_v21  ;;  %v21446_v21 = vld [vmem:[%s28238_s5 + $0x820] ss:$28 sps:$4 sm:$0xff]  }
 0x3ee   : > { %5191 = vmatprep.subr.bf16.mxu1 %v21388_v6  ;;  %v21451_v6 = vld [vmem:[%s28238_s5 + $0x854] ss:$28 sps:$4 sm:$0xff]  }
 0x3f1   : > { %5192 = vmatpush1.bf16.msra.mxu1 %v21386_v51  ;;  %v21454_v51 = vld [vmem:[%s28238_s5 + $0x85c] ss:$28 sps:$4 sm:$0xff]  }
 0x3f2   : > { %5204 = vmatprep.subr.bf16.mxu1 %v21391_v63  ;;  %v21449_v63 = vld [vmem:[%s28238_s5 + $0x850] ss:$28 sps:$4 sm:$0xff]  }
 0x3f4   : > { %5194 = vmatmul.mubr.bf16.vlgmr.msra.gmra.mrb[40].mxu1 %v23726_v44  ;;  %v21404_v44 = vld [vmem:[#allocation4 + $0xda0] ss:$16 sps:$4 sm:$0xff]  }
 0x3f5   : > { %5205 = vmatpush1.bf16.msra.mxu1 %v21389_v7  ;;  %5236 = vmatprep.mubr.bf16.mxu1 %v23331_v0  ;;  %v21452_v7 = vld [vmem:[%s28238_s5 + $0x858] ss:$28 sps:$4 sm:$0xff]  }
 0x3f6   : > { %5206 = vmatprep.subr.bf16.mxu1 %v21394_v8  ;;  %v21457_v8 = vld [vmem:[%s28238_s5 + $0x88c] ss:$28 sps:$4 sm:$0xff]  }
 0x3f9   : > { %5207 = vmatpush1.bf16.msra.mxu1 %v21392_v9  ;;  %v21460_v9 = vld [vmem:[%s28238_s5 + $0x894] ss:$28 sps:$4 sm:$0xff]  }
 0x3fa   : > { %5208 = vmatprep.subr.bf16.mxu1 %v21397_v11  ;;  %v21455_v11 = vld [vmem:[%s28238_s5 + $0x888] ss:$28 sps:$4 sm:$0xff]  }
 0x3fd   : > { %5209 = vmatpush1.bf16.msra.mxu1 %v21395_v16  ;;  %v21458_v16 = vld [vmem:[%s28238_s5 + $0x890] ss:$28 sps:$4 sm:$0xff]  }
 0x3fe   : > { %5210 = vmatprep.subr.bf16.mxu1 %v21400_v17  ;;  %v21463_v17 = vld [vmem:[%s28238_s5 + $0x8c4] ss:$28 sps:$4 sm:$0xff]  }
 0x401   : > { %5211 = vmatpush1.bf16.msra.mxu1 %v21398_v19  ;;  %v21466_v19 = vld [vmem:[%s28238_s5 + $0x8cc] ss:$28 sps:$4 sm:$0xff]  }
 0x402   : > { %5212 = vmatprep.subr.bf16.mxu1 %v21403_v23  ;;  %v21461_v23 = vld [vmem:[%s28238_s5 + $0x8c0] ss:$28 sps:$4 sm:$0xff]  }
 0x405   : > { %5213 = vmatpush1.bf16.msra.mxu1 %v21401_v61  ;;  %v21464_v61 = vld [vmem:[%s28238_s5 + $0x8c8] ss:$28 sps:$4 sm:$0xff]  }
 0x406   : > { %5214 = vmatprep.subr.bf16.mxu1 %v21406_v24  ;;  %v21469_v24 = vld [vmem:[%s28238_s5 + $0x8fc] ss:$28 sps:$4 sm:$0xff]  }
 0x407   : > { %v3721_v27 = vpop.f32.mrb[36].mxu1 }
 0x408   : > { %v23772_v45 = vadd.f32 %v3721_v27, %v23752_v40  ;;  %v3723_v29 = vpop.f32.mrb[37].mxu1  ;;  %v21413_v40 = vld [vmem:[%s28238_s5 + $0x700] ss:$28 sps:$4 sm:$0xff]  }
 0x409   : > { %v23775_v32 = vadd.f32 %v3723_v29, %v23754_v41  ;;  %v3725_v20 = vpop.f32.mrb[38].mxu1  ;;  %5215 = vmatpush1.bf16.msra.mxu1 %v21404_v44  ;;  %v21415_v41 = vld [vmem:[%s28238_s5 + $0x704] ss:$28 sps:$4 sm:$0xff]   ;;  %v21475_v29 = vld [vmem:[%s28238_s5 + $0x934] ss:$28 sps:$4 sm:$0xff]  }
 0x40a   : > { %v23778_v33 = vadd.f32 %v3725_v20, %v23756_v43  ;;  %v3727_v18 = vpop.f32.mrb[39].mxu1  ;;  %5216 = vmatprep.subr.bf16.mxu1 %v21409_v26  ;;  %v21416_v43 = vld [vmem:[%s28238_s5 + $0x708] ss:$28 sps:$4 sm:$0xff]   ;;  %v21467_v26 = vld [vmem:[%s28238_s5 + $0x8f8] ss:$28 sps:$4 sm:$0xff]  }
 0x40b   : > { %v23781_v38 = vadd.f32 %v3727_v18, %v23758_v48  ;;  %v21419_v48 = vld [vmem:[%s28238_s5 + $0x738] ss:$28 sps:$4 sm:$0xff]   ;;  %7215 = vmatpush1.bf16.msra.mxu0 %v21416_v43  ;;  %v21472_v44 = vld [vmem:[%s28238_s5 + $0x904] ss:$28 sps:$4 sm:$0xff]  }
 0x40c   : > { %7216 = vmatprep.subr.bf16.mxu0 %v21424_v47  ;;  %v21470_v27 = vld [vmem:[%s28238_s5 + $0x900] ss:$28 sps:$4 sm:$0xff]   ;;  %v21476_v18 = vld [vmem:[%s28238_s5 + $0x938] ss:$28 sps:$4 sm:$0xff]   ;;  %v21488_v47 = vld [vmem:[%s28238_s5 + $0x9a8] ss:$28 sps:$4 sm:$0xff]  }
 0x40d   : > { %5217 = vmatpush1.bf16.msra.mxu1 %v21407_v34  ;;  %v21478_v20 = vld [vmem:[%s28238_s5 + $0x93c] ss:$28 sps:$4 sm:$0xff]   ;;  %v21473_v34 = vld [vmem:[%s28238_s5 + $0x930] ss:$28 sps:$4 sm:$0xff]   ;;  %v21487_v43 = vld [vmem:[%s28238_s5 + $0x9a4] ss:$28 sps:$4 sm:$0xff]  }
 0x40e   : > { %5218 = vmatprep.subr.bf16.mxu1 %v21412_v37  ;;  %v21481_v37 = vld [vmem:[%s28238_s5 + $0x96c] ss:$28 sps:$4 sm:$0xff]  }
 0x40f   : > { %7217 = vmatpush1.bf16.msra.mxu0 %v21422_v49  ;;  %v21496_v49 = vld [vmem:[%s28238_s5 + $0x9e4] ss:$28 sps:$4 sm:$0xff]  }
 0x410   : > { %7218 = vmatprep.subr.bf16.mxu0 %v21430_v53  ;;  %v21494_v53 = vld [vmem:[%s28238_s5 + $0x9e0] ss:$28 sps:$4 sm:$0xff]  }
 0x411   : > { %5219 = vmatpush1.bf16.msra.mxu1 %v21410_v42  ;;  %v21484_v42 = vld [vmem:[%s28238_s5 + $0x974] ss:$28 sps:$4 sm:$0xff]  }
 0x412   : > { %7128 = vmatprep.subr.bf16.mxu1 %v21415_v41  ;;  %v21482_v41 = vld [vmem:[%s28238_s5 + $0x970] ss:$28 sps:$4 sm:$0xff]  }
 0x413   : > { %7219 = vmatpush1.bf16.msra.mxu0 %v21428_v22  ;;  %v21499_v22 = vld [vmem:[%s28238_s5 + $0xa14] ss:$28 sps:$4 sm:$0xff]  }
 0x414   : > { %5237 = vmatmul.mubr.bf16.vlgmr.msra.gmra.mrb[40].mxu1 %v23714_v50  ;;  %v21421_v50 = vld [vmem:[%s28238_s5 + $0x73c] ss:$28 sps:$4 sm:$0xff]   ;;  %7220 = vmatprep.subr.bf16.mxu0 %v21436_v55 }
 0x415   : > { %7129 = vmatpush1.bf16.msra.mxu1 %v21413_v40  ;;  %v21479_v40 = vld [vmem:[%s28238_s5 + $0x968] ss:$28 sps:$4 sm:$0xff]   ;;  %v21502_v55 = vld [vmem:[%s28238_s5 + $0xa1c] ss:$28 sps:$4 sm:$0xff]  }
 0x416   : > { %7130 = vmatprep.subr.bf16.mxu1 %v21421_v50  ;;  %v21485_v50 = vld [vmem:[%s28238_s5 + $0x9a0] ss:$28 sps:$4 sm:$0xff]  }
 0x417   : > { %7221 = vmatpush1.bf16.msra.mxu0 %v21434_v57  ;;  %v21508_v57 = vld [vmem:[%s28238_s5 + $0xa54] ss:$28 sps:$4 sm:$0xff]  }
 0x418   : > { %7222 = vmatprep.subr.bf16.mxu0 %v21442_v59  ;;  %v21506_v59 = vld [vmem:[%s28238_s5 + $0xa50] ss:$28 sps:$4 sm:$0xff]  }
 0x419   : > { %7131 = vmatpush1.bf16.msra.mxu1 %v21419_v48  ;;  %v21493_v48 = vld [vmem:[%s28238_s5 + $0x9dc] ss:$28 sps:$4 sm:$0xff]  }
 0x41a   : > { %7132 = vmatprep.subr.bf16.mxu1 %v21427_v52  ;;  %v21491_v52 = vld [vmem:[%s28238_s5 + $0x9d8] ss:$28 sps:$4 sm:$0xff]  }
 0x41b   : > { %7223 = vmatpush1.bf16.msra.mxu0 %v21440_v62  ;;  %v21514_v62 = vld [vmem:[%s28238_s5 + $0xa8c] ss:$28 sps:$4 sm:$0xff]  }
 0x41c   : > { %7224 = vmatprep.subr.bf16.mxu0 %v21448_v31 }
 0x41d   : > { %7133 = vmatpush1.bf16.msra.mxu1 %v21425_v54  ;;  %v21497_v54 = vld [vmem:[%s28238_s5 + $0xa10] ss:$28 sps:$4 sm:$0xff]  }
 0x41e   : > { %7134 = vmatprep.subr.bf16.mxu1 %v21433_v13  ;;  %v21500_v13 = vld [vmem:[%s28238_s5 + $0xa18] ss:$28 sps:$4 sm:$0xff]  }
 0x41f   : > { %7225 = vmatpush1.bf16.msra.mxu0 %v21446_v21 }
 0x420   : > { %7226 = vmatprep.subr.bf16.mxu0 %v21454_v51 }
 0x421   : > { %7135 = vmatpush1.bf16.msra.mxu1 %v21431_v56  ;;  %v21505_v56 = vld [vmem:[%s28238_s5 + $0xa4c] ss:$28 sps:$4 sm:$0xff]  }
 0x422   : > { %7136 = vmatprep.subr.bf16.mxu1 %v21439_v58  ;;  %v21503_v58 = vld [vmem:[%s28238_s5 + $0xa48] ss:$28 sps:$4 sm:$0xff]  }
 0x423   : > { %7227 = vmatpush1.bf16.msra.mxu0 %v21452_v7 }
 0x424   : > { %7228 = vmatprep.subr.bf16.mxu0 %v21460_v9 }
 0x425   : > { %7137 = vmatpush1.bf16.msra.mxu1 %v21437_v60  ;;  %v21511_v60 = vld [vmem:[%s28238_s5 + $0xa84] ss:$28 sps:$4 sm:$0xff]  }
 0x426   : > { %7138 = vmatprep.subr.bf16.mxu1 %v21445_v1 }
 0x427   : > { %7229 = vmatpush1.bf16.msra.mxu0 %v21458_v16 }
 0x428   : > { %7230 = vmatprep.subr.bf16.mxu0 %v21466_v19 }
 0x429   : > { %7139 = vmatpush1.bf16.msra.mxu1 %v21443_v2 }
 0x42a   : > { %7140 = vmatprep.subr.bf16.mxu1 %v21451_v6 }
 0x42b   : > { %7231 = vmatpush1.bf16.msra.mxu0 %v21464_v61 }
 0x42c   : > { %7232 = vmatprep.subr.bf16.mxu0 %v21472_v44 }
 0x42d   : > { %7141 = vmatpush1.bf16.msra.mxu1 %v21449_v63 }
 0x42e   : > { %7142 = vmatprep.subr.bf16.mxu1 %v21457_v8 }
 0x42f   : > { %7233 = vmatpush1.bf16.msra.mxu0 %v21470_v27 }
 0x430   : > { %7234 = vmatprep.subr.bf16.mxu0 %v21478_v20 }
 0x431   : > { %7143 = vmatpush1.bf16.msra.mxu1 %v21455_v11 }
 0x432   : > { %7144 = vmatprep.subr.bf16.mxu1 %v21463_v17 }
 0x433   : > { %7235 = vmatpush1.bf16.msra.mxu0 %v21476_v18 }
 0x434   : > { %7236 = vmatprep.subr.bf16.mxu0 %v21484_v42  ;;  %v21517_v42 = vld [vmem:[%s28238_s5 + $0xabc] ss:$28 sps:$4 sm:$0xff]  }
 0x435   : > { %7145 = vmatpush1.bf16.msra.mxu1 %v21461_v23 }
 0x436   : > { %7146 = vmatprep.subr.bf16.mxu1 %v21469_v24 }
 0x437   : > { %7237 = vmatpush1.bf16.msra.mxu0 %v21482_v41 }
 0x438   : > { %7238 = vmatprep.subr.bf16.mxu0 %v21490_v46  ;;  %v21518_v46 = vld [vmem:[%s28238_s5 + $0xac0] ss:$28 sps:$4 sm:$0xff]  }
 0x439   : > { %7147 = vmatpush1.bf16.msra.mxu1 %v21467_v26 }
 0x43a   : > { %7148 = vmatprep.subr.bf16.mxu1 %v21475_v29 }
 0x43b   : > { %7239 = vmatpush1.bf16.msra.mxu0 %v21488_v47  ;;  %v21526_v47 = vld [vmem:[%s28238_s5 + $0xafc] ss:$28 sps:$4 sm:$0xff]  }
 0x43c   : > { %7240 = vmatprep.subr.bf16.mxu0 %v21496_v49  ;;  %v21524_v49 = vld [vmem:[%s28238_s5 + $0xaf8] ss:$28 sps:$4 sm:$0xff]  }
 0x43d   : > { %7149 = vmatpush1.bf16.msra.mxu1 %v21473_v34  ;;  %v21512_v34 = vld [vmem:[%s28238_s5 + $0xa88] ss:$28 sps:$4 sm:$0xff]  }
 0x43e   : > { %7150 = vmatprep.subr.bf16.mxu1 %v21481_v37 }
 0x43f   : > { %7241 = vmatpush1.bf16.msra.mxu0 %v21494_v53  ;;  %v21532_v53 = vld [vmem:[%s28238_s5 + $0xb34] ss:$28 sps:$4 sm:$0xff]  }
 0x440   : > { %7242 = vmatprep.subr.bf16.mxu0 %v21502_v55  ;;  %v21538_v55 = vld [vmem:[%s28238_s5 + $0xb6c] ss:$28 sps:$4 sm:$0xff]  }
 0x441   : > { %7151 = vmatpush1.bf16.msra.mxu1 %v21479_v40  ;;  %v21520_v40 = vld [vmem:[%s28238_s5 + $0xac4] ss:$28 sps:$4 sm:$0xff]  }
 0x442   : > { %7152 = vmatprep.subr.bf16.mxu1 %v21487_v43  ;;  %v21515_v43 = vld [vmem:[%s28238_s5 + $0xab8] ss:$28 sps:$4 sm:$0xff]  }
 0x443   : > { %7243 = vmatpush1.bf16.msra.mxu0 %v21500_v13  ;;  %v21535_v13 = vld [vmem:[%s28238_s5 + $0xb64] ss:$28 sps:$4 sm:$0xff]  }
 0x444   : > { %7244 = vmatprep.subr.bf16.mxu0 %v21508_v57  ;;  %v21536_v57 = vld [vmem:[%s28238_s5 + $0xb68] ss:$28 sps:$4 sm:$0xff]  }
 0x445   : > { %7153 = vmatpush1.bf16.msra.mxu1 %v21485_v50  ;;  %v21523_v50 = vld [vmem:[%s28238_s5 + $0xaf4] ss:$28 sps:$4 sm:$0xff]  }
 0x446   : > { %7154 = vmatprep.subr.bf16.mxu1 %v21493_v48  ;;  %v21521_v48 = vld [vmem:[%s28238_s5 + $0xaf0] ss:$28 sps:$4 sm:$0xff]  }
 0x447   : > { %7245 = vmatpush1.bf16.msra.mxu0 %v21506_v59  ;;  %v21544_v59 = vld [vmem:[%s28238_s5 + $0xba4] ss:$28 sps:$4 sm:$0xff]  }
 0x448   : > { %7257 = vmatprep.subr.bf16.mxu0 %v21514_v62  ;;  %v21542_v62 = vld [vmem:[%s28238_s5 + $0xba0] ss:$28 sps:$4 sm:$0xff]  }
 0x449   : > { %7155 = vmatpush1.bf16.msra.mxu1 %v21491_v52  ;;  %v21529_v52 = vld [vmem:[%s28238_s5 + $0xb2c] ss:$28 sps:$4 sm:$0xff]  }
 0x44a   : > { %7156 = vmatprep.subr.bf16.mxu1 %v21499_v22  ;;  %v21530_v22 = vld [vmem:[%s28238_s5 + $0xb30] ss:$28 sps:$4 sm:$0xff]  }
 0x44d   : > { %7157 = vmatpush1.bf16.msra.mxu1 %v21497_v54  ;;  %v21527_v54 = vld [vmem:[%s28238_s5 + $0xb28] ss:$28 sps:$4 sm:$0xff]  }
 0x44e   : > { %7158 = vmatprep.subr.bf16.mxu1 %v21505_v56  ;;  %v21533_v56 = vld [vmem:[%s28238_s5 + $0xb60] ss:$28 sps:$4 sm:$0xff]  }
 0x451   : > { %7159 = vmatpush1.bf16.msra.mxu1 %v21503_v58  ;;  %v21541_v58 = vld [vmem:[%s28238_s5 + $0xb9c] ss:$28 sps:$4 sm:$0xff]  }
 0x452   : > { %7171 = vmatprep.subr.bf16.mxu1 %v21511_v60  ;;  %v21539_v60 = vld [vmem:[%s28238_s5 + $0xb98] ss:$28 sps:$4 sm:$0xff]  }
 0x4a8   : > { %v5410_v1 = vpop.f32.mrb[32].mxu0 }
 0x4a9   : > { %v5421_v31 = vmax.f32 %v23772_v45, %v5410_v1  ;;  %v5412_v2 = vpop.f32.mrb[33].mxu0  ;;  %v21547_v1 = vld [vmem:[%s28238_s5 + $0xbd4] ss:$28 sps:$4 sm:$0xff]  }
 0x4aa   : > { %v5422_v21 = vmax.f32 %v23775_v32, %v5412_v2  ;;  %v5414_v6 = vpop.f32.mrb[34].mxu0  ;;  %v21545_v2 = vld [vmem:[%s28238_s5 + $0xbd0] ss:$28 sps:$4 sm:$0xff]  }
 0x4ab   : > { %v5425_v51 = vmax.f32 %v23778_v33, %v5414_v6  ;;  %v5416_v63 = vpop.f32.mrb[35].mxu0  ;;  %v21553_v6 = vld [vmem:[%s28238_s5 + $0xc0c] ss:$28 sps:$4 sm:$0xff]  }
 0x4ac   : > { %v5426_v7 = vmax.f32 %v23781_v38, %v5416_v63  ;;  %v21551_v63 = vld [vmem:[%s28238_s5 + $0xc08] ss:$28 sps:$4 sm:$0xff]  }
 0x4ad   : > { %v23986_v8 = vpack.c.bf16 %v5425_v51, %v5421_v31  ;;  %v21550_v31 = vld [vmem:[%s28238_s5 + $0xbdc] ss:$28 sps:$4 sm:$0xff]   ;;  %v21556_v51 = vld [vmem:[%s28238_s5 + $0xc14] ss:$28 sps:$4 sm:$0xff]  }
 0x4ae   : > { %v23988_v9 = vpack.c.bf16 %v5426_v7, %v5422_v21  ;;  %v21548_v21 = vld [vmem:[%s28238_s5 + $0xbd8] ss:$28 sps:$4 sm:$0xff]   ;;  %v21554_v7 = vld [vmem:[%s28238_s5 + $0xc10] ss:$28 sps:$4 sm:$0xff]  }
 0x4b0   : > { %v5968_v44 = vshll.u32 %v23988_v9, 16  ;;  %v5966_v37 = vshrl.u32 %v23988_v9, 16 }
 0x4e7   : > { %v5238_v11 = vpop.f32.mrb[40].mxu1 }
 0x4e8   : > { %v5419_v16 = vmax.f32 %v23761_v3, %v5238_v11  ;;  %v5240_v17 = vpop.f32.mrb[41].mxu1  ;;  %v21559_v11 = vld [vmem:[%s28238_s5 + $0xc44] ss:$28 sps:$4 sm:$0xff]  }
 0x4e9   : > { %v5420_v19 = vmax.f32 %v23763_v4, %v5240_v17  ;;  %v5242_v45 = vpop.f32.mrb[42].mxu1  ;;  %v21557_v17 = vld [vmem:[%s28238_s5 + $0xc40] ss:$28 sps:$4 sm:$0xff]  }
 0x4ea   : > { %v5423_v23 = vmax.f32 %v23765_v30, %v5242_v45  ;;  %v5244_v32 = vpop.f32.mrb[43].mxu1  ;;  %v5970_v30 = vrot.slane %v5968_v44, 1  ;;  %v21565_v45 = vld [vmem:[%s28238_s5 + $0xc7c] ss:$28 sps:$4 sm:$0xff]  }
 0x4eb   : > { %v5424_v61 = vmax.f32 %v23767_v5, %v5244_v32  ;;  %v21509_v5 = vld [vmem:[%s28238_s5 + $0xa80] ss:$28 sps:$4 sm:$0xff]   ;;  %v21563_v32 = vld [vmem:[%s28238_s5 + $0xc78] ss:$28 sps:$4 sm:$0xff]  }
 0x4ec   : > { %v23994_v33 = vpack.c.bf16 %v5423_v23, %v5419_v16  ;;  %v24024_v41 = vor.u32 %v5970_v30, %v5966_v37  ;;  %v21562_v16 = vld [vmem:[%s28238_s5 + $0xc4c] ss:$28 sps:$4 sm:$0xff]   ;;  %v21568_v23 = vld [vmem:[%s28238_s5 + $0xc84] ss:$28 sps:$4 sm:$0xff]   ;;  %v21574_v44 = vld [vmem:[%s28238_s5 + $0xcbc] ss:$28 sps:$4 sm:$0xff]  }
 0x4ed   : > { %v23996_v24 = vpack.c.bf16 %v5424_v61, %v5420_v19  ;;  %v21560_v19 = vld [vmem:[%s28238_s5 + $0xc48] ss:$28 sps:$4 sm:$0xff]   ;;  %v21566_v61 = vld [vmem:[%s28238_s5 + $0xc80] ss:$28 sps:$4 sm:$0xff]   ;;  %v21578_v30 = vld [vmem:[%s28238_s5 + $0xcf0] ss:$28 sps:$4 sm:$0xff]  }
 0x4ee   : > { %v5947_v38 = vshll.u32 %v23994_v33, 16  ;;  %v5945_v29 = vshrl.u32 %v23994_v33, 16  ;;  %v21581_v37 = vld [vmem:[%s28238_s5 + $0xd20] ss:$28 sps:$4 sm:$0xff]  }
 0x4ef   : > { %v5954_v26 = vshll.u32 %v23996_v24, 16  ;;  %v5952_v27 = vshrl.u32 %v23996_v24, 16 }
 0x4f0   : > { %v5949_v3 = vrot.slane %v5947_v38, 1  ;;  %v21571_v38 = vld [vmem:[%s28238_s5 + $0xcb4] ss:$28 sps:$4 sm:$0xff]  }
 0x4f1   : > { %v5956_v4 = vrot.slane %v5954_v26, 1  ;;  %v21569_v26 = vld [vmem:[%s28238_s5 + $0xcb0] ss:$28 sps:$4 sm:$0xff]  }
 0x4f2   : > { %v24011_v18 = vor.u32 %v5949_v3, %v5945_v29  ;;  %v21572_v3 = vld [vmem:[%s28238_s5 + $0xcb8] ss:$28 sps:$4 sm:$0xff]   ;;  %v21575_v29 = vld [vmem:[%s28238_s5 + $0xce8] ss:$28 sps:$4 sm:$0xff]  }
 0x4f3   : > { %v24003_v20 = vor.u32 %v5956_v4, %v5952_v27  ;;  %v21577_v27 = vld [vmem:[%s28238_s5 + $0xcec] ss:$28 sps:$4 sm:$0xff]   ;;  %v21580_v4 = vld [vmem:[%s28238_s5 + $0xcf4] ss:$28 sps:$4 sm:$0xff]  }
 0x4f5   : > { %7160 = vmatprep.mubr.bf16.mxu1 %v24003_v20  ;;  %7246 = vmatprep.mubr.bf16.mxu0 %v24003_v20 }
 0x4f6   : > { %7161 = vmatmul.mubr.bf16.vlgmr.msra.gmra.mrb[44].mxu1 %v24011_v18  ;;  %7247 = vmatmul.mubr.bf16.vlgmr.msra.gmra.mrb[36].mxu0 %v24011_v18 }
 0x4f7   : > { %7172 = vmatpush1.bf16.msra.mxu1 %v21509_v5  ;;  %7258 = vmatpush1.bf16.msra.mxu0 %v21512_v34  ;;  %v21583_v5 = vld [vmem:[%s28238_s5 + $0xd24] ss:$28 sps:$4 sm:$0xff]   ;;  %v21586_v34 = vld [vmem:[%s28238_s5 + $0xd2c] ss:$28 sps:$4 sm:$0xff]  }
 0x4f8   : > { %7203 = vmatprep.mubr.bf16.mxu1 %v24024_v41  ;;  %7289 = vmatprep.mubr.bf16.mxu0 %v24024_v41 }
 0x4f9   : > { %7173 = vmatprep.subr.bf16.mxu1 %v21517_v42  ;;  %7259 = vmatprep.subr.bf16.mxu0 %v21520_v40  ;;  %v21584_v42 = vld [vmem:[%s28238_s5 + $0xd28] ss:$28 sps:$4 sm:$0xff]   ;;  %v21589_v40 = vld [vmem:[%s28238_s5 + $0xd5c] ss:$28 sps:$4 sm:$0xff]  }
 0x4fb   : > { %7174 = vmatpush1.bf16.msra.mxu1 %v21515_v43  ;;  %7260 = vmatpush1.bf16.msra.mxu0 %v21518_v46  ;;  %v21592_v43 = vld [vmem:[%s28238_s5 + $0xd64] ss:$28 sps:$4 sm:$0xff]   ;;  %v21587_v46 = vld [vmem:[%s28238_s5 + $0xd58] ss:$28 sps:$4 sm:$0xff]  }
 0x4fc   : > { %7175 = vmatprep.subr.bf16.mxu1 %v21523_v50  ;;  %7261 = vmatprep.subr.bf16.mxu0 %v21526_v47  ;;  %v21590_v50 = vld [vmem:[%s28238_s5 + $0xd60] ss:$28 sps:$4 sm:$0xff]   ;;  %v21595_v47 = vld [vmem:[%s28238_s5 + $0xd94] ss:$28 sps:$4 sm:$0xff]  }
 0x4ff   : > { %7176 = vmatpush1.bf16.msra.mxu1 %v21521_v48  ;;  %7262 = vmatpush1.bf16.msra.mxu0 %v21524_v49  ;;  %v21598_v48 = vld [vmem:[%s28238_s5 + $0xd9c] ss:$28 sps:$4 sm:$0xff]   ;;  %v21593_v49 = vld [vmem:[%s28238_s5 + $0xd90] ss:$28 sps:$4 sm:$0xff]  }
 0x500   : > { %7177 = vmatprep.subr.bf16.mxu1 %v21529_v52  ;;  %7263 = vmatprep.subr.bf16.mxu0 %v21532_v53  ;;  %v21596_v52 = vld [vmem:[%s28238_s5 + $0xd98] ss:$28 sps:$4 sm:$0xff]   ;;  %v21601_v53 = vld [vmem:[%s28238_s5 + $0xdcc] ss:$28 sps:$4 sm:$0xff]  }
 0x503   : > { %7178 = vmatpush1.bf16.msra.mxu1 %v21527_v54  ;;  %7264 = vmatpush1.bf16.msra.mxu0 %v21530_v22  ;;  %v21604_v54 = vld [vmem:[%s28238_s5 + $0xdd4] ss:$28 sps:$4 sm:$0xff]   ;;  %v5961_v22 = vshll.u32 %v23986_v8, 16 }
 0x504   : > { %7179 = vmatprep.subr.bf16.mxu1 %v21535_v13  ;;  %7265 = vmatprep.subr.bf16.mxu0 %v21538_v55  ;;  %v21599_v13 = vld [vmem:[%s28238_s5 + $0xdc8] ss:$28 sps:$4 sm:$0xff]   ;;  %v21602_v55 = vld [vmem:[%s28238_s5 + $0xdd0] ss:$28 sps:$4 sm:$0xff]  }
 0x507   : > { %7180 = vmatpush1.bf16.msra.mxu1 %v21533_v56  ;;  %7266 = vmatpush1.bf16.msra.mxu0 %v21536_v57  ;;  %v5963_v56 = vrot.slane %v5961_v22, 1  ;;  %v21607_v57 = vld [vmem:[%s28238_s5 + $0x714] ss:$28 sps:$4 sm:$0xff]   ;;  %v21655_v22 = vld [vmem:[%s28238_s5 + $0x940] ss:$28 sps:$4 sm:$0xff]  }
 0x508   : > { %7181 = vmatprep.subr.bf16.mxu1 %v21541_v58  ;;  %7267 = vmatprep.subr.bf16.mxu0 %v21544_v59  ;;  %v21608_v58 = vld [vmem:[%s28238_s5 + $0x8d8] ss:$28 sps:$4 sm:$0xff]   ;;  %v5959_v59 = vshrl.u32 %v23986_v8, 16 }
 0x50b   : > { %7182 = vmatpush1.bf16.msra.mxu1 %v21539_v60  ;;  %7268 = vmatpush1.bf16.msra.mxu0 %v21542_v62  ;;  %v21605_v60 = vld [vmem:[%s28238_s5 + $0x710] ss:$28 sps:$4 sm:$0xff]   ;;  %v24213_v62 = vor.u32 %v5963_v56, %v5959_v59  ;;  %v21663_v56 = vld [vmem:[%s28238_s5 + $0xd00] ss:$28 sps:$4 sm:$0xff]  }
 0x50c   : > { %7183 = vmatprep.subr.bf16.mxu1 %v21547_v1  ;;  %7269 = vmatprep.subr.bf16.mxu0 %v21550_v31  ;;  %v21609_v1 = vld [vmem:[%s28238_s5 + $0x718] ss:$28 sps:$4 sm:$0xff]   ;;  %v21612_v31 = vld [vmem:[%s28238_s5 + $0x74c] ss:$28 sps:$4 sm:$0xff]  }
 0x50d   : > { %v21667_v59 = vld [vmem:[%s28238_s5 + $0x9b4] ss:$28 sps:$4 sm:$0xff]  }
 0x50f   : > { %7184 = vmatpush1.bf16.msra.mxu1 %v21545_v2  ;;  %7270 = vmatpush1.bf16.msra.mxu0 %v21548_v21  ;;  %v21613_v2 = vld [vmem:[%s28238_s5 + $0x910] ss:$28 sps:$4 sm:$0xff]   ;;  %v21610_v21 = vld [vmem:[%s28238_s5 + $0x748] ss:$28 sps:$4 sm:$0xff]  }
 0x510   : > { %7185 = vmatprep.subr.bf16.mxu1 %v21553_v6  ;;  %7271 = vmatprep.subr.bf16.mxu0 %v21556_v51  ;;  %v21614_v6 = vld [vmem:[%s28238_s5 + $0x750] ss:$28 sps:$4 sm:$0xff]   ;;  %v21617_v51 = vld [vmem:[%s28238_s5 + $0x784] ss:$28 sps:$4 sm:$0xff]  }
 0x513   : > { %7186 = vmatpush1.bf16.msra.mxu1 %v21551_v63  ;;  %7272 = vmatpush1.bf16.msra.mxu0 %v21554_v7  ;;  %v21618_v63 = vld [vmem:[%s28238_s5 + $0x948] ss:$28 sps:$4 sm:$0xff]   ;;  %v21615_v7 = vld [vmem:[%s28238_s5 + $0x780] ss:$28 sps:$4 sm:$0xff]  }
 0x514   : > { %7187 = vmatprep.subr.bf16.mxu1 %v21559_v11  ;;  %7273 = vmatprep.subr.bf16.mxu0 %v21562_v16  ;;  %v21622_v11 = vld [vmem:[%s28238_s5 + $0x7bc] ss:$28 sps:$4 sm:$0xff]  }
 0x515   : > { %v21623_v16 = vld [vmem:[%s28238_s5 + $0x980] ss:$28 sps:$4 sm:$0xff]  }
 0x517   : > { %7188 = vmatpush1.bf16.msra.mxu1 %v21557_v17  ;;  %7274 = vmatpush1.bf16.msra.mxu0 %v21560_v19  ;;  %v21620_v17 = vld [vmem:[%s28238_s5 + $0x7b8] ss:$28 sps:$4 sm:$0xff]   ;;  %v21624_v19 = vld [vmem:[%s28238_s5 + $0x7c0] ss:$28 sps:$4 sm:$0xff]  }
 0x518   : > { %7189 = vmatprep.subr.bf16.mxu1 %v21565_v45  ;;  %7275 = vmatprep.subr.bf16.mxu0 %v21568_v23  ;;  %v21627_v45 = vld [vmem:[%s28238_s5 + $0x7f4] ss:$28 sps:$4 sm:$0xff]  }
 0x519   : > { %v21628_v23 = vld [vmem:[%s28238_s5 + $0x9b8] ss:$28 sps:$4 sm:$0xff]  }
 0x51b   : > { %7190 = vmatpush1.bf16.msra.mxu1 %v21563_v32  ;;  %7276 = vmatpush1.bf16.msra.mxu0 %v21566_v61  ;;  %v21625_v32 = vld [vmem:[%s28238_s5 + $0x7f0] ss:$28 sps:$4 sm:$0xff]   ;;  %v21629_v61 = vld [vmem:[%s28238_s5 + $0x7f8] ss:$28 sps:$4 sm:$0xff]  }
 0x51c   : > { %7191 = vmatprep.subr.bf16.mxu1 %v21571_v38  ;;  %7277 = vmatprep.subr.bf16.mxu0 %v21574_v44  ;;  %v21632_v38 = vld [vmem:[%s28238_s5 + $0x82c] ss:$28 sps:$4 sm:$0xff]  }
 0x51d   : > { %v21633_v44 = vld [vmem:[%s28238_s5 + $0x9f0] ss:$28 sps:$4 sm:$0xff]  }
 0x51f   : > { %7192 = vmatpush1.bf16.msra.mxu1 %v21569_v26  ;;  %7278 = vmatpush1.bf16.msra.mxu0 %v21572_v3  ;;  %v21630_v26 = vld [vmem:[%s28238_s5 + $0x828] ss:$28 sps:$4 sm:$0xff]   ;;  %v21634_v3 = vld [vmem:[%s28238_s5 + $0x830] ss:$28 sps:$4 sm:$0xff]  }
 0x520   : > { %7193 = vmatprep.subr.bf16.mxu1 %v21577_v27  ;;  %7279 = vmatprep.subr.bf16.mxu0 %v21580_v4  ;;  %v21637_v27 = vld [vmem:[%s28238_s5 + $0x864] ss:$28 sps:$4 sm:$0xff]  }
 0x521   : > { %v21638_v4 = vld [vmem:[%s28238_s5 + $0xa28] ss:$28 sps:$4 sm:$0xff]  }
 0x523   : > { %7194 = vmatpush1.bf16.msra.mxu1 %v21575_v29  ;;  %7280 = vmatpush1.bf16.msra.mxu0 %v21578_v30  ;;  %v21635_v29 = vld [vmem:[%s28238_s5 + $0x860] ss:$28 sps:$4 sm:$0xff]   ;;  %v21639_v30 = vld [vmem:[%s28238_s5 + $0x868] ss:$28 sps:$4 sm:$0xff]  }
 0x524   : > { %7195 = vmatprep.subr.bf16.mxu1 %v21583_v5  ;;  %7281 = vmatprep.subr.bf16.mxu0 %v21586_v34  ;;  %v21642_v5 = vld [vmem:[%s28238_s5 + $0x89c] ss:$28 sps:$4 sm:$0xff]  }
 0x525   : > { %v21643_v34 = vld [vmem:[%s28238_s5 + $0xa60] ss:$28 sps:$4 sm:$0xff]  }
 0x527   : > { %7196 = vmatpush1.bf16.msra.mxu1 %v21581_v37  ;;  %7282 = vmatpush1.bf16.msra.mxu0 %v21584_v42  ;;  %v21640_v37 = vld [vmem:[%s28238_s5 + $0x898] ss:$28 sps:$4 sm:$0xff]   ;;  %v21644_v42 = vld [vmem:[%s28238_s5 + $0x8a0] ss:$28 sps:$4 sm:$0xff]  }
 0x528   : > { %7197 = vmatprep.subr.bf16.mxu1 %v21589_v40  ;;  %7283 = vmatprep.subr.bf16.mxu0 %v21592_v43  ;;  %v21647_v40 = vld [vmem:[%s28238_s5 + $0x8d4] ss:$28 sps:$4 sm:$0xff]  }
 0x529   : > { %v21648_v43 = vld [vmem:[%s28238_s5 + $0xc58] ss:$28 sps:$4 sm:$0xff]  }
 0x52b   : > { %7198 = vmatpush1.bf16.msra.mxu1 %v21587_v46  ;;  %7284 = vmatpush1.bf16.msra.mxu0 %v21590_v50  ;;  %v21645_v46 = vld [vmem:[%s28238_s5 + $0x8d0] ss:$28 sps:$4 sm:$0xff]   ;;  %v21649_v50 = vld [vmem:[%s28238_s5 + $0xa98] ss:$28 sps:$4 sm:$0xff]  }
 0x52c   : > { %7199 = vmatprep.subr.bf16.mxu1 %v21595_v47  ;;  %7285 = vmatprep.subr.bf16.mxu0 %v21598_v48  ;;  %v21652_v47 = vld [vmem:[%s28238_s5 + $0x90c] ss:$28 sps:$4 sm:$0xff]  }
 0x52d   : > { %v21653_v48 = vld [vmem:[%s28238_s5 + $0xc90] ss:$28 sps:$4 sm:$0xff]  }
 0x52f   : > { %7200 = vmatpush1.bf16.msra.mxu1 %v21593_v49  ;;  %7286 = vmatpush1.bf16.msra.mxu0 %v21596_v52  ;;  %v21650_v49 = vld [vmem:[%s28238_s5 + $0x908] ss:$28 sps:$4 sm:$0xff]   ;;  %v21654_v52 = vld [vmem:[%s28238_s5 + $0xad0] ss:$28 sps:$4 sm:$0xff]  }
 0x530   : > { %7201 = vmatprep.subr.bf16.mxu1 %v21601_v53  ;;  %7287 = vmatprep.subr.bf16.mxu0 %v21604_v54  ;;  %v21657_v53 = vld [vmem:[%s28238_s5 + $0x944] ss:$28 sps:$4 sm:$0xff]  }
 0x531   : > { %v21658_v54 = vld [vmem:[%s28238_s5 + $0xcc8] ss:$28 sps:$4 sm:$0xff]  }
 0x533   : > { %7202 = vmatpush1.bf16.msra.mxu1 %v21599_v13  ;;  %7288 = vmatpush1.bf16.msra.mxu0 %v21602_v55  ;;  %v21659_v13 = vld [vmem:[%s28238_s5 + $0xb08] ss:$28 sps:$4 sm:$0xff]   ;;  %v21662_v55 = vld [vmem:[%s28238_s5 + $0x97c] ss:$28 sps:$4 sm:$0xff]  }
 0x534   : > { %7300 = vmatprep.subr.bf16.mxu1 %v21607_v57  ;;  %20008 = vmatprep.subr.bf16.mxu0 %v21608_v58  ;;  %v21660_v57 = vld [vmem:[%s28238_s5 + $0x978] ss:$28 sps:$4 sm:$0xff]   ;;  %v21664_v58 = vld [vmem:[%s28238_s5 + $0xb40] ss:$28 sps:$4 sm:$0xff]  }
 0x536   : > { %7204 = vmatmul.mubr.bf16.vlgmr.msra.gmra.mrb[44].mxu1 %v24213_v62  ;;  %7290 = vmatmul.mubr.bf16.vlgmr.msra.gmra.mrb[36].mxu0 %v24213_v62 }
 0x537   : > { %7301 = vmatpush1.bf16.msra.mxu1 %v21605_v60  ;;  %7332 = vmatprep.mubr.bf16.mxu1 %v24003_v20  ;;  %v21668_v60 = vld [vmem:[%s28238_s5 + $0xd38] ss:$28 sps:$4 sm:$0xff]  }
 0x538   : > { %20009 = vmatpush3.bf16.msra.mxu0 %v21609_v1  ;;  %7418 = vmatprep.mubr.bf16.mxu0 %v24003_v20  ;;  %v21619_v20 = vld [vmem:[%s28238_s5 + $0x788] ss:$28 sps:$4 sm:$0xff]   ;;  %v21665_v1 = vld [vmem:[%s28238_s5 + $0x9b0] ss:$28 sps:$4 sm:$0xff]  }
 0x539   : > { %7302 = vmatprep.subr.bf16.mxu1 %v21612_v31  ;;  %20010 = vmatprep.subr.bf16.mxu0 %v21613_v2  ;;  %v21669_v31 = vld [vmem:[%s28238_s5 + $0xb78] ss:$28 sps:$4 sm:$0xff]   ;;  %v21672_v2 = vld [vmem:[%s28238_s5 + $0x9ec] ss:$28 sps:$4 sm:$0xff]  }
 0x53b   : > { %7303 = vmatpush1.bf16.msra.mxu1 %v21610_v21  ;;  %v21673_v21 = vld [vmem:[%s28238_s5 + $0xd70] ss:$28 sps:$4 sm:$0xff]  }
 0x53c   : > { %20011 = vmatpush3.bf16.msra.mxu0 %v21614_v6  ;;  %7304 = vmatprep.subr.bf16.mxu1 %v21617_v51  ;;  %v21670_v6 = vld [vmem:[%s28238_s5 + $0x9e8] ss:$28 sps:$4 sm:$0xff]   ;;  %v21674_v51 = vld [vmem:[%s28238_s5 + $0xbb0] ss:$28 sps:$4 sm:$0xff]  }
 0x53d   : > { %20012 = vmatprep.subr.bf16.mxu0 %v21618_v63  ;;  %v21677_v63 = vld [vmem:[%s28238_s5 + $0xa24] ss:$28 sps:$4 sm:$0xff]  }
 0x53f   : > { %7305 = vmatpush1.bf16.msra.mxu1 %v21615_v7  ;;  %v21678_v7 = vld [vmem:[%s28238_s5 + $0xda8] ss:$28 sps:$4 sm:$0xff]  }
 0x540   : > { %20013 = vmatpush3.bf16.msra.mxu0 %v21619_v20  ;;  %7306 = vmatprep.subr.bf16.mxu1 %v21622_v11  ;;  %v21675_v20 = vld [vmem:[%s28238_s5 + $0xa20] ss:$28 sps:$4 sm:$0xff]   ;;  %v21679_v11 = vld [vmem:[%s28238_s5 + $0xbe8] ss:$28 sps:$4 sm:$0xff]  }
 0x541   : > { %20014 = vmatprep.subr.bf16.mxu0 %v21623_v16  ;;  %v21682_v16 = vld [vmem:[%s28238_s5 + $0xa5c] ss:$28 sps:$4 sm:$0xff]  }
 0x543   : > { %7307 = vmatpush1.bf16.msra.mxu1 %v21620_v17  ;;  %v21683_v17 = vld [vmem:[%s28238_s5 + $0xde0] ss:$28 sps:$4 sm:$0xff]  }
 0x544   : > { %20015 = vmatpush3.bf16.msra.mxu0 %v21624_v19  ;;  %7308 = vmatprep.subr.bf16.mxu1 %v21627_v45  ;;  %v21680_v19 = vld [vmem:[%s28238_s5 + $0xa58] ss:$28 sps:$4 sm:$0xff]   ;;  %v21684_v45 = vld [vmem:[%s28238_s5 + $0xc20] ss:$28 sps:$4 sm:$0xff]  }
 0x545   : > { %20016 = vmatprep.subr.bf16.mxu0 %v21628_v23  ;;  %v21687_v23 = vld [vmem:[%s28238_s5 + $0xa94] ss:$28 sps:$4 sm:$0xff]  }
 0x547   : > { %7309 = vmatpush1.bf16.msra.mxu1 %v21625_v32  ;;  %v21690_v32 = vld [vmem:[%s28238_s5 + $0xc] ss:$28 sps:$4 sm:$0xff]  }
 0x548   : > { %20017 = vmatpush3.bf16.msra.mxu0 %v21629_v61  ;;  %7310 = vmatprep.subr.bf16.mxu1 %v21632_v38  ;;  %v21685_v61 = vld [vmem:[%s28238_s5 + $0xa90] ss:$28 sps:$4 sm:$0xff]   ;;  %v21688_v38 = vld [vmem:[%s28238_s5 + $0x8] ss:$28 sps:$4 sm:$0xff]  }
 0x549   : > { %20018 = vmatprep.subr.bf16.mxu0 %v21633_v44  ;;  %v21693_v44 = vld [vmem:[%s28238_s5 + $0xacc] ss:$28 sps:$4 sm:$0xff]  }
 0x54b   : > { %7311 = vmatpush1.bf16.msra.mxu1 %v21630_v26  ;;  %v21696_v26 = vld [vmem:[%s28238_s5 + $0x44] ss:$28 sps:$4 sm:$0xff]  }
 0x54c   : > { %20019 = vmatpush3.bf16.msra.mxu0 %v21634_v3  ;;  %7312 = vmatprep.subr.bf16.mxu1 %v21637_v27  ;;  %v21691_v3 = vld [vmem:[%s28238_s5 + $0xac8] ss:$28 sps:$4 sm:$0xff]   ;;  %v21694_v27 = vld [vmem:[%s28238_s5 + $0x40] ss:$28 sps:$4 sm:$0xff]  }
 0x54d   : > { %20020 = vmatprep.subr.bf16.mxu0 %v21638_v4  ;;  %v21702_v4 = vld [vmem:[%s28238_s5 + $0x7c] ss:$28 sps:$4 sm:$0xff]  }
 0x54f   : > { %7313 = vmatpush1.bf16.msra.mxu1 %v21635_v29  ;;  %v21700_v29 = vld [vmem:[%s28238_s5 + $0x78] ss:$28 sps:$4 sm:$0xff]  }
 0x550   : > { %20021 = vmatpush3.bf16.msra.mxu0 %v21639_v30  ;;  %7314 = vmatprep.subr.bf16.mxu1 %v21642_v5  ;;  %v21705_v30 = vld [vmem:[%s28238_s5 + $0xb3c] ss:$28 sps:$4 sm:$0xff]   ;;  %v21708_v5 = vld [vmem:[%s28238_s5 + $0xb4] ss:$28 sps:$4 sm:$0xff]  }
 0x551   : > { %20022 = vmatprep.subr.bf16.mxu0 %v21643_v34  ;;  %v21703_v34 = vld [vmem:[%s28238_s5 + $0xb38] ss:$28 sps:$4 sm:$0xff]  }
 0x553   : > { %7315 = vmatpush1.bf16.msra.mxu1 %v21640_v37  ;;  %v21706_v37 = vld [vmem:[%s28238_s5 + $0xb0] ss:$28 sps:$4 sm:$0xff]  }
 0x554   : > { %20023 = vmatpush3.bf16.msra.mxu0 %v21644_v42  ;;  %7316 = vmatprep.subr.bf16.mxu1 %v21647_v40  ;;  %v21711_v42 = vld [vmem:[%s28238_s5 + $0xb74] ss:$28 sps:$4 sm:$0xff]   ;;  %v21714_v40 = vld [vmem:[%s28238_s5 + $0xec] ss:$28 sps:$4 sm:$0xff]  }
 0x555   : > { %20030 = vmatprep.subr.bf16.mxu0 %v21648_v43  ;;  %v21709_v43 = vld [vmem:[%s28238_s5 + $0xb70] ss:$28 sps:$4 sm:$0xff]  }
 0x557   : > { %7419 = vmatmul.mubr.bf16.vlgmr.msra.gmra.mrb[40].mxu0 %v24011_v18  ;;  %7317 = vmatpush1.bf16.msra.mxu1 %v21645_v46  ;;  %v21712_v46 = vld [vmem:[%s28238_s5 + $0xe8] ss:$28 sps:$4 sm:$0xff]  }
 0x558   : > { %20031 = vmatpush3.bf16.msra.mxu0 %v21649_v50  ;;  %7459 = vmatprep.mubr.bf16.mxu0 %v24024_v41  ;;  %v21717_v50 = vld [vmem:[%s28238_s5 + $0xbac] ss:$28 sps:$4 sm:$0xff]  }
 0x559   : > { %7318 = vmatprep.subr.bf16.mxu1 %v21652_v47  ;;  %20032 = vmatprep.subr.bf16.mxu0 %v21653_v48  ;;  %v21720_v47 = vld [vmem:[%s28238_s5 + $0x124] ss:$28 sps:$4 sm:$0xff]  }
 0x55a   : > { %v21715_v48 = vld [vmem:[%s28238_s5 + $0xba8] ss:$28 sps:$4 sm:$0xff]  }
 0x55b   : > { %7319 = vmatpush1.bf16.msra.mxu1 %v21650_v49  ;;  %v21718_v49 = vld [vmem:[%s28238_s5 + $0x120] ss:$28 sps:$4 sm:$0xff]  }
 0x55c   : > { %20033 = vmatpush3.bf16.msra.mxu0 %v21654_v52  ;;  %7320 = vmatprep.subr.bf16.mxu1 %v21657_v53  ;;  %v21723_v52 = vld [vmem:[%s28238_s5 + $0xbe4] ss:$28 sps:$4 sm:$0xff]   ;;  %v21726_v53 = vld [vmem:[%s28238_s5 + $0x15c] ss:$28 sps:$4 sm:$0xff]  }
 0x55d   : > { %20034 = vmatprep.subr.bf16.mxu0 %v21658_v54  ;;  %v21721_v54 = vld [vmem:[%s28238_s5 + $0xbe0] ss:$28 sps:$4 sm:$0xff]  }
 0x55f   : > { %7321 = vmatpush1.bf16.msra.mxu1 %v21655_v22  ;;  %v21724_v22 = vld [vmem:[%s28238_s5 + $0x158] ss:$28 sps:$4 sm:$0xff]  }
 0x560   : > { %20035 = vmatpush3.bf16.msra.mxu0 %v21659_v13  ;;  %7322 = vmatprep.subr.bf16.mxu1 %v21662_v55  ;;  %v21729_v13 = vld [vmem:[%s28238_s5 + $0xc1c] ss:$28 sps:$4 sm:$0xff]   ;;  %v21732_v55 = vld [vmem:[%s28238_s5 + $0x194] ss:$28 sps:$4 sm:$0xff]  }
 0x561   : > { %20036 = vmatprep.subr.bf16.mxu0 %v21663_v56  ;;  %v21727_v56 = vld [vmem:[%s28238_s5 + $0xc18] ss:$28 sps:$4 sm:$0xff]  }
 0x563   : > { %7323 = vmatpush1.bf16.msra.mxu1 %v21660_v57  ;;  %v21730_v57 = vld [vmem:[%s28238_s5 + $0x190] ss:$28 sps:$4 sm:$0xff]  }
 0x564   : > { %20037 = vmatpush3.bf16.msra.mxu0 %v21664_v58  ;;  %7324 = vmatprep.subr.bf16.mxu1 %v21667_v59  ;;  %v21735_v58 = vld [vmem:[%s28238_s5 + $0xc54] ss:$28 sps:$4 sm:$0xff]   ;;  %v21738_v59 = vld [vmem:[%s28238_s5 + $0x1cc] ss:$28 sps:$4 sm:$0xff]  }
 0x565   : > { %20038 = vmatprep.subr.bf16.mxu0 %v21668_v60  ;;  %v21733_v60 = vld [vmem:[%s28238_s5 + $0xc50] ss:$28 sps:$4 sm:$0xff]  }
 0x567   : > { %7325 = vmatpush1.bf16.msra.mxu1 %v21665_v1  ;;  %v21736_v1 = vld [vmem:[%s28238_s5 + $0x1c8] ss:$28 sps:$4 sm:$0xff]  }
 0x568   : > { %20039 = vmatpush3.bf16.msra.mxu0 %v21669_v31  ;;  %7326 = vmatprep.subr.bf16.mxu1 %v21672_v2  ;;  %v21741_v31 = vld [vmem:[%s28238_s5 + $0xc8c] ss:$28 sps:$4 sm:$0xff]   ;;  %v21744_v2 = vld [vmem:[%s28238_s5 + $0x204] ss:$28 sps:$4 sm:$0xff]  }
 0x569   : > { %20040 = vmatprep.subr.bf16.mxu0 %v21673_v21  ;;  %v21739_v21 = vld [vmem:[%s28238_s5 + $0xc88] ss:$28 sps:$4 sm:$0xff]  }
 0x56b   : > { %7327 = vmatpush1.bf16.msra.mxu1 %v21670_v6  ;;  %v21742_v6 = vld [vmem:[%s28238_s5 + $0x200] ss:$28 sps:$4 sm:$0xff]  }
 0x56c   : > { %20041 = vmatpush3.bf16.msra.mxu0 %v21674_v51  ;;  %7328 = vmatprep.subr.bf16.mxu1 %v21677_v63  ;;  %v21747_v51 = vld [vmem:[%s28238_s5 + $0xcc4] ss:$28 sps:$4 sm:$0xff]   ;;  %v21750_v63 = vld [vmem:[%s28238_s5 + $0x23c] ss:$28 sps:$4 sm:$0xff]  }
 0x56d   : > { %20042 = vmatprep.subr.bf16.mxu0 %v21678_v7  ;;  %v21745_v7 = vld [vmem:[%s28238_s5 + $0xcc0] ss:$28 sps:$4 sm:$0xff]  }
 0x56f   : > { %7329 = vmatpush1.bf16.msra.mxu1 %v21675_v20  ;;  %v21748_v20 = vld [vmem:[%s28238_s5 + $0x238] ss:$28 sps:$4 sm:$0xff]  }
 0x570   : > { %20043 = vmatpush3.bf16.msra.mxu0 %v21679_v11  ;;  %7330 = vmatprep.subr.bf16.mxu1 %v21682_v16  ;;  %v21753_v11 = vld [vmem:[%s28238_s5 + $0xcfc] ss:$28 sps:$4 sm:$0xff]   ;;  %v21756_v16 = vld [vmem:[%s28238_s5 + $0x274] ss:$28 sps:$4 sm:$0xff]  }
 0x571   : > { %20044 = vmatprep.subr.bf16.mxu0 %v21683_v17  ;;  %v21751_v17 = vld [vmem:[%s28238_s5 + $0xcf8] ss:$28 sps:$4 sm:$0xff]  }
 0x573   : > { %7331 = vmatpush1.bf16.msra.mxu1 %v21680_v19  ;;  %v21754_v19 = vld [vmem:[%s28238_s5 + $0x270] ss:$28 sps:$4 sm:$0xff]  }
 0x574   : > { %20045 = vmatpush3.bf16.msra.mxu0 %v21684_v45  ;;  %7343 = vmatprep.subr.bf16.mxu1 %v21687_v23  ;;  %v21759_v45 = vld [vmem:[%s28238_s5 + $0xd34] ss:$28 sps:$4 sm:$0xff]   ;;  %v21762_v23 = vld [vmem:[%s28238_s5 + $0x2ac] ss:$28 sps:$4 sm:$0xff]  }
 0x575   : > { %8706 = vmatprep.subr.bf16.mxu0 %v21690_v32  ;;  %v21757_v32 = vld [vmem:[%s28238_s5 + $0xd30] ss:$28 sps:$4 sm:$0xff]  }
 0x576   : > { %7333 = vmatmul.mubr.bf16.vlgmr.msra.gmra.mrb[48].mxu1 %v24011_v18  ;;  %v21699_v18 = vld [vmem:[%s28238_s5 + $0xb04] ss:$28 sps:$4 sm:$0xff]  }
 0x577   : > { %7460 = vmatmul.mubr.bf16.vlgmr.msra.gmra.mrb[44].mxu0 %v24213_v62  ;;  %7344 = vmatpush1.bf16.msra.mxu1 %v21685_v61  ;;  %v21760_v61 = vld [vmem:[%s28238_s5 + $0x2a8] ss:$28 sps:$4 sm:$0xff]  }
 0x578   : > { %7375 = vmatprep.mubr.bf16.mxu1 %v24024_v41  ;;  %8707 = vmatpush1.bf16.msra.mxu0 %v21688_v38  ;;  %v21697_v41 = vld [vmem:[%s28238_s5 + $0xb00] ss:$28 sps:$4 sm:$0xff]   ;;  %v21765_v38 = vld [vmem:[%s28238_s5 + $0xd6c] ss:$28 sps:$4 sm:$0xff]  }
 0x579   : > { %8738 = vmatprep.mubr.bf16.mxu0 %v23996_v24  ;;  %7345 = vmatprep.subr.bf16.mxu1 %v21693_v44  ;;  %v21768_v44 = vld [vmem:[%s28238_s5 + $0x2e4] ss:$28 sps:$4 sm:$0xff]  }
 0x57a   : > { %8708 = vmatprep.subr.bf16.mxu0 %v21696_v26  ;;  %v21763_v26 = vld [vmem:[%s28238_s5 + $0xd68] ss:$28 sps:$4 sm:$0xff]  }
 0x57b   : > { %7346 = vmatpush1.bf16.msra.mxu1 %v21691_v3  ;;  %v21766_v3 = vld [vmem:[%s28238_s5 + $0x2e0] ss:$28 sps:$4 sm:$0xff]  }
 0x57c   : > { %8709 = vmatpush1.bf16.msra.mxu0 %v21694_v27  ;;  %7347 = vmatprep.subr.bf16.mxu1 %v21699_v18  ;;  %v21771_v27 = vld [vmem:[%s28238_s5 + $0xda4] ss:$28 sps:$4 sm:$0xff]   ;;  %v21774_v18 = vld [vmem:[%s28238_s5 + $0x31c] ss:$28 sps:$4 sm:$0xff]  }
 0x57d   : > { %8710 = vmatprep.subr.bf16.mxu0 %v21702_v4  ;;  %v21769_v4 = vld [vmem:[%s28238_s5 + $0xda0] ss:$28 sps:$4 sm:$0xff]  }
 0x57f   : > { %7348 = vmatpush1.bf16.msra.mxu1 %v21697_v41  ;;  %v21772_v41 = vld [vmem:[%s28238_s5 + $0x318] ss:$28 sps:$4 sm:$0xff]  }
 0x580   : > { %8711 = vmatpush1.bf16.msra.mxu0 %v21700_v29  ;;  %7349 = vmatprep.subr.bf16.mxu1 %v21705_v30  ;;  %v21777_v29 = vld [vmem:[%s28238_s5 + $0xddc] ss:$28 sps:$4 sm:$0xff]   ;;  %v21780_v30 = vld [vmem:[%s28238_s5 + $0x354] ss:$28 sps:$4 sm:$0xff]  }
 0x581   : > { %8712 = vmatprep.subr.bf16.mxu0 %v21708_v5  ;;  %v21775_v5 = vld [vmem:[%s28238_s5 + $0xdd8] ss:$28 sps:$4 sm:$0xff]  }
 0x583   : > { %7350 = vmatpush1.bf16.msra.mxu1 %v21703_v34  ;;  %v21778_v34 = vld [vmem:[%s28238_s5 + $0x350] ss:$28 sps:$4 sm:$0xff]  }
 0x584   : > { %8713 = vmatpush1.bf16.msra.mxu0 %v21706_v37  ;;  %7351 = vmatprep.subr.bf16.mxu1 %v21711_v42  ;;  %v21783_v37 = vld [vmem:[%s28238_s5 + $0x4] ss:$28 sps:$4 sm:$0xff]   ;;  %v21786_v42 = vld [vmem:[%s28238_s5 + $0x38c] ss:$28 sps:$4 sm:$0xff]  }
 0x585   : > { %8714 = vmatprep.subr.bf16.mxu0 %v21714_v40  ;;  %v21781_v40 = vld [vmem:[%s28238_s5] ss:$28 sps:$4 sm:$0xff]  }
 0x587   : > { %7352 = vmatpush1.bf16.msra.mxu1 %v21709_v43  ;;  %v21784_v43 = vld [vmem:[%s28238_s5 + $0x388] ss:$28 sps:$4 sm:$0xff]  }
 0x588   : > { %8715 = vmatpush1.bf16.msra.mxu0 %v21712_v46  ;;  %7353 = vmatprep.subr.bf16.mxu1 %v21717_v50  ;;  %v21789_v46 = vld [vmem:[%s28238_s5 + $0x3c] ss:$28 sps:$4 sm:$0xff]   ;;  %v21792_v50 = vld [vmem:[%s28238_s5 + $0x3c4] ss:$28 sps:$4 sm:$0xff]  }
 0x589   : > { %8716 = vmatprep.subr.bf16.mxu0 %v21720_v47  ;;  %v21787_v47 = vld [vmem:[%s28238_s5 + $0x38] ss:$28 sps:$4 sm:$0xff]  }
 0x58b   : > { %7354 = vmatpush1.bf16.msra.mxu1 %v21715_v48  ;;  %v21790_v48 = vld [vmem:[%s28238_s5 + $0x3c0] ss:$28 sps:$4 sm:$0xff]  }
 0x58c   : > { %8717 = vmatpush1.bf16.msra.mxu0 %v21718_v49  ;;  %7355 = vmatprep.subr.bf16.mxu1 %v21723_v52  ;;  %v21798_v49 = vld [vmem:[%s28238_s5 + $0x3fc] ss:$28 sps:$4 sm:$0xff]   ;;  %v21793_v52 = vld [vmem:[%s28238_s5 + $0x70] ss:$28 sps:$4 sm:$0xff]  }
 0x58d   : > { %8718 = vmatprep.subr.bf16.mxu0 %v21726_v53  ;;  %v21796_v53 = vld [vmem:[%s28238_s5 + $0x3f8] ss:$28 sps:$4 sm:$0xff]  }
 0x58f   : > { %7356 = vmatpush1.bf16.msra.mxu1 %v21721_v54  ;;  %v21801_v54 = vld [vmem:[%s28238_s5 + $0xac] ss:$28 sps:$4 sm:$0xff]  }
 0x590   : > { %8719 = vmatpush1.bf16.msra.mxu0 %v21724_v22  ;;  %7357 = vmatprep.subr.bf16.mxu1 %v21729_v13  ;;  %v21804_v22 = vld [vmem:[%s28238_s5 + $0x434] ss:$28 sps:$4 sm:$0xff]   ;;  %v21799_v13 = vld [vmem:[%s28238_s5 + $0xa8] ss:$28 sps:$4 sm:$0xff]  }
 0x591   : > { %8720 = vmatprep.subr.bf16.mxu0 %v21732_v55  ;;  %v21802_v55 = vld [vmem:[%s28238_s5 + $0x430] ss:$28 sps:$4 sm:$0xff]  }
 0x593   : > { %7358 = vmatpush1.bf16.msra.mxu1 %v21727_v56  ;;  %v21807_v56 = vld [vmem:[%s28238_s5 + $0xe4] ss:$28 sps:$4 sm:$0xff]  }
 0x594   : > { %8721 = vmatpush1.bf16.msra.mxu0 %v21730_v57  ;;  %7359 = vmatprep.subr.bf16.mxu1 %v21735_v58  ;;  %v21810_v57 = vld [vmem:[%s28238_s5 + $0x46c] ss:$28 sps:$4 sm:$0xff]   ;;  %v21805_v58 = vld [vmem:[%s28238_s5 + $0xe0] ss:$28 sps:$4 sm:$0xff]  }
 0x595   : > { %8722 = vmatprep.subr.bf16.mxu0 %v21738_v59  ;;  %v21808_v59 = vld [vmem:[%s28238_s5 + $0x468] ss:$28 sps:$4 sm:$0xff]  }
 0x597   : > { %7360 = vmatpush1.bf16.msra.mxu1 %v21733_v60  ;;  %v21813_v60 = vld [vmem:[%s28238_s5 + $0x11c] ss:$28 sps:$4 sm:$0xff]  }
 0x598   : > { %8723 = vmatpush1.bf16.msra.mxu0 %v21736_v1  ;;  %7361 = vmatprep.subr.bf16.mxu1 %v21741_v31  ;;  %v21816_v1 = vld [vmem:[%s28238_s5 + $0x4a4] ss:$28 sps:$4 sm:$0xff]   ;;  %v21811_v31 = vld [vmem:[%s28238_s5 + $0x118] ss:$28 sps:$4 sm:$0xff]  }
 0x599   : > { %8724 = vmatprep.subr.bf16.mxu0 %v21744_v2  ;;  %v21814_v2 = vld [vmem:[%s28238_s5 + $0x4a0] ss:$28 sps:$4 sm:$0xff]  }
 0x59b   : > { %7362 = vmatpush1.bf16.msra.mxu1 %v21739_v21  ;;  %v21819_v21 = vld [vmem:[%s28238_s5 + $0x154] ss:$28 sps:$4 sm:$0xff]  }
 0x59c   : > { %8725 = vmatpush1.bf16.msra.mxu0 %v21742_v6  ;;  %7363 = vmatprep.subr.bf16.mxu1 %v21747_v51  ;;  %v21822_v6 = vld [vmem:[%s28238_s5 + $0x4dc] ss:$28 sps:$4 sm:$0xff]   ;;  %v21817_v51 = vld [vmem:[%s28238_s5 + $0x150] ss:$28 sps:$4 sm:$0xff]  }
 0x59d   : > { %8726 = vmatprep.subr.bf16.mxu0 %v21750_v63  ;;  %v21820_v63 = vld [vmem:[%s28238_s5 + $0x4d8] ss:$28 sps:$4 sm:$0xff]  }
 0x59f   : > { %7364 = vmatpush1.bf16.msra.mxu1 %v21745_v7  ;;  %v21825_v7 = vld [vmem:[%s28238_s5 + $0x18c] ss:$28 sps:$4 sm:$0xff]  }
 0x5a0   : > { %8727 = vmatpush1.bf16.msra.mxu0 %v21748_v20  ;;  %7365 = vmatprep.subr.bf16.mxu1 %v21753_v11  ;;  %v21828_v20 = vld [vmem:[%s28238_s5 + $0x514] ss:$28 sps:$4 sm:$0xff]   ;;  %v21823_v11 = vld [vmem:[%s28238_s5 + $0x188] ss:$28 sps:$4 sm:$0xff]  }
 0x5a1   : > { %8728 = vmatprep.subr.bf16.mxu0 %v21756_v16  ;;  %v21826_v16 = vld [vmem:[%s28238_s5 + $0x510] ss:$28 sps:$4 sm:$0xff]  }
 0x5a3   : > { %7366 = vmatpush1.bf16.msra.mxu1 %v21751_v17  ;;  %v21831_v17 = vld [vmem:[%s28238_s5 + $0x1c4] ss:$28 sps:$4 sm:$0xff]  }
 0x5a4   : > { %8729 = vmatpush1.bf16.msra.mxu0 %v21754_v19  ;;  %7367 = vmatprep.subr.bf16.mxu1 %v21759_v45  ;;  %v21834_v19 = vld [vmem:[%s28238_s5 + $0x54c] ss:$28 sps:$4 sm:$0xff]   ;;  %v21829_v45 = vld [vmem:[%s28238_s5 + $0x1c0] ss:$28 sps:$4 sm:$0xff]  }
 0x5a5   : > { %8730 = vmatprep.subr.bf16.mxu0 %v21762_v23  ;;  %v21832_v23 = vld [vmem:[%s28238_s5 + $0x548] ss:$28 sps:$4 sm:$0xff]  }
 0x5a7   : > { %7368 = vmatpush1.bf16.msra.mxu1 %v21757_v32  ;;  %v21837_v32 = vld [vmem:[%s28238_s5 + $0x1fc] ss:$28 sps:$4 sm:$0xff]  }
 0x5a8   : > { %8731 = vmatpush1.bf16.msra.mxu0 %v21760_v61  ;;  %7369 = vmatprep.subr.bf16.mxu1 %v21765_v38  ;;  %v21840_v61 = vld [vmem:[%s28238_s5 + $0x584] ss:$28 sps:$4 sm:$0xff]   ;;  %v21835_v38 = vld [vmem:[%s28238_s5 + $0x1f8] ss:$28 sps:$4 sm:$0xff]  }
 0x5a9   : > { %8732 = vmatprep.subr.bf16.mxu0 %v21768_v44  ;;  %v21838_v44 = vld [vmem:[%s28238_s5 + $0x580] ss:$28 sps:$4 sm:$0xff]  }
 0x5ab   : > { %7370 = vmatpush1.bf16.msra.mxu1 %v21763_v26  ;;  %v21843_v26 = vld [vmem:[%s28238_s5 + $0x234] ss:$28 sps:$4 sm:$0xff]  }
 0x5ac   : > { %8733 = vmatpush1.bf16.msra.mxu0 %v21766_v3  ;;  %7371 = vmatprep.subr.bf16.mxu1 %v21771_v27  ;;  %v21846_v3 = vld [vmem:[%s28238_s5 + $0x5bc] ss:$28 sps:$4 sm:$0xff]   ;;  %v21841_v27 = vld [vmem:[%s28238_s5 + $0x230] ss:$28 sps:$4 sm:$0xff]  }
 0x5ad   : > { %8734 = vmatprep.subr.bf16.mxu0 %v21774_v18  ;;  %v21844_v18 = vld [vmem:[%s28238_s5 + $0x5b8] ss:$28 sps:$4 sm:$0xff]  }
 0x5af   : > { %7372 = vmatpush1.bf16.msra.mxu1 %v21769_v4  ;;  %v21849_v4 = vld [vmem:[%s28238_s5 + $0x26c] ss:$28 sps:$4 sm:$0xff]  }
 0x5b0   : > { %8735 = vmatpush1.bf16.msra.mxu0 %v21772_v41  ;;  %7373 = vmatprep.subr.bf16.mxu1 %v21777_v29  ;;  %v21852_v41 = vld [vmem:[%s28238_s5 + $0x5f4] ss:$28 sps:$4 sm:$0xff]   ;;  %v21847_v29 = vld [vmem:[%s28238_s5 + $0x268] ss:$28 sps:$4 sm:$0xff]  }
 0x5b1   : > { %8736 = vmatprep.subr.bf16.mxu0 %v21780_v30  ;;  %v21850_v30 = vld [vmem:[%s28238_s5 + $0x5f0] ss:$28 sps:$4 sm:$0xff]  }
 0x5b3   : > { %7374 = vmatpush1.bf16.msra.mxu1 %v21775_v5  ;;  %v21855_v5 = vld [vmem:[%s28238_s5 + $0x2a4] ss:$28 sps:$4 sm:$0xff]  }
 0x5b4   : > { %8737 = vmatpush1.bf16.msra.mxu0 %v21778_v34  ;;  %8620 = vmatprep.subr.bf16.mxu1 %v21783_v37  ;;  %v21858_v34 = vld [vmem:[%s28238_s5 + $0x62c] ss:$28 sps:$4 sm:$0xff]   ;;  %v21853_v37 = vld [vmem:[%s28238_s5 + $0x2a0] ss:$28 sps:$4 sm:$0xff]  }
 0x5b5   : > { %8749 = vmatprep.subr.bf16.mxu0 %v21786_v42  ;;  %v21856_v42 = vld [vmem:[%s28238_s5 + $0x628] ss:$28 sps:$4 sm:$0xff]  }
 0x5b6   : > { %7376 = vmatmul.mubr.bf16.vlgmr.msra.gmra.mrb[48].mxu1 %v24213_v62  ;;  %v21795_v62 = vld [vmem:[%s28238_s5 + $0x74] ss:$28 sps:$4 sm:$0xff]  }
 0x5b7   : > { %8739 = vmatmul.mubr.bf16.vlgmr.msra.gmra.mrb[36].mxu0 %v23994_v33  ;;  %8621 = vmatpush1.bf16.msra.mxu1 %v21781_v40  ;;  %v21861_v40 = vld [vmem:[%s28238_s5 + $0x2dc] ss:$28 sps:$4 sm:$0xff]  }
 0x5b8   : > { %8652 = vmatprep.mubr.bf16.mxu1 %v23996_v24  ;;  %8750 = vmatpush1.bf16.msra.mxu0 %v21784_v43  ;;  %v21864_v43 = vld [vmem:[%s28238_s5 + $0x664] ss:$28 sps:$4 sm:$0xff]  }
 0x5b9   : > { %8781 = vmatprep.mubr.bf16.mxu0 %v23988_v9  ;;  %8622 = vmatprep.subr.bf16.mxu1 %v21789_v46  ;;  %v21859_v46 = vld [vmem:[%s28238_s5 + $0x2d8] ss:$28 sps:$4 sm:$0xff]  }
 0x5ba   : > { %8751 = vmatprep.subr.bf16.mxu0 %v21792_v50  ;;  %v21862_v50 = vld [vmem:[%s28238_s5 + $0x660] ss:$28 sps:$4 sm:$0xff]  }
 0x5bb   : > { %8623 = vmatpush1.bf16.msra.mxu1 %v21787_v47  ;;  %v21867_v47 = vld [vmem:[%s28238_s5 + $0x314] ss:$28 sps:$4 sm:$0xff]  }
 0x5bc   : > { %8752 = vmatpush1.bf16.msra.mxu0 %v21790_v48  ;;  %8624 = vmatprep.subr.bf16.mxu1 %v21795_v62  ;;  %v21870_v48 = vld [vmem:[%s28238_s5 + $0x69c] ss:$28 sps:$4 sm:$0xff]   ;;  %v21865_v62 = vld [vmem:[%s28238_s5 + $0x310] ss:$28 sps:$4 sm:$0xff]  }
 0x5bd   : > { %8753 = vmatprep.subr.bf16.mxu0 %v21798_v49  ;;  %v21868_v49 = vld [vmem:[%s28238_s5 + $0x698] ss:$28 sps:$4 sm:$0xff]  }
 0x5bf   : > { %8625 = vmatpush1.bf16.msra.mxu1 %v21793_v52  ;;  %v21873_v52 = vld [vmem:[%s28238_s5 + $0x34c] ss:$28 sps:$4 sm:$0xff]  }
 0x5c0   : > { %8754 = vmatpush1.bf16.msra.mxu0 %v21796_v53  ;;  %8626 = vmatprep.subr.bf16.mxu1 %v21801_v54  ;;  %v21876_v53 = vld [vmem:[%s28238_s5 + $0x6d4] ss:$28 sps:$4 sm:$0xff]   ;;  %v21871_v54 = vld [vmem:[%s28238_s5 + $0x348] ss:$28 sps:$4 sm:$0xff]  }
 0x5c1   : > { %8755 = vmatprep.subr.bf16.mxu0 %v21804_v22  ;;  %v21874_v22 = vld [vmem:[%s28238_s5 + $0x6d0] ss:$28 sps:$4 sm:$0xff]  }
 0x5c3   : > { %8627 = vmatpush1.bf16.msra.mxu1 %v21799_v13  ;;  %v21879_v13 = vld [vmem:[%s28238_s5 + $0x384] ss:$28 sps:$4 sm:$0xff]  }
 0x5c4   : > { %8756 = vmatpush1.bf16.msra.mxu0 %v21802_v55  ;;  %8628 = vmatprep.subr.bf16.mxu1 %v21807_v56  ;;  %v21880_v55 = vld [vmem:[%s28238_s5 + $0x1d8] ss:$28 sps:$4 sm:$0xff]   ;;  %v21877_v56 = vld [vmem:[%s28238_s5 + $0x380] ss:$28 sps:$4 sm:$0xff]  }
 0x5c5   : > { %8757 = vmatprep.subr.bf16.mxu0 %v21810_v57  ;;  %v21881_v57 = vld [vmem:[%s28238_s5 + $0x18] ss:$28 sps:$4 sm:$0xff]  }
 0x5c7   : > { %8629 = vmatpush1.bf16.msra.mxu1 %v21805_v58  ;;  %v21884_v58 = vld [vmem:[%s28238_s5 + $0x3bc] ss:$28 sps:$4 sm:$0xff]  }
 0x5c8   : > { %8758 = vmatpush1.bf16.msra.mxu0 %v21808_v59  ;;  %8630 = vmatprep.subr.bf16.mxu1 %v21813_v60  ;;  %v21885_v59 = vld [vmem:[%s28238_s5 + $0x210] ss:$28 sps:$4 sm:$0xff]   ;;  %v21882_v60 = vld [vmem:[%s28238_s5 + $0x3b8] ss:$28 sps:$4 sm:$0xff]  }
 0x5c9   : > { %8759 = vmatprep.subr.bf16.mxu0 %v21816_v1  ;;  %v21886_v1 = vld [vmem:[%s28238_s5 + $0x50] ss:$28 sps:$4 sm:$0xff]  }
 0x5cb   : > { %8631 = vmatpush1.bf16.msra.mxu1 %v21811_v31  ;;  %v21889_v31 = vld [vmem:[%s28238_s5 + $0x3f4] ss:$28 sps:$4 sm:$0xff]  }
 0x5cc   : > { %8760 = vmatpush1.bf16.msra.mxu0 %v21814_v2  ;;  %8632 = vmatprep.subr.bf16.mxu1 %v21819_v21  ;;  %v21890_v2 = vld [vmem:[%s28238_s5 + $0x248] ss:$28 sps:$4 sm:$0xff]   ;;  %v21887_v21 = vld [vmem:[%s28238_s5 + $0x3f0] ss:$28 sps:$4 sm:$0xff]  }
 0x5cd   : > { %8761 = vmatprep.subr.bf16.mxu0 %v21822_v6  ;;  %v21891_v6 = vld [vmem:[%s28238_s5 + $0x88] ss:$28 sps:$4 sm:$0xff]  }
 0x5cf   : > { %8633 = vmatpush1.bf16.msra.mxu1 %v21817_v51  ;;  %v21894_v51 = vld [vmem:[%s28238_s5 + $0x42c] ss:$28 sps:$4 sm:$0xff]  }
 0x5d0   : > { %8762 = vmatpush1.bf16.msra.mxu0 %v21820_v63  ;;  %8634 = vmatprep.subr.bf16.mxu1 %v21825_v7  ;;  %v21895_v63 = vld [vmem:[%s28238_s5 + $0x280] ss:$28 sps:$4 sm:$0xff]   ;;  %v21892_v7 = vld [vmem:[%s28238_s5 + $0x428] ss:$28 sps:$4 sm:$0xff]  }
 0x5d1   : > { %8763 = vmatprep.subr.bf16.mxu0 %v21828_v20  ;;  %v21896_v20 = vld [vmem:[%s28238_s5 + $0xc0] ss:$28 sps:$4 sm:$0xff]  }
 0x5d3   : > { %8635 = vmatpush1.bf16.msra.mxu1 %v21823_v11  ;;  %v21899_v11 = vld [vmem:[%s28238_s5 + $0x464] ss:$28 sps:$4 sm:$0xff]  }
 0x5d4   : > { %8764 = vmatpush1.bf16.msra.mxu0 %v21826_v16  ;;  %8636 = vmatprep.subr.bf16.mxu1 %v21831_v17  ;;  %v21900_v16 = vld [vmem:[%s28238_s5 + $0x2b8] ss:$28 sps:$4 sm:$0xff]   ;;  %v21897_v17 = vld [vmem:[%s28238_s5 + $0x460] ss:$28 sps:$4 sm:$0xff]  }
 0x5d5   : > { %8765 = vmatprep.subr.bf16.mxu0 %v21834_v19  ;;  %v21901_v19 = vld [vmem:[%s28238_s5 + $0xf8] ss:$28 sps:$4 sm:$0xff]  }
 0x5d7   : > { %8637 = vmatpush1.bf16.msra.mxu1 %v21829_v45  ;;  %v21904_v45 = vld [vmem:[%s28238_s5 + $0x49c] ss:$28 sps:$4 sm:$0xff]  }
 0x5d8   : > { %8766 = vmatpush1.bf16.msra.mxu0 %v21832_v23  ;;  %8638 = vmatprep.subr.bf16.mxu1 %v21837_v32  ;;  %v21905_v23 = vld [vmem:[%s28238_s5 + $0x2f0] ss:$28 sps:$4 sm:$0xff]   ;;  %v21902_v32 = vld [vmem:[%s28238_s5 + $0x498] ss:$28 sps:$4 sm:$0xff]  }
 0x5d9   : > { %8767 = vmatprep.subr.bf16.mxu0 %v21840_v61  ;;  %v21906_v61 = vld [vmem:[%s28238_s5 + $0x130] ss:$28 sps:$4 sm:$0xff]  }
 0x5db   : > { %8639 = vmatpush1.bf16.msra.mxu1 %v21835_v38  ;;  %v21909_v38 = vld [vmem:[%s28238_s5 + $0x4d4] ss:$28 sps:$4 sm:$0xff]  }
 0x5dc   : > { %8768 = vmatpush1.bf16.msra.mxu0 %v21838_v44  ;;  %8640 = vmatprep.subr.bf16.mxu1 %v21843_v26  ;;  %v21910_v44 = vld [vmem:[%s28238_s5 + $0x328] ss:$28 sps:$4 sm:$0xff]   ;;  %v21907_v26 = vld [vmem:[%s28238_s5 + $0x4d0] ss:$28 sps:$4 sm:$0xff]  }
 0x5dd   : > { %8769 = vmatprep.subr.bf16.mxu0 %v21846_v3  ;;  %v21911_v3 = vld [vmem:[%s28238_s5 + $0x168] ss:$28 sps:$4 sm:$0xff]  }
 0x5df   : > { %8641 = vmatpush1.bf16.msra.mxu1 %v21841_v27  ;;  %v21914_v27 = vld [vmem:[%s28238_s5 + $0x50c] ss:$28 sps:$4 sm:$0xff]  }
 0x5e0   : > { %8770 = vmatpush1.bf16.msra.mxu0 %v21844_v18  ;;  %8642 = vmatprep.subr.bf16.mxu1 %v21849_v4  ;;  %v21915_v18 = vld [vmem:[%s28238_s5 + $0x360] ss:$28 sps:$4 sm:$0xff]   ;;  %v21912_v4 = vld [vmem:[%s28238_s5 + $0x508] ss:$28 sps:$4 sm:$0xff]  }
 0x5e1   : > { %8771 = vmatprep.subr.bf16.mxu0 %v21852_v41  ;;  %v21916_v41 = vld [vmem:[%s28238_s5 + $0x1a0] ss:$28 sps:$4 sm:$0xff]  }
 0x5e3   : > { %8643 = vmatpush1.bf16.msra.mxu1 %v21847_v29  ;;  %v21919_v29 = vld [vmem:[%s28238_s5 + $0x544] ss:$28 sps:$4 sm:$0xff]  }
 0x5e4   : > { %8772 = vmatpush1.bf16.msra.mxu0 %v21850_v30  ;;  %8644 = vmatprep.subr.bf16.mxu1 %v21855_v5  ;;  %v21920_v30 = vld [vmem:[%s28238_s5 + $0x558] ss:$28 sps:$4 sm:$0xff]   ;;  %v21917_v5 = vld [vmem:[%s28238_s5 + $0x540] ss:$28 sps:$4 sm:$0xff]  }
 0x5e5   : > { %8773 = vmatprep.subr.bf16.mxu0 %v21858_v34  ;;  %v21921_v34 = vld [vmem:[%s28238_s5 + $0x398] ss:$28 sps:$4 sm:$0xff]  }
 0x5e7   : > { %8645 = vmatpush1.bf16.msra.mxu1 %v21853_v37  ;;  %v21924_v37 = vld [vmem:[%s28238_s5 + $0x57c] ss:$28 sps:$4 sm:$0xff]  }
 0x5e8   : > { %8774 = vmatpush1.bf16.msra.mxu0 %v21856_v42  ;;  %8646 = vmatprep.subr.bf16.mxu1 %v21861_v40  ;;  %v21925_v42 = vld [vmem:[%s28238_s5 + $0x590] ss:$28 sps:$4 sm:$0xff]   ;;  %v21922_v40 = vld [vmem:[%s28238_s5 + $0x578] ss:$28 sps:$4 sm:$0xff]  }
 0x5e9   : > { %8775 = vmatprep.subr.bf16.mxu0 %v21864_v43  ;;  %v21926_v43 = vld [vmem:[%s28238_s5 + $0x3d0] ss:$28 sps:$4 sm:$0xff]  }
 0x5eb   : > { %8647 = vmatpush1.bf16.msra.mxu1 %v21859_v46  ;;  %v21929_v46 = vld [vmem:[%s28238_s5 + $0x5b4] ss:$28 sps:$4 sm:$0xff]  }
 0x5ec   : > { %8776 = vmatpush1.bf16.msra.mxu0 %v21862_v50  ;;  %8648 = vmatprep.subr.bf16.mxu1 %v21867_v47  ;;  %v21930_v50 = vld [vmem:[%s28238_s5 + $0x5c8] ss:$28 sps:$4 sm:$0xff]   ;;  %v21927_v47 = vld [vmem:[%s28238_s5 + $0x5b0] ss:$28 sps:$4 sm:$0xff]  }
 0x5ed   : > { %8777 = vmatprep.subr.bf16.mxu0 %v21870_v48  ;;  %v21931_v48 = vld [vmem:[%s28238_s5 + $0x408] ss:$28 sps:$4 sm:$0xff]  }
 0x5ef   : > { %8649 = vmatpush1.bf16.msra.mxu1 %v21865_v62  ;;  %v21934_v62 = vld [vmem:[%s28238_s5 + $0x5ec] ss:$28 sps:$4 sm:$0xff]  }
 0x5f0   : > { %8778 = vmatpush1.bf16.msra.mxu0 %v21868_v49  ;;  %8650 = vmatprep.subr.bf16.mxu1 %v21873_v52  ;;  %v21935_v49 = vld [vmem:[%s28238_s5 + $0x600] ss:$28 sps:$4 sm:$0xff]   ;;  %v21932_v52 = vld [vmem:[%s28238_s5 + $0x5e8] ss:$28 sps:$4 sm:$0xff]  }
 0x5f1   : > { %8779 = vmatprep.subr.bf16.mxu0 %v21876_v53  ;;  %v21936_v53 = vld [vmem:[%s28238_s5 + $0x440] ss:$28 sps:$4 sm:$0xff]  }
 0x5f3   : > { %8651 = vmatpush1.bf16.msra.mxu1 %v21871_v54  ;;  %v21939_v54 = vld [vmem:[%s28238_s5 + $0x624] ss:$28 sps:$4 sm:$0xff]  }
 0x5f4   : > { %8780 = vmatpush1.bf16.msra.mxu0 %v21874_v22  ;;  %8663 = vmatprep.subr.bf16.mxu1 %v21879_v13  ;;  %v21940_v22 = vld [vmem:[%s28238_s5 + $0x638] ss:$28 sps:$4 sm:$0xff]   ;;  %v21937_v13 = vld [vmem:[%s28238_s5 + $0x620] ss:$28 sps:$4 sm:$0xff]  }
 0x5f5   : > { %20052 = vmatprep.subr.bf16.mxu0 %v21880_v55  ;;  %v21941_v55 = vld [vmem:[%s28238_s5 + $0x478] ss:$28 sps:$4 sm:$0xff]  }
 0x5f6   : > { %8653 = vmatmul.mubr.bf16.vlgmr.msra.gmra.mrb[44].mxu1 %v23994_v33 }
 0x5f7   : > { %8782 = vmatmul.mubr.bf16.vlgmr.msra.gmra.mrb[36].mxu0 %v23986_v8  ;;  %8664 = vmatpush1.bf16.msra.mxu1 %v21877_v56  ;;  %v21944_v56 = vld [vmem:[%s28238_s5 + $0x65c] ss:$28 sps:$4 sm:$0xff]  }
 0x5f8   : > { %8695 = vmatprep.mubr.bf16.mxu1 %v23988_v9  ;;  %20053 = vmatpush3.bf16.msra.mxu0 %v21881_v57  ;;  %v21945_v57 = vld [vmem:[%s28238_s5 + $0x670] ss:$28 sps:$4 sm:$0xff]  }
 0x5f9   : > { %8910 = vmatprep.mubr.bf16.mxu0 %v23996_v24  ;;  %8665 = vmatprep.subr.bf16.mxu1 %v21884_v58  ;;  %v21942_v58 = vld [vmem:[%s28238_s5 + $0x658] ss:$28 sps:$4 sm:$0xff]  }
 0x5fa   : > { %20054 = vmatprep.subr.bf16.mxu0 %v21885_v59  ;;  %v21946_v59 = vld [vmem:[%s28238_s5 + $0x4b0] ss:$28 sps:$4 sm:$0xff]  }
 0x5fb   : > { %8666 = vmatpush1.bf16.msra.mxu1 %v21882_v60  ;;  %v21949_v60 = vld [vmem:[%s28238_s5 + $0x694] ss:$28 sps:$4 sm:$0xff]  }
 0x5fc   : > { %20055 = vmatpush3.bf16.msra.mxu0 %v21886_v1  ;;  %8667 = vmatprep.subr.bf16.mxu1 %v21889_v31  ;;  %v21950_v1 = vld [vmem:[%s28238_s5 + $0x6a8] ss:$28 sps:$4 sm:$0xff]  }
 0x5fd   : > { %20056 = vmatprep.subr.bf16.mxu0 %v21890_v2 }
 0x5ff   : > { %8668 = vmatpush1.bf16.msra.mxu1 %v21887_v21  ;;  %v21947_v21 = vld [vmem:[%s28238_s5 + $0x690] ss:$28 sps:$4 sm:$0xff]  }
 0x600   : > { %20057 = vmatpush3.bf16.msra.mxu0 %v21891_v6  ;;  %8669 = vmatprep.subr.bf16.mxu1 %v21894_v51 }
 0x601   : > { %20058 = vmatprep.subr.bf16.mxu0 %v21895_v63  ;;  %v21951_v63 = vld [vmem:[%s28238_s5 + $0x4e8] ss:$28 sps:$4 sm:$0xff]  }
 0x603   : > { %8670 = vmatpush1.bf16.msra.mxu1 %v21892_v7  ;;  %v21954_v7 = vld [vmem:[%s28238_s5 + $0x6cc] ss:$28 sps:$4 sm:$0xff]  }
 0x604   : > { %20059 = vmatpush3.bf16.msra.mxu0 %v21896_v20  ;;  %8671 = vmatprep.subr.bf16.mxu1 %v21899_v11  ;;  %v21955_v11 = vld [vmem:[%s28238_s5 + $0x6e0] ss:$28 sps:$4 sm:$0xff]  }
 0x605   : > { %20060 = vmatprep.subr.bf16.mxu0 %v21900_v16 }
 0x607   : > { %8672 = vmatpush1.bf16.msra.mxu1 %v21897_v17  ;;  %v21952_v17 = vld [vmem:[%s28238_s5 + $0x6c8] ss:$28 sps:$4 sm:$0xff]  }
 0x608   : > { %20061 = vmatpush3.bf16.msra.mxu0 %v21901_v19  ;;  %8673 = vmatprep.subr.bf16.mxu1 %v21904_v45  ;;  %v21956_v19 = vld [vmem:[%s28238_s5 + $0x520] ss:$28 sps:$4 sm:$0xff]   ;;  %v21959_v45 = vld [vmem:[%s28238_s5 + $0x14] ss:$28 sps:$4 sm:$0xff]  }
 0x609   : > { %20062 = vmatprep.subr.bf16.mxu0 %v21905_v23  ;;  %v21962_v23 = vld [vmem:[%s28238_s5 + $0xe0c] ss:$28 sps:$4 sm:$0xff]  }
 0x60b   : > { %8674 = vmatpush1.bf16.msra.mxu1 %v21902_v32  ;;  %v21957_v32 = vld [vmem:[%s28238_s5 + $0x10] ss:$28 sps:$4 sm:$0xff]  }
 0x60c   : > { %20063 = vmatpush3.bf16.msra.mxu0 %v21906_v61  ;;  %8675 = vmatprep.subr.bf16.mxu1 %v21909_v38  ;;  %v21960_v61 = vld [vmem:[%s28238_s5 + $0xe08] ss:$28 sps:$4 sm:$0xff]  }
 0x60d   : > { %20064 = vmatprep.subr.bf16.mxu0 %v21910_v44  ;;  %v21965_v38 = vld [vmem:[%s28238_s5 + $0x4c] ss:$28 sps:$4 sm:$0xff]   ;;  %v21968_v44 = vld [vmem:[%s28238_s5 + $0xe44] ss:$28 sps:$4 sm:$0xff]  }
 0x60f   : > { %8676 = vmatpush1.bf16.msra.mxu1 %v21907_v26  ;;  %v25019_v26 = vrot.slane %v23996_v24, 1 }
 0x610   : > { %20065 = vmatpush3.bf16.msra.mxu0 %v21911_v3  ;;  %8677 = vmatprep.subr.bf16.mxu1 %v21914_v27  ;;  %v21963_v3 = vld [vmem:[%s28238_s5 + $0x48] ss:$28 sps:$4 sm:$0xff]   ;;  %v21966_v27 = vld [vmem:[%s28238_s5 + $0xe40] ss:$28 sps:$4 sm:$0xff]  }
 0x611   : > { %20066 = vmatprep.subr.bf16.mxu0 %v21915_v18  ;;  %v21971_v18 = vld [vmem:[%s28238_s5 + $0x84] ss:$28 sps:$4 sm:$0xff]  }
 0x613   : > { %8678 = vmatpush1.bf16.msra.mxu1 %v21912_v4  ;;  %v21974_v4 = vld [vmem:[%s28238_s5 + $0xe7c] ss:$28 sps:$4 sm:$0xff]  }
 0x614   : > { %20067 = vmatpush3.bf16.msra.mxu0 %v21916_v41  ;;  %8679 = vmatprep.subr.bf16.mxu1 %v21919_v29  ;;  %v21972_v41 = vld [vmem:[%s28238_s5 + $0xe78] ss:$28 sps:$4 sm:$0xff]  }
 0x615   : > { %20074 = vmatprep.subr.bf16.mxu0 %v21920_v30  ;;  %v21977_v29 = vld [vmem:[%s28238_s5 + $0xbc] ss:$28 sps:$4 sm:$0xff]   ;;  %v21980_v30 = vld [vmem:[%s28238_s5 + $0xeb4] ss:$28 sps:$4 sm:$0xff]  }
 0x617   : > { %8911 = vmatmul.mubr.bf16.vlgmr.msra.gmra.mrb[48].mxu0 %v23994_v33  ;;  %8680 = vmatpush1.bf16.msra.mxu1 %v21917_v5  ;;  %v21975_v5 = vld [vmem:[%s28238_s5 + $0xb8] ss:$28 sps:$4 sm:$0xff]  }
 0x618   : > { %20075 = vmatpush3.bf16.msra.mxu0 %v21921_v34  ;;  %8951 = vmatprep.mubr.bf16.mxu0 %v23988_v9  ;;  %v21978_v34 = vld [vmem:[%s28238_s5 + $0xeb0] ss:$28 sps:$4 sm:$0xff]  }
 0x619   : > { %8681 = vmatprep.subr.bf16.mxu1 %v21924_v37  ;;  %20076 = vmatprep.subr.bf16.mxu0 %v21925_v42  ;;  %v21983_v37 = vld [vmem:[%s28238_s5 + $0xf4] ss:$28 sps:$4 sm:$0xff]   ;;  %v21986_v42 = vld [vmem:[%s28238_s5 + $0xeec] ss:$28 sps:$4 sm:$0xff]  }
 0x61b   : > { %8682 = vmatpush1.bf16.msra.mxu1 %v21922_v40  ;;  %v21981_v40 = vld [vmem:[%s28238_s5 + $0xf0] ss:$28 sps:$4 sm:$0xff]  }
 0x61c   : > { %20077 = vmatpush3.bf16.msra.mxu0 %v21926_v43  ;;  %8683 = vmatprep.subr.bf16.mxu1 %v21929_v46  ;;  %v21984_v43 = vld [vmem:[%s28238_s5 + $0xee8] ss:$28 sps:$4 sm:$0xff]  }
 0x61d   : > { %20078 = vmatprep.subr.bf16.mxu0 %v21930_v50  ;;  %v21989_v46 = vld [vmem:[%s28238_s5 + $0x12c] ss:$28 sps:$4 sm:$0xff]   ;;  %v21992_v50 = vld [vmem:[%s28238_s5 + $0xf24] ss:$28 sps:$4 sm:$0xff]  }
 0x61f   : > { %8684 = vmatpush1.bf16.msra.mxu1 %v21927_v47  ;;  %v21987_v47 = vld [vmem:[%s28238_s5 + $0x128] ss:$28 sps:$4 sm:$0xff]  }
 0x620   : > { %20079 = vmatpush3.bf16.msra.mxu0 %v21931_v48  ;;  %8685 = vmatprep.subr.bf16.mxu1 %v21934_v62  ;;  %v21990_v48 = vld [vmem:[%s28238_s5 + $0xf20] ss:$28 sps:$4 sm:$0xff]  }
 0x621   : > { %20080 = vmatprep.subr.bf16.mxu0 %v21935_v49  ;;  %v21995_v62 = vld [vmem:[%s28238_s5 + $0x164] ss:$28 sps:$4 sm:$0xff]   ;;  %v21998_v49 = vld [vmem:[%s28238_s5 + $0xf5c] ss:$28 sps:$4 sm:$0xff]  }
 0x623   : > { %8686 = vmatpush1.bf16.msra.mxu1 %v21932_v52 }
 0x624   : > { %20081 = vmatpush3.bf16.msra.mxu0 %v21936_v53  ;;  %8687 = vmatprep.subr.bf16.mxu1 %v21939_v54  ;;  %v21993_v54 = vld [vmem:[%s28238_s5 + $0x160] ss:$28 sps:$4 sm:$0xff]  }
 0x625   : > { %20082 = vmatprep.subr.bf16.mxu0 %v21940_v22 }
 0x627   : > { %8688 = vmatpush1.bf16.msra.mxu1 %v21937_v13 }
 0x628   : > { %20083 = vmatpush3.bf16.msra.mxu0 %v21941_v55  ;;  %8689 = vmatprep.subr.bf16.mxu1 %v21944_v56  ;;  %v21996_v55 = vld [vmem:[%s28238_s5 + $0xf58] ss:$28 sps:$4 sm:$0xff]  }
 0x629   : > { %20084 = vmatprep.subr.bf16.mxu0 %v21945_v57  ;;  %v22001_v56 = vld [vmem:[%s28238_s5 + $0x19c] ss:$28 sps:$4 sm:$0xff]  }
 0x62a   : > { %v20024_v31 = vpop.f32.mrb[40].mxu0 }
 0x62b   : > { %v20025_v2 = vpop.f32.mrb[41].mxu0  ;;  %8690 = vmatpush1.bf16.msra.mxu1 %v21942_v58  ;;  %v22004_v58 = vld [vmem:[%s28238_s5 + $0xf94] ss:$28 sps:$4 sm:$0xff]  }
 0x62c   : > { %v24979_v6 = vadd.f32 %v20025_v2, %v20024_v31  ;;  %v20027_v51 = vpop.f32.mrb[42].mxu0  ;;  %20085 = vmatpush3.bf16.msra.mxu0 %v21946_v59  ;;  %8691 = vmatprep.subr.bf16.mxu1 %v21949_v60  ;;  %v22002_v2 = vld [vmem:[%s28238_s5 + $0xf90] ss:$28 sps:$4 sm:$0xff]  }
 0x62d   : > { %v20028_v20 = vpop.f32.mrb[43].mxu0  ;;  %20086 = vmatprep.subr.bf16.mxu0 %v21950_v1  ;;  %v21999_v1 = vld [vmem:[%s28238_s5 + $0x198] ss:$28 sps:$4 sm:$0xff]  }
 0x62e   : > { %v24990_v16 = vadd.f32 %v20028_v20, %v20027_v51  ;;  %v22005_v51 = vld [vmem:[%s28238_s5 + $0x1d0] ss:$28 sps:$4 sm:$0xff]   ;;  %v22016_v20 = vld [vmem:[%s28238_s5 + $0x1004] ss:$28 sps:$4 sm:$0xff]  }
 0x62f   : > { %8692 = vmatpush1.bf16.msra.mxu1 %v21947_v21  ;;  %v22007_v21 = vld [vmem:[%s28238_s5 + $0x1d4] ss:$28 sps:$4 sm:$0xff]  }
 0x630   : > { %20087 = vmatpush3.bf16.msra.mxu0 %v21951_v63  ;;  %8693 = vmatprep.subr.bf16.mxu1 %v21954_v7  ;;  %v22008_v63 = vld [vmem:[%s28238_s5 + $0xfc8] ss:$28 sps:$4 sm:$0xff]  }
 0x631   : > { %20088 = vmatprep.subr.bf16.mxu0 %v21955_v11  ;;  %v22013_v7 = vld [vmem:[%s28238_s5 + $0x20c] ss:$28 sps:$4 sm:$0xff]  }
 0x632   : > { %v22011_v11 = vld [vmem:[%s28238_s5 + $0x208] ss:$28 sps:$4 sm:$0xff]  }
 0x633   : > { %8694 = vmatpush1.bf16.msra.mxu1 %v21952_v17  ;;  %v22019_v17 = vld [vmem:[%s28238_s5 + $0x244] ss:$28 sps:$4 sm:$0xff]  }
 0x634   : > { %20089 = vmatpush3.bf16.msra.mxu0 %v21956_v19  ;;  %8792 = vmatprep.subr.bf16.mxu1 %v21959_v45  ;;  %v22022_v19 = vld [vmem:[%s28238_s5 + $0x103c] ss:$28 sps:$4 sm:$0xff]  }
 0x635   : > { %10467 = vmatprep.subr.bf16.mxu0 %v21962_v23  ;;  %v22017_v45 = vld [vmem:[%s28238_s5 + $0x240] ss:$28 sps:$4 sm:$0xff]   ;;  %v22020_v23 = vld [vmem:[%s28238_s5 + $0x1038] ss:$28 sps:$4 sm:$0xff]  }
 0x636   : > { %8696 = vmatmul.mubr.bf16.vlgmr.msra.gmra.mrb[44].mxu1 %v23986_v8 }
 0x637   : > { %8952 = vmatmul.mubr.bf16.vlgmr.msra.gmra.mrb[52].mxu0 %v23986_v8  ;;  %8793 = vmatpush1.bf16.msra.mxu1 %v21957_v32  ;;  %v22025_v32 = vld [vmem:[%s28238_s5 + $0x27c] ss:$28 sps:$4 sm:$0xff]  }
 0x638   : > { %8824 = vmatprep.mubr.bf16.mxu1 %v23996_v24  ;;  %10468 = vmatpush1.bf16.msra.mxu0 %v21960_v61  ;;  %v21969_v24 = vld [vmem:[%s28238_s5 + $0x80] ss:$28 sps:$4 sm:$0xff]   ;;  %v22028_v61 = vld [vmem:[%s28238_s5 + $0x1074] ss:$28 sps:$4 sm:$0xff]  }
 0x639   : > { %10499 = vmatprep.mubr.bf16.mxu0 %v25019_v26  ;;  %8794 = vmatprep.subr.bf16.mxu1 %v21965_v38  ;;  %v22023_v38 = vld [vmem:[%s28238_s5 + $0x278] ss:$28 sps:$4 sm:$0xff]  }
 0x63a   : > { %10469 = vmatprep.subr.bf16.mxu0 %v21968_v44  ;;  %v22026_v44 = vld [vmem:[%s28238_s5 + $0x1070] ss:$28 sps:$4 sm:$0xff]  }
 0x63b   : > { %8795 = vmatpush1.bf16.msra.mxu1 %v21963_v3  ;;  %v22031_v3 = vld [vmem:[%s28238_s5 + $0x2b4] ss:$28 sps:$4 sm:$0xff]  }
 0x63c   : > { %10470 = vmatpush1.bf16.msra.mxu0 %v21966_v27  ;;  %8796 = vmatprep.subr.bf16.mxu1 %v21971_v18  ;;  %v22034_v27 = vld [vmem:[%s28238_s5 + $0x10ac] ss:$28 sps:$4 sm:$0xff]  }
 0x63d   : > { %10471 = vmatprep.subr.bf16.mxu0 %v21974_v4  ;;  %v22029_v18 = vld [vmem:[%s28238_s5 + $0x2b0] ss:$28 sps:$4 sm:$0xff]   ;;  %v22032_v4 = vld [vmem:[%s28238_s5 + $0x10a8] ss:$28 sps:$4 sm:$0xff]  }
 0x63f   : > { %8797 = vmatpush1.bf16.msra.mxu1 %v21969_v24  ;;  %v22037_v24 = vld [vmem:[%s28238_s5 + $0x2ec] ss:$28 sps:$4 sm:$0xff]  }
 0x640   : > { %10472 = vmatpush1.bf16.msra.mxu0 %v21972_v41  ;;  %8798 = vmatprep.subr.bf16.mxu1 %v21977_v29  ;;  %v22040_v41 = vld [vmem:[%s28238_s5 + $0x10e4] ss:$28 sps:$4 sm:$0xff]  }
 0x641   : > { %10473 = vmatprep.subr.bf16.mxu0 %v21980_v30  ;;  %v22035_v29 = vld [vmem:[%s28238_s5 + $0x2e8] ss:$28 sps:$4 sm:$0xff]   ;;  %v22038_v30 = vld [vmem:[%s28238_s5 + $0x10e0] ss:$28 sps:$4 sm:$0xff]  }
 0x643   : > { %8799 = vmatpush1.bf16.msra.mxu1 %v21975_v5  ;;  %v22043_v5 = vld [vmem:[%s28238_s5 + $0x324] ss:$28 sps:$4 sm:$0xff]  }
 0x644   : > { %10474 = vmatpush1.bf16.msra.mxu0 %v21978_v34  ;;  %8800 = vmatprep.subr.bf16.mxu1 %v21983_v37  ;;  %v22046_v34 = vld [vmem:[%s28238_s5 + $0x111c] ss:$28 sps:$4 sm:$0xff]  }
 0x645   : > { %10475 = vmatprep.subr.bf16.mxu0 %v21986_v42  ;;  %v22041_v37 = vld [vmem:[%s28238_s5 + $0x320] ss:$28 sps:$4 sm:$0xff]   ;;  %v22044_v42 = vld [vmem:[%s28238_s5 + $0x1118] ss:$28 sps:$4 sm:$0xff]  }
 0x647   : > { %8801 = vmatpush1.bf16.msra.mxu1 %v21981_v40  ;;  %v22049_v40 = vld [vmem:[%s28238_s5 + $0x35c] ss:$28 sps:$4 sm:$0xff]  }
 0x648   : > { %10476 = vmatpush1.bf16.msra.mxu0 %v21984_v43  ;;  %8802 = vmatprep.subr.bf16.mxu1 %v21989_v46  ;;  %v22052_v43 = vld [vmem:[%s28238_s5 + $0x1154] ss:$28 sps:$4 sm:$0xff]  }
 0x649   : > { %10477 = vmatprep.subr.bf16.mxu0 %v21992_v50  ;;  %v22047_v46 = vld [vmem:[%s28238_s5 + $0x358] ss:$28 sps:$4 sm:$0xff]   ;;  %v22050_v50 = vld [vmem:[%s28238_s5 + $0x1150] ss:$28 sps:$4 sm:$0xff]  }
 0x64a   : > { %v20046_v52 = vpop.f32.mrb[44].mxu0 }
 0x64b   : > { %v20047_v53 = vpop.f32.mrb[45].mxu0  ;;  %8803 = vmatpush1.bf16.msra.mxu1 %v21987_v47  ;;  %v22055_v47 = vld [vmem:[%s28238_s5 + $0x394] ss:$28 sps:$4 sm:$0xff]  }
 0x64c   : > { %v20048_v22 = vadd.f32 %v20047_v53, %v20046_v52  ;;  %v20049_v13 = vpop.f32.mrb[46].mxu0  ;;  %10478 = vmatpush1.bf16.msra.mxu0 %v21990_v48  ;;  %8804 = vmatprep.subr.bf16.mxu1 %v21995_v62  ;;  %v22058_v48 = vld [vmem:[%s28238_s5 + $0x118c] ss:$28 sps:$4 sm:$0xff]   ;;  %v25216_v52 = vrot.slane %v23994_v33, 1 }
 0x64d   : > { %v20050_v57 = vpop.f32.mrb[47].mxu0  ;;  %10479 = vmatprep.subr.bf16.mxu0 %v21998_v49  ;;  %v22053_v62 = vld [vmem:[%s28238_s5 + $0x390] ss:$28 sps:$4 sm:$0xff]   ;;  %v22056_v49 = vld [vmem:[%s28238_s5 + $0x1188] ss:$28 sps:$4 sm:$0xff]  }
 0x64e   : > { %v25096_v59 = vadd.f32 %v20048_v22, %v24979_v6  ;;  %v20051_v60 = vadd.f32 %v20050_v57, %v20049_v13  ;;  %v22010_v6 = vld [vmem:[%s28238_s5 + $0xfcc] ss:$28 sps:$4 sm:$0xff]   ;;  %v25227_v22 = vrot.slane %v23988_v9, 1  ;;  %v22068_v57 = vld [vmem:[%s28238_s5 + $0x11f8] ss:$28 sps:$4 sm:$0xff]  }
 0x64f   : > { %8805 = vmatpush1.bf16.msra.mxu1 %v21993_v54  ;;  %v22061_v53 = vld [vmem:[%s28238_s5 + $0x3cc] ss:$28 sps:$4 sm:$0xff]   ;;  %v22064_v54 = vld [vmem:[%s28238_s5 + $0x11c4] ss:$28 sps:$4 sm:$0xff]  }
 0x650   : > { %v25102_v31 = vadd.f32 %v20051_v60, %v24990_v16  ;;  %10480 = vmatpush1.bf16.msra.mxu0 %v21996_v55  ;;  %8806 = vmatprep.subr.bf16.mxu1 %v22001_v56  ;;  %v22014_v16 = vld [vmem:[%s28238_s5 + $0x1000] ss:$28 sps:$4 sm:$0xff]   ;;  %v22059_v13 = vld [vmem:[%s28238_s5 + $0x3c8] ss:$28 sps:$4 sm:$0xff]   ;;  %v22076_v60 = vld [vmem:[%s28238_s5 + $0x1234] ss:$28 sps:$4 sm:$0xff]  }
 0x651   : > { %10481 = vmatprep.subr.bf16.mxu0 %v22004_v58  ;;  %v22067_v55 = vld [vmem:[%s28238_s5 + $0x404] ss:$28 sps:$4 sm:$0xff]   ;;  %v22070_v56 = vld [vmem:[%s28238_s5 + $0x11fc] ss:$28 sps:$4 sm:$0xff]  }
 0x652   : > { %v22073_v58 = vld [vmem:[%s28238_s5 + $0x43c] ss:$28 sps:$4 sm:$0xff]  }
 0x653   : > { %8807 = vmatpush1.bf16.msra.mxu1 %v21999_v1  ;;  %v22071_v1 = vld [vmem:[%s28238_s5 + $0x438] ss:$28 sps:$4 sm:$0xff]  }
 0x654   : > { %10482 = vmatpush1.bf16.msra.mxu0 %v22002_v2  ;;  %8808 = vmatprep.subr.bf16.mxu1 %v22007_v21  ;;  %v22074_v2 = vld [vmem:[%s28238_s5 + $0x1230] ss:$28 sps:$4 sm:$0xff]  }
 0x655   : > { %10483 = vmatprep.subr.bf16.mxu0 %v22010_v6  ;;  %v22079_v21 = vld [vmem:[%s28238_s5 + $0x474] ss:$28 sps:$4 sm:$0xff]   ;;  %v22082_v6 = vld [vmem:[%s28238_s5 + $0x126c] ss:$28 sps:$4 sm:$0xff]  }
 0x657   : > { %8809 = vmatpush1.bf16.msra.mxu1 %v22005_v51  ;;  %v22077_v51 = vld [vmem:[%s28238_s5 + $0x470] ss:$28 sps:$4 sm:$0xff]  }
 0x658   : > { %10484 = vmatpush1.bf16.msra.mxu0 %v22008_v63  ;;  %8810 = vmatprep.subr.bf16.mxu1 %v22013_v7  ;;  %v22080_v63 = vld [vmem:[%s28238_s5 + $0x1268] ss:$28 sps:$4 sm:$0xff]  }
 0x659   : > { %10485 = vmatprep.subr.bf16.mxu0 %v22016_v20  ;;  %v22085_v7 = vld [vmem:[%s28238_s5 + $0x4ac] ss:$28 sps:$4 sm:$0xff]   ;;  %v22088_v20 = vld [vmem:[%s28238_s5 + $0x12a4] ss:$28 sps:$4 sm:$0xff]  }
 0x65b   : > { %8811 = vmatpush1.bf16.msra.mxu1 %v22011_v11  ;;  %v22083_v11 = vld [vmem:[%s28238_s5 + $0x4a8] ss:$28 sps:$4 sm:$0xff]  }
 0x65c   : > { %10486 = vmatpush1.bf16.msra.mxu0 %v22014_v16  ;;  %8812 = vmatprep.subr.bf16.mxu1 %v22019_v17  ;;  %v22086_v16 = vld [vmem:[%s28238_s5 + $0x12a0] ss:$28 sps:$4 sm:$0xff]  }
 0x65d   : > { %10487 = vmatprep.subr.bf16.mxu0 %v22022_v19  ;;  %v22091_v17 = vld [vmem:[%s28238_s5 + $0x4e4] ss:$28 sps:$4 sm:$0xff]   ;;  %v22094_v19 = vld [vmem:[%s28238_s5 + $0x12dc] ss:$28 sps:$4 sm:$0xff]  }
 0x65f   : > { %8813 = vmatpush1.bf16.msra.mxu1 %v22017_v45  ;;  %v22089_v45 = vld [vmem:[%s28238_s5 + $0x4e0] ss:$28 sps:$4 sm:$0xff]  }
 0x660   : > { %10488 = vmatpush1.bf16.msra.mxu0 %v22020_v23  ;;  %8814 = vmatprep.subr.bf16.mxu1 %v22025_v32  ;;  %v22092_v23 = vld [vmem:[%s28238_s5 + $0x12d8] ss:$28 sps:$4 sm:$0xff]  }
 0x661   : > { %10489 = vmatprep.subr.bf16.mxu0 %v22028_v61  ;;  %v22097_v32 = vld [vmem:[%s28238_s5 + $0x51c] ss:$28 sps:$4 sm:$0xff]   ;;  %v22100_v61 = vld [vmem:[%s28238_s5 + $0x1314] ss:$28 sps:$4 sm:$0xff]  }
 0x663   : > { %8815 = vmatpush1.bf16.msra.mxu1 %v22023_v38  ;;  %v22095_v38 = vld [vmem:[%s28238_s5 + $0x518] ss:$28 sps:$4 sm:$0xff]  }
 0x664   : > { %10490 = vmatpush1.bf16.msra.mxu0 %v22026_v44  ;;  %8816 = vmatprep.subr.bf16.mxu1 %v22031_v3  ;;  %v22098_v44 = vld [vmem:[%s28238_s5 + $0x1310] ss:$28 sps:$4 sm:$0xff]  }
 0x665   : > { %10491 = vmatprep.subr.bf16.mxu0 %v22034_v27  ;;  %v22103_v3 = vld [vmem:[%s28238_s5 + $0x554] ss:$28 sps:$4 sm:$0xff]   ;;  %v22106_v27 = vld [vmem:[%s28238_s5 + $0x134c] ss:$28 sps:$4 sm:$0xff]  }
 0x667   : > { %8817 = vmatpush1.bf16.msra.mxu1 %v22029_v18  ;;  %v22101_v18 = vld [vmem:[%s28238_s5 + $0x550] ss:$28 sps:$4 sm:$0xff]  }
 0x668   : > { %10492 = vmatpush1.bf16.msra.mxu0 %v22032_v4  ;;  %8818 = vmatprep.subr.bf16.mxu1 %v22037_v24  ;;  %v22104_v4 = vld [vmem:[%s28238_s5 + $0x1348] ss:$28 sps:$4 sm:$0xff]  }
 0x669   : > { %10493 = vmatprep.subr.bf16.mxu0 %v22040_v41  ;;  %v22109_v24 = vld [vmem:[%s28238_s5 + $0x58c] ss:$28 sps:$4 sm:$0xff]   ;;  %v22112_v41 = vld [vmem:[%s28238_s5 + $0x1384] ss:$28 sps:$4 sm:$0xff]  }
 0x66b   : > { %8819 = vmatpush1.bf16.msra.mxu1 %v22035_v29  ;;  %v22107_v29 = vld [vmem:[%s28238_s5 + $0x588] ss:$28 sps:$4 sm:$0xff]  }
 0x66c   : > { %10494 = vmatpush1.bf16.msra.mxu0 %v22038_v30  ;;  %8820 = vmatprep.subr.bf16.mxu1 %v22043_v5  ;;  %v22110_v30 = vld [vmem:[%s28238_s5 + $0x1380] ss:$28 sps:$4 sm:$0xff]  }
 0x66d   : > { %10495 = vmatprep.subr.bf16.mxu0 %v22046_v34  ;;  %v22115_v5 = vld [vmem:[%s28238_s5 + $0x5c4] ss:$28 sps:$4 sm:$0xff]   ;;  %v22118_v34 = vld [vmem:[%s28238_s5 + $0x13bc] ss:$28 sps:$4 sm:$0xff]  }
 0x66f   : > { %8821 = vmatpush1.bf16.msra.mxu1 %v22041_v37  ;;  %v22113_v37 = vld [vmem:[%s28238_s5 + $0x5c0] ss:$28 sps:$4 sm:$0xff]  }
 0x670   : > { %10496 = vmatpush1.bf16.msra.mxu0 %v22044_v42  ;;  %8822 = vmatprep.subr.bf16.mxu1 %v22049_v40  ;;  %v22116_v42 = vld [vmem:[%s28238_s5 + $0x13b8] ss:$28 sps:$4 sm:$0xff]  }
 0x671   : > { %10497 = vmatprep.subr.bf16.mxu0 %v22052_v43  ;;  %v22121_v40 = vld [vmem:[%s28238_s5 + $0x5fc] ss:$28 sps:$4 sm:$0xff]   ;;  %v22124_v43 = vld [vmem:[%s28238_s5 + $0x13f4] ss:$28 sps:$4 sm:$0xff]  }
 0x673   : > { %8823 = vmatpush1.bf16.msra.mxu1 %v22047_v46  ;;  %v22119_v46 = vld [vmem:[%s28238_s5 + $0x5f8] ss:$28 sps:$4 sm:$0xff]  }
 0x674   : > { %10498 = vmatpush1.bf16.msra.mxu0 %v22050_v50  ;;  %8835 = vmatprep.subr.bf16.mxu1 %v22055_v47  ;;  %v22122_v50 = vld [vmem:[%s28238_s5 + $0x13f0] ss:$28 sps:$4 sm:$0xff]  }
 0x675   : > { %10510 = vmatprep.subr.bf16.mxu0 %v22058_v48  ;;  %v22127_v47 = vld [vmem:[%s28238_s5 + $0x634] ss:$28 sps:$4 sm:$0xff]   ;;  %v22130_v48 = vld [vmem:[%s28238_s5 + $0x142c] ss:$28 sps:$4 sm:$0xff]  }
 0x676   : > { %8825 = vmatmul.mubr.bf16.vlgmr.msra.gmra.mrb[48].mxu1 %v23994_v33  ;;  %v22062_v33 = vld [vmem:[%s28238_s5 + $0x11c0] ss:$28 sps:$4 sm:$0xff]  }
 0x677   : > { %10500 = vmatmul.mubr.bf16.vlgmr.msra.gmra.mrb[36].mxu0 %v25216_v52  ;;  %8836 = vmatpush1.bf16.msra.mxu1 %v22053_v62  ;;  %v22125_v62 = vld [vmem:[%s28238_s5 + $0x630] ss:$28 sps:$4 sm:$0xff]  }
 0x678   : > { %8867 = vmatprep.mubr.bf16.mxu1 %v23988_v9  ;;  %10511 = vmatpush1.bf16.msra.mxu0 %v22056_v49  ;;  %v22065_v9 = vld [vmem:[%s28238_s5 + $0x400] ss:$28 sps:$4 sm:$0xff]   ;;  %v22128_v49 = vld [vmem:[%s28238_s5 + $0x1428] ss:$28 sps:$4 sm:$0xff]  }
 0x679   : > { %10542 = vmatprep.mubr.bf16.mxu0 %v25227_v22  ;;  %8837 = vmatprep.subr.bf16.mxu1 %v22061_v53  ;;  %v22133_v53 = vld [vmem:[%s28238_s5 + $0x66c] ss:$28 sps:$4 sm:$0xff]  }
 0x67a   : > { %10512 = vmatprep.subr.bf16.mxu0 %v22064_v54  ;;  %v22136_v54 = vld [vmem:[%s28238_s5 + $0x1464] ss:$28 sps:$4 sm:$0xff]  }
 0x67b   : > { %8838 = vmatpush1.bf16.msra.mxu1 %v22059_v13  ;;  %v22131_v13 = vld [vmem:[%s28238_s5 + $0x668] ss:$28 sps:$4 sm:$0xff]  }
 0x67c   : > { %10513 = vmatpush1.bf16.msra.mxu0 %v22062_v33  ;;  %8839 = vmatprep.subr.bf16.mxu1 %v22067_v55  ;;  %v22134_v33 = vld [vmem:[%s28238_s5 + $0x1460] ss:$28 sps:$4 sm:$0xff]  }
 0x67d   : > { %10514 = vmatprep.subr.bf16.mxu0 %v22070_v56  ;;  %v22139_v55 = vld [vmem:[%s28238_s5 + $0x6a4] ss:$28 sps:$4 sm:$0xff]   ;;  %v22142_v56 = vld [vmem:[%s28238_s5 + $0x149c] ss:$28 sps:$4 sm:$0xff]  }
 0x67f   : > { %8840 = vmatpush1.bf16.msra.mxu1 %v22065_v9  ;;  %v22137_v9 = vld [vmem:[%s28238_s5 + $0x6a0] ss:$28 sps:$4 sm:$0xff]  }
 0x680   : > { %10515 = vmatpush1.bf16.msra.mxu0 %v22068_v57  ;;  %8841 = vmatprep.subr.bf16.mxu1 %v22073_v58  ;;  %v22140_v57 = vld [vmem:[%s28238_s5 + $0x1498] ss:$28 sps:$4 sm:$0xff]  }
 0x681   : > { %10516 = vmatprep.subr.bf16.mxu0 %v22076_v60  ;;  %v22145_v58 = vld [vmem:[%s28238_s5 + $0x6dc] ss:$28 sps:$4 sm:$0xff]   ;;  %v22148_v60 = vld [vmem:[%s28238_s5 + $0x14d4] ss:$28 sps:$4 sm:$0xff]  }
 0x683   : > { %8842 = vmatpush1.bf16.msra.mxu1 %v22071_v1  ;;  %v22143_v1 = vld [vmem:[%s28238_s5 + $0x6d8] ss:$28 sps:$4 sm:$0xff]  }
 0x684   : > { %10517 = vmatpush1.bf16.msra.mxu0 %v22074_v2  ;;  %8843 = vmatprep.subr.bf16.mxu1 %v22079_v21  ;;  %v22146_v2 = vld [vmem:[%s28238_s5 + $0x14d0] ss:$28 sps:$4 sm:$0xff]   ;;  %v22151_v21 = vld [vmem:[%s28238_s5 + $0xe04] ss:$28 sps:$4 sm:$0xff]  }
 0x685   : > { %10518 = vmatprep.subr.bf16.mxu0 %v22082_v6  ;;  %v22152_v6 = vld [vmem:[%s28238_s5 + $0xfd8] ss:$28 sps:$4 sm:$0xff]  }
 0x687   : > { %8844 = vmatpush1.bf16.msra.mxu1 %v22077_v51  ;;  %v22149_v51 = vld [vmem:[%s28238_s5 + $0xe00] ss:$28 sps:$4 sm:$0xff]  }
 0x688   : > { %10519 = vmatpush1.bf16.msra.mxu0 %v22080_v63  ;;  %8845 = vmatprep.subr.bf16.mxu1 %v22085_v7  ;;  %v22153_v63 = vld [vmem:[%s28238_s5 + $0xe18] ss:$28 sps:$4 sm:$0xff]   ;;  %v25418_v7 = vrot.slane %v23986_v8, 1 }
 0x689   : > { %10520 = vmatprep.subr.bf16.mxu0 %v22088_v20  ;;  %v22156_v20 = vld [vmem:[%s28238_s5 + $0xe3c] ss:$28 sps:$4 sm:$0xff]  }
 0x68b   : > { %8846 = vmatpush1.bf16.msra.mxu1 %v22083_v11  ;;  %v22157_v11 = vld [vmem:[%s28238_s5 + $0x1010] ss:$28 sps:$4 sm:$0xff]  }
 0x68c   : > { %10521 = vmatpush1.bf16.msra.mxu0 %v22086_v16  ;;  %8847 = vmatprep.subr.bf16.mxu1 %v22091_v17  ;;  %v22154_v16 = vld [vmem:[%s28238_s5 + $0xe38] ss:$28 sps:$4 sm:$0xff]   ;;  %v22158_v17 = vld [vmem:[%s28238_s5 + $0xe50] ss:$28 sps:$4 sm:$0xff]  }
 0x68d   : > { %10522 = vmatprep.subr.bf16.mxu0 %v22094_v19  ;;  %v22162_v19 = vld [vmem:[%s28238_s5 + $0x1048] ss:$28 sps:$4 sm:$0xff]  }
 0x68f   : > { %8848 = vmatpush1.bf16.msra.mxu1 %v22089_v45  ;;  %v22159_v45 = vld [vmem:[%s28238_s5 + $0xe70] ss:$28 sps:$4 sm:$0xff]  }
 0x690   : > { %10523 = vmatpush1.bf16.msra.mxu0 %v22092_v23  ;;  %8849 = vmatprep.subr.bf16.mxu1 %v22097_v32  ;;  %v22163_v23 = vld [vmem:[%s28238_s5 + $0xe88] ss:$28 sps:$4 sm:$0xff]  }
 0x691   : > { %10524 = vmatprep.subr.bf16.mxu0 %v22100_v61  ;;  %v22166_v32 = vld [vmem:[%s28238_s5 + $0xeac] ss:$28 sps:$4 sm:$0xff]   ;;  %v22167_v61 = vld [vmem:[%s28238_s5 + $0x1080] ss:$28 sps:$4 sm:$0xff]  }
 0x693   : > { %8850 = vmatpush1.bf16.msra.mxu1 %v22095_v38  ;;  %v22164_v38 = vld [vmem:[%s28238_s5 + $0xea8] ss:$28 sps:$4 sm:$0xff]  }
 0x694   : > { %10525 = vmatpush1.bf16.msra.mxu0 %v22098_v44  ;;  %8851 = vmatprep.subr.bf16.mxu1 %v22103_v3  ;;  %v22168_v44 = vld [vmem:[%s28238_s5 + $0xec0] ss:$28 sps:$4 sm:$0xff]  }
 0x695   : > { %10526 = vmatprep.subr.bf16.mxu0 %v22106_v27  ;;  %v22171_v3 = vld [vmem:[%s28238_s5 + $0xee4] ss:$28 sps:$4 sm:$0xff]   ;;  %v22172_v27 = vld [vmem:[%s28238_s5 + $0x10b8] ss:$28 sps:$4 sm:$0xff]  }
 0x697   : > { %8852 = vmatpush1.bf16.msra.mxu1 %v22101_v18  ;;  %v22169_v18 = vld [vmem:[%s28238_s5 + $0xee0] ss:$28 sps:$4 sm:$0xff]  }
 0x698   : > { %10527 = vmatpush1.bf16.msra.mxu0 %v22104_v4  ;;  %8853 = vmatprep.subr.bf16.mxu1 %v22109_v24  ;;  %v22173_v4 = vld [vmem:[%s28238_s5 + $0xef8] ss:$28 sps:$4 sm:$0xff]  }
 0x699   : > { %10528 = vmatprep.subr.bf16.mxu0 %v22112_v41  ;;  %v22176_v24 = vld [vmem:[%s28238_s5 + $0xf1c] ss:$28 sps:$4 sm:$0xff]   ;;  %v22177_v41 = vld [vmem:[%s28238_s5 + $0x10f0] ss:$28 sps:$4 sm:$0xff]  }
 0x69b   : > { %8854 = vmatpush1.bf16.msra.mxu1 %v22107_v29  ;;  %v22174_v29 = vld [vmem:[%s28238_s5 + $0xf18] ss:$28 sps:$4 sm:$0xff]  }
 0x69c   : > { %10529 = vmatpush1.bf16.msra.mxu0 %v22110_v30  ;;  %8855 = vmatprep.subr.bf16.mxu1 %v22115_v5  ;;  %v22178_v30 = vld [vmem:[%s28238_s5 + $0xf30] ss:$28 sps:$4 sm:$0xff]  }
 0x69d   : > { %10530 = vmatprep.subr.bf16.mxu0 %v22118_v34  ;;  %v22181_v5 = vld [vmem:[%s28238_s5 + $0xf54] ss:$28 sps:$4 sm:$0xff]   ;;  %v22182_v34 = vld [vmem:[%s28238_s5 + $0x1128] ss:$28 sps:$4 sm:$0xff]  }
 0x69f   : > { %8856 = vmatpush1.bf16.msra.mxu1 %v22113_v37  ;;  %v22179_v37 = vld [vmem:[%s28238_s5 + $0xf50] ss:$28 sps:$4 sm:$0xff]  }
 0x6a0   : > { %10531 = vmatpush1.bf16.msra.mxu0 %v22116_v42  ;;  %8857 = vmatprep.subr.bf16.mxu1 %v22121_v40  ;;  %v22183_v42 = vld [vmem:[%s28238_s5 + $0xf68] ss:$28 sps:$4 sm:$0xff]  }
 0x6a1   : > { %10532 = vmatprep.subr.bf16.mxu0 %v22124_v43  ;;  %v22186_v40 = vld [vmem:[%s28238_s5 + $0xf8c] ss:$28 sps:$4 sm:$0xff]   ;;  %v22187_v43 = vld [vmem:[%s28238_s5 + $0x1160] ss:$28 sps:$4 sm:$0xff]  }
 0x6a3   : > { %8858 = vmatpush1.bf16.msra.mxu1 %v22119_v46  ;;  %v22184_v46 = vld [vmem:[%s28238_s5 + $0xf88] ss:$28 sps:$4 sm:$0xff]  }
 0x6a4   : > { %10533 = vmatpush1.bf16.msra.mxu0 %v22122_v50  ;;  %8859 = vmatprep.subr.bf16.mxu1 %v22127_v47  ;;  %v22188_v50 = vld [vmem:[%s28238_s5 + $0xfa0] ss:$28 sps:$4 sm:$0xff]  }
 0x6a5   : > { %10534 = vmatprep.subr.bf16.mxu0 %v22130_v48  ;;  %v22191_v47 = vld [vmem:[%s28238_s5 + $0xfc4] ss:$28 sps:$4 sm:$0xff]   ;;  %v22192_v48 = vld [vmem:[%s28238_s5 + $0x1358] ss:$28 sps:$4 sm:$0xff]  }
 0x6a7   : > { %8860 = vmatpush1.bf16.msra.mxu1 %v22125_v62  ;;  %v22189_v62 = vld [vmem:[%s28238_s5 + $0xfc0] ss:$28 sps:$4 sm:$0xff]  }
 0x6a8   : > { %10535 = vmatpush1.bf16.msra.mxu0 %v22128_v49  ;;  %8861 = vmatprep.subr.bf16.mxu1 %v22133_v53  ;;  %v22193_v49 = vld [vmem:[%s28238_s5 + $0x1198] ss:$28 sps:$4 sm:$0xff]  }
 0x6a9   : > { %10536 = vmatprep.subr.bf16.mxu0 %v22136_v54  ;;  %v22196_v53 = vld [vmem:[%s28238_s5 + $0xffc] ss:$28 sps:$4 sm:$0xff]   ;;  %v22197_v54 = vld [vmem:[%s28238_s5 + $0x1390] ss:$28 sps:$4 sm:$0xff]  }
 0x6ab   : > { %8862 = vmatpush1.bf16.msra.mxu1 %v22131_v13  ;;  %v22194_v13 = vld [vmem:[%s28238_s5 + $0xff8] ss:$28 sps:$4 sm:$0xff]  }
 0x6ac   : > { %10537 = vmatpush1.bf16.msra.mxu0 %v22134_v33  ;;  %8863 = vmatprep.subr.bf16.mxu1 %v22139_v55  ;;  %v22198_v33 = vld [vmem:[%s28238_s5 + $0x11d0] ss:$28 sps:$4 sm:$0xff]  }
 0x6ad   : > { %10538 = vmatprep.subr.bf16.mxu0 %v22142_v56  ;;  %v22201_v55 = vld [vmem:[%s28238_s5 + $0x1034] ss:$28 sps:$4 sm:$0xff]   ;;  %v22202_v56 = vld [vmem:[%s28238_s5 + $0x13c8] ss:$28 sps:$4 sm:$0xff]  }
 0x6af   : > { %8864 = vmatpush1.bf16.msra.mxu1 %v22137_v9  ;;  %v22199_v9 = vld [vmem:[%s28238_s5 + $0x1030] ss:$28 sps:$4 sm:$0xff]  }
 0x6b0   : > { %10539 = vmatpush1.bf16.msra.mxu0 %v22140_v57  ;;  %8865 = vmatprep.subr.bf16.mxu1 %v22145_v58  ;;  %v22203_v57 = vld [vmem:[%s28238_s5 + $0x1208] ss:$28 sps:$4 sm:$0xff]  }
 0x6b1   : > { %10540 = vmatprep.subr.bf16.mxu0 %v22148_v60  ;;  %v22206_v58 = vld [vmem:[%s28238_s5 + $0x106c] ss:$28 sps:$4 sm:$0xff]   ;;  %v22207_v60 = vld [vmem:[%s28238_s5 + $0x1400] ss:$28 sps:$4 sm:$0xff]  }
 0x6b3   : > { %8866 = vmatpush1.bf16.msra.mxu1 %v22143_v1  ;;  %v22204_v1 = vld [vmem:[%s28238_s5 + $0x1068] ss:$28 sps:$4 sm:$0xff]  }
 0x6b4   : > { %10541 = vmatpush1.bf16.msra.mxu0 %v22146_v2  ;;  %10381 = vmatprep.subr.bf16.mxu1 %v22151_v21  ;;  %v22208_v2 = vld [vmem:[%s28238_s5 + $0x1240] ss:$28 sps:$4 sm:$0xff]  }
 0x6b5   : > { %20096 = vmatprep.subr.bf16.mxu0 %v22152_v6  ;;  %v22211_v21 = vld [vmem:[%s28238_s5 + $0x10a4] ss:$28 sps:$4 sm:$0xff]   ;;  %v22212_v6 = vld [vmem:[%s28238_s5 + $0x1438] ss:$28 sps:$4 sm:$0xff]  }
 0x6b6   : > { %8868 = vmatmul.mubr.bf16.vlgmr.msra.gmra.mrb[48].mxu1 %v23986_v8  ;;  %v22161_v8 = vld [vmem:[%s28238_s5 + $0xe74] ss:$28 sps:$4 sm:$0xff]  }
 0x6b7   : > { %10543 = vmatmul.mubr.bf16.vlgmr.msra.gmra.mrb[36].mxu0 %v25418_v7  ;;  %10382 = vmatpush1.bf16.msra.mxu1 %v22149_v51  ;;  %v22209_v51 = vld [vmem:[%s28238_s5 + $0x10a0] ss:$28 sps:$4 sm:$0xff]  }
 0x6b8   : > { %10413 = vmatprep.mubr.bf16.mxu1 %v25019_v26  ;;  %20097 = vmatpush3.bf16.msra.mxu0 %v22153_v63  ;;  %v22213_v63 = vld [vmem:[%s28238_s5 + $0x1278] ss:$28 sps:$4 sm:$0xff]  }
 0x6b9   : > { %10671 = vmatprep.mubr.bf16.mxu0 %v25019_v26  ;;  %10383 = vmatprep.subr.bf16.mxu1 %v22156_v20  ;;  %v22216_v20 = vld [vmem:[%s28238_s5 + $0x10dc] ss:$28 sps:$4 sm:$0xff]  }
 0x6ba   : > { %20098 = vmatprep.subr.bf16.mxu0 %v22157_v11  ;;  %v22217_v11 = vld [vmem:[%s28238_s5 + $0x1470] ss:$28 sps:$4 sm:$0xff]  }
 0x6bb   : > { %10384 = vmatpush1.bf16.msra.mxu1 %v22154_v16  ;;  %v22214_v16 = vld [vmem:[%s28238_s5 + $0x10d8] ss:$28 sps:$4 sm:$0xff]  }
 0x6bc   : > { %20099 = vmatpush3.bf16.msra.mxu0 %v22158_v17  ;;  %10385 = vmatprep.subr.bf16.mxu1 %v22161_v8  ;;  %v22218_v17 = vld [vmem:[%s28238_s5 + $0x12b0] ss:$28 sps:$4 sm:$0xff]  }
 0x6bd   : > { %20100 = vmatprep.subr.bf16.mxu0 %v22162_v19  ;;  %v22221_v8 = vld [vmem:[%s28238_s5 + $0x1114] ss:$28 sps:$4 sm:$0xff]   ;;  %v22222_v19 = vld [vmem:[%s28238_s5 + $0x14a8] ss:$28 sps:$4 sm:$0xff]  }
 0x6bf   : > { %10386 = vmatpush1.bf16.msra.mxu1 %v22159_v45 }
 0x6c0   : > { %20101 = vmatpush3.bf16.msra.mxu0 %v22163_v23  ;;  %10387 = vmatprep.subr.bf16.mxu1 %v22166_v32  ;;  %v22219_v32 = vld [vmem:[%s28238_s5 + $0x1110] ss:$28 sps:$4 sm:$0xff]  }
 0x6c1   : > { %20102 = vmatprep.subr.bf16.mxu0 %v22167_v61 }
 0x6c3   : > { %10388 = vmatpush1.bf16.msra.mxu1 %v22164_v38 }
 0x6c4   : > { %20103 = vmatpush3.bf16.msra.mxu0 %v22168_v44  ;;  %10389 = vmatprep.subr.bf16.mxu1 %v22171_v3  ;;  %v22223_v44 = vld [vmem:[%s28238_s5 + $0x12e8] ss:$28 sps:$4 sm:$0xff]  }
 0x6c5   : > { %20104 = vmatprep.subr.bf16.mxu0 %v22172_v27  ;;  %v22226_v3 = vld [vmem:[%s28238_s5 + $0x114c] ss:$28 sps:$4 sm:$0xff]  }
 0x6c7   : > { %10390 = vmatpush1.bf16.msra.mxu1 %v22169_v18  ;;  %v22227_v18 = vld [vmem:[%s28238_s5 + $0x14e0] ss:$28 sps:$4 sm:$0xff]  }
 0x6c8   : > { %20105 = vmatpush3.bf16.msra.mxu0 %v22173_v4  ;;  %10391 = vmatprep.subr.bf16.mxu1 %v22176_v24 }
 0x6c9   : > { %20106 = vmatprep.subr.bf16.mxu0 %v22177_v41  ;;  %v22224_v41 = vld [vmem:[%s28238_s5 + $0x1148] ss:$28 sps:$4 sm:$0xff]  }
 0x6cb   : > { %10392 = vmatpush1.bf16.msra.mxu1 %v22174_v29 }
 0x6cc   : > { %20107 = vmatpush3.bf16.msra.mxu0 %v22178_v30  ;;  %10393 = vmatprep.subr.bf16.mxu1 %v22181_v5  ;;  %v22228_v30 = vld [vmem:[%s28238_s5 + $0x1320] ss:$28 sps:$4 sm:$0xff]  }
 0x6cd   : > { %20108 = vmatprep.subr.bf16.mxu0 %v22182_v34  ;;  %v22231_v5 = vld [vmem:[%s28238_s5 + $0x1184] ss:$28 sps:$4 sm:$0xff]   ;;  %v22232_v34 = vld [vmem:[%s28238_s5 + $0x11b8] ss:$28 sps:$4 sm:$0xff]  }
 0x6cf   : > { %10394 = vmatpush1.bf16.msra.mxu1 %v22179_v37  ;;  %v22237_v37 = vld [vmem:[%s28238_s5 + $0x11f4] ss:$28 sps:$4 sm:$0xff]  }
 0x6d0   : > { %20109 = vmatpush3.bf16.msra.mxu0 %v22183_v42  ;;  %10395 = vmatprep.subr.bf16.mxu1 %v22186_v40  ;;  %v22235_v42 = vld [vmem:[%s28238_s5 + $0x11f0] ss:$28 sps:$4 sm:$0xff]  }
 0x6d1   : > { %20110 = vmatprep.subr.bf16.mxu0 %v22187_v43  ;;  %v22240_v40 = vld [vmem:[%s28238_s5 + $0x122c] ss:$28 sps:$4 sm:$0xff]  }
 0x6d2   : > { %v22238_v43 = vld [vmem:[%s28238_s5 + $0x1228] ss:$28 sps:$4 sm:$0xff]  }
 0x6d3   : > { %10396 = vmatpush1.bf16.msra.mxu1 %v22184_v46  ;;  %v22243_v46 = vld [vmem:[%s28238_s5 + $0x1264] ss:$28 sps:$4 sm:$0xff]  }
 0x6d4   : > { %20111 = vmatpush3.bf16.msra.mxu0 %v22188_v50  ;;  %10397 = vmatprep.subr.bf16.mxu1 %v22191_v47  ;;  %v22241_v50 = vld [vmem:[%s28238_s5 + $0x1260] ss:$28 sps:$4 sm:$0xff]  }
 0x6d5   : > { %20118 = vmatprep.subr.bf16.mxu0 %v22192_v48  ;;  %v22246_v47 = vld [vmem:[%s28238_s5 + $0x129c] ss:$28 sps:$4 sm:$0xff]  }
 0x6d6   : > { %v22244_v48 = vld [vmem:[%s28238_s5 + $0x1298] ss:$28 sps:$4 sm:$0xff]  }
 0x6d7   : > { %10672 = vmatmul.mubr.bf16.vlgmr.msra.gmra.mrb[56].mxu0 %v25216_v52  ;;  %10398 = vmatpush1.bf16.msra.mxu1 %v22189_v62  ;;  %v22249_v62 = vld [vmem:[%s28238_s5 + $0x12d4] ss:$28 sps:$4 sm:$0xff]  }
 0x6d8   : > { %20119 = vmatpush3.bf16.msra.mxu0 %v22193_v49  ;;  %10712 = vmatprep.mubr.bf16.mxu0 %v25227_v22 }
 0x6d9   : > { %10399 = vmatprep.subr.bf16.mxu1 %v22196_v53  ;;  %20120 = vmatprep.subr.bf16.mxu0 %v22197_v54  ;;  %v22247_v54 = vld [vmem:[%s28238_s5 + $0x12d0] ss:$28 sps:$4 sm:$0xff]  }
 0x6db   : > { %10400 = vmatpush1.bf16.msra.mxu1 %v22194_v13 }
 0x6dc   : > { %20121 = vmatpush3.bf16.msra.mxu0 %v22198_v33  ;;  %10401 = vmatprep.subr.bf16.mxu1 %v22201_v55  ;;  %v22252_v55 = vld [vmem:[%s28238_s5 + $0x130c] ss:$28 sps:$4 sm:$0xff]  }
 0x6dd   : > { %20122 = vmatprep.subr.bf16.mxu0 %v22202_v56 }
 0x6df   : > { %10402 = vmatpush1.bf16.msra.mxu1 %v22199_v9 }
 0x6e0   : > { %20123 = vmatpush3.bf16.msra.mxu0 %v22203_v57  ;;  %10403 = vmatprep.subr.bf16.mxu1 %v22206_v58  ;;  %v22250_v58 = vld [vmem:[%s28238_s5 + $0x1308] ss:$28 sps:$4 sm:$0xff]  }
 0x6e1   : > { %20124 = vmatprep.subr.bf16.mxu0 %v22207_v60 }
 0x6e3   : > { %10404 = vmatpush1.bf16.msra.mxu1 %v22204_v1  ;;  %v22255_v1 = vld [vmem:[%s28238_s5 + $0x1344] ss:$28 sps:$4 sm:$0xff]  }
 0x6e4   : > { %20125 = vmatpush3.bf16.msra.mxu0 %v22208_v2  ;;  %10405 = vmatprep.subr.bf16.mxu1 %v22211_v21  ;;  %v22253_v2 = vld [vmem:[%s28238_s5 + $0x1340] ss:$28 sps:$4 sm:$0xff]  }
 0x6e5   : > { %20126 = vmatprep.subr.bf16.mxu0 %v22212_v6  ;;  %v22258_v21 = vld [vmem:[%s28238_s5 + $0x137c] ss:$28 sps:$4 sm:$0xff]  }
 0x6e6   : > { %v22256_v6 = vld [vmem:[%s28238_s5 + $0x1378] ss:$28 sps:$4 sm:$0xff]  }
 0x6e7   : > { %10406 = vmatpush1.bf16.msra.mxu1 %v22209_v51  ;;  %v22261_v51 = vld [vmem:[%s28238_s5 + $0x13b4] ss:$28 sps:$4 sm:$0xff]  }
 0x6e8   : > { %20127 = vmatpush3.bf16.msra.mxu0 %v22213_v63  ;;  %10407 = vmatprep.subr.bf16.mxu1 %v22216_v20  ;;  %v22259_v63 = vld [vmem:[%s28238_s5 + $0x13b0] ss:$28 sps:$4 sm:$0xff]  }
 0x6e9   : > { %20128 = vmatprep.subr.bf16.mxu0 %v22217_v11  ;;  %v22264_v20 = vld [vmem:[%s28238_s5 + $0x13ec] ss:$28 sps:$4 sm:$0xff]  }
 0x6ea   : > { %v20068_v45 = vpop.f32.mrb[48].mxu0  ;;  %v22262_v11 = vld [vmem:[%s28238_s5 + $0x13e8] ss:$28 sps:$4 sm:$0xff]  }
 0x6eb   : > { %v20069_v23 = vpop.f32.mrb[49].mxu0  ;;  %10408 = vmatpush1.bf16.msra.mxu1 %v22214_v16  ;;  %v22267_v16 = vld [vmem:[%s28238_s5 + $0x1424] ss:$28 sps:$4 sm:$0xff]  }
 0x6ec   : > { %v20070_v61 = vadd.f32 %v20069_v23, %v20068_v45  ;;  %v20071_v38 = vpop.f32.mrb[50].mxu0  ;;  %20129 = vmatpush3.bf16.msra.mxu0 %v22218_v17  ;;  %10409 = vmatprep.subr.bf16.mxu1 %v22221_v8  ;;  %v22265_v17 = vld [vmem:[%s28238_s5 + $0x1420] ss:$28 sps:$4 sm:$0xff]   ;;  %v22273_v45 = vld [vmem:[%s28238_s5 + $0x1494] ss:$28 sps:$4 sm:$0xff]  }
 0x6ed   : > { %v20072_v27 = vpop.f32.mrb[51].mxu0  ;;  %20130 = vmatprep.subr.bf16.mxu0 %v22222_v19  ;;  %v22270_v8 = vld [vmem:[%s28238_s5 + $0x145c] ss:$28 sps:$4 sm:$0xff]   ;;  %v22271_v23 = vld [vmem:[%s28238_s5 + $0x1490] ss:$28 sps:$4 sm:$0xff]  }
 0x6ee   : > { %v8913_v4 = vadd.f32 %v20070_v61, %v25096_v59  ;;  %v20073_v24 = vadd.f32 %v20072_v27, %v20071_v38  ;;  %v22229_v59 = vld [vmem:[%s28238_s5 + $0x1180] ss:$28 sps:$4 sm:$0xff]   ;;  %v22268_v19 = vld [vmem:[%s28238_s5 + $0x1458] ss:$28 sps:$4 sm:$0xff]   ;;  %v22274_v61 = vld [vmem:[%s28238_s5 + $0x14c8] ss:$28 sps:$4 sm:$0xff]  }
 0x6ef   : > { %10410 = vmatpush1.bf16.msra.mxu1 %v22219_v32  ;;  %v22276_v32 = vld [vmem:[%s28238_s5 + $0x14cc] ss:$28 sps:$4 sm:$0xff]   ;;  %v22279_v38 = vld [vmem:[%s28238_s5 + $0xe14] ss:$28 sps:$4 sm:$0xff]  }
 0x6f0   : > { %v8916_v29 = vadd.f32 %v20073_v24, %v25102_v31  ;;  %20131 = vmatpush3.bf16.msra.mxu0 %v22223_v44  ;;  %10411 = vmatprep.subr.bf16.mxu1 %v22226_v3  ;;  %v22234_v31 = vld [vmem:[%s28238_s5 + $0x11bc] ss:$28 sps:$4 sm:$0xff]   ;;  %v22277_v44 = vld [vmem:[%s28238_s5 + $0xe10] ss:$28 sps:$4 sm:$0xff]   ;;  %v22280_v27 = vld [vmem:[%s28238_s5 + $0xe48] ss:$28 sps:$4 sm:$0xff]  }
 0x6f1   : > { %20132 = vmatprep.subr.bf16.mxu0 %v22227_v18  ;;  %v22282_v3 = vld [vmem:[%s28238_s5 + $0xe4c] ss:$28 sps:$4 sm:$0xff]   ;;  %v22285_v18 = vld [vmem:[%s28238_s5 + $0xe84] ss:$28 sps:$4 sm:$0xff]   ;;  %v22288_v24 = vld [vmem:[%s28238_s5 + $0xebc] ss:$28 sps:$4 sm:$0xff]  }
 0x6f3   : > { %10412 = vmatpush1.bf16.msra.mxu1 %v22224_v41  ;;  %v22291_v41 = vld [vmem:[%s28238_s5 + $0xef4] ss:$28 sps:$4 sm:$0xff]  }
 0x6f4   : > { %20133 = vmatpush3.bf16.msra.mxu0 %v22228_v30  ;;  %10424 = vmatprep.subr.bf16.mxu1 %v22231_v5  ;;  %v22294_v30 = vld [vmem:[%s28238_s5 + $0xf2c] ss:$28 sps:$4 sm:$0xff]  }
 0x6f5   : > { %v22292_v5 = vld [vmem:[%s28238_s5 + $0xf28] ss:$28 sps:$4 sm:$0xff]  }
 0x6f6   : > { %10414 = vmatmul.mubr.bf16.vlgmr.msra.gmra.mrb[44].mxu1 %v25216_v52 }
 0x6f7   : > { %10713 = vmatmul.mubr.bf16.vlgmr.msra.gmra.mrb[60].mxu0 %v25418_v7  ;;  %10425 = vmatpush1.bf16.msra.mxu1 %v22229_v59  ;;  %v22297_v59 = vld [vmem:[%s28238_s5 + $0xf64] ss:$28 sps:$4 sm:$0xff]  }
 0x6f8   : > { %10456 = vmatprep.mubr.bf16.mxu1 %v25227_v22  ;;  %10426 = vmatprep.subr.bf16.mxu1 %v22234_v31  ;;  %v22295_v31 = vld [vmem:[%s28238_s5 + $0xf60] ss:$28 sps:$4 sm:$0xff]  }
 0x6f9   : > { %10865 = vmatprep.mubr.bf16.mxu0 %v23331_v0 }
 0x6fb   : > { %10427 = vmatpush1.bf16.msra.mxu1 %v22232_v34  ;;  %v22300_v34 = vld [vmem:[%s28238_s5 + $0xf9c] ss:$28 sps:$4 sm:$0xff]  }
 0x6fc   : > { %10428 = vmatprep.subr.bf16.mxu1 %v22237_v37  ;;  %v22298_v37 = vld [vmem:[%s28238_s5 + $0xf98] ss:$28 sps:$4 sm:$0xff]  }
 0x6ff   : > { %10429 = vmatpush1.bf16.msra.mxu1 %v22235_v42  ;;  %v22303_v42 = vld [vmem:[%s28238_s5 + $0xfd4] ss:$28 sps:$4 sm:$0xff]  }
 0x700   : > { %10430 = vmatprep.subr.bf16.mxu1 %v22240_v40  ;;  %v22301_v40 = vld [vmem:[%s28238_s5 + $0xfd0] ss:$28 sps:$4 sm:$0xff]  }
 0x703   : > { %10431 = vmatpush1.bf16.msra.mxu1 %v22238_v43  ;;  %v22306_v43 = vld [vmem:[%s28238_s5 + $0x100c] ss:$28 sps:$4 sm:$0xff]  }
 0x704   : > { %10432 = vmatprep.subr.bf16.mxu1 %v22243_v46  ;;  %v22304_v46 = vld [vmem:[%s28238_s5 + $0x1008] ss:$28 sps:$4 sm:$0xff]  }
 0x707   : > { %10433 = vmatpush1.bf16.msra.mxu1 %v22241_v50  ;;  %v22309_v50 = vld [vmem:[%s28238_s5 + $0x1044] ss:$28 sps:$4 sm:$0xff]  }
 0x708   : > { %10434 = vmatprep.subr.bf16.mxu1 %v22246_v47  ;;  %v22307_v47 = vld [vmem:[%s28238_s5 + $0x1040] ss:$28 sps:$4 sm:$0xff]  }
 0x70a   : > { %v20090_v49 = vpop.f32.mrb[52].mxu0 }
 0x70b   : > { %v20091_v53 = vpop.f32.mrb[53].mxu0  ;;  %10435 = vmatpush1.bf16.msra.mxu1 %v22244_v48  ;;  %v22312_v48 = vld [vmem:[%s28238_s5 + $0x107c] ss:$28 sps:$4 sm:$0xff]  }
 0x70c   : > { %v20092_v13 = vadd.f32 %v20091_v53, %v20090_v49  ;;  %v20093_v33 = vpop.f32.mrb[54].mxu0  ;;  %10436 = vmatprep.subr.bf16.mxu1 %v22249_v62  ;;  %v22310_v62 = vld [vmem:[%s28238_s5 + $0x1078] ss:$28 sps:$4 sm:$0xff]   ;;  %v22313_v53 = vld [vmem:[%s28238_s5 + $0x10b0] ss:$28 sps:$4 sm:$0xff]  }
 0x70d   : > { %v20094_v56 = vpop.f32.mrb[55].mxu0  ;;  %v22315_v49 = vld [vmem:[%s28238_s5 + $0x10b4] ss:$28 sps:$4 sm:$0xff]  }
 0x70e   : > { %v25657_v9 = vadd.f32 %v20092_v13, %v8913_v4  ;;  %v20095_v57 = vadd.f32 %v20094_v56, %v20093_v33  ;;  %v22283_v4 = vld [vmem:[%s28238_s5 + $0xe80] ss:$28 sps:$4 sm:$0xff]   ;;  %v22316_v13 = vld [vmem:[%s28238_s5 + $0x10e8] ss:$28 sps:$4 sm:$0xff]  }
 0x70f   : > { %10437 = vmatpush1.bf16.msra.mxu1 %v22247_v54  ;;  %v22318_v54 = vld [vmem:[%s28238_s5 + $0x10ec] ss:$28 sps:$4 sm:$0xff]   ;;  %v22321_v33 = vld [vmem:[%s28238_s5 + $0x1124] ss:$28 sps:$4 sm:$0xff]   ;;  %v22324_v56 = vld [vmem:[%s28238_s5 + $0x115c] ss:$28 sps:$4 sm:$0xff]  }
 0x710   : > { %v25662_v60 = vadd.f32 %v20095_v57, %v8916_v29  ;;  %10438 = vmatprep.subr.bf16.mxu1 %v22252_v55  ;;  %v22289_v29 = vld [vmem:[%s28238_s5 + $0xef0] ss:$28 sps:$4 sm:$0xff]   ;;  %v22319_v55 = vld [vmem:[%s28238_s5 + $0x1120] ss:$28 sps:$4 sm:$0xff]   ;;  %v22322_v57 = vld [vmem:[%s28238_s5 + $0x1158] ss:$28 sps:$4 sm:$0xff]  }
 0x713   : > { %10439 = vmatpush1.bf16.msra.mxu1 %v22250_v58  ;;  %v22327_v58 = vld [vmem:[%s28238_s5 + $0x1194] ss:$28 sps:$4 sm:$0xff]  }
 0x714   : > { %10440 = vmatprep.subr.bf16.mxu1 %v22255_v1  ;;  %v22325_v1 = vld [vmem:[%s28238_s5 + $0x1190] ss:$28 sps:$4 sm:$0xff]  }
 0x717   : > { %10441 = vmatpush1.bf16.msra.mxu1 %v22253_v2  ;;  %v22330_v2 = vld [vmem:[%s28238_s5 + $0x11cc] ss:$28 sps:$4 sm:$0xff]  }
 0x718   : > { %10442 = vmatprep.subr.bf16.mxu1 %v22258_v21  ;;  %v22328_v21 = vld [vmem:[%s28238_s5 + $0x11c8] ss:$28 sps:$4 sm:$0xff]  }
 0x71b   : > { %10443 = vmatpush1.bf16.msra.mxu1 %v22256_v6  ;;  %v22333_v6 = vld [vmem:[%s28238_s5 + $0x1204] ss:$28 sps:$4 sm:$0xff]  }
 0x71c   : > { %10444 = vmatprep.subr.bf16.mxu1 %v22261_v51  ;;  %v22331_v51 = vld [vmem:[%s28238_s5 + $0x1200] ss:$28 sps:$4 sm:$0xff]  }
 0x71f   : > { %10445 = vmatpush1.bf16.msra.mxu1 %v22259_v63  ;;  %v22339_v63 = vld [vmem:[%s28238_s5 + $0x1274] ss:$28 sps:$4 sm:$0xff]  }
 0x720   : > { %10446 = vmatprep.subr.bf16.mxu1 %v22264_v20  ;;  %v22337_v20 = vld [vmem:[%s28238_s5 + $0x1270] ss:$28 sps:$4 sm:$0xff]  }
 0x723   : > { %10447 = vmatpush1.bf16.msra.mxu1 %v22262_v11  ;;  %v25845_v11 = vld [vmem:[%s28239_s6] sm:$0xff] }
 0x724   : > { %10448 = vmatprep.subr.bf16.mxu1 %v22267_v16  ;;  %v22342_v16 = vld [vmem:[%s28238_s5 + $0x12ac] ss:$28 sps:$4 sm:$0xff]  }
 0x727   : > { %10449 = vmatpush1.bf16.msra.mxu1 %v22265_v17  ;;  %v10748_v17 = vrot.slane %v25845_v11, %v1542_v14  ;;  %v22343_v14 = vld [vmem:[%s28238_s5 + $0x12e0] ss:$28 sps:$4 sm:$0xff]  }
 0x728   : > { %10450 = vmatprep.subr.bf16.mxu1 %v22270_v8  ;;  %v22340_v8 = vld [vmem:[%s28238_s5 + $0x12a8] ss:$28 sps:$4 sm:$0xff]  }
 0x72b   : > { %10451 = vmatpush1.bf16.msra.mxu1 %v22268_v19  ;;  %v10752_v19 = vrot.slane %v25845_v11, %v1546_v15  ;;  %v22348_v15 = vld [vmem:[%s28238_s5 + $0x131c] ss:$28 sps:$4 sm:$0xff]  }
 0x72c   : > { %10452 = vmatprep.subr.bf16.mxu1 %v22273_v45  ;;  %v22345_v45 = vld [vmem:[%s28238_s5 + $0x12e4] ss:$28 sps:$4 sm:$0xff]  }
 0x72f   : > { %10453 = vmatpush1.bf16.msra.mxu1 %v22271_v23 }
 0x730   : > { %10454 = vmatprep.subr.bf16.mxu1 %v22276_v32 }
 0x733   : > { %10455 = vmatpush1.bf16.msra.mxu1 %v22274_v61 }
 0x734   : > { %10553 = vmatprep.subr.bf16.mxu1 %v22279_v38 }
 0x736   : > { %10457 = vmatmul.mubr.bf16.vlgmr.msra.gmra.mrb[44].mxu1 %v25418_v7 }
 0x737   : > { %10554 = vmatpush1.bf16.msra.mxu1 %v22277_v44  ;;  %10585 = vmatprep.mubr.bf16.mxu1 %v25019_v26  ;;  %v22286_v26 = vld [vmem:[%s28238_s5 + $0xeb8] ss:$28 sps:$4 sm:$0xff]  }
 0x738   : > { %10555 = vmatprep.subr.bf16.mxu1 %v22282_v3 }
 0x73b   : > { %10556 = vmatpush1.bf16.msra.mxu1 %v22280_v27 }
 0x73c   : > { %10557 = vmatprep.subr.bf16.mxu1 %v22285_v18 }
 0x73f   : > { %10558 = vmatpush1.bf16.msra.mxu1 %v22283_v4 }
 0x740   : > { %10559 = vmatprep.subr.bf16.mxu1 %v22288_v24 }
 0x743   : > { %10560 = vmatpush1.bf16.msra.mxu1 %v22286_v26  ;;  %v22346_v26 = vld [vmem:[%s28238_s5 + $0x1318] ss:$28 sps:$4 sm:$0xff]  }
 0x744   : > { %10561 = vmatprep.subr.bf16.mxu1 %v22291_v41 }
 0x747   : > { %10562 = vmatpush1.bf16.msra.mxu1 %v22289_v29 }
 0x748   : > { %10563 = vmatprep.subr.bf16.mxu1 %v22294_v30  ;;  %v22351_v30 = vld [vmem:[%s28238_s5 + $0x1354] ss:$28 sps:$4 sm:$0xff]  }
 0x74b   : > { %10564 = vmatpush1.bf16.msra.mxu1 %v22292_v5 }
 0x74c   : > { %10565 = vmatprep.subr.bf16.mxu1 %v22297_v59 }
 0x74f   : > { %10566 = vmatpush1.bf16.msra.mxu1 %v22295_v31  ;;  %v22349_v31 = vld [vmem:[%s28238_s5 + $0x1350] ss:$28 sps:$4 sm:$0xff]  }
 0x750   : > { %10567 = vmatprep.subr.bf16.mxu1 %v22300_v34  ;;  %v22354_v34 = vld [vmem:[%s28238_s5 + $0x138c] ss:$28 sps:$4 sm:$0xff]  }
 0x753   : > { %10568 = vmatpush1.bf16.msra.mxu1 %v22298_v37  ;;  %v22352_v37 = vld [vmem:[%s28238_s5 + $0x1388] ss:$28 sps:$4 sm:$0xff]  }
 0x754   : > { %10569 = vmatprep.subr.bf16.mxu1 %v22303_v42  ;;  %v22357_v42 = vld [vmem:[%s28238_s5 + $0x13c4] ss:$28 sps:$4 sm:$0xff]  }
 0x757   : > { %10570 = vmatpush1.bf16.msra.mxu1 %v22301_v40  ;;  %v22355_v40 = vld [vmem:[%s28238_s5 + $0x13c0] ss:$28 sps:$4 sm:$0xff]  }
 0x758   : > { %10571 = vmatprep.subr.bf16.mxu1 %v22306_v43  ;;  %v22360_v43 = vld [vmem:[%s28238_s5 + $0x13fc] ss:$28 sps:$4 sm:$0xff]  }
 0x75b   : > { %10572 = vmatpush1.bf16.msra.mxu1 %v22304_v46  ;;  %v22358_v46 = vld [vmem:[%s28238_s5 + $0x13f8] ss:$28 sps:$4 sm:$0xff]  }
 0x75c   : > { %10573 = vmatprep.subr.bf16.mxu1 %v22309_v50  ;;  %v22363_v50 = vld [vmem:[%s28238_s5 + $0x1434] ss:$28 sps:$4 sm:$0xff]  }
 0x75f   : > { %10574 = vmatpush1.bf16.msra.mxu1 %v22307_v47  ;;  %v22361_v47 = vld [vmem:[%s28238_s5 + $0x1430] ss:$28 sps:$4 sm:$0xff]  }
 0x760   : > { %10575 = vmatprep.subr.bf16.mxu1 %v22312_v48  ;;  %v22366_v48 = vld [vmem:[%s28238_s5 + $0x146c] ss:$28 sps:$4 sm:$0xff]  }
 0x763   : > { %10576 = vmatpush1.bf16.msra.mxu1 %v22310_v62  ;;  %v22364_v62 = vld [vmem:[%s28238_s5 + $0x1468] ss:$28 sps:$4 sm:$0xff]  }
 0x764   : > { %10577 = vmatprep.subr.bf16.mxu1 %v22315_v49  ;;  %v22369_v49 = vld [vmem:[%s28238_s5 + $0x14a4] ss:$28 sps:$4 sm:$0xff]  }
 0x767   : > { %10578 = vmatpush1.bf16.msra.mxu1 %v22313_v53 }
 0x768   : > { %10579 = vmatprep.subr.bf16.mxu1 %v22318_v54 }
 0x76b   : > { %10580 = vmatpush1.bf16.msra.mxu1 %v22316_v13  ;;  %v22367_v13 = vld [vmem:[%s28238_s5 + $0x14a0] ss:$28 sps:$4 sm:$0xff]  }
 0x76c   : > { %10581 = vmatprep.subr.bf16.mxu1 %v22321_v33 }
 0x76f   : > { %10582 = vmatpush1.bf16.msra.mxu1 %v22319_v55 }
 0x770   : > { %10583 = vmatprep.subr.bf16.mxu1 %v22324_v56  ;;  %v22372_v56 = vld [vmem:[%s28238_s5 + $0x14dc] ss:$28 sps:$4 sm:$0xff]  }
 0x773   : > { %10584 = vmatpush1.bf16.msra.mxu1 %v22322_v57 }
 0x774   : > { %10596 = vmatprep.subr.bf16.mxu1 %v22327_v58 }
 0x776   : > { %10586 = vmatmul.mubr.bf16.vlgmr.msra.gmra.mrb[48].mxu1 %v25216_v52  ;;  %v22336_v52 = vld [vmem:[%s28238_s5 + $0x123c] ss:$28 sps:$4 sm:$0xff]  }
 0x777   : > { %10597 = vmatpush1.bf16.msra.mxu1 %v22325_v1  ;;  %10628 = vmatprep.mubr.bf16.mxu1 %v25227_v22  ;;  %v22334_v22 = vld [vmem:[%s28238_s5 + $0x1238] ss:$28 sps:$4 sm:$0xff]  }
 0x778   : > { %10598 = vmatprep.subr.bf16.mxu1 %v22330_v2  ;;  %v22370_v1 = vld [vmem:[%s28238_s5 + $0x14d8] ss:$28 sps:$4 sm:$0xff]  }
 0x77b   : > { %10599 = vmatpush1.bf16.msra.mxu1 %v22328_v21 }
 0x77c   : > { %10600 = vmatprep.subr.bf16.mxu1 %v22333_v6 }
 0x77f   : > { %10601 = vmatpush1.bf16.msra.mxu1 %v22331_v51 }
 0x780   : > { %10602 = vmatprep.subr.bf16.mxu1 %v22336_v52 }
 0x783   : > { %10603 = vmatpush1.bf16.msra.mxu1 %v22334_v22 }
 0x784   : > { %10604 = vmatprep.subr.bf16.mxu1 %v22339_v63  ;;  %v10764_v63 = vrot.slane %v25845_v11, %v1558_v36 }
 0x787   : > { %10605 = vmatpush1.bf16.msra.mxu1 %v22337_v20 }
 0x788   : > { %10606 = vmatprep.subr.bf16.mxu1 %v22342_v16 }
 0x78a   : > { %v10544_v23 = vpop.f32.mrb[36].mxu0 }
 0x78b   : > { %v10774_v32 = vadd.f32 %v10748_v17, %v10544_v23  ;;  %v10546_v61 = vpop.f32.mrb[37].mxu0  ;;  %10607 = vmatpush1.bf16.msra.mxu1 %v22340_v8 }
 0x78c   : > { %v10775_v38 = vadd.f32 %v10752_v19, %v10546_v61  ;;  %v10548_v44 = vpop.f32.mrb[38].mxu0  ;;  %10608 = vmatprep.subr.bf16.mxu1 %v22345_v45  ;;  %v10740_v61 = vrot.slane %v25845_v11, %v23613_v35 }
 0x78d   : > { %v10781_v3 = vadd.f32 %v10748_v17, %v10548_v44  ;;  %v10550_v27 = vpop.f32.mrb[39].mxu0  ;;  %v10788_v4 = vmax.f32 %v10774_v32, 0.0 }
 0x78e   : > { %v10782_v18 = vadd.f32 %v10752_v19, %v10550_v27  ;;  %v10789_v41 = vmax.f32 %v10775_v38, 0.0 }
 0x78f   : > { %v10795_v24 = vmax.f32 %v10781_v3, 0.0  ;;  %10609 = vmatpush1.bf16.msra.mxu1 %v22343_v14  ;;  %v10744_v14 = vrot.slane %v25845_v11, %v1538_v39  ;;  %v25947_v39 = vld [vmem:[%s28240_s7] sm:$0xf] }
 0x790   : > { %v10796_v29 = vmax.f32 %v10782_v18, 0.0  ;;  %10610 = vmatprep.subr.bf16.mxu1 %v22348_v15 }
 0x791   : > { %v25874_v5 = vpack.c.bf16 %v10795_v24, %v10788_v4 }
 0x792   : > { %v25876_v59 = vpack.c.bf16 %v10796_v29, %v10789_v41 }
 0x793   : > { %10611 = vmatpush1.bf16.msra.mxu1 %v22346_v26 }
 0x794   : > { %10612 = vmatprep.subr.bf16.mxu1 %v22351_v30 }
 0x797   : > { %10613 = vmatpush1.bf16.msra.mxu1 %v22349_v31  ;;  %v25955_v31 = vsel %vm651_vm0, %v25874_v5, 0  ;;  %v22384_v5 = vld [vmem:[%s28241_s8 + $0x2c] ss:$16 sps:$4 sm:$0xff]  }
 0x798   : > { %10614 = vmatprep.subr.bf16.mxu1 %v22354_v34  ;;  %v22376_v34 = vld [vmem:[%s28241_s8 + $0x8] ss:$16 sps:$4 sm:$0xff]  }
 0x79b   : > { %10615 = vmatpush1.bf16.msra.mxu1 %v22352_v37  ;;  %v22378_v37 = vld [vmem:[%s28241_s8 + $0xc] ss:$16 sps:$4 sm:$0xff]  }
 0x79c   : > { %10616 = vmatprep.subr.bf16.mxu1 %v22357_v42  ;;  %v22382_v42 = vld [vmem:[%s28241_s8 + $0x28] ss:$16 sps:$4 sm:$0xff]  }
 0x79f   : > { %10617 = vmatpush1.bf16.msra.mxu1 %v22355_v40  ;;  %v22390_v40 = vld [vmem:[%s28241_s8 + $0x4c] ss:$16 sps:$4 sm:$0xff]  }
 0x7a0   : > { %10618 = vmatprep.subr.bf16.mxu1 %v22360_v43  ;;  %v22388_v43 = vld [vmem:[%s28241_s8 + $0x48] ss:$16 sps:$4 sm:$0xff]  }
 0x7a3   : > { %10619 = vmatpush1.bf16.msra.mxu1 %v22358_v46  ;;  %v22396_v46 = vld [vmem:[%s28241_s8 + $0x6c] ss:$16 sps:$4 sm:$0xff]  }
 0x7a4   : > { %10620 = vmatprep.subr.bf16.mxu1 %v22363_v50  ;;  %v22394_v50 = vld [vmem:[%s28241_s8 + $0x68] ss:$16 sps:$4 sm:$0xff]  }
 0x7a7   : > { %10621 = vmatpush1.bf16.msra.mxu1 %v22361_v47  ;;  %v22402_v47 = vld [vmem:[%s28241_s8 + $0x8c] ss:$16 sps:$4 sm:$0xff]  }
 0x7a8   : > { %10622 = vmatprep.subr.bf16.mxu1 %v22366_v48  ;;  %v22400_v48 = vld [vmem:[%s28241_s8 + $0x88] ss:$16 sps:$4 sm:$0xff]  }
 0x7aa   : > { %v20112_v53 = vpop.f32.mrb[56].mxu0 }
 0x7ab   : > { %v20113_v54 = vpop.f32.mrb[57].mxu0  ;;  %10623 = vmatpush1.bf16.msra.mxu1 %v22364_v62  ;;  %v22408_v62 = vld [vmem:[%s28241_s8 + $0xac] ss:$16 sps:$4 sm:$0xff]  }
 0x7ac   : > { %v20114_v33 = vadd.f32 %v20113_v54, %v20112_v53  ;;  %v20115_v55 = vpop.f32.mrb[58].mxu0  ;;  %10624 = vmatprep.subr.bf16.mxu1 %v22369_v49  ;;  %v22406_v49 = vld [vmem:[%s28241_s8 + $0xa8] ss:$16 sps:$4 sm:$0xff]   ;;  %v22414_v53 = vld [vmem:[%s28241_s8 + $0xcc] ss:$16 sps:$4 sm:$0xff]  }
 0x7ad   : > { %v20116_v57 = vpop.f32.mrb[59].mxu0  ;;  %v22412_v54 = vld [vmem:[%s28241_s8 + $0xc8] ss:$16 sps:$4 sm:$0xff]  }
 0x7ae   : > { %v20117_v58 = vadd.f32 %v20116_v57, %v20115_v55  ;;  %v22424_v55 = vld [vmem:[%s28241_s8 + $0x108] ss:$16 sps:$4 sm:$0xff]  }
 0x7af   : > { %10625 = vmatpush1.bf16.msra.mxu1 %v22367_v13  ;;  %v22418_v13 = vld [vmem:[%s28241_s8 + $0xe8] ss:$16 sps:$4 sm:$0xff]  }
 0x7b0   : > { %10626 = vmatprep.subr.bf16.mxu1 %v22372_v56  ;;  %v22426_v56 = vld [vmem:[%s28241_s8 + $0x10c] ss:$16 sps:$4 sm:$0xff]   ;;  %v22430_v57 = vld [vmem:[%s28241_s8 + $0x128] ss:$16 sps:$4 sm:$0xff]  }
 0x7b3   : > { %10627 = vmatpush1.bf16.msra.mxu1 %v22370_v1  ;;  %v22436_v1 = vld [vmem:[%s28241_s8 + $0x148] ss:$16 sps:$4 sm:$0xff]  }
 0x7b4   : > { %12686 = vmatprep.subr.bf16.mxu1 %v22378_v37  ;;  %v22433_v37 = vld [vmem:[%s28241_s8 + $0x140] ss:$16 sps:$4 sm:$0xff]  }
 0x7b6   : > { %10629 = vmatmul.mubr.bf16.vlgmr.msra.gmra.mrb[48].mxu1 %v25418_v7 }
 0x7b7   : > { %12687 = vmatpush1.bf16.msra.mxu1 %v22376_v34  ;;  %v22435_v34 = vld [vmem:[%s28241_s8 + $0x144] ss:$16 sps:$4 sm:$0xff]  }
 0x7b8   : > { %12688 = vmatprep.subr.bf16.mxu1 %v22384_v5 }
 0x7bb   : > { %12689 = vmatpush1.bf16.msra.mxu1 %v22382_v42  ;;  %v22439_v42 = vld [vmem:[%s28241_s8 + $0x160] ss:$16 sps:$4 sm:$0xff]  }
 0x7bc   : > { %12690 = vmatprep.subr.bf16.mxu1 %v22390_v40  ;;  %v22441_v40 = vld [vmem:[%s28241_s8 + $0x164] ss:$16 sps:$4 sm:$0xff]  }
 0x7bf   : > { %12691 = vmatpush1.bf16.msra.mxu1 %v22388_v43 }
 0x7c0   : > { %12692 = vmatprep.subr.bf16.mxu1 %v22396_v46  ;;  %v22442_v46 = vld [vmem:[%s28241_s8 + $0x168] ss:$16 sps:$4 sm:$0xff]  }
 0x7c3   : > { %12693 = vmatpush1.bf16.msra.mxu1 %v22394_v50  ;;  %v22444_v50 = vld [vmem:[%s28241_s8 + $0x16c] ss:$16 sps:$4 sm:$0xff]  }
 0x7c4   : > { %12694 = vmatprep.subr.bf16.mxu1 %v22402_v47 }
 0x7c7   : > { %12695 = vmatpush1.bf16.msra.mxu1 %v22400_v48 }
 0x7c8   : > { %12696 = vmatprep.subr.bf16.mxu1 %v22408_v62  ;;  %v22445_v62 = vld [vmem:[%s28241_s8 + $0x180] ss:$16 sps:$4 sm:$0xff]  }
 0x7ca   : > { %v20134_v2 = vpop.f32.mrb[60].mxu0 }
 0x7cb   : > { %v20135_v21 = vpop.f32.mrb[61].mxu0  ;;  %12697 = vmatpush1.bf16.msra.mxu1 %v22406_v49  ;;  %v22447_v49 = vld [vmem:[%s28241_s8 + $0x184] ss:$16 sps:$4 sm:$0xff]  }
 0x7cc   : > { %v20136_v6 = vadd.f32 %v20135_v21, %v20134_v2  ;;  %v20137_v51 = vpop.f32.mrb[62].mxu0  ;;  %12698 = vmatprep.subr.bf16.mxu1 %v22414_v53  ;;  %v22438_v2 = vld [vmem:[%s28241_s8 + $0x14c] ss:$16 sps:$4 sm:$0xff]   ;;  %v10756_v21 = vrot.slane %v25845_v11, %v1550_v25  ;;  %v22448_v53 = vld [vmem:[%s28241_s8 + $0x188] ss:$16 sps:$4 sm:$0xff]  }
 0x7cd   : > { %v20138_v52 = vpop.f32.mrb[63].mxu0 }
 0x7ce   : > { %v10715_v22 = vadd.f32 %v20136_v6, %v20114_v33  ;;  %v20139_v20 = vadd.f32 %v20138_v52, %v20137_v51  ;;  %v22420_v33 = vld [vmem:[%s28241_s8 + $0xec] ss:$16 sps:$4 sm:$0xff]   ;;  %v10760_v6 = vrot.slane %v25845_v11, %v1554_v28  ;;  %v18755_v28 = vld [vmem:[%s28240_s7 + $0x4] sm:$0xf] }
 0x7cf   : > { %12699 = vmatpush1.bf16.msra.mxu1 %v22412_v54  ;;  %v22375_v11 = vld [vmem:[%s28241_s8 + $0x4] ss:$16 sps:$4 sm:$0xff]   ;;  %v22450_v54 = vld [vmem:[%s28241_s8 + $0x18c] ss:$16 sps:$4 sm:$0xff]  }
 0x7d0   : > { %v10727_v16 = vadd.f32 %v10715_v22, %v25657_v9  ;;  %v10718_v17 = vadd.f32 %v20139_v20, %v20117_v58  ;;  %12700 = vmatprep.subr.bf16.mxu1 %v22420_v33  ;;  %v22432_v58 = vld [vmem:[%s28241_s8 + $0x12c] ss:$16 sps:$4 sm:$0xff]   ;;  %v22451_v33 = vld [vmem:[%s28241_s8 + $0x1a0] ss:$16 sps:$4 sm:$0xff]  }
 0x7d2   : > { %v10778_v8 = vadd.f32 %v10764_v63, %v10727_v16  ;;  %v10734_v19 = vadd.f32 %v10718_v17, %v25662_v60 }
 0x7d3   : > { %12701 = vmatpush1.bf16.msra.mxu1 %v22418_v13 }
 0x7d4   : > { %v10785_v45 = vadd.f32 %v10764_v63, %v10734_v19  ;;  %v10792_v23 = vmax.f32 %v10778_v8, 0.0  ;;  %12702 = vmatprep.subr.bf16.mxu1 %v22426_v56 }
 0x7d6   : > { %v10799_v7 = vmax.f32 %v10785_v45, 0.0 }
 0x7d7   : > { %12703 = vmatpush1.bf16.msra.mxu1 %v22424_v55  ;;  %v22453_v55 = vld [vmem:[%s28241_s8 + $0x1a4] ss:$16 sps:$4 sm:$0xff]  }
 0x7d8   : > { %v25929_v32 = vpack.c.bf16 %v10799_v7, %v10792_v23  ;;  %12704 = vmatprep.subr.bf16.mxu1 %v22432_v58  ;;  %v22456_v58 = vld [vmem:[%s28241_s8 + $0x1ac] ss:$16 sps:$4 sm:$0xff]  }
 0x7da   : > { %v10831_v12 = vsel %vm651_vm0, %v25929_v32, 0  ;;  %v22381_v32 = vld [vmem:[%s28241_s8 + $0x24] ss:$16 sps:$4 sm:$0xff]  }
 0x7db   : > { %12705 = vmatpush1.bf16.msra.mxu1 %v22430_v57  ;;  %v22454_v57 = vld [vmem:[%s28241_s8 + $0x1a8] ss:$16 sps:$4 sm:$0xff]  }
 0x7dc   : > { %12706 = vmatprep.subr.bf16.mxu1 %v22438_v2 }
 0x7df   : > { %12707 = vmatpush1.bf16.msra.mxu1 %v22436_v1 }
 0x7e0   : > { %12708 = vmatprep.subr.bf16.mxu1 %v22444_v50  ;;  %v22487_v50 = vld [vmem:[%s28241_s8 + $0x260] ss:$16 sps:$4 sm:$0xff]  }
 0x7e3   : > { %12709 = vmatpush1.bf16.msra.mxu1 %v22442_v46 }
 0x7e4   : > { %12710 = vmatprep.subr.bf16.mxu1 %v22450_v54 }
 0x7e7   : > { %12711 = vmatpush1.bf16.msra.mxu1 %v22448_v53  ;;  %v22498_v53 = vld [vmem:[%s28241_s8 + $0x28c] ss:$16 sps:$4 sm:$0xff]  }
 0x7e8   : > { %12712 = vmatprep.subr.bf16.mxu1 %v22456_v58  ;;  %v22504_v58 = vld [vmem:[%s28241_s8 + $0x2ac] ss:$16 sps:$4 sm:$0xff]  }
 0x7eb   : > { %12713 = vmatpush1.bf16.msra.mxu1 %v22454_v57  ;;  %v22501_v57 = vld [vmem:[%s28241_s8 + $0x2a4] ss:$16 sps:$4 sm:$0xff]  }
 0x809   : > { %v10458_v36 = vpop.f32.mrb[44].mxu1 }
 0x80a   : > { %v10772_v38 = vadd.f32 %v10740_v61, %v10458_v36  ;;  %v10460_v44 = vpop.f32.mrb[45].mxu1  ;;  %v22379_v36 = vld [vmem:[%s28241_s8 + $0x20] ss:$16 sps:$4 sm:$0xff]  }
 0x80b   : > { %v10773_v9 = vadd.f32 %v10744_v14, %v10460_v44  ;;  %v10462_v15 = vpop.f32.mrb[46].mxu1  ;;  %v22385_v44 = vld [vmem:[%s28241_s8 + $0x40] ss:$16 sps:$4 sm:$0xff]  }
 0x80c   : > { %v10779_v3 = vadd.f32 %v10740_v61, %v10462_v15  ;;  %v10464_v27 = vpop.f32.mrb[47].mxu1  ;;  %v10786_v18 = vmax.f32 %v10772_v38, 0.0  ;;  %v22387_v38 = vld [vmem:[%s28241_s8 + $0x44] ss:$16 sps:$4 sm:$0xff]   ;;  %v22391_v15 = vld [vmem:[%s28241_s8 + $0x60] ss:$16 sps:$4 sm:$0xff]  }
 0x80d   : > { %v10780_v60 = vadd.f32 %v10744_v14, %v10464_v27  ;;  %v10787_v24 = vmax.f32 %v10773_v9, 0.0  ;;  %v22393_v9 = vld [vmem:[%s28241_s8 + $0x64] ss:$16 sps:$4 sm:$0xff]   ;;  %v22397_v27 = vld [vmem:[%s28241_s8 + $0x80] ss:$16 sps:$4 sm:$0xff]  }
 0x80e   : > { %v10793_v4 = vmax.f32 %v10779_v3, 0.0  ;;  %v22399_v3 = vld [vmem:[%s28241_s8 + $0x84] ss:$16 sps:$4 sm:$0xff]  }
 0x80f   : > { %v10794_v26 = vmax.f32 %v10780_v60, 0.0  ;;  %v22405_v60 = vld [vmem:[%s28241_s8 + $0xa4] ss:$16 sps:$4 sm:$0xff]  }
 0x810   : > { %v10800_v41 = vpack.c.bf16 %v10793_v4, %v10786_v18  ;;  %v22403_v18 = vld [vmem:[%s28241_s8 + $0xa0] ss:$16 sps:$4 sm:$0xff]   ;;  %v22411_v4 = vld [vmem:[%s28241_s8 + $0xc4] ss:$16 sps:$4 sm:$0xff]  }
 0x811   : > { %v25936_v29 = vpack.c.bf16 %v10794_v26, %v10787_v24  ;;  %v22409_v24 = vld [vmem:[%s28241_s8 + $0xc0] ss:$16 sps:$4 sm:$0xff]   ;;  %v22417_v26 = vld [vmem:[%s28241_s8 + $0xe4] ss:$16 sps:$4 sm:$0xff]  }
 0x812   : > { %v25939_v30 = vsel %vm651_vm0, %v10800_v41, 0  ;;  %v22415_v41 = vld [vmem:[%s28241_s8 + $0xe0] ss:$16 sps:$4 sm:$0xff]  }
 0x813   : > { %18748 = vmatprep.subr.msk.bf16.mxu0 %vm651_vm0, %v25936_v29 }
 0x814   : > { %10834 = vmatpush1.bf16.msra.mxu0 %v25939_v30 }
 0x815   : > { %18750 = vmatprep.subr.msk.bf16.mxu0 %vm651_vm0, %v25876_v59 }
 0x817   : > { %18749 = vmatmul.mubr.msk.bf16.vlgmr.msra.gmra.mrb[64].mxu0 %vm10808_vm6, %v25947_v39 }
 0x818   : > { %10875 = vmatpush1.bf16.msra.mxu0 %v25955_v31  ;;  %10906 = vmatprep.mubr.bf16.mxu0 %v23331_v0 }
 0x81f   : > { %18751 = vmatmul.mubr.msk.bf16.vlgmr.msra.gmra.mrb[68].mxu0 %vm10808_vm6, %v25947_v39 }
 0x820   : > { %10947 = vmatprep.mubr.bf16.mxu0 %v23331_v0 }
 0x889   : > { %v10630_v51 = vpop.f32.mrb[48].mxu1 }
 0x88a   : > { %v10776_v52 = vadd.f32 %v10756_v21, %v10630_v51  ;;  %v10632_v22 = vpop.f32.mrb[49].mxu1  ;;  %v22460_v51 = vld [vmem:[%s28241_s8 + $0x1c8] ss:$16 sps:$4 sm:$0xff]  }
 0x88b   : > { %v10777_v63 = vadd.f32 %v10760_v6, %v10632_v22  ;;  %v10634_v20 = vpop.f32.mrb[50].mxu1  ;;  %v22465_v22 = vld [vmem:[%s28241_s8 + $0x1e4] ss:$16 sps:$4 sm:$0xff]  }
 0x88c   : > { %v10783_v16 = vadd.f32 %v10756_v21, %v10634_v20  ;;  %v10636_v17 = vpop.f32.mrb[51].mxu1  ;;  %v10790_v19 = vmax.f32 %v10776_v52, 0.0  ;;  %v22457_v21 = vld [vmem:[%s28241_s8 + $0x1c0] ss:$16 sps:$4 sm:$0xff]   ;;  %v22462_v52 = vld [vmem:[%s28241_s8 + $0x1cc] ss:$16 sps:$4 sm:$0xff]  }
 0x88d   : > { %v10784_v8 = vadd.f32 %v10760_v6, %v10636_v17  ;;  %v10791_v23 = vmax.f32 %v10777_v63, 0.0  ;;  %v22459_v6 = vld [vmem:[%s28241_s8 + $0x1c4] ss:$16 sps:$4 sm:$0xff]   ;;  %12714 = vmatprep.subr.bf16.mxu1 %v22462_v52  ;;  %v22468_v63 = vld [vmem:[%s28241_s8 + $0x1ec] ss:$16 sps:$4 sm:$0xff]  }
 0x88e   : > { %v10797_v45 = vmax.f32 %v10783_v16, 0.0  ;;  %12715 = vmatpush1.bf16.msra.mxu1 %v22460_v51  ;;  %v22463_v20 = vld [vmem:[%s28241_s8 + $0x1e0] ss:$16 sps:$4 sm:$0xff]   ;;  %v22466_v16 = vld [vmem:[%s28241_s8 + $0x1e8] ss:$16 sps:$4 sm:$0xff]  }
 0x88f   : > { %v10798_v7 = vmax.f32 %v10784_v8, 0.0  ;;  %12716 = vmatprep.subr.bf16.mxu1 %v22468_v63  ;;  %v22471_v17 = vld [vmem:[%s28241_s8 + $0x204] ss:$16 sps:$4 sm:$0xff]   ;;  %v22474_v8 = vld [vmem:[%s28241_s8 + $0x20c] ss:$16 sps:$4 sm:$0xff]  }
 0x890   : > { %v10804_v61 = vpack.c.bf16 %v10797_v45, %v10790_v19  ;;  %v22507_v51 = vld [vmem:[%s28241_s8 + $0x2c4] ss:$16 sps:$4 sm:$0xff]   ;;  %v22510_v52 = vld [vmem:[%s28241_s8 + $0x2cc] ss:$16 sps:$4 sm:$0xff]  }
 0x891   : > { %v10805_v14 = vpack.c.bf16 %v10798_v7, %v10791_v23 }
 0x892   : > { %v10825_v25 = vsel %vm651_vm0, %v10804_v61, 0  ;;  %12717 = vmatpush1.bf16.msra.mxu1 %v22466_v16  ;;  %v22508_v16 = vld [vmem:[%s28241_s8 + $0x2c8] ss:$16 sps:$4 sm:$0xff]  }
 0x893   : > { %18752 = vmatprep.subr.msk.bf16.mxu0 %vm651_vm0, %v10805_v14  ;;  %12727 = vmatprep.subr.bf16.mxu1 %v22474_v8  ;;  %v22513_v8 = vld [vmem:[%s28241_s8 + $0x2e4] ss:$16 sps:$4 sm:$0xff]  }
 0x894   : > { %10916 = vmatpush1.bf16.msra.mxu0 %v10825_v25 }
 0x895   : > { %20352 = vmatprep.subr.bf16.mxu0 %v23332_v10 }
 0x897   : > { %18753 = vmatmul.mubr.msk.bf16.vlgmr.msra.gmra.mrb[72].mxu0 %vm10808_vm6, %v25947_v39 }
 0x898   : > { %20353 = vmatpush3.bf16.msra.mxu0 %v10831_v12  ;;  %20354 = vmatprep.mubr.msk.bf16.mxu0 %vm23333_vm3, %v23332_v10 }
 0x899   : > { %18756 = vmatprep.subr.msk.bf16.mxu0 %vm651_vm0, %v25936_v29  ;;  %v22423_v29 = vld [vmem:[%s28241_s8 + $0x104] ss:$16 sps:$4 sm:$0xff]  }
 0x89f   : > { %20355 = vmatmul.mubr.msk.bf16.vlgmr.msra.gmra.mrb[76].mxu0 %vm10808_vm6, %v25947_v39  ;;  %v22429_v39 = vld [vmem:[%s28241_s8 + $0x124] ss:$16 sps:$4 sm:$0xff]  }
 0x8a0   : > { %11002 = vmatpush1.bf16.msra.mxu0 %v25939_v30  ;;  %11033 = vmatprep.mubr.bf16.mxu0 %v23331_v0  ;;  %v22421_v30 = vld [vmem:[%s28241_s8 + $0x100] ss:$16 sps:$4 sm:$0xff]  }
 0x8a1   : > { %18758 = vmatprep.subr.msk.bf16.mxu0 %vm651_vm0, %v25876_v59  ;;  %v22373_v59 = vld [vmem:[%s28241_s8] ss:$16 sps:$4 sm:$0xff]  }
 0x8a7   : > { %18757 = vmatmul.mubr.msk.bf16.vlgmr.msra.gmra.mrb[80].mxu0 %vm10808_vm6, %v18755_v28 }
 0x8a8   : > { %11043 = vmatpush1.bf16.msra.mxu0 %v25955_v31  ;;  %11074 = vmatprep.mubr.bf16.mxu0 %v23331_v0  ;;  %v22427_v31 = vld [vmem:[%s28241_s8 + $0x120] ss:$16 sps:$4 sm:$0xff]  }
 0x8a9   : > { %18760 = vmatprep.subr.msk.bf16.mxu0 %vm651_vm0, %v10805_v14 }
 0x8af   : > { %18759 = vmatmul.mubr.msk.bf16.vlgmr.msra.gmra.mrb[84].mxu0 %vm10808_vm6, %v18755_v28 }
 0x8b0   : > { %11084 = vmatpush1.bf16.msra.mxu0 %v10825_v25  ;;  %11115 = vmatprep.mubr.bf16.mxu0 %v23331_v0 }
 0x8b1   : > { %20358 = vmatprep.subr.bf16.mxu0 %v23332_v10 }
 0x8b7   : > { %18761 = vmatmul.mubr.msk.bf16.vlgmr.msra.gmra.mrb[88].mxu0 %vm10808_vm6, %v18755_v28 }
 0x8b8   : > { %20359 = vmatpush3.bf16.msra.mxu0 %v10831_v12  ;;  %20360 = vmatprep.mubr.msk.bf16.mxu0 %vm23333_vm3, %v23332_v10 }
 0x8b9   : > { %12522 = vmatprep.subr.bf16.mxu0 %v22375_v11 }
 0x8bf   : > { %20361 = vmatmul.mubr.msk.bf16.vlgmr.msra.gmra.mrb[92].mxu0 %vm10808_vm6, %v18755_v28 }
 0x8c0   : > { %12523 = vmatpush1.bf16.msra.mxu0 %v22373_v59 }
 0x8c1   : > { %12524 = vmatprep.subr.bf16.mxu0 %v22381_v32 }
 0x8c4   : > { %12525 = vmatpush1.bf16.msra.mxu0 %v22379_v36 }
 0x8c5   : > { %12526 = vmatprep.subr.bf16.mxu0 %v22387_v38 }
 0x8c8   : > { %12527 = vmatpush1.bf16.msra.mxu0 %v22385_v44 }
 0x8c9   : > { %12528 = vmatprep.subr.bf16.mxu0 %v22393_v9  ;;  %v22469_v9 = vld [vmem:[%s28241_s8 + $0x200] ss:$16 sps:$4 sm:$0xff]  }
 0x8cc   : > { %12529 = vmatpush1.bf16.msra.mxu0 %v22391_v15  ;;  %v22472_v15 = vld [vmem:[%s28241_s8 + $0x208] ss:$16 sps:$4 sm:$0xff]  }
 0x8cd   : > { %12530 = vmatprep.subr.bf16.mxu0 %v22399_v3 }
 0x8d0   : > { %12531 = vmatpush1.bf16.msra.mxu0 %v22397_v27  ;;  %v22477_v27 = vld [vmem:[%s28241_s8 + $0x224] ss:$16 sps:$4 sm:$0xff]  }
 0x8d1   : > { %12532 = vmatprep.subr.bf16.mxu0 %v22405_v60  ;;  %v22480_v60 = vld [vmem:[%s28241_s8 + $0x22c] ss:$16 sps:$4 sm:$0xff]  }
 0x8d4   : > { %12533 = vmatpush1.bf16.msra.mxu0 %v22403_v18 }
 0x8d5   : > { %12534 = vmatprep.subr.bf16.mxu0 %v22411_v4  ;;  %v22475_v4 = vld [vmem:[%s28241_s8 + $0x220] ss:$16 sps:$4 sm:$0xff]  }
 0x8d8   : > { %12535 = vmatpush1.bf16.msra.mxu0 %v22409_v24  ;;  %v22478_v24 = vld [vmem:[%s28241_s8 + $0x228] ss:$16 sps:$4 sm:$0xff]  }
 0x8d9   : > { %12536 = vmatprep.subr.bf16.mxu0 %v22417_v26 }
 0x8dc   : > { %12537 = vmatpush1.bf16.msra.mxu0 %v22415_v41 }
 0x8dd   : > { %12538 = vmatprep.subr.bf16.mxu0 %v22423_v29  ;;  %v22483_v29 = vld [vmem:[%s28241_s8 + $0x244] ss:$16 sps:$4 sm:$0xff]  }
 0x8e0   : > { %12539 = vmatpush1.bf16.msra.mxu0 %v22421_v30  ;;  %v22486_v30 = vld [vmem:[%s28241_s8 + $0x24c] ss:$16 sps:$4 sm:$0xff]  }
 0x8e1   : > { %12540 = vmatprep.subr.bf16.mxu0 %v22429_v39 }
 0x8e4   : > { %12541 = vmatpush1.bf16.msra.mxu0 %v22427_v31 }
 0x8e5   : > { %12542 = vmatprep.subr.bf16.mxu0 %v22435_v34 }
 0x8e8   : > { %12543 = vmatpush1.bf16.msra.mxu0 %v22433_v37 }
 0x8e9   : > { %12544 = vmatprep.subr.bf16.mxu0 %v22441_v40  ;;  %v22489_v40 = vld [vmem:[%s28241_s8 + $0x264] ss:$16 sps:$4 sm:$0xff]  }
 0x8ea   : > { %v10867_v5 = vpop.f32.mrb[64].mxu0 }
 0x8eb   : > { %v10869_v43 = vpop.f32.mrb[65].mxu0 }
 0x8ec   : > { %v10871_v47 = vpop.f32.mrb[66].mxu0  ;;  %12545 = vmatpush1.bf16.msra.mxu0 %v22439_v42  ;;  %v22484_v42 = vld [vmem:[%s28241_s8 + $0x248] ss:$16 sps:$4 sm:$0xff]  }
 0x8ed   : > { %v10872_v48 = vpop.f32.mrb[67].mxu0  ;;  %12546 = vmatprep.subr.bf16.mxu0 %v22447_v49  ;;  %v22490_v47 = vld [vmem:[%s28241_s8 + $0x268] ss:$16 sps:$4 sm:$0xff]   ;;  %v22495_v49 = vld [vmem:[%s28241_s8 + $0x284] ss:$16 sps:$4 sm:$0xff]  }
 0x8f0   : > { %12547 = vmatpush1.bf16.msra.mxu0 %v22445_v62 }
 0x8f1   : > { %12548 = vmatprep.subr.bf16.mxu0 %v22453_v55  ;;  %v22493_v55 = vld [vmem:[%s28241_s8 + $0x280] ss:$16 sps:$4 sm:$0xff]  }
 0x8f2   : > { %v10908_v13 = vpop.f32.mrb[68].mxu0 }
 0x8f3   : > { %v26161_v56 = vpop.f32.mrb[69].mxu0 }
 0x8f4   : > { %v10912_v1 = vpop.f32.mrb[70].mxu0  ;;  %12549 = vmatpush1.bf16.msra.mxu0 %v22451_v33 }
 0x8f5   : > { %v10913_v2 = vpop.f32.mrb[71].mxu0  ;;  %12550 = vmatprep.subr.bf16.mxu0 %v22459_v6 }
 0x8f6   : > { %v22499_v2 = vld [vmem:[%s28241_s8 + $0x2a0] ss:$16 sps:$4 sm:$0xff]  }
 0x8f8   : > { %12551 = vmatpush1.bf16.msra.mxu0 %v22457_v21  ;;  %v22502_v21 = vld [vmem:[%s28241_s8 + $0x2a8] ss:$16 sps:$4 sm:$0xff]  }
 0x8f9   : > { %12552 = vmatprep.subr.bf16.mxu0 %v22465_v22 }
 0x8fc   : > { %12553 = vmatpush1.bf16.msra.mxu0 %v22463_v20  ;;  %v22505_v20 = vld [vmem:[%s28241_s8 + $0x2c0] ss:$16 sps:$4 sm:$0xff]  }
 0x8fd   : > { %12563 = vmatprep.subr.bf16.mxu0 %v22471_v17 }
 0x96a   : > { %v10949_v19 = vpop.f32.mrb[72].mxu0 }
 0x96b   : > { %v10951_v45 = vpop.f32.mrb[73].mxu0 }
 0x96c   : > { %v10953_v23 = vpop.f32.mrb[74].mxu0 }
 0x96d   : > { %v10954_v7 = vpop.f32.mrb[75].mxu0  ;;  %v22514_v23 = vld [vmem:[%s28241_s8 + $0x2e8] ss:$16 sps:$4 sm:$0xff]  }
 0x96e   : > { %v22519_v7 = vld [vmem:[%s28241_s8 + $0x304] ss:$16 sps:$4 sm:$0xff]  }
 0x972   : > { %v26199_v61 = vpop.f32.mrb[76].mxu0 }
 0x973   : > { %v20356_v14 = vpop.f32.mrb[77].mxu0 }
 0x974   : > { %v10993_v25 = vpop.f32.mrb[78].mxu0  ;;  %v22517_v14 = vld [vmem:[%s28241_s8 + $0x300] ss:$16 sps:$4 sm:$0xff]  }
 0x975   : > { %v20357_v12 = vpop.f32.mrb[79].mxu0  ;;  %v22520_v25 = vld [vmem:[%s28241_s8 + $0x308] ss:$16 sps:$4 sm:$0xff]  }
 0x976   : > { %v22525_v12 = vld [vmem:[%s28241_s8 + $0x324] ss:$16 sps:$4 sm:$0xff]  }
 0x97a   : > { %v11035_v28 = vpop.f32.mrb[80].mxu0 }
 0x97b   : > { %v11164_v11 = vmax.f32 %v10867_v5, %v11035_v28  ;;  %v11037_v59 = vpop.f32.mrb[81].mxu0  ;;  %v22481_v5 = vld [vmem:[%s28241_s8 + $0x240] ss:$16 sps:$4 sm:$0xff]   ;;  %v22528_v28 = vld [vmem:[%s28241_s8 + $0x32c] ss:$16 sps:$4 sm:$0xff]  }
 0x97c   : > { %v11165_v32 = vmax.f32 %v10869_v43, %v11037_v59  ;;  %v11039_v36 = vpop.f32.mrb[82].mxu0  ;;  %v22492_v43 = vld [vmem:[%s28241_s8 + $0x26c] ss:$16 sps:$4 sm:$0xff]   ;;  %v22526_v59 = vld [vmem:[%s28241_s8 + $0x328] ss:$16 sps:$4 sm:$0xff]  }
 0x97d   : > { %v11040_v38 = vpop.f32.mrb[83].mxu0  ;;  %v26209_v3 = vpack.c.bf16 %v11164_v11, %v11164_v11  ;;  %v22523_v11 = vld [vmem:[%s28241_s8 + $0x320] ss:$16 sps:$4 sm:$0xff]   ;;  %v22534_v36 = vld [vmem:[%s28241_s8 + $0x34c] ss:$16 sps:$4 sm:$0xff]  }
 0x97e   : > { %v26201_v44 = vpack.c.bf16 %v11165_v32, %v11165_v32  ;;  %v22531_v32 = vld [vmem:[%s28241_s8 + $0x344] ss:$16 sps:$4 sm:$0xff]   ;;  %v22529_v38 = vld [vmem:[%s28241_s8 + $0x340] ss:$16 sps:$4 sm:$0xff]  }
 0x980   : > { %12554 = vmatprep.mubr.bf16.mxu0 %v26201_v44  ;;  %12718 = vmatprep.mubr.bf16.mxu1 %v26201_v44 }
 0x981   : > { %12555 = vmatmul.mubr.bf16.vlgmr.msra.gmra.mrb[96].mxu0 %v26209_v3  ;;  %12719 = vmatmul.mubr.bf16.vlgmr.msra.gmra.mrb[52].mxu1 %v26209_v3 }
 0x982   : > { %12564 = vmatpush1.bf16.msra.mxu0 %v22469_v9  ;;  %12728 = vmatpush1.bf16.msra.mxu1 %v22472_v15  ;;  %v11076_v18 = vpop.f32.mrb[84].mxu0  ;;  %v22532_v9 = vld [vmem:[%s28241_s8 + $0x348] ss:$16 sps:$4 sm:$0xff]   ;;  %v22537_v15 = vld [vmem:[%s28241_s8 + $0x364] ss:$16 sps:$4 sm:$0xff]  }
 0x983   : > { %v26227_v26 = vmax.f32 %v10908_v13, %v11076_v18  ;;  %v11078_v41 = vpop.f32.mrb[85].mxu0  ;;  %12565 = vmatprep.subr.bf16.mxu0 %v22477_v27  ;;  %12729 = vmatprep.subr.bf16.mxu1 %v22480_v60  ;;  %v22540_v27 = vld [vmem:[%s28241_s8 + $0x36c] ss:$16 sps:$4 sm:$0xff]   ;;  %v22535_v60 = vld [vmem:[%s28241_s8 + $0x360] ss:$16 sps:$4 sm:$0xff]  }
 0x984   : > { %v11167_v39 = vmax.f32 %v26161_v56, %v11078_v41  ;;  %v11080_v31 = vpop.f32.mrb[86].mxu0  ;;  %v22496_v56 = vld [vmem:[%s28241_s8 + $0x288] ss:$16 sps:$4 sm:$0xff]   ;;  %v22541_v41 = vld [vmem:[%s28241_s8 + $0x380] ss:$16 sps:$4 sm:$0xff]  }
 0x985   : > { %v11081_v34 = vpop.f32.mrb[87].mxu0  ;;  %v22538_v18 = vld [vmem:[%s28241_s8 + $0x368] ss:$16 sps:$4 sm:$0xff]   ;;  %v22547_v31 = vld [vmem:[%s28241_s8 + $0x3a0] ss:$16 sps:$4 sm:$0xff]  }
 0x986   : > { %v26236_v37 = vpack.c.bf16 %v11167_v39, %v11167_v39  ;;  %12566 = vmatpush1.bf16.msra.mxu0 %v22475_v4  ;;  %12730 = vmatpush1.bf16.msra.mxu1 %v22478_v24  ;;  %v22543_v4 = vld [vmem:[%s28241_s8 + $0x384] ss:$16 sps:$4 sm:$0xff]   ;;  %v22546_v24 = vld [vmem:[%s28241_s8 + $0x38c] ss:$16 sps:$4 sm:$0xff]   ;;  %v22550_v34 = vld [vmem:[%s28241_s8 + $0x3a8] ss:$16 sps:$4 sm:$0xff]  }
 0x987   : > { %12567 = vmatprep.subr.bf16.mxu0 %v22483_v29  ;;  %12731 = vmatprep.subr.bf16.mxu1 %v22486_v30  ;;  %v22544_v29 = vld [vmem:[%s28241_s8 + $0x388] ss:$16 sps:$4 sm:$0xff]   ;;  %v22549_v30 = vld [vmem:[%s28241_s8 + $0x3a4] ss:$16 sps:$4 sm:$0xff]   ;;  %v22552_v39 = vld [vmem:[%s28241_s8 + $0x3ac] ss:$16 sps:$4 sm:$0xff]  }
 0x988   : > { %12595 = vmatprep.mubr.bf16.mxu0 %v26236_v37  ;;  %12759 = vmatprep.mubr.bf16.mxu1 %v26236_v37 }
 0x98a   : > { %12568 = vmatpush1.bf16.msra.mxu0 %v22481_v5  ;;  %12732 = vmatpush1.bf16.msra.mxu1 %v22484_v42  ;;  %v11117_v46 = vpop.f32.mrb[88].mxu0  ;;  %v22555_v5 = vld [vmem:[%s28241_s8 + $0x3c4] ss:$16 sps:$4 sm:$0xff]   ;;  %v22558_v42 = vld [vmem:[%s28241_s8 + $0x3cc] ss:$16 sps:$4 sm:$0xff]  }
 0x98b   : > { %v26258_v48 = vmax.f32 %v10949_v19, %v11117_v46  ;;  %v11119_v62 = vpop.f32.mrb[89].mxu0  ;;  %12569 = vmatprep.subr.bf16.mxu0 %v22489_v40  ;;  %12733 = vmatprep.subr.bf16.mxu1 %v22492_v43  ;;  %v22516_v19 = vld [vmem:[%s28241_s8 + $0x2ec] ss:$16 sps:$4 sm:$0xff]   ;;  %v22553_v40 = vld [vmem:[%s28241_s8 + $0x3c0] ss:$16 sps:$4 sm:$0xff]  }
 0x98c   : > { %v26266_v54 = vmax.f32 %v10951_v45, %v11119_v62  ;;  %v11121_v13 = vpop.f32.mrb[90].mxu0  ;;  %v22511_v45 = vld [vmem:[%s28241_s8 + $0x2e0] ss:$16 sps:$4 sm:$0xff]   ;;  %v22556_v43 = vld [vmem:[%s28241_s8 + $0x3c8] ss:$16 sps:$4 sm:$0xff]  }
 0x98d   : > { %v11122_v33 = vpop.f32.mrb[91].mxu0  ;;  %v22561_v46 = vld [vmem:[%s28241_s8 + $0x3e4] ss:$16 sps:$4 sm:$0xff]   ;;  %v22562_v62 = vld [vmem:[%s28241_s8 + $0x3e8] ss:$16 sps:$4 sm:$0xff]  }
 0x98e   : > { %12570 = vmatpush1.bf16.msra.mxu0 %v22487_v50  ;;  %12734 = vmatpush1.bf16.msra.mxu1 %v22490_v47  ;;  %v22564_v50 = vld [vmem:[%s28241_s8 + $0x3ec] ss:$16 sps:$4 sm:$0xff]   ;;  %v22559_v47 = vld [vmem:[%s28241_s8 + $0x3e0] ss:$16 sps:$4 sm:$0xff]   ;;  %v26420_v33 = vpack.c.bf16 %v26227_v26, %v26227_v26 }
 0x98f   : > { %12571 = vmatprep.subr.bf16.mxu0 %v22495_v49  ;;  %12735 = vmatprep.subr.bf16.mxu1 %v22498_v53  ;;  %v22567_v49 = vld [vmem:[%s28241_s8 + $0x404] ss:$16 sps:$4 sm:$0xff]   ;;  %v22570_v53 = vld [vmem:[%s28241_s8 + $0x40c] ss:$16 sps:$4 sm:$0xff]   ;;  %v22565_v13 = vld [vmem:[%s28241_s8 + $0x400] ss:$16 sps:$4 sm:$0xff]  }
 0x990   : > { %v22571_v26 = vld [vmem:[%s28241_s8 + $0x420] ss:$16 sps:$4 sm:$0xff]  }
 0x992   : > { %12572 = vmatpush1.bf16.msra.mxu0 %v22493_v55  ;;  %12736 = vmatpush1.bf16.msra.mxu1 %v22496_v56  ;;  %v11158_v1 = vpop.f32.mrb[92].mxu0  ;;  %v22568_v55 = vld [vmem:[%s28241_s8 + $0x408] ss:$16 sps:$4 sm:$0xff]   ;;  %v26427_v56 = vpack.c.bf16 %v26266_v54, %v26266_v54 }
 0x993   : > { %v26287_v6 = vmax.f32 %v26199_v61, %v11158_v1  ;;  %12573 = vmatprep.subr.bf16.mxu0 %v22501_v57  ;;  %12737 = vmatprep.subr.bf16.mxu1 %v22504_v58  ;;  %v20362_v22 = vpop.f32.mrb[93].mxu0  ;;  %v22522_v61 = vld [vmem:[%s28241_s8 + $0x30c] ss:$16 sps:$4 sm:$0xff]   ;;  %v22573_v57 = vld [vmem:[%s28241_s8 + $0x424] ss:$16 sps:$4 sm:$0xff]  }
 0x994   : > { %v11161_v63 = vpop.f32.mrb[94].mxu0  ;;  %v22576_v58 = vld [vmem:[%s28241_s8 + $0x42c] ss:$16 sps:$4 sm:$0xff]   ;;  %v22574_v54 = vld [vmem:[%s28241_s8 + $0x428] ss:$16 sps:$4 sm:$0xff]  }
 0x995   : > { %v20363_v17 = vpop.f32.mrb[95].mxu0  ;;  %v22579_v1 = vld [vmem:[%s28241_s8 + $0x444] ss:$16 sps:$4 sm:$0xff]   ;;  %v22588_v22 = vld [vmem:[%s28241_s8 + $0x46c] ss:$16 sps:$4 sm:$0xff]  }
 0x996   : > { %12574 = vmatpush1.bf16.msra.mxu0 %v22499_v2  ;;  %12738 = vmatpush1.bf16.msra.mxu1 %v22502_v21  ;;  %v22582_v2 = vld [vmem:[%s28241_s8 + $0x44c] ss:$16 sps:$4 sm:$0xff]   ;;  %v22577_v21 = vld [vmem:[%s28241_s8 + $0x440] ss:$16 sps:$4 sm:$0xff]  }
 0x997   : > { %12575 = vmatprep.subr.bf16.mxu0 %v22507_v51  ;;  %12739 = vmatprep.subr.bf16.mxu1 %v22510_v52  ;;  %v22580_v51 = vld [vmem:[%s28241_s8 + $0x448] ss:$16 sps:$4 sm:$0xff]   ;;  %v22585_v52 = vld [vmem:[%s28241_s8 + $0x464] ss:$16 sps:$4 sm:$0xff]   ;;  %v22583_v63 = vld [vmem:[%s28241_s8 + $0x460] ss:$16 sps:$4 sm:$0xff]  }
 0x998   : > { %v22594_v17 = vld [vmem:[%s28241_s8 + $0x48c] ss:$16 sps:$4 sm:$0xff]  }
 0x99a   : > { %12576 = vmatpush1.bf16.msra.mxu0 %v22505_v20  ;;  %12740 = vmatpush1.bf16.msra.mxu1 %v22508_v16  ;;  %v22586_v20 = vld [vmem:[%s28241_s8 + $0x468] ss:$16 sps:$4 sm:$0xff]   ;;  %v22591_v16 = vld [vmem:[%s28241_s8 + $0x484] ss:$16 sps:$4 sm:$0xff]  }
 0x99b   : > { %12577 = vmatprep.subr.bf16.mxu0 %v22513_v8  ;;  %12741 = vmatprep.subr.bf16.mxu1 %v22516_v19  ;;  %v22589_v8 = vld [vmem:[%s28241_s8 + $0x480] ss:$16 sps:$4 sm:$0xff]   ;;  %v22592_v19 = vld [vmem:[%s28241_s8 + $0x488] ss:$16 sps:$4 sm:$0xff]  }
 0x99e   : > { %12578 = vmatpush1.bf16.msra.mxu0 %v22511_v45  ;;  %12742 = vmatpush1.bf16.msra.mxu1 %v22514_v23  ;;  %v22597_v45 = vld [vmem:[%s28241_s8 + $0x4a4] ss:$16 sps:$4 sm:$0xff]   ;;  %v22600_v23 = vld [vmem:[%s28241_s8 + $0x4ac] ss:$16 sps:$4 sm:$0xff]  }
 0x99f   : > { %12579 = vmatprep.subr.bf16.mxu0 %v22519_v7  ;;  %12743 = vmatprep.subr.bf16.mxu1 %v22522_v61  ;;  %v22595_v7 = vld [vmem:[%s28241_s8 + $0x4a0] ss:$16 sps:$4 sm:$0xff]   ;;  %v22598_v61 = vld [vmem:[%s28241_s8 + $0x4a8] ss:$16 sps:$4 sm:$0xff]  }
 0x9a2   : > { %12580 = vmatpush1.bf16.msra.mxu0 %v22517_v14  ;;  %12744 = vmatpush1.bf16.msra.mxu1 %v22520_v25  ;;  %v22603_v14 = vld [vmem:[%s28241_s8 + $0x4c4] ss:$16 sps:$4 sm:$0xff]   ;;  %v22606_v25 = vld [vmem:[%s28241_s8 + $0x4cc] ss:$16 sps:$4 sm:$0xff]  }
 0x9a3   : > { %12581 = vmatprep.subr.bf16.mxu0 %v22525_v12  ;;  %12745 = vmatprep.subr.bf16.mxu1 %v22528_v28  ;;  %v22601_v12 = vld [vmem:[%s28241_s8 + $0x4c0] ss:$16 sps:$4 sm:$0xff]   ;;  %v22604_v28 = vld [vmem:[%s28241_s8 + $0x4c8] ss:$16 sps:$4 sm:$0xff]  }
 0x9a6   : > { %12582 = vmatpush1.bf16.msra.mxu0 %v22523_v11  ;;  %12746 = vmatpush1.bf16.msra.mxu1 %v22526_v59  ;;  %v22609_v11 = vld [vmem:[%s28241_s8 + $0x4e4] ss:$16 sps:$4 sm:$0xff]   ;;  %v22612_v59 = vld [vmem:[%s28241_s8 + $0x4ec] ss:$16 sps:$4 sm:$0xff]  }
 0x9a7   : > { %12583 = vmatprep.subr.bf16.mxu0 %v22531_v32  ;;  %12747 = vmatprep.subr.bf16.mxu1 %v22534_v36  ;;  %v22607_v32 = vld [vmem:[%s28241_s8 + $0x4e0] ss:$16 sps:$4 sm:$0xff]   ;;  %v22610_v36 = vld [vmem:[%s28241_s8 + $0x4e8] ss:$16 sps:$4 sm:$0xff]  }
 0x9aa   : > { %12584 = vmatpush1.bf16.msra.mxu0 %v22529_v38  ;;  %12748 = vmatpush1.bf16.msra.mxu1 %v22532_v9  ;;  %v22615_v38 = vld [vmem:[%s28241_s8 + $0x504] ss:$16 sps:$4 sm:$0xff]   ;;  %v22618_v9 = vld [vmem:[%s28241_s8 + $0x50c] ss:$16 sps:$4 sm:$0xff]  }
 0x9ab   : > { %12585 = vmatprep.subr.bf16.mxu0 %v22537_v15  ;;  %12749 = vmatprep.subr.bf16.mxu1 %v22540_v27  ;;  %v22613_v15 = vld [vmem:[%s28241_s8 + $0x500] ss:$16 sps:$4 sm:$0xff]   ;;  %v22616_v27 = vld [vmem:[%s28241_s8 + $0x508] ss:$16 sps:$4 sm:$0xff]  }
 0x9ae   : > { %12586 = vmatpush1.bf16.msra.mxu0 %v22535_v60  ;;  %12750 = vmatpush1.bf16.msra.mxu1 %v22538_v18  ;;  %v22621_v60 = vld [vmem:[%s28241_s8 + $0x524] ss:$16 sps:$4 sm:$0xff]   ;;  %v22624_v18 = vld [vmem:[%s28241_s8 + $0x52c] ss:$16 sps:$4 sm:$0xff]  }
 0x9af   : > { %12587 = vmatprep.subr.bf16.mxu0 %v22543_v4  ;;  %12751 = vmatprep.subr.bf16.mxu1 %v22546_v24  ;;  %v22619_v4 = vld [vmem:[%s28241_s8 + $0x520] ss:$16 sps:$4 sm:$0xff]   ;;  %v22622_v24 = vld [vmem:[%s28241_s8 + $0x528] ss:$16 sps:$4 sm:$0xff]  }
 0x9b2   : > { %12588 = vmatpush1.bf16.msra.mxu0 %v22541_v41  ;;  %12752 = vmatpush1.bf16.msra.mxu1 %v22544_v29  ;;  %v22627_v41 = vld [vmem:[%s28241_s8 + $0x544] ss:$16 sps:$4 sm:$0xff]   ;;  %v22630_v29 = vld [vmem:[%s28241_s8 + $0x54c] ss:$16 sps:$4 sm:$0xff]  }
 0x9b3   : > { %12589 = vmatprep.subr.bf16.mxu0 %v22549_v30  ;;  %12753 = vmatprep.subr.bf16.mxu1 %v22552_v39  ;;  %v22625_v30 = vld [vmem:[%s28241_s8 + $0x540] ss:$16 sps:$4 sm:$0xff]   ;;  %v22628_v39 = vld [vmem:[%s28241_s8 + $0x548] ss:$16 sps:$4 sm:$0xff]  }
 0x9b6   : > { %12590 = vmatpush1.bf16.msra.mxu0 %v22547_v31  ;;  %12754 = vmatpush1.bf16.msra.mxu1 %v22550_v34  ;;  %v22633_v31 = vld [vmem:[%s28241_s8 + $0x564] ss:$16 sps:$4 sm:$0xff]   ;;  %v22636_v34 = vld [vmem:[%s28241_s8 + $0x56c] ss:$16 sps:$4 sm:$0xff]  }
 0x9b7   : > { %12591 = vmatprep.subr.bf16.mxu0 %v22555_v5  ;;  %12755 = vmatprep.subr.bf16.mxu1 %v22558_v42  ;;  %v22631_v5 = vld [vmem:[%s28241_s8 + $0x560] ss:$16 sps:$4 sm:$0xff]   ;;  %v22634_v42 = vld [vmem:[%s28241_s8 + $0x568] ss:$16 sps:$4 sm:$0xff]  }
 0x9ba   : > { %12592 = vmatpush1.bf16.msra.mxu0 %v22553_v40  ;;  %12756 = vmatpush1.bf16.msra.mxu1 %v22556_v43  ;;  %v22639_v40 = vld [vmem:[%s28241_s8 + $0x584] ss:$16 sps:$4 sm:$0xff]   ;;  %v22642_v43 = vld [vmem:[%s28241_s8 + $0x58c] ss:$16 sps:$4 sm:$0xff]  }
 0x9bb   : > { %12593 = vmatprep.subr.bf16.mxu0 %v22561_v46  ;;  %12757 = vmatprep.subr.bf16.mxu1 %v22564_v50  ;;  %v22637_v46 = vld [vmem:[%s28241_s8 + $0x580] ss:$16 sps:$4 sm:$0xff]   ;;  %v22640_v50 = vld [vmem:[%s28241_s8 + $0x588] ss:$16 sps:$4 sm:$0xff]  }
 0x9be   : > { %12594 = vmatpush1.bf16.msra.mxu0 %v22559_v47  ;;  %12758 = vmatpush1.bf16.msra.mxu1 %v22562_v62  ;;  %v22645_v47 = vld [vmem:[%s28241_s8 + $0x5a4] ss:$16 sps:$4 sm:$0xff]   ;;  %v22648_v62 = vld [vmem:[%s28241_s8 + $0x5ac] ss:$16 sps:$4 sm:$0xff]  }
 0x9bf   : > { %12604 = vmatprep.subr.bf16.mxu0 %v22567_v49  ;;  %12768 = vmatprep.subr.bf16.mxu1 %v22570_v53  ;;  %v22643_v49 = vld [vmem:[%s28241_s8 + $0x5a0] ss:$16 sps:$4 sm:$0xff]   ;;  %v22646_v53 = vld [vmem:[%s28241_s8 + $0x5a8] ss:$16 sps:$4 sm:$0xff]  }
 0x9c1   : > { %12596 = vmatmul.mubr.bf16.vlgmr.msra.gmra.mrb[96].mxu0 %v26420_v33  ;;  %12760 = vmatmul.mubr.bf16.vlgmr.msra.gmra.mrb[52].mxu1 %v26420_v33 }
 0x9c2   : > { %12605 = vmatpush1.bf16.msra.mxu0 %v22565_v13  ;;  %12636 = vmatprep.mubr.bf16.mxu0 %v26427_v56  ;;  %v22651_v13 = vld [vmem:[%s28241_s8 + $0x5c4] ss:$16 sps:$4 sm:$0xff]  }
 0x9c3   : > { %12769 = vmatpush1.bf16.msra.mxu1 %v22568_v55  ;;  %12800 = vmatprep.mubr.bf16.mxu1 %v26427_v56  ;;  %v22654_v55 = vld [vmem:[%s28241_s8 + $0x5cc] ss:$16 sps:$4 sm:$0xff]  }
 0x9c4   : > { %12606 = vmatprep.subr.bf16.mxu0 %v22573_v57  ;;  %12770 = vmatprep.subr.bf16.mxu1 %v22576_v58  ;;  %v22649_v57 = vld [vmem:[%s28241_s8 + $0x5c0] ss:$16 sps:$4 sm:$0xff]   ;;  %v22652_v58 = vld [vmem:[%s28241_s8 + $0x5c8] ss:$16 sps:$4 sm:$0xff]  }
 0x9c6   : > { %12607 = vmatpush1.bf16.msra.mxu0 %v22571_v26  ;;  %v22657_v26 = vld [vmem:[%s28241_s8 + $0x5e4] ss:$16 sps:$4 sm:$0xff]  }
 0x9c7   : > { %12771 = vmatpush1.bf16.msra.mxu1 %v22574_v54  ;;  %12608 = vmatprep.subr.bf16.mxu0 %v22579_v1  ;;  %v22660_v54 = vld [vmem:[%s28241_s8 + $0x5ec] ss:$16 sps:$4 sm:$0xff]   ;;  %v22655_v1 = vld [vmem:[%s28241_s8 + $0x5e0] ss:$16 sps:$4 sm:$0xff]  }
 0x9c8   : > { %12772 = vmatprep.subr.bf16.mxu1 %v22582_v2  ;;  %v22658_v2 = vld [vmem:[%s28241_s8 + $0x5e8] ss:$16 sps:$4 sm:$0xff]  }
 0x9ca   : > { %12609 = vmatpush1.bf16.msra.mxu0 %v22577_v21  ;;  %v22663_v21 = vld [vmem:[%s28241_s8 + $0x604] ss:$16 sps:$4 sm:$0xff]  }
 0x9cb   : > { %12773 = vmatpush1.bf16.msra.mxu1 %v22580_v51  ;;  %12610 = vmatprep.subr.bf16.mxu0 %v22585_v52  ;;  %v22666_v51 = vld [vmem:[%s28241_s8 + $0x60c] ss:$16 sps:$4 sm:$0xff]   ;;  %v22661_v52 = vld [vmem:[%s28241_s8 + $0x600] ss:$16 sps:$4 sm:$0xff]  }
 0x9cc   : > { %12774 = vmatprep.subr.bf16.mxu1 %v22588_v22  ;;  %v26624_v22 = vpack.c.bf16 %v26258_v48, %v26258_v48  ;;  %v22667_v48 = vld [vmem:[%s28241_s8 + $0x620] ss:$16 sps:$4 sm:$0xff]  }
 0x9ce   : > { %12611 = vmatpush1.bf16.msra.mxu0 %v22583_v63  ;;  %v22664_v63 = vld [vmem:[%s28241_s8 + $0x608] ss:$16 sps:$4 sm:$0xff]  }
 0x9cf   : > { %12775 = vmatpush1.bf16.msra.mxu1 %v22586_v20  ;;  %12612 = vmatprep.subr.bf16.mxu0 %v22591_v16  ;;  %v22669_v20 = vld [vmem:[%s28241_s8 + $0x624] ss:$16 sps:$4 sm:$0xff]   ;;  %v22672_v16 = vld [vmem:[%s28241_s8 + $0x62c] ss:$16 sps:$4 sm:$0xff]  }
 0x9d0   : > { %12776 = vmatprep.subr.bf16.mxu1 %v22594_v17  ;;  %v22670_v17 = vld [vmem:[%s28241_s8 + $0x628] ss:$16 sps:$4 sm:$0xff]  }
 0x9d2   : > { %12613 = vmatpush1.bf16.msra.mxu0 %v22589_v8  ;;  %v22675_v8 = vld [vmem:[%s28241_s8 + $0x644] ss:$16 sps:$4 sm:$0xff]  }
 0x9d3   : > { %12777 = vmatpush1.bf16.msra.mxu1 %v22592_v19  ;;  %12614 = vmatprep.subr.bf16.mxu0 %v22597_v45  ;;  %v22678_v19 = vld [vmem:[%s28241_s8 + $0x64c] ss:$16 sps:$4 sm:$0xff]   ;;  %v22673_v45 = vld [vmem:[%s28241_s8 + $0x640] ss:$16 sps:$4 sm:$0xff]  }
 0x9d4   : > { %12778 = vmatprep.subr.bf16.mxu1 %v22600_v23  ;;  %v22676_v23 = vld [vmem:[%s28241_s8 + $0x648] ss:$16 sps:$4 sm:$0xff]  }
 0x9d6   : > { %12615 = vmatpush1.bf16.msra.mxu0 %v22595_v7  ;;  %v22681_v7 = vld [vmem:[%s28241_s8 + $0x664] ss:$16 sps:$4 sm:$0xff]  }
 0x9d7   : > { %12779 = vmatpush1.bf16.msra.mxu1 %v22598_v61  ;;  %12616 = vmatprep.subr.bf16.mxu0 %v22603_v14  ;;  %v22684_v61 = vld [vmem:[%s28241_s8 + $0x66c] ss:$16 sps:$4 sm:$0xff]   ;;  %v22679_v14 = vld [vmem:[%s28241_s8 + $0x660] ss:$16 sps:$4 sm:$0xff]  }
 0x9d8   : > { %12780 = vmatprep.subr.bf16.mxu1 %v22606_v25  ;;  %v22682_v25 = vld [vmem:[%s28241_s8 + $0x668] ss:$16 sps:$4 sm:$0xff]  }
 0x9da   : > { %12617 = vmatpush1.bf16.msra.mxu0 %v22601_v12  ;;  %v22687_v12 = vld [vmem:[%s28241_s8 + $0x684] ss:$16 sps:$4 sm:$0xff]  }
 0x9db   : > { %12781 = vmatpush1.bf16.msra.mxu1 %v22604_v28  ;;  %12618 = vmatprep.subr.bf16.mxu0 %v22609_v11  ;;  %v22690_v28 = vld [vmem:[%s28241_s8 + $0x68c] ss:$16 sps:$4 sm:$0xff]   ;;  %v22685_v11 = vld [vmem:[%s28241_s8 + $0x680] ss:$16 sps:$4 sm:$0xff]  }
 0x9dc   : > { %12782 = vmatprep.subr.bf16.mxu1 %v22612_v59  ;;  %v22688_v59 = vld [vmem:[%s28241_s8 + $0x688] ss:$16 sps:$4 sm:$0xff]  }
 0x9de   : > { %12619 = vmatpush1.bf16.msra.mxu0 %v22607_v32  ;;  %v22693_v32 = vld [vmem:[%s28241_s8 + $0x6a4] ss:$16 sps:$4 sm:$0xff]  }
 0x9df   : > { %12783 = vmatpush1.bf16.msra.mxu1 %v22610_v36  ;;  %12620 = vmatprep.subr.bf16.mxu0 %v22615_v38  ;;  %v22696_v36 = vld [vmem:[%s28241_s8 + $0x6ac] ss:$16 sps:$4 sm:$0xff]   ;;  %v22691_v38 = vld [vmem:[%s28241_s8 + $0x6a0] ss:$16 sps:$4 sm:$0xff]  }
 0x9e0   : > { %12784 = vmatprep.subr.bf16.mxu1 %v22618_v9  ;;  %v22694_v9 = vld [vmem:[%s28241_s8 + $0x6a8] ss:$16 sps:$4 sm:$0xff]  }
 0x9e2   : > { %12621 = vmatpush1.bf16.msra.mxu0 %v22613_v15  ;;  %v22699_v15 = vld [vmem:[%s28241_s8 + $0x6c4] ss:$16 sps:$4 sm:$0xff]  }
 0x9e3   : > { %12785 = vmatpush1.bf16.msra.mxu1 %v22616_v27  ;;  %12622 = vmatprep.subr.bf16.mxu0 %v22621_v60  ;;  %v22702_v27 = vld [vmem:[%s28241_s8 + $0x6cc] ss:$16 sps:$4 sm:$0xff]   ;;  %v22697_v60 = vld [vmem:[%s28241_s8 + $0x6c0] ss:$16 sps:$4 sm:$0xff]  }
 0x9e4   : > { %12786 = vmatprep.subr.bf16.mxu1 %v22624_v18  ;;  %v22700_v18 = vld [vmem:[%s28241_s8 + $0x6c8] ss:$16 sps:$4 sm:$0xff]  }
 0x9e6   : > { %12623 = vmatpush1.bf16.msra.mxu0 %v22619_v4  ;;  %v22705_v4 = vld [vmem:[%s28241_s8 + $0x6e4] ss:$16 sps:$4 sm:$0xff]  }
 0x9e7   : > { %12787 = vmatpush1.bf16.msra.mxu1 %v22622_v24  ;;  %12624 = vmatprep.subr.bf16.mxu0 %v22627_v41  ;;  %v22708_v24 = vld [vmem:[%s28241_s8 + $0x6ec] ss:$16 sps:$4 sm:$0xff]   ;;  %v22703_v41 = vld [vmem:[%s28241_s8 + $0x6e0] ss:$16 sps:$4 sm:$0xff]  }
 0x9e8   : > { %12788 = vmatprep.subr.bf16.mxu1 %v22630_v29  ;;  %v22706_v29 = vld [vmem:[%s28241_s8 + $0x6e8] ss:$16 sps:$4 sm:$0xff]  }
 0x9ea   : > { %12625 = vmatpush1.bf16.msra.mxu0 %v22625_v30  ;;  %v22711_v30 = vld [vmem:[%s28241_s8 + $0x704] ss:$16 sps:$4 sm:$0xff]  }
 0x9eb   : > { %12789 = vmatpush1.bf16.msra.mxu1 %v22628_v39  ;;  %12626 = vmatprep.subr.bf16.mxu0 %v22633_v31  ;;  %v22714_v39 = vld [vmem:[%s28241_s8 + $0x70c] ss:$16 sps:$4 sm:$0xff]   ;;  %v22709_v31 = vld [vmem:[%s28241_s8 + $0x700] ss:$16 sps:$4 sm:$0xff]  }
 0x9ec   : > { %12790 = vmatprep.subr.bf16.mxu1 %v22636_v34  ;;  %v26728_v34 = vpack.c.bf16 %v26287_v6, %v26287_v6  ;;  %v22715_v6 = vld [vmem:[%s28241_s8 + $0x720] ss:$16 sps:$4 sm:$0xff]  }
 0x9ee   : > { %12627 = vmatpush1.bf16.msra.mxu0 %v22631_v5  ;;  %v22712_v5 = vld [vmem:[%s28241_s8 + $0x708] ss:$16 sps:$4 sm:$0xff]  }
 0x9ef   : > { %12791 = vmatpush1.bf16.msra.mxu1 %v22634_v42  ;;  %12628 = vmatprep.subr.bf16.mxu0 %v22639_v40  ;;  %v22717_v42 = vld [vmem:[%s28241_s8 + $0x724] ss:$16 sps:$4 sm:$0xff]   ;;  %v22720_v40 = vld [vmem:[%s28241_s8 + $0x72c] ss:$16 sps:$4 sm:$0xff]  }
 0x9f0   : > { %12792 = vmatprep.subr.bf16.mxu1 %v22642_v43  ;;  %v22718_v43 = vld [vmem:[%s28241_s8 + $0x728] ss:$16 sps:$4 sm:$0xff]  }
 0x9f2   : > { %12629 = vmatpush1.bf16.msra.mxu0 %v22637_v46  ;;  %v22723_v46 = vld [vmem:[%s28241_s8 + $0x744] ss:$16 sps:$4 sm:$0xff]  }
 0x9f3   : > { %12793 = vmatpush1.bf16.msra.mxu1 %v22640_v50  ;;  %12630 = vmatprep.subr.bf16.mxu0 %v22645_v47  ;;  %v22726_v50 = vld [vmem:[%s28241_s8 + $0x74c] ss:$16 sps:$4 sm:$0xff]   ;;  %v22721_v47 = vld [vmem:[%s28241_s8 + $0x740] ss:$16 sps:$4 sm:$0xff]  }
 0x9f4   : > { %12794 = vmatprep.subr.bf16.mxu1 %v22648_v62  ;;  %v22724_v62 = vld [vmem:[%s28241_s8 + $0x748] ss:$16 sps:$4 sm:$0xff]  }
 0x9f6   : > { %12631 = vmatpush1.bf16.msra.mxu0 %v22643_v49  ;;  %v22732_v49 = vld [vmem:[%s28241_s8 + $0x76c] ss:$16 sps:$4 sm:$0xff]  }
 0x9f7   : > { %12795 = vmatpush1.bf16.msra.mxu1 %v22646_v53  ;;  %12632 = vmatprep.subr.bf16.mxu0 %v22651_v13  ;;  %v22727_v53 = vld [vmem:[%s28241_s8 + $0x760] ss:$16 sps:$4 sm:$0xff]   ;;  %v22730_v13 = vld [vmem:[%s28241_s8 + $0x768] ss:$16 sps:$4 sm:$0xff]  }
 0x9f8   : > { %12796 = vmatprep.subr.bf16.mxu1 %v22654_v55  ;;  %v22735_v55 = vld [vmem:[%s28241_s8 + $0x784] ss:$16 sps:$4 sm:$0xff]  }
 0x9fa   : > { %12633 = vmatpush1.bf16.msra.mxu0 %v22649_v57  ;;  %v22738_v57 = vld [vmem:[%s28241_s8 + $0x78c] ss:$16 sps:$4 sm:$0xff]  }
 0x9fb   : > { %12797 = vmatpush1.bf16.msra.mxu1 %v22652_v58  ;;  %12634 = vmatprep.subr.bf16.mxu0 %v22657_v26  ;;  %v22733_v58 = vld [vmem:[%s28241_s8 + $0x780] ss:$16 sps:$4 sm:$0xff]   ;;  %v22736_v26 = vld [vmem:[%s28241_s8 + $0x788] ss:$16 sps:$4 sm:$0xff]  }
 0x9fc   : > { %12798 = vmatprep.subr.bf16.mxu1 %v22660_v54  ;;  %v22741_v54 = vld [vmem:[%s28241_s8 + $0x7a4] ss:$16 sps:$4 sm:$0xff]  }
 0x9fe   : > { %12635 = vmatpush1.bf16.msra.mxu0 %v22655_v1  ;;  %v22744_v1 = vld [vmem:[%s28241_s8 + $0x7ac] ss:$16 sps:$4 sm:$0xff]  }
 0x9ff   : > { %12799 = vmatpush1.bf16.msra.mxu1 %v22658_v2  ;;  %12645 = vmatprep.subr.bf16.mxu0 %v22663_v21  ;;  %v22739_v2 = vld [vmem:[%s28241_s8 + $0x7a0] ss:$16 sps:$4 sm:$0xff]   ;;  %v22742_v21 = vld [vmem:[%s28241_s8 + $0x7a8] ss:$16 sps:$4 sm:$0xff]  }
 0xa00   : > { %12809 = vmatprep.subr.bf16.mxu1 %v22666_v51  ;;  %v22747_v51 = vld [vmem:[%s28241_s8 + $0x7c4] ss:$16 sps:$4 sm:$0xff]  }
 0xa01   : > { %12637 = vmatmul.mubr.bf16.vlgmr.msra.gmra.mrb[96].mxu0 %v26624_v22 }
 0xa02   : > { %12801 = vmatmul.mubr.bf16.vlgmr.msra.gmra.mrb[52].mxu1 %v26624_v22  ;;  %12646 = vmatpush1.bf16.msra.mxu0 %v22661_v52  ;;  %v22750_v52 = vld [vmem:[%s28241_s8 + $0x7cc] ss:$16 sps:$4 sm:$0xff]  }
 0xa03   : > { %12810 = vmatpush1.bf16.msra.mxu1 %v22664_v63  ;;  %12647 = vmatprep.subr.bf16.mxu0 %v22669_v20  ;;  %v22745_v63 = vld [vmem:[%s28241_s8 + $0x7c0] ss:$16 sps:$4 sm:$0xff]   ;;  %v22748_v20 = vld [vmem:[%s28241_s8 + $0x7c8] ss:$16 sps:$4 sm:$0xff]  }
 0xa04   : > { %12811 = vmatprep.subr.bf16.mxu1 %v22672_v16  ;;  %12677 = vmatprep.mubr.bf16.mxu0 %v23331_v0  ;;  %v22753_v16 = vld [vmem:[%s28241_s8 + $0x7e4] ss:$16 sps:$4 sm:$0xff]  }
 0xa05   : > { %12841 = vmatprep.mubr.bf16.mxu1 %v23331_v0 }
 0xa06   : > { %12648 = vmatpush1.bf16.msra.mxu0 %v22667_v48  ;;  %v22756_v48 = vld [vmem:[%s28241_s8 + $0x7ec] ss:$16 sps:$4 sm:$0xff]  }
 0xa07   : > { %12812 = vmatpush1.bf16.msra.mxu1 %v22670_v17  ;;  %12649 = vmatprep.subr.bf16.mxu0 %v22675_v8  ;;  %v22751_v17 = vld [vmem:[%s28241_s8 + $0x7e0] ss:$16 sps:$4 sm:$0xff]   ;;  %v22754_v8 = vld [vmem:[%s28241_s8 + $0x7e8] ss:$16 sps:$4 sm:$0xff]  }
 0xa08   : > { %12813 = vmatprep.subr.bf16.mxu1 %v22678_v19  ;;  %v22759_v19 = vld [vmem:[%s28241_s8 + $0x804] ss:$16 sps:$4 sm:$0xff]  }
 0xa0a   : > { %12650 = vmatpush1.bf16.msra.mxu0 %v22673_v45  ;;  %v22762_v45 = vld [vmem:[%s28241_s8 + $0x80c] ss:$16 sps:$4 sm:$0xff]  }
 0xa0b   : > { %12814 = vmatpush1.bf16.msra.mxu1 %v22676_v23  ;;  %12651 = vmatprep.subr.bf16.mxu0 %v22681_v7  ;;  %v22757_v23 = vld [vmem:[%s28241_s8 + $0x800] ss:$16 sps:$4 sm:$0xff]   ;;  %v22760_v7 = vld [vmem:[%s28241_s8 + $0x808] ss:$16 sps:$4 sm:$0xff]  }
 0xa0c   : > { %12815 = vmatprep.subr.bf16.mxu1 %v22684_v61  ;;  %v22765_v61 = vld [vmem:[%s28241_s8 + $0x824] ss:$16 sps:$4 sm:$0xff]  }
 0xa0e   : > { %12652 = vmatpush1.bf16.msra.mxu0 %v22679_v14  ;;  %v22768_v14 = vld [vmem:[%s28241_s8 + $0x82c] ss:$16 sps:$4 sm:$0xff]  }
 0xa0f   : > { %12816 = vmatpush1.bf16.msra.mxu1 %v22682_v25  ;;  %12653 = vmatprep.subr.bf16.mxu0 %v22687_v12  ;;  %v22763_v25 = vld [vmem:[%s28241_s8 + $0x820] ss:$16 sps:$4 sm:$0xff]   ;;  %v22766_v12 = vld [vmem:[%s28241_s8 + $0x828] ss:$16 sps:$4 sm:$0xff]  }
 0xa10   : > { %12817 = vmatprep.subr.bf16.mxu1 %v22690_v28  ;;  %v22771_v28 = vld [vmem:[%s28241_s8 + $0x844] ss:$16 sps:$4 sm:$0xff]  }
 0xa12   : > { %12654 = vmatpush1.bf16.msra.mxu0 %v22685_v11  ;;  %v22774_v11 = vld [vmem:[%s28241_s8 + $0x84c] ss:$16 sps:$4 sm:$0xff]  }
 0xa13   : > { %12818 = vmatpush1.bf16.msra.mxu1 %v22688_v59  ;;  %12655 = vmatprep.subr.bf16.mxu0 %v22693_v32  ;;  %v22769_v59 = vld [vmem:[%s28241_s8 + $0x840] ss:$16 sps:$4 sm:$0xff]   ;;  %v22772_v32 = vld [vmem:[%s28241_s8 + $0x848] ss:$16 sps:$4 sm:$0xff]  }
 0xa14   : > { %12819 = vmatprep.subr.bf16.mxu1 %v22696_v36  ;;  %v22777_v36 = vld [vmem:[%s28241_s8 + $0x864] ss:$16 sps:$4 sm:$0xff]  }
 0xa16   : > { %12656 = vmatpush1.bf16.msra.mxu0 %v22691_v38  ;;  %v22780_v38 = vld [vmem:[%s28241_s8 + $0x86c] ss:$16 sps:$4 sm:$0xff]  }
 0xa17   : > { %12820 = vmatpush1.bf16.msra.mxu1 %v22694_v9  ;;  %12657 = vmatprep.subr.bf16.mxu0 %v22699_v15  ;;  %v22775_v9 = vld [vmem:[%s28241_s8 + $0x860] ss:$16 sps:$4 sm:$0xff]   ;;  %v22778_v15 = vld [vmem:[%s28241_s8 + $0x868] ss:$16 sps:$4 sm:$0xff]  }
 0xa18   : > { %12821 = vmatprep.subr.bf16.mxu1 %v22702_v27  ;;  %v22783_v27 = vld [vmem:[%s28241_s8 + $0x884] ss:$16 sps:$4 sm:$0xff]  }
 0xa1a   : > { %12658 = vmatpush1.bf16.msra.mxu0 %v22697_v60  ;;  %v22786_v60 = vld [vmem:[%s28241_s8 + $0x88c] ss:$16 sps:$4 sm:$0xff]  }
 0xa1b   : > { %12822 = vmatpush1.bf16.msra.mxu1 %v22700_v18  ;;  %12659 = vmatprep.subr.bf16.mxu0 %v22705_v4  ;;  %v22781_v18 = vld [vmem:[%s28241_s8 + $0x880] ss:$16 sps:$4 sm:$0xff]   ;;  %v22784_v4 = vld [vmem:[%s28241_s8 + $0x888] ss:$16 sps:$4 sm:$0xff]  }
 0xa1c   : > { %12823 = vmatprep.subr.bf16.mxu1 %v22708_v24  ;;  %v22789_v24 = vld [vmem:[%s28241_s8 + $0x8a4] ss:$16 sps:$4 sm:$0xff]  }
 0xa1e   : > { %12660 = vmatpush1.bf16.msra.mxu0 %v22703_v41  ;;  %v22792_v41 = vld [vmem:[%s28241_s8 + $0x8ac] ss:$16 sps:$4 sm:$0xff]  }
 0xa1f   : > { %12824 = vmatpush1.bf16.msra.mxu1 %v22706_v29  ;;  %14195 = vmatprep.subr.bf16.mxu0 %v22711_v30  ;;  %v22787_v29 = vld [vmem:[%s28241_s8 + $0x8a0] ss:$16 sps:$4 sm:$0xff]   ;;  %v22790_v30 = vld [vmem:[%s28241_s8 + $0x8a8] ss:$16 sps:$4 sm:$0xff]  }
 0xa20   : > { %14359 = vmatprep.subr.bf16.mxu1 %v22714_v39  ;;  %v22795_v39 = vld [vmem:[%s28241_s8 + $0x8c4] ss:$16 sps:$4 sm:$0xff]  }
 0xa21   : > { %12678 = vmatmul.mubr.bf16.vlgmr.msra.gmra.mrb[96].mxu0 %v26728_v34 }
 0xa22   : > { %12842 = vmatmul.mubr.bf16.vlgmr.msra.gmra.mrb[52].mxu1 %v26728_v34  ;;  %14196 = vmatpush1.bf16.msra.mxu0 %v22709_v31  ;;  %v22798_v31 = vld [vmem:[%s28241_s8 + $0x8cc] ss:$16 sps:$4 sm:$0xff]  }
 0xa23   : > { %14227 = vmatprep.mubr.bf16.mxu0 %v26201_v44  ;;  %14360 = vmatpush1.bf16.msra.mxu1 %v22712_v5  ;;  %v22793_v5 = vld [vmem:[%s28241_s8 + $0x8c0] ss:$16 sps:$4 sm:$0xff]  }
 0xa24   : > { %14391 = vmatprep.mubr.bf16.mxu1 %v26201_v44  ;;  %14197 = vmatprep.subr.bf16.mxu0 %v22717_v42  ;;  %v22729_v44 = vld [vmem:[%s28241_s8 + $0x764] ss:$16 sps:$4 sm:$0xff]   ;;  %v22796_v42 = vld [vmem:[%s28241_s8 + $0x8c8] ss:$16 sps:$4 sm:$0xff]  }
 0xa25   : > { %14361 = vmatprep.subr.bf16.mxu1 %v22720_v40  ;;  %v22801_v40 = vld [vmem:[%s28241_s8 + $0x8e4] ss:$16 sps:$4 sm:$0xff]  }
 0xa26   : > { %14198 = vmatpush1.bf16.msra.mxu0 %v22715_v6  ;;  %v22804_v6 = vld [vmem:[%s28241_s8 + $0x8ec] ss:$16 sps:$4 sm:$0xff]  }
 0xa27   : > { %14362 = vmatpush1.bf16.msra.mxu1 %v22718_v43  ;;  %14199 = vmatprep.subr.bf16.mxu0 %v22723_v46  ;;  %v22799_v43 = vld [vmem:[%s28241_s8 + $0x8e0] ss:$16 sps:$4 sm:$0xff]   ;;  %v22802_v46 = vld [vmem:[%s28241_s8 + $0x8e8] ss:$16 sps:$4 sm:$0xff]  }
 0xa28   : > { %14363 = vmatprep.subr.bf16.mxu1 %v22726_v50  ;;  %v22807_v50 = vld [vmem:[%s28241_s8 + $0x904] ss:$16 sps:$4 sm:$0xff]  }
 0xa2a   : > { %14200 = vmatpush1.bf16.msra.mxu0 %v22721_v47  ;;  %v22810_v47 = vld [vmem:[%s28241_s8 + $0x90c] ss:$16 sps:$4 sm:$0xff]  }
 0xa2b   : > { %14364 = vmatpush1.bf16.msra.mxu1 %v22724_v62  ;;  %14201 = vmatprep.subr.bf16.mxu0 %v22729_v44  ;;  %v22805_v62 = vld [vmem:[%s28241_s8 + $0x900] ss:$16 sps:$4 sm:$0xff]   ;;  %v22808_v44 = vld [vmem:[%s28241_s8 + $0x908] ss:$16 sps:$4 sm:$0xff]  }
 0xa2c   : > { %14365 = vmatprep.subr.bf16.mxu1 %v22732_v49  ;;  %v22813_v49 = vld [vmem:[%s28241_s8 + $0x924] ss:$16 sps:$4 sm:$0xff]  }
 0xa2e   : > { %14202 = vmatpush1.bf16.msra.mxu0 %v22727_v53  ;;  %v22816_v53 = vld [vmem:[%s28241_s8 + $0x92c] ss:$16 sps:$4 sm:$0xff]  }
 0xa2f   : > { %14366 = vmatpush1.bf16.msra.mxu1 %v22730_v13  ;;  %14203 = vmatprep.subr.bf16.mxu0 %v22735_v55  ;;  %v22811_v13 = vld [vmem:[%s28241_s8 + $0x920] ss:$16 sps:$4 sm:$0xff]   ;;  %v22814_v55 = vld [vmem:[%s28241_s8 + $0x928] ss:$16 sps:$4 sm:$0xff]  }
 0xa30   : > { %14367 = vmatprep.subr.bf16.mxu1 %v22738_v57  ;;  %v22819_v57 = vld [vmem:[%s28241_s8 + $0x944] ss:$16 sps:$4 sm:$0xff]  }
 0xa32   : > { %14204 = vmatpush1.bf16.msra.mxu0 %v22733_v58  ;;  %v22817_v58 = vld [vmem:[%s28241_s8 + $0x940] ss:$16 sps:$4 sm:$0xff]  }
 0xa33   : > { %14368 = vmatpush1.bf16.msra.mxu1 %v22736_v26  ;;  %14205 = vmatprep.subr.bf16.mxu0 %v22741_v54  ;;  %v22820_v26 = vld [vmem:[%s28241_s8 + $0x948] ss:$16 sps:$4 sm:$0xff]   ;;  %v22828_v54 = vld [vmem:[%s28241_s8 + $0x96c] ss:$16 sps:$4 sm:$0xff]  }
 0xa34   : > { %14369 = vmatprep.subr.bf16.mxu1 %v22744_v1  ;;  %v22823_v1 = vld [vmem:[%s28241_s8 + $0x960] ss:$16 sps:$4 sm:$0xff]  }
 0xa36   : > { %14206 = vmatpush1.bf16.msra.mxu0 %v22739_v2  ;;  %v22826_v2 = vld [vmem:[%s28241_s8 + $0x968] ss:$16 sps:$4 sm:$0xff]  }
 0xa37   : > { %14370 = vmatpush1.bf16.msra.mxu1 %v22742_v21  ;;  %14207 = vmatprep.subr.bf16.mxu0 %v22747_v51  ;;  %v22831_v21 = vld [vmem:[%s28241_s8 + $0x984] ss:$16 sps:$4 sm:$0xff]   ;;  %v22834_v51 = vld [vmem:[%s28241_s8 + $0x98c] ss:$16 sps:$4 sm:$0xff]  }
 0xa38   : > { %14371 = vmatprep.subr.bf16.mxu1 %v22750_v52  ;;  %v22829_v52 = vld [vmem:[%s28241_s8 + $0x980] ss:$16 sps:$4 sm:$0xff]  }
 0xa3a   : > { %14208 = vmatpush1.bf16.msra.mxu0 %v22745_v63  ;;  %v22832_v63 = vld [vmem:[%s28241_s8 + $0x988] ss:$16 sps:$4 sm:$0xff]  }
 0xa3b   : > { %14372 = vmatpush1.bf16.msra.mxu1 %v22748_v20  ;;  %14209 = vmatprep.subr.bf16.mxu0 %v22753_v16  ;;  %v22837_v20 = vld [vmem:[%s28241_s8 + $0x9a4] ss:$16 sps:$4 sm:$0xff]   ;;  %v22840_v16 = vld [vmem:[%s28241_s8 + $0x9ac] ss:$16 sps:$4 sm:$0xff]  }
 0xa3c   : > { %14373 = vmatprep.subr.bf16.mxu1 %v22756_v48  ;;  %v22835_v48 = vld [vmem:[%s28241_s8 + $0x9a0] ss:$16 sps:$4 sm:$0xff]  }
 0xa3e   : > { %14210 = vmatpush1.bf16.msra.mxu0 %v22751_v17  ;;  %v22838_v17 = vld [vmem:[%s28241_s8 + $0x9a8] ss:$16 sps:$4 sm:$0xff]  }
 0xa3f   : > { %14374 = vmatpush1.bf16.msra.mxu1 %v22754_v8  ;;  %14211 = vmatprep.subr.bf16.mxu0 %v22759_v19  ;;  %v22843_v8 = vld [vmem:[%s28241_s8 + $0x9c4] ss:$16 sps:$4 sm:$0xff]   ;;  %v22846_v19 = vld [vmem:[%s28241_s8 + $0x9cc] ss:$16 sps:$4 sm:$0xff]  }
 0xa40   : > { %14375 = vmatprep.subr.bf16.mxu1 %v22762_v45  ;;  %v22841_v45 = vld [vmem:[%s28241_s8 + $0x9c0] ss:$16 sps:$4 sm:$0xff]  }
 0xa42   : > { %14212 = vmatpush1.bf16.msra.mxu0 %v22757_v23  ;;  %v22844_v23 = vld [vmem:[%s28241_s8 + $0x9c8] ss:$16 sps:$4 sm:$0xff]  }
 0xa43   : > { %14376 = vmatpush1.bf16.msra.mxu1 %v22760_v7  ;;  %14213 = vmatprep.subr.bf16.mxu0 %v22765_v61  ;;  %v22849_v7 = vld [vmem:[%s28241_s8 + $0x9e4] ss:$16 sps:$4 sm:$0xff]   ;;  %v22852_v61 = vld [vmem:[%s28241_s8 + $0x9ec] ss:$16 sps:$4 sm:$0xff]  }
 0xa44   : > { %14377 = vmatprep.subr.bf16.mxu1 %v22768_v14  ;;  %v22847_v14 = vld [vmem:[%s28241_s8 + $0x9e0] ss:$16 sps:$4 sm:$0xff]  }
 0xa46   : > { %14214 = vmatpush1.bf16.msra.mxu0 %v22763_v25  ;;  %v22850_v25 = vld [vmem:[%s28241_s8 + $0x9e8] ss:$16 sps:$4 sm:$0xff]  }
 0xa47   : > { %14378 = vmatpush1.bf16.msra.mxu1 %v22766_v12  ;;  %14215 = vmatprep.subr.bf16.mxu0 %v22771_v28  ;;  %v22855_v12 = vld [vmem:[%s28241_s8 + $0xa04] ss:$16 sps:$4 sm:$0xff]   ;;  %v22858_v28 = vld [vmem:[%s28241_s8 + $0xa0c] ss:$16 sps:$4 sm:$0xff]  }
 0xa48   : > { %14379 = vmatprep.subr.bf16.mxu1 %v22774_v11  ;;  %v22853_v11 = vld [vmem:[%s28241_s8 + $0xa00] ss:$16 sps:$4 sm:$0xff]  }
 0xa4a   : > { %14216 = vmatpush1.bf16.msra.mxu0 %v22769_v59  ;;  %v22856_v59 = vld [vmem:[%s28241_s8 + $0xa08] ss:$16 sps:$4 sm:$0xff]  }
 0xa4b   : > { %14380 = vmatpush1.bf16.msra.mxu1 %v22772_v32  ;;  %14217 = vmatprep.subr.bf16.mxu0 %v22777_v36  ;;  %v22861_v32 = vld [vmem:[%s28241_s8 + $0xa24] ss:$16 sps:$4 sm:$0xff]   ;;  %v22864_v36 = vld [vmem:[%s28241_s8 + $0xa2c] ss:$16 sps:$4 sm:$0xff]  }
 0xa4c   : > { %14381 = vmatprep.subr.bf16.mxu1 %v22780_v38  ;;  %v22859_v38 = vld [vmem:[%s28241_s8 + $0xa20] ss:$16 sps:$4 sm:$0xff]  }
 0xa4e   : > { %14218 = vmatpush1.bf16.msra.mxu0 %v22775_v9  ;;  %v22862_v9 = vld [vmem:[%s28241_s8 + $0xa28] ss:$16 sps:$4 sm:$0xff]  }
 0xa4f   : > { %14382 = vmatpush1.bf16.msra.mxu1 %v22778_v15  ;;  %14219 = vmatprep.subr.bf16.mxu0 %v22783_v27  ;;  %v22867_v15 = vld [vmem:[%s28241_s8 + $0xa44] ss:$16 sps:$4 sm:$0xff]   ;;  %v22870_v27 = vld [vmem:[%s28241_s8 + $0xa4c] ss:$16 sps:$4 sm:$0xff]  }
 0xa50   : > { %14383 = vmatprep.subr.bf16.mxu1 %v22786_v60  ;;  %v22865_v60 = vld [vmem:[%s28241_s8 + $0xa40] ss:$16 sps:$4 sm:$0xff]  }
 0xa52   : > { %14220 = vmatpush1.bf16.msra.mxu0 %v22781_v18  ;;  %v22868_v18 = vld [vmem:[%s28241_s8 + $0xa48] ss:$16 sps:$4 sm:$0xff]  }
 0xa53   : > { %14384 = vmatpush1.bf16.msra.mxu1 %v22784_v4  ;;  %14221 = vmatprep.subr.bf16.mxu0 %v22789_v24  ;;  %v22873_v4 = vld [vmem:[%s28241_s8 + $0xa64] ss:$16 sps:$4 sm:$0xff]   ;;  %v22876_v24 = vld [vmem:[%s28241_s8 + $0xa6c] ss:$16 sps:$4 sm:$0xff]  }
 0xa54   : > { %14385 = vmatprep.subr.bf16.mxu1 %v22792_v41  ;;  %v22871_v41 = vld [vmem:[%s28241_s8 + $0xa60] ss:$16 sps:$4 sm:$0xff]  }
 0xa56   : > { %14222 = vmatpush1.bf16.msra.mxu0 %v22787_v29  ;;  %v22874_v29 = vld [vmem:[%s28241_s8 + $0xa68] ss:$16 sps:$4 sm:$0xff]  }
 0xa57   : > { %14386 = vmatpush1.bf16.msra.mxu1 %v22790_v30  ;;  %14223 = vmatprep.subr.bf16.mxu0 %v22795_v39  ;;  %v22879_v30 = vld [vmem:[%s28241_s8 + $0xa84] ss:$16 sps:$4 sm:$0xff]   ;;  %v22882_v39 = vld [vmem:[%s28241_s8 + $0xa8c] ss:$16 sps:$4 sm:$0xff]  }
 0xa58   : > { %14387 = vmatprep.subr.bf16.mxu1 %v22798_v31  ;;  %v22877_v31 = vld [vmem:[%s28241_s8 + $0xa80] ss:$16 sps:$4 sm:$0xff]  }
 0xa5a   : > { %14224 = vmatpush1.bf16.msra.mxu0 %v22793_v5  ;;  %v22880_v5 = vld [vmem:[%s28241_s8 + $0xa88] ss:$16 sps:$4 sm:$0xff]  }
 0xa5b   : > { %14388 = vmatpush1.bf16.msra.mxu1 %v22796_v42  ;;  %14225 = vmatprep.subr.bf16.mxu0 %v22801_v40  ;;  %v22885_v42 = vld [vmem:[%s28241_s8 + $0xaa4] ss:$16 sps:$4 sm:$0xff]   ;;  %v22888_v40 = vld [vmem:[%s28241_s8 + $0xaac] ss:$16 sps:$4 sm:$0xff]  }
 0xa5c   : > { %14389 = vmatprep.subr.bf16.mxu1 %v22804_v6  ;;  %v22883_v6 = vld [vmem:[%s28241_s8 + $0xaa0] ss:$16 sps:$4 sm:$0xff]  }
 0xa5e   : > { %14226 = vmatpush1.bf16.msra.mxu0 %v22799_v43  ;;  %v22886_v43 = vld [vmem:[%s28241_s8 + $0xaa8] ss:$16 sps:$4 sm:$0xff]  }
 0xa5f   : > { %14390 = vmatpush1.bf16.msra.mxu1 %v22802_v46  ;;  %14236 = vmatprep.subr.bf16.mxu0 %v22807_v50  ;;  %v22891_v46 = vld [vmem:[%s28241_s8 + $0xac4] ss:$16 sps:$4 sm:$0xff]   ;;  %v22894_v50 = vld [vmem:[%s28241_s8 + $0xacc] ss:$16 sps:$4 sm:$0xff]  }
 0xa60   : > { %14400 = vmatprep.subr.bf16.mxu1 %v22810_v47  ;;  %v22889_v47 = vld [vmem:[%s28241_s8 + $0xac0] ss:$16 sps:$4 sm:$0xff]  }
 0xa61   : > { %14228 = vmatmul.mubr.bf16.vlgmr.msra.gmra.mrb[100].mxu0 %v26209_v3 }
 0xa62   : > { %14392 = vmatmul.mubr.bf16.vlgmr.msra.gmra.mrb[56].mxu1 %v26209_v3  ;;  %14237 = vmatpush1.bf16.msra.mxu0 %v22805_v62  ;;  %v22822_v3 = vld [vmem:[%s28241_s8 + $0x94c] ss:$16 sps:$4 sm:$0xff]   ;;  %v22892_v62 = vld [vmem:[%s28241_s8 + $0xac8] ss:$16 sps:$4 sm:$0xff]  }
 0xa63   : > { %14268 = vmatprep.mubr.bf16.mxu0 %v26236_v37  ;;  %14401 = vmatpush1.bf16.msra.mxu1 %v22808_v44  ;;  %v22897_v44 = vld [vmem:[%s28241_s8 + $0xae4] ss:$16 sps:$4 sm:$0xff]  }
 0xa64   : > { %14432 = vmatprep.mubr.bf16.mxu1 %v26236_v37  ;;  %14238 = vmatprep.subr.bf16.mxu0 %v22813_v49  ;;  %v22825_v37 = vld [vmem:[%s28241_s8 + $0x964] ss:$16 sps:$4 sm:$0xff]   ;;  %v22900_v49 = vld [vmem:[%s28241_s8 + $0xaec] ss:$16 sps:$4 sm:$0xff]  }
 0xa65   : > { %14402 = vmatprep.subr.bf16.mxu1 %v22816_v53  ;;  %v22895_v53 = vld [vmem:[%s28241_s8 + $0xae0] ss:$16 sps:$4 sm:$0xff]  }
 0xa66   : > { %14239 = vmatpush1.bf16.msra.mxu0 %v22811_v13  ;;  %v22898_v13 = vld [vmem:[%s28241_s8 + $0xae8] ss:$16 sps:$4 sm:$0xff]  }
 0xa67   : > { %14403 = vmatpush1.bf16.msra.mxu1 %v22814_v55  ;;  %14240 = vmatprep.subr.bf16.mxu0 %v22819_v57  ;;  %v22903_v55 = vld [vmem:[%s28241_s8 + $0xb04] ss:$16 sps:$4 sm:$0xff]   ;;  %v22906_v57 = vld [vmem:[%s28241_s8 + $0xb0c] ss:$16 sps:$4 sm:$0xff]  }
 0xa68   : > { %14404 = vmatprep.subr.bf16.mxu1 %v22822_v3  ;;  %v22901_v3 = vld [vmem:[%s28241_s8 + $0xb00] ss:$16 sps:$4 sm:$0xff]  }
 0xa6a   : > { %14241 = vmatpush1.bf16.msra.mxu0 %v22817_v58  ;;  %v22904_v58 = vld [vmem:[%s28241_s8 + $0xb08] ss:$16 sps:$4 sm:$0xff]  }
 0xa6b   : > { %14405 = vmatpush1.bf16.msra.mxu1 %v22820_v26  ;;  %14242 = vmatprep.subr.bf16.mxu0 %v22825_v37  ;;  %v22909_v26 = vld [vmem:[%s28241_s8 + $0xb24] ss:$16 sps:$4 sm:$0xff]   ;;  %v22912_v37 = vld [vmem:[%s28241_s8 + $0xb2c] ss:$16 sps:$4 sm:$0xff]  }
 0xa6c   : > { %14406 = vmatprep.subr.bf16.mxu1 %v22828_v54  ;;  %v22907_v54 = vld [vmem:[%s28241_s8 + $0xb20] ss:$16 sps:$4 sm:$0xff]  }
 0xa6e   : > { %14243 = vmatpush1.bf16.msra.mxu0 %v22823_v1  ;;  %v22910_v1 = vld [vmem:[%s28241_s8 + $0xb28] ss:$16 sps:$4 sm:$0xff]  }
 0xa6f   : > { %14407 = vmatpush1.bf16.msra.mxu1 %v22826_v2  ;;  %14244 = vmatprep.subr.bf16.mxu0 %v22831_v21  ;;  %v22915_v2 = vld [vmem:[%s28241_s8 + $0xb44] ss:$16 sps:$4 sm:$0xff]   ;;  %v22913_v21 = vld [vmem:[%s28241_s8 + $0xb40] ss:$16 sps:$4 sm:$0xff]  }
 0xa70   : > { %14408 = vmatprep.subr.bf16.mxu1 %v22834_v51  ;;  %v22916_v51 = vld [vmem:[%s28241_s8 + $0xb48] ss:$16 sps:$4 sm:$0xff]  }
 0xa72   : > { %14245 = vmatpush1.bf16.msra.mxu0 %v22829_v52  ;;  %v22924_v52 = vld [vmem:[%s28241_s8 + $0xb6c] ss:$16 sps:$4 sm:$0xff]  }
 0xa73   : > { %14409 = vmatpush1.bf16.msra.mxu1 %v22832_v63  ;;  %14246 = vmatprep.subr.bf16.mxu0 %v22837_v20  ;;  %v22919_v63 = vld [vmem:[%s28241_s8 + $0xb60] ss:$16 sps:$4 sm:$0xff]   ;;  %v22922_v20 = vld [vmem:[%s28241_s8 + $0xb68] ss:$16 sps:$4 sm:$0xff]  }
 0xa74   : > { %14410 = vmatprep.subr.bf16.mxu1 %v22840_v16  ;;  %v22927_v16 = vld [vmem:[%s28241_s8 + $0xb84] ss:$16 sps:$4 sm:$0xff]  }
 0xa76   : > { %14247 = vmatpush1.bf16.msra.mxu0 %v22835_v48  ;;  %v22930_v48 = vld [vmem:[%s28241_s8 + $0xb8c] ss:$16 sps:$4 sm:$0xff]  }
 0xa77   : > { %14411 = vmatpush1.bf16.msra.mxu1 %v22838_v17  ;;  %14248 = vmatprep.subr.bf16.mxu0 %v22843_v8  ;;  %v22925_v17 = vld [vmem:[%s28241_s8 + $0xb80] ss:$16 sps:$4 sm:$0xff]   ;;  %v22928_v8 = vld [vmem:[%s28241_s8 + $0xb88] ss:$16 sps:$4 sm:$0xff]  }
 0xa78   : > { %14412 = vmatprep.subr.bf16.mxu1 %v22846_v19  ;;  %v22933_v19 = vld [vmem:[%s28241_s8 + $0xba4] ss:$16 sps:$4 sm:$0xff]  }
 0xa7a   : > { %14249 = vmatpush1.bf16.msra.mxu0 %v22841_v45  ;;  %v22936_v45 = vld [vmem:[%s28241_s8 + $0xbac] ss:$16 sps:$4 sm:$0xff]  }
 0xa7b   : > { %14413 = vmatpush1.bf16.msra.mxu1 %v22844_v23  ;;  %14250 = vmatprep.subr.bf16.mxu0 %v22849_v7  ;;  %v22931_v23 = vld [vmem:[%s28241_s8 + $0xba0] ss:$16 sps:$4 sm:$0xff]   ;;  %v22934_v7 = vld [vmem:[%s28241_s8 + $0xba8] ss:$16 sps:$4 sm:$0xff]  }
 0xa7c   : > { %14414 = vmatprep.subr.bf16.mxu1 %v22852_v61  ;;  %v22939_v61 = vld [vmem:[%s28241_s8 + $0xbc4] ss:$16 sps:$4 sm:$0xff]  }
 0xa7e   : > { %14251 = vmatpush1.bf16.msra.mxu0 %v22847_v14  ;;  %v22942_v14 = vld [vmem:[%s28241_s8 + $0xbcc] ss:$16 sps:$4 sm:$0xff]  }
 0xa7f   : > { %14415 = vmatpush1.bf16.msra.mxu1 %v22850_v25  ;;  %14252 = vmatprep.subr.bf16.mxu0 %v22855_v12  ;;  %v22937_v25 = vld [vmem:[%s28241_s8 + $0xbc0] ss:$16 sps:$4 sm:$0xff]   ;;  %v22940_v12 = vld [vmem:[%s28241_s8 + $0xbc8] ss:$16 sps:$4 sm:$0xff]  }
 0xa80   : > { %14416 = vmatprep.subr.bf16.mxu1 %v22858_v28  ;;  %v22945_v28 = vld [vmem:[%s28241_s8 + $0xbe4] ss:$16 sps:$4 sm:$0xff]  }
 0xa82   : > { %14253 = vmatpush1.bf16.msra.mxu0 %v22853_v11  ;;  %v22948_v11 = vld [vmem:[%s28241_s8 + $0xbec] ss:$16 sps:$4 sm:$0xff]  }
 0xa83   : > { %14417 = vmatpush1.bf16.msra.mxu1 %v22856_v59  ;;  %14254 = vmatprep.subr.bf16.mxu0 %v22861_v32  ;;  %v22943_v59 = vld [vmem:[%s28241_s8 + $0xbe0] ss:$16 sps:$4 sm:$0xff]   ;;  %v22946_v32 = vld [vmem:[%s28241_s8 + $0xbe8] ss:$16 sps:$4 sm:$0xff]  }
 0xa84   : > { %14418 = vmatprep.subr.bf16.mxu1 %v22864_v36  ;;  %v22951_v36 = vld [vmem:[%s28241_s8 + $0xc04] ss:$16 sps:$4 sm:$0xff]  }
 0xa86   : > { %14255 = vmatpush1.bf16.msra.mxu0 %v22859_v38  ;;  %v22954_v38 = vld [vmem:[%s28241_s8 + $0xc0c] ss:$16 sps:$4 sm:$0xff]  }
 0xa87   : > { %14419 = vmatpush1.bf16.msra.mxu1 %v22862_v9  ;;  %14256 = vmatprep.subr.bf16.mxu0 %v22867_v15  ;;  %v22949_v9 = vld [vmem:[%s28241_s8 + $0xc00] ss:$16 sps:$4 sm:$0xff]   ;;  %v22952_v15 = vld [vmem:[%s28241_s8 + $0xc08] ss:$16 sps:$4 sm:$0xff]  }
 0xa88   : > { %14420 = vmatprep.subr.bf16.mxu1 %v22870_v27  ;;  %v22957_v27 = vld [vmem:[%s28241_s8 + $0xc24] ss:$16 sps:$4 sm:$0xff]  }
 0xa8a   : > { %14257 = vmatpush1.bf16.msra.mxu0 %v22865_v60  ;;  %v22960_v60 = vld [vmem:[%s28241_s8 + $0xc2c] ss:$16 sps:$4 sm:$0xff]  }
 0xa8b   : > { %14421 = vmatpush1.bf16.msra.mxu1 %v22868_v18  ;;  %14258 = vmatprep.subr.bf16.mxu0 %v22873_v4  ;;  %v22955_v18 = vld [vmem:[%s28241_s8 + $0xc20] ss:$16 sps:$4 sm:$0xff]   ;;  %v22958_v4 = vld [vmem:[%s28241_s8 + $0xc28] ss:$16 sps:$4 sm:$0xff]  }
 0xa8c   : > { %14422 = vmatprep.subr.bf16.mxu1 %v22876_v24  ;;  %v22963_v24 = vld [vmem:[%s28241_s8 + $0xc44] ss:$16 sps:$4 sm:$0xff]  }
 0xa8e   : > { %14259 = vmatpush1.bf16.msra.mxu0 %v22871_v41  ;;  %v22966_v41 = vld [vmem:[%s28241_s8 + $0xc4c] ss:$16 sps:$4 sm:$0xff]  }
 0xa8f   : > { %14423 = vmatpush1.bf16.msra.mxu1 %v22874_v29  ;;  %14260 = vmatprep.subr.bf16.mxu0 %v22879_v30  ;;  %v22961_v29 = vld [vmem:[%s28241_s8 + $0xc40] ss:$16 sps:$4 sm:$0xff]   ;;  %v22964_v30 = vld [vmem:[%s28241_s8 + $0xc48] ss:$16 sps:$4 sm:$0xff]  }
 0xa90   : > { %14424 = vmatprep.subr.bf16.mxu1 %v22882_v39  ;;  %v22969_v39 = vld [vmem:[%s28241_s8 + $0xc64] ss:$16 sps:$4 sm:$0xff]  }
 0xa92   : > { %14261 = vmatpush1.bf16.msra.mxu0 %v22877_v31  ;;  %v22972_v31 = vld [vmem:[%s28241_s8 + $0xc6c] ss:$16 sps:$4 sm:$0xff]  }
 0xa93   : > { %14425 = vmatpush1.bf16.msra.mxu1 %v22880_v5  ;;  %14262 = vmatprep.subr.bf16.mxu0 %v22885_v42  ;;  %v22967_v5 = vld [vmem:[%s28241_s8 + $0xc60] ss:$16 sps:$4 sm:$0xff]   ;;  %v22970_v42 = vld [vmem:[%s28241_s8 + $0xc68] ss:$16 sps:$4 sm:$0xff]  }
 0xa94   : > { %14426 = vmatprep.subr.bf16.mxu1 %v22888_v40  ;;  %v22975_v40 = vld [vmem:[%s28241_s8 + $0xc84] ss:$16 sps:$4 sm:$0xff]  }
 0xa96   : > { %14263 = vmatpush1.bf16.msra.mxu0 %v22883_v6  ;;  %v22978_v6 = vld [vmem:[%s28241_s8 + $0xc8c] ss:$16 sps:$4 sm:$0xff]  }
 0xa97   : > { %14427 = vmatpush1.bf16.msra.mxu1 %v22886_v43  ;;  %14264 = vmatprep.subr.bf16.mxu0 %v22891_v46  ;;  %v22973_v43 = vld [vmem:[%s28241_s8 + $0xc80] ss:$16 sps:$4 sm:$0xff]   ;;  %v22976_v46 = vld [vmem:[%s28241_s8 + $0xc88] ss:$16 sps:$4 sm:$0xff]  }
 0xa98   : > { %14428 = vmatprep.subr.bf16.mxu1 %v22894_v50  ;;  %v22981_v50 = vld [vmem:[%s28241_s8 + $0xca4] ss:$16 sps:$4 sm:$0xff]  }
 0xa9a   : > { %14265 = vmatpush1.bf16.msra.mxu0 %v22889_v47  ;;  %v22984_v47 = vld [vmem:[%s28241_s8 + $0xcac] ss:$16 sps:$4 sm:$0xff]  }
 0xa9b   : > { %14429 = vmatpush1.bf16.msra.mxu1 %v22892_v62  ;;  %14266 = vmatprep.subr.bf16.mxu0 %v22897_v44  ;;  %v22979_v62 = vld [vmem:[%s28241_s8 + $0xca0] ss:$16 sps:$4 sm:$0xff]   ;;  %v22982_v44 = vld [vmem:[%s28241_s8 + $0xca8] ss:$16 sps:$4 sm:$0xff]  }
 0xa9c   : > { %14430 = vmatprep.subr.bf16.mxu1 %v22900_v49  ;;  %v22987_v49 = vld [vmem:[%s28241_s8 + $0xcc4] ss:$16 sps:$4 sm:$0xff]  }
 0xa9e   : > { %14267 = vmatpush1.bf16.msra.mxu0 %v22895_v53  ;;  %v22990_v53 = vld [vmem:[%s28241_s8 + $0xccc] ss:$16 sps:$4 sm:$0xff]  }
 0xa9f   : > { %14431 = vmatpush1.bf16.msra.mxu1 %v22898_v13  ;;  %14277 = vmatprep.subr.bf16.mxu0 %v22903_v55  ;;  %v22985_v13 = vld [vmem:[%s28241_s8 + $0xcc0] ss:$16 sps:$4 sm:$0xff]   ;;  %v22988_v55 = vld [vmem:[%s28241_s8 + $0xcc8] ss:$16 sps:$4 sm:$0xff]  }
 0xaa0   : > { %14441 = vmatprep.subr.bf16.mxu1 %v22906_v57  ;;  %v22993_v57 = vld [vmem:[%s28241_s8 + $0xce4] ss:$16 sps:$4 sm:$0xff]  }
 0xaa1   : > { %14269 = vmatmul.mubr.bf16.vlgmr.msra.gmra.mrb[100].mxu0 %v26420_v33 }
 0xaa2   : > { %14433 = vmatmul.mubr.bf16.vlgmr.msra.gmra.mrb[56].mxu1 %v26420_v33  ;;  %14278 = vmatpush1.bf16.msra.mxu0 %v22901_v3  ;;  %v22918_v33 = vld [vmem:[%s28241_s8 + $0xb4c] ss:$16 sps:$4 sm:$0xff]  }
 0xaa3   : > { %14309 = vmatprep.mubr.bf16.mxu0 %v26427_v56  ;;  %14442 = vmatpush1.bf16.msra.mxu1 %v22904_v58  ;;  %v22996_v3 = vld [vmem:[%s28241_s8 + $0xcec] ss:$16 sps:$4 sm:$0xff]   ;;  %v22991_v58 = vld [vmem:[%s28241_s8 + $0xce0] ss:$16 sps:$4 sm:$0xff]  }
 0xaa4   : > { %14473 = vmatprep.mubr.bf16.mxu1 %v26427_v56  ;;  %14279 = vmatprep.subr.bf16.mxu0 %v22909_v26  ;;  %v22921_v56 = vld [vmem:[%s28241_s8 + $0xb64] ss:$16 sps:$4 sm:$0xff]   ;;  %v22994_v26 = vld [vmem:[%s28241_s8 + $0xce8] ss:$16 sps:$4 sm:$0xff]  }
 0xaa5   : > { %14443 = vmatprep.subr.bf16.mxu1 %v22912_v37  ;;  %v22999_v37 = vld [vmem:[%s28241_s8 + $0xd04] ss:$16 sps:$4 sm:$0xff]  }
 0xaa6   : > { %14280 = vmatpush1.bf16.msra.mxu0 %v22907_v54  ;;  %v23002_v54 = vld [vmem:[%s28241_s8 + $0xd0c] ss:$16 sps:$4 sm:$0xff]  }
 0xaa7   : > { %14444 = vmatpush1.bf16.msra.mxu1 %v22910_v1  ;;  %14281 = vmatprep.subr.bf16.mxu0 %v22915_v2  ;;  %v22997_v1 = vld [vmem:[%s28241_s8 + $0xd00] ss:$16 sps:$4 sm:$0xff]   ;;  %v23000_v2 = vld [vmem:[%s28241_s8 + $0xd08] ss:$16 sps:$4 sm:$0xff]  }
 0xaa8   : > { %14445 = vmatprep.subr.bf16.mxu1 %v22918_v33  ;;  %v23005_v33 = vld [vmem:[%s28241_s8 + $0xd24] ss:$16 sps:$4 sm:$0xff]  }
 0xaaa   : > { %14282 = vmatpush1.bf16.msra.mxu0 %v22913_v21  ;;  %v23008_v21 = vld [vmem:[%s28241_s8 + $0xd2c] ss:$16 sps:$4 sm:$0xff]  }
 0xaab   : > { %14446 = vmatpush1.bf16.msra.mxu1 %v22916_v51  ;;  %14283 = vmatprep.subr.bf16.mxu0 %v22921_v56  ;;  %v23003_v51 = vld [vmem:[%s28241_s8 + $0xd20] ss:$16 sps:$4 sm:$0xff]   ;;  %v23006_v56 = vld [vmem:[%s28241_s8 + $0xd28] ss:$16 sps:$4 sm:$0xff]  }
 0xaac   : > { %14447 = vmatprep.subr.bf16.mxu1 %v22924_v52  ;;  %v23011_v52 = vld [vmem:[%s28241_s8 + $0xd44] ss:$16 sps:$4 sm:$0xff]  }
 0xaae   : > { %14284 = vmatpush1.bf16.msra.mxu0 %v22919_v63  ;;  %v23009_v63 = vld [vmem:[%s28241_s8 + $0xd40] ss:$16 sps:$4 sm:$0xff]  }
 0xaaf   : > { %14448 = vmatpush1.bf16.msra.mxu1 %v22922_v20  ;;  %14285 = vmatprep.subr.bf16.mxu0 %v22927_v16  ;;  %v23012_v20 = vld [vmem:[%s28241_s8 + $0xd48] ss:$16 sps:$4 sm:$0xff]   ;;  %v23017_v16 = vld [vmem:[%s28241_s8 + $0xd64] ss:$16 sps:$4 sm:$0xff]  }
 0xab0   : > { %14449 = vmatprep.subr.bf16.mxu1 %v22930_v48  ;;  %v23020_v48 = vld [vmem:[%s28241_s8 + $0xd6c] ss:$16 sps:$4 sm:$0xff]  }
 0xab2   : > { %14286 = vmatpush1.bf16.msra.mxu0 %v22925_v17  ;;  %v23015_v17 = vld [vmem:[%s28241_s8 + $0xd60] ss:$16 sps:$4 sm:$0xff]  }
 0xab3   : > { %14450 = vmatpush1.bf16.msra.mxu1 %v22928_v8  ;;  %14287 = vmatprep.subr.bf16.mxu0 %v22933_v19  ;;  %v23018_v8 = vld [vmem:[%s28241_s8 + $0xd68] ss:$16 sps:$4 sm:$0xff]   ;;  %v23023_v19 = vld [vmem:[%s28241_s8 + $0xd84] ss:$16 sps:$4 sm:$0xff]  }
 0xab4   : > { %14451 = vmatprep.subr.bf16.mxu1 %v22936_v45  ;;  %v23026_v45 = vld [vmem:[%s28241_s8 + $0xd8c] ss:$16 sps:$4 sm:$0xff]  }
 0xab6   : > { %14288 = vmatpush1.bf16.msra.mxu0 %v22931_v23  ;;  %v23021_v23 = vld [vmem:[%s28241_s8 + $0xd80] ss:$16 sps:$4 sm:$0xff]  }
 0xab7   : > { %14452 = vmatpush1.bf16.msra.mxu1 %v22934_v7  ;;  %14289 = vmatprep.subr.bf16.mxu0 %v22939_v61  ;;  %v23024_v7 = vld [vmem:[%s28241_s8 + $0xd88] ss:$16 sps:$4 sm:$0xff]   ;;  %v23029_v61 = vld [vmem:[%s28241_s8 + $0xda4] ss:$16 sps:$4 sm:$0xff]  }
 0xab8   : > { %14453 = vmatprep.subr.bf16.mxu1 %v22942_v14  ;;  %v23032_v14 = vld [vmem:[%s28241_s8 + $0xdac] ss:$16 sps:$4 sm:$0xff]  }
 0xaba   : > { %14290 = vmatpush1.bf16.msra.mxu0 %v22937_v25  ;;  %v23027_v25 = vld [vmem:[%s28241_s8 + $0xda0] ss:$16 sps:$4 sm:$0xff]  }
 0xabb   : > { %14454 = vmatpush1.bf16.msra.mxu1 %v22940_v12  ;;  %14291 = vmatprep.subr.bf16.mxu0 %v22945_v28  ;;  %v23030_v12 = vld [vmem:[%s28241_s8 + $0xda8] ss:$16 sps:$4 sm:$0xff]   ;;  %v23035_v28 = vld [vmem:[%s28241_s8 + $0xdc4] ss:$16 sps:$4 sm:$0xff]  }
 0xabc   : > { %14455 = vmatprep.subr.bf16.mxu1 %v22948_v11 }
 0xabe   : > { %14292 = vmatpush1.bf16.msra.mxu0 %v22943_v59  ;;  %v23038_v59 = vld [vmem:[%s28241_s8 + $0xdcc] ss:$16 sps:$4 sm:$0xff]  }
 0xabf   : > { %14456 = vmatpush1.bf16.msra.mxu1 %v22946_v32  ;;  %14293 = vmatprep.subr.bf16.mxu0 %v22951_v36 }
 0xac0   : > { %14457 = vmatprep.subr.bf16.mxu1 %v22954_v38 }
 0xac2   : > { %14294 = vmatpush1.bf16.msra.mxu0 %v22949_v9 }
 0xac3   : > { %14458 = vmatpush1.bf16.msra.mxu1 %v22952_v15  ;;  %14295 = vmatprep.subr.bf16.mxu0 %v22957_v27  ;;  %v23033_v15 = vld [vmem:[%s28241_s8 + $0xdc0] ss:$16 sps:$4 sm:$0xff]  }
 0xac4   : > { %14459 = vmatprep.subr.bf16.mxu1 %v22960_v60 }
 0xac6   : > { %14296 = vmatpush1.bf16.msra.mxu0 %v22955_v18  ;;  %v23036_v18 = vld [vmem:[%s28241_s8 + $0xdc8] ss:$16 sps:$4 sm:$0xff]  }
 0xac7   : > { %14460 = vmatpush1.bf16.msra.mxu1 %v22958_v4  ;;  %14297 = vmatprep.subr.bf16.mxu0 %v22963_v24  ;;  %v23041_v4 = vld [vmem:[%s28241_s8 + $0xde4] ss:$16 sps:$4 sm:$0xff]  }
 0xac8   : > { %14461 = vmatprep.subr.bf16.mxu1 %v22966_v41  ;;  %v23044_v41 = vld [vmem:[%s28241_s8 + $0xdec] ss:$16 sps:$4 sm:$0xff]  }
 0xaca   : > { %14298 = vmatpush1.bf16.msra.mxu0 %v22961_v29  ;;  %v23039_v29 = vld [vmem:[%s28241_s8 + $0xde0] ss:$16 sps:$4 sm:$0xff]  }
 0xacb   : > { %14462 = vmatpush1.bf16.msra.mxu1 %v22964_v30  ;;  %14299 = vmatprep.subr.bf16.mxu0 %v22969_v39  ;;  %v23042_v30 = vld [vmem:[%s28241_s8 + $0xde8] ss:$16 sps:$4 sm:$0xff]   ;;  %v23045_v39 = vld [vmem:[%s28242_s9 + $0x40] sm:$0xff]  }
 0xacc   : > { %14463 = vmatprep.subr.bf16.mxu1 %v22972_v31  ;;  %v23047_v31 = vld [vmem:[%s28242_s9 + $0x200] sm:$0xff]  }
 0xace   : > { %14300 = vmatpush1.bf16.msra.mxu0 %v22967_v5  ;;  %v23046_v5 = vld [vmem:[%s28242_s9] sm:$0xff]  }
 0xacf   : > { %14464 = vmatpush1.bf16.msra.mxu1 %v22970_v42  ;;  %14301 = vmatprep.subr.bf16.mxu0 %v22975_v40  ;;  %v23048_v42 = vld [vmem:[%s28242_s9 + $0x1c0] sm:$0xff]   ;;  %v23049_v40 = vld [vmem:[%s28242_s9 + $0x48] sm:$0xff]  }
 0xad0   : > { %14465 = vmatprep.subr.bf16.mxu1 %v22978_v6  ;;  %v23051_v6 = vld [vmem:[%s28242_s9 + $0x208] sm:$0xff]  }
 0xad2   : > { %14302 = vmatpush1.bf16.msra.mxu0 %v22973_v43  ;;  %v23050_v43 = vld [vmem:[%s28242_s9 + $0x8] sm:$0xff]  }
 0xad3   : > { %14466 = vmatpush1.bf16.msra.mxu1 %v22976_v46  ;;  %14303 = vmatprep.subr.bf16.mxu0 %v22981_v50  ;;  %v23052_v46 = vld [vmem:[%s28242_s9 + $0x1c8] sm:$0xff]   ;;  %v23053_v50 = vld [vmem:[%s28242_s9 + $0x50] sm:$0xff]  }
 0xad4   : > { %14467 = vmatprep.subr.bf16.mxu1 %v22984_v47  ;;  %v23054_v47 = vld [vmem:[%s28242_s9 + $0x10] sm:$0xff]  }
 0xad6   : > { %14304 = vmatpush1.bf16.msra.mxu0 %v22979_v62  ;;  %v23056_v62 = vld [vmem:[%s28242_s9 + $0x1d0] sm:$0xff]  }
 0xad7   : > { %14468 = vmatpush1.bf16.msra.mxu1 %v22982_v44  ;;  %14305 = vmatprep.subr.bf16.mxu0 %v22987_v49  ;;  %v23057_v44 = vld [vmem:[%s28242_s9 + $0x58] sm:$0xff]  }
 0xad8   : > { %14469 = vmatprep.subr.bf16.mxu1 %v22990_v53  ;;  %v23059_v49 = vld [vmem:[%s28242_s9 + $0x218] sm:$0xff]  }
 0xad9   : > { %v23058_v53 = vld [vmem:[%s28242_s9 + $0x18] sm:$0xff]  }
 0xada   : > { %14306 = vmatpush1.bf16.msra.mxu0 %v22985_v13  ;;  %v23060_v13 = vld [vmem:[%s28242_s9 + $0x1d8] sm:$0xff]  }
 0xadb   : > { %14470 = vmatpush1.bf16.msra.mxu1 %v22988_v55  ;;  %14307 = vmatprep.subr.bf16.mxu0 %v22993_v57  ;;  %v23061_v55 = vld [vmem:[%s28242_s9 + $0x60] sm:$0xff]  }
 0xadc   : > { %14471 = vmatprep.subr.bf16.mxu1 %v22996_v3  ;;  %v23063_v57 = vld [vmem:[%s28242_s9 + $0x220] sm:$0xff]  }
 0xadd   : > { %v23062_v3 = vld [vmem:[%s28242_s9 + $0x20] sm:$0xff]  }
 0xade   : > { %14308 = vmatpush1.bf16.msra.mxu0 %v22991_v58  ;;  %v23064_v58 = vld [vmem:[%s28242_s9 + $0x1e0] sm:$0xff]  }
 0xadf   : > { %14472 = vmatpush1.bf16.msra.mxu1 %v22994_v26  ;;  %14318 = vmatprep.subr.bf16.mxu0 %v22999_v37  ;;  %v23065_v26 = vld [vmem:[%s28242_s9 + $0x68] sm:$0xff]  }
 0xae0   : > { %14482 = vmatprep.subr.bf16.mxu1 %v23002_v54  ;;  %v23067_v37 = vld [vmem:[%s28242_s9 + $0x228] sm:$0xff]  }
 0xae1   : > { %14310 = vmatmul.mubr.bf16.vlgmr.msra.gmra.mrb[100].mxu0 %v26624_v22  ;;  %v23066_v54 = vld [vmem:[%s28242_s9 + $0x28] sm:$0xff]  }
 0xae2   : > { %14474 = vmatmul.mubr.bf16.vlgmr.msra.gmra.mrb[56].mxu1 %v26624_v22  ;;  %14319 = vmatpush1.bf16.msra.mxu0 %v22997_v1  ;;  %v23014_v22 = vld [vmem:[%s28241_s8 + $0xd4c] ss:$16 sps:$4 sm:$0xff]  }
 0xae3   : > { %14483 = vmatpush1.bf16.msra.mxu1 %v23000_v2  ;;  %14320 = vmatprep.subr.bf16.mxu0 %v23005_v33  ;;  %v23068_v1 = vld [vmem:[%s28242_s9 + $0x1e8] sm:$0xff]   ;;  %v23069_v2 = vld [vmem:[%s28242_s9 + $0x70] sm:$0xff]  }
 0xae4   : > { %14484 = vmatprep.subr.bf16.mxu1 %v23008_v21  ;;  %14350 = vmatprep.mubr.bf16.mxu0 %v23331_v0  ;;  %v23070_v33 = vld [vmem:[%s28242_s9 + $0x30] sm:$0xff]  }
 0xae5   : > { %14514 = vmatprep.mubr.bf16.mxu1 %v23331_v0  ;;  %v23071_v21 = vld [vmem:[%s28242_s9 + $0x230] sm:$0xff]  }
 0xae6   : > { %14321 = vmatpush1.bf16.msra.mxu0 %v23003_v51  ;;  %v23072_v51 = vld [vmem:[%s28242_s9 + $0x1f0] sm:$0xff]  }
 0xae7   : > { %14485 = vmatpush1.bf16.msra.mxu1 %v23006_v56  ;;  %14322 = vmatprep.subr.bf16.mxu0 %v23011_v52  ;;  %v23073_v56 = vld [vmem:[%s28242_s9 + $0x78] sm:$0xff]  }
 0xae8   : > { %14486 = vmatprep.subr.bf16.mxu1 %v23014_v22  ;;  %v23074_v52 = vld [vmem:[%s28242_s9 + $0x38] sm:$0xff]  }
 0xae9   : > { %v23075_v22 = vld [vmem:[%s28242_s9 + $0x238] sm:$0xff]  }
 0xaea   : > { %14323 = vmatpush1.bf16.msra.mxu0 %v23009_v63  ;;  %v23076_v63 = vld [vmem:[%s28242_s9 + $0x1f8] sm:$0xff]  }
 0xaeb   : > { %14487 = vmatpush1.bf16.msra.mxu1 %v23012_v20  ;;  %14324 = vmatprep.subr.bf16.mxu0 %v23017_v16  ;;  %v23078_v20 = vld [vmem:[%s28242_s9 + $0x2e0] sm:$0xff]  }
 0xaec   : > { %14488 = vmatprep.subr.bf16.mxu1 %v23020_v48 }
 0xaee   : > { %14325 = vmatpush1.bf16.msra.mxu0 %v23015_v17 }
 0xaef   : > { %14489 = vmatpush1.bf16.msra.mxu1 %v23018_v8  ;;  %14326 = vmatprep.subr.bf16.mxu0 %v23023_v19 }
 0xaf0   : > { %14490 = vmatprep.subr.bf16.mxu1 %v23026_v45 }
 0xaf2   : > { %14327 = vmatpush1.bf16.msra.mxu0 %v23021_v23 }
 0xaf3   : > { %14491 = vmatpush1.bf16.msra.mxu1 %v23024_v7  ;;  %14328 = vmatprep.subr.bf16.mxu0 %v23029_v61 }
 0xaf4   : > { %v27388_v11 = vpop.f32.mrb[96].mxu0  ;;  %14492 = vmatprep.subr.bf16.mxu1 %v23032_v14 }
 0xaf5   : > { %v27393_v32 = vpop.f32.mrb[52].mxu1  ;;  %v27395_v36 = vpop.f32.mrb[97].mxu0 }
 0xaf6   : > { %v27397_v38 = vpop.f32.mrb[53].mxu1  ;;  %v12683_v9 = vpop.f32.mrb[98].mxu0  ;;  %14329 = vmatpush1.bf16.msra.mxu0 %v23027_v25 }
 0xaf7   : > { %v12847_v27 = vpop.f32.mrb[54].mxu1  ;;  %14493 = vmatpush1.bf16.msra.mxu1 %v23030_v12  ;;  %v12684_v60 = vpop.f32.mrb[99].mxu0  ;;  %14330 = vmatprep.subr.bf16.mxu0 %v23035_v28  ;;  %v23079_v9 = vld [vmem:[%s28242_s9 + $0x2a0] sm:$0xff]  }
 0xaf8   : > { %v12848_v24 = vpop.f32.mrb[55].mxu1  ;;  %14494 = vmatprep.subr.bf16.mxu1 %v23038_v59  ;;  %v23080_v60 = vld [vmem:[%s28242_s9 + $0x88] sm:$0xff]  }
 0xaf9   : > { %v23083_v24 = vld [vmem:[%s28242_s9 + $0x90] sm:$0xff]  }
 0xafa   : > { %14331 = vmatpush1.bf16.msra.mxu0 %v23033_v15 }
 0xafb   : > { %14495 = vmatpush1.bf16.msra.mxu1 %v23036_v18  ;;  %14332 = vmatprep.subr.bf16.mxu0 %v23041_v4  ;;  %v23081_v18 = vld [vmem:[%s28242_s9 + $0x2e8] sm:$0xff]  }
 0xafc   : > { %14496 = vmatprep.subr.bf16.mxu1 %v23044_v41  ;;  %v23082_v4 = vld [vmem:[%s28242_s9 + $0x2a8] sm:$0xff]   ;;  %v23084_v41 = vld [vmem:[%s28242_s9 + $0x2f0] sm:$0xff]  }
 0xafe   : > { %14333 = vmatpush1.bf16.msra.mxu0 %v23039_v29  ;;  %v23085_v29 = vld [vmem:[%s28242_s9 + $0x2b0] sm:$0xff]  }
 0xaff   : > { %14497 = vmatpush1.bf16.msra.mxu1 %v23042_v30  ;;  %20144 = vmatprep.subr.bf16.mxu0 %v23045_v39  ;;  %v23086_v30 = vld [vmem:[%s28242_s9 + $0x98] sm:$0xff]  }
 0xb00   : > { %20188 = vmatprep.subr.bf16.mxu1 %v23047_v31  ;;  %v23087_v39 = vld [vmem:[%s28242_s9 + $0x2f8] sm:$0xff]  }
 0xb01   : > { %14351 = vmatmul.mubr.bf16.vlgmr.msra.gmra.mrb[100].mxu0 %v26728_v34  ;;  %v23088_v31 = vld [vmem:[%s28242_s9 + $0x2b8] sm:$0xff]  }
 0xb02   : > { %14515 = vmatmul.mubr.bf16.vlgmr.msra.gmra.mrb[56].mxu1 %v26728_v34  ;;  %20145 = vmatpush3.bf16.msra.mxu0 %v23046_v5  ;;  %v23055_v34 = vld [vmem:[%s28242_s9 + $0x210] sm:$0xff]   ;;  %v23089_v5 = vld [vmem:[%s28242_s9 + $0xa0] sm:$0xff]  }
 0xb03   : > { %20189 = vmatpush3.bf16.msra.mxu1 %v23048_v42  ;;  %20146 = vmatprep.subr.bf16.mxu0 %v23049_v40  ;;  %v23090_v42 = vld [vmem:[%s28242_s9 + $0x300] sm:$0xff]  }
 0xb04   : > { %20190 = vmatprep.subr.bf16.mxu1 %v23051_v6  ;;  %v23091_v40 = vld [vmem:[%s28242_s9 + $0x2c0] sm:$0xff]   ;;  %v23092_v6 = vld [vmem:[%s28242_s9 + $0xa8] sm:$0xff]  }
 0xb06   : > { %20147 = vmatpush3.bf16.msra.mxu0 %v23050_v43  ;;  %v23093_v43 = vld [vmem:[%s28242_s9 + $0x308] sm:$0xff]  }
 0xb07   : > { %20191 = vmatpush3.bf16.msra.mxu1 %v23052_v46  ;;  %20148 = vmatprep.subr.bf16.mxu0 %v23053_v50  ;;  %v23094_v46 = vld [vmem:[%s28242_s9 + $0x2c8] sm:$0xff]   ;;  %v23095_v50 = vld [vmem:[%s28242_s9 + $0xb0] sm:$0xff]  }
 0xb08   : > { %20192 = vmatprep.subr.bf16.mxu1 %v23055_v34  ;;  %v23096_v34 = vld [vmem:[%s28242_s9 + $0x310] sm:$0xff]  }
 0xb0a   : > { %20149 = vmatpush3.bf16.msra.mxu0 %v23054_v47  ;;  %v23097_v47 = vld [vmem:[%s28242_s9 + $0x2d0] sm:$0xff]  }
 0xb0b   : > { %20193 = vmatpush3.bf16.msra.mxu1 %v23056_v62  ;;  %20150 = vmatprep.subr.bf16.mxu0 %v23057_v44  ;;  %v23098_v62 = vld [vmem:[%s28242_s9 + $0xb8] sm:$0xff]  }
 0xb0c   : > { %20194 = vmatprep.subr.bf16.mxu1 %v23059_v49  ;;  %v23099_v44 = vld [vmem:[%s28242_s9 + $0x318] sm:$0xff]  }
 0xb0d   : > { %v23100_v49 = vld [vmem:[%s28242_s9 + $0x2d8] sm:$0xff]  }
 0xb0e   : > { %20151 = vmatpush3.bf16.msra.mxu0 %v23058_v53  ;;  %v23101_v53 = vld [vmem:[%s28242_s9 + $0xc0] sm:$0xff]  }
 0xb0f   : > { %20195 = vmatpush3.bf16.msra.mxu1 %v23060_v13  ;;  %20152 = vmatprep.subr.bf16.mxu0 %v23061_v55  ;;  %v23102_v55 = vld [vmem:[%s28242_s9 + $0x3c0] sm:$0xff]  }
 0xb10   : > { %20196 = vmatprep.subr.bf16.mxu1 %v23063_v57  ;;  %v23103_v57 = vld [vmem:[%s28242_s9 + $0x380] sm:$0xff]  }
 0xb12   : > { %20153 = vmatpush3.bf16.msra.mxu0 %v23062_v3 }
 0xb13   : > { %20197 = vmatpush3.bf16.msra.mxu1 %v23064_v58  ;;  %20154 = vmatprep.subr.bf16.mxu0 %v23065_v26  ;;  %v23104_v58 = vld [vmem:[%s28242_s9 + $0xc8] sm:$0xff]  }
 0xb14   : > { %20198 = vmatprep.subr.bf16.mxu1 %v23067_v37  ;;  %v23105_v26 = vld [vmem:[%s28242_s9 + $0x3c8] sm:$0xff]  }
 0xb16   : > { %20155 = vmatpush3.bf16.msra.mxu0 %v23066_v54  ;;  %v23106_v54 = vld [vmem:[%s28242_s9 + $0x388] sm:$0xff]  }
 0xb17   : > { %20199 = vmatpush3.bf16.msra.mxu1 %v23068_v1  ;;  %20156 = vmatprep.subr.bf16.mxu0 %v23069_v2  ;;  %v23107_v1 = vld [vmem:[%s28242_s9 + $0xd0] sm:$0xff]  }
 0xb18   : > { %20200 = vmatprep.subr.bf16.mxu1 %v23071_v21  ;;  %v23108_v2 = vld [vmem:[%s28242_s9 + $0x3d0] sm:$0xff]   ;;  %v23110_v21 = vld [vmem:[%s28242_s9 + $0xd8] sm:$0xff]  }
 0xb1a   : > { %20157 = vmatpush3.bf16.msra.mxu0 %v23070_v33  ;;  %v23109_v33 = vld [vmem:[%s28242_s9 + $0x390] sm:$0xff]  }
 0xb1b   : > { %20201 = vmatpush3.bf16.msra.mxu1 %v23072_v51  ;;  %20158 = vmatprep.subr.bf16.mxu0 %v23073_v56  ;;  %v23111_v51 = vld [vmem:[%s28242_s9 + $0x3d8] sm:$0xff]   ;;  %v23113_v56 = vld [vmem:[%s28242_s9 + $0x120] sm:$0xff]  }
 0xb1c   : > { %20202 = vmatprep.subr.bf16.mxu1 %v23075_v22  ;;  %v23114_v22 = vld [vmem:[%s28242_s9 + $0xe0] sm:$0xff]  }
 0xb1e   : > { %20159 = vmatpush3.bf16.msra.mxu0 %v23074_v52  ;;  %v23112_v52 = vld [vmem:[%s28242_s9 + $0x398] sm:$0xff]  }
 0xb1f   : > { %14800 = vmatprep.subr.bf16.mxu0 %v23331_v0  ;;  %20203 = vmatpush3.bf16.msra.mxu1 %v23076_v63 }
 0xb20   : > { %20210 = vmatprep.subr.bf16.mxu1 %v23078_v20  ;;  %v23115_v20 = vld [vmem:[%s28242_s9 + $0x3e0] sm:$0xff]  }
 0xbd4   : > { %v14352_v16 = vpop.f32.mrb[100].mxu0 }
 0xbd5   : > { %v14523_v48 = vmax.f32 %v27388_v11, %v14352_v16  ;;  %v14516_v17 = vpop.f32.mrb[56].mxu1  ;;  %v14354_v8 = vpop.f32.mrb[101].mxu0  ;;  %v23077_v11 = vld [vmem:[%s28242_s9 + $0x80] sm:$0xff]   ;;  %v23117_v16 = vld [vmem:[%s28242_s9 + $0x128] sm:$0xff]  }
 0xbd6   : > { %v27521_v19 = vmax.f32 %v27393_v32, %v14516_v17  ;;  %v14524_v45 = vmax.f32 %v27395_v36, %v14354_v8  ;;  %v14518_v23 = vpop.f32.mrb[57].mxu1  ;;  %v14356_v7 = vpop.f32.mrb[102].mxu0  ;;  %v23118_v17 = vld [vmem:[%s28242_s9 + $0xe8] sm:$0xff]  }
 0xbd7   : > { %v14526_v61 = vmax.f32 %v27397_v38, %v14518_v23  ;;  %v14520_v14 = vpop.f32.mrb[58].mxu1  ;;  %v14357_v25 = vpop.f32.mrb[103].mxu0  ;;  %v27525_v12 = vpack.c.bf16 %v14523_v48, %v14523_v48  ;;  %v23116_v48 = vld [vmem:[%s28242_s9 + $0x3a0] sm:$0xff]   ;;  %v23119_v8 = vld [vmem:[%s28242_s9 + $0x3e8] sm:$0xff]   ;;  %v23122_v23 = vld [vmem:[%s28242_s9 + $0xf0] sm:$0xff]  }
 0xbd8   : > { %v27527_v28 = vpack.c.bf16 %v14524_v45, %v14524_v45  ;;  %v14521_v59 = vpop.f32.mrb[59].mxu1  ;;  %v27670_v63 = vpack.c.bf16 %v27521_v19, %v27521_v19  ;;  %v23121_v19 = vld [vmem:[%s28242_s9 + $0x130] sm:$0xff]   ;;  %v23120_v45 = vld [vmem:[%s28242_s9 + $0x3a8] sm:$0xff]   ;;  %v23126_v25 = vld [vmem:[%s28242_s9 + $0xf8] sm:$0xff]  }
 0xbd9   : > { %v27532_v32 = vpack.c.bf16 %v14526_v61, %v14526_v61  ;;  %v15225_v15 = vrot.slane %v27525_v12, 1  ;;  %v27621_v13 = vshrl.u32 %v27525_v12, 16  ;;  %v23123_v7 = vld [vmem:[%s28242_s9 + $0x3f0] sm:$0xff]   ;;  %v23125_v61 = vld [vmem:[%s28242_s9 + $0x138] sm:$0xff]  }
 0xbda   : > { %14792 = vmatprep.mubr.bf16.mxu0 %v27527_v28  ;;  %v15226_v36 = vrot.slane %v27527_v28, 1  ;;  %v27537_v38 = vshrl.u32 %v27527_v28, 16  ;;  %v15858_v37 = vrot.slane %v27527_v28, 2  ;;  %v23124_v14 = vld [vmem:[%s28242_s9 + $0x3b0] sm:$0xff]   ;;  %v23127_v59 = vld [vmem:[%s28242_s9 + $0x3f8] sm:$0xff]  }
 0xbdb   : > { %14793 = vmatmul.mubr.bf16.vlgmr.msra.gmra.mrb[104].mxu0 %v27525_v12  ;;  %v15541_v3 = vrot.slane %v27621_v13, 1 }
 0xbdc   : > { %14801 = vmatpush1.bf16.msra.mxu0 %v23077_v11  ;;  %19463 = vmatprep.mubr.msk.bf16.mxu0 %vm14756_vm7, %v27532_v32  ;;  %v15542_v27 = vrot.slane %v27537_v38, 1  ;;  %v23129_v11 = vld [vmem:[%s28242_s9 + $0x140] sm:$0xff]  }
 0xbdd   : > { %15435 = vmatprep.mubr.bf16.mxu1 %v15226_v36  ;;  %14802 = vmatprep.subr.bf16.mxu0 %v23331_v0  ;;  %v23128_v36 = vld [vmem:[%s28242_s9 + $0x3b8] sm:$0xff]  }
 0xbde   : > { %15436 = vmatmul.mubr.bf16.vlgmr.msra.gmra.mrb[60].mxu1 %v15225_v15  ;;  %v23131_v15 = vld [vmem:[%s28242_s9 + $0x4a0] sm:$0xff]  }
 0xbdf   : > { %20211 = vmatpush3.bf16.msra.mxu1 %v23079_v9  ;;  %15751 = vmatprep.mubr.bf16.mxu1 %v15542_v27  ;;  %v23130_v9 = vld [vmem:[%s28242_s9 + $0x100] sm:$0xff]   ;;  %v23133_v27 = vld [vmem:[%s28242_s9 + $0x148] sm:$0xff]  }
 0xbe0   : > { %14803 = vmatpush1.bf16.msra.mxu0 %v23080_v60  ;;  %20212 = vmatprep.subr.bf16.mxu1 %v23081_v18  ;;  %v23132_v60 = vld [vmem:[%s28242_s9 + $0x460] sm:$0xff]   ;;  %v15857_v18 = vrot.slane %v27525_v12, 2 }
 0xbe1   : > { %14804 = vmatprep.subr.bf16.mxu0 %v23331_v0 }
 0xbe3   : > { %20213 = vmatpush3.bf16.msra.mxu1 %v23082_v4  ;;  %v23134_v4 = vld [vmem:[%s28242_s9 + $0x108] sm:$0xff]  }
 0xbe4   : > { %14805 = vmatpush1.bf16.msra.mxu0 %v23083_v24  ;;  %20214 = vmatprep.subr.bf16.mxu1 %v23084_v41  ;;  %v23135_v24 = vld [vmem:[%s28242_s9 + $0x4a8] sm:$0xff]   ;;  %v16174_v41 = vrot.slane %v27537_v38, 2 }
 0xbe5   : > { %14806 = vmatprep.subr.bf16.mxu0 %v23331_v0 }
 0xbe7   : > { %20215 = vmatpush3.bf16.msra.mxu1 %v23085_v29  ;;  %v23137_v29 = vld [vmem:[%s28242_s9 + $0x150] sm:$0xff]  }
 0xbe8   : > { %14807 = vmatpush1.bf16.msra.mxu0 %v23086_v30  ;;  %20216 = vmatprep.subr.bf16.mxu1 %v23087_v39  ;;  %v23136_v30 = vld [vmem:[%s28242_s9 + $0x468] sm:$0xff]   ;;  %v23138_v39 = vld [vmem:[%s28242_s9 + $0x110] sm:$0xff]  }
 0xbe9   : > { %14808 = vmatprep.subr.bf16.mxu0 %v23331_v0 }
 0xbeb   : > { %20217 = vmatpush3.bf16.msra.mxu1 %v23088_v31  ;;  %v23141_v31 = vld [vmem:[%s28242_s9 + $0x158] sm:$0xff]  }
 0xbec   : > { %14809 = vmatpush1.bf16.msra.mxu0 %v23089_v5  ;;  %20218 = vmatprep.subr.bf16.mxu1 %v23090_v42  ;;  %v23140_v5 = vld [vmem:[%s28242_s9 + $0x470] sm:$0xff]   ;;  %v23142_v42 = vld [vmem:[%s28242_s9 + $0x118] sm:$0xff]  }
 0xbed   : > { %14810 = vmatprep.subr.bf16.mxu0 %v23331_v0 }
 0xbef   : > { %20219 = vmatpush3.bf16.msra.mxu1 %v23091_v40  ;;  %v23143_v40 = vld [vmem:[%s28242_s9 + $0x4b8] sm:$0xff]  }
 0xbf0   : > { %14811 = vmatpush1.bf16.msra.mxu0 %v23092_v6  ;;  %20220 = vmatprep.subr.bf16.mxu1 %v23093_v43  ;;  %v23144_v6 = vld [vmem:[%s28242_s9 + $0x478] sm:$0xff]   ;;  %v23145_v43 = vld [vmem:[%s28242_s9 + $0x160] sm:$0xff]  }
 0xbf1   : > { %14812 = vmatprep.subr.bf16.mxu0 %v23331_v0 }
 0xbf3   : > { %20221 = vmatpush3.bf16.msra.mxu1 %v23094_v46  ;;  %v23146_v46 = vld [vmem:[%s28242_s9 + $0x4c0] sm:$0xff]  }
 0xbf4   : > { %14813 = vmatpush1.bf16.msra.mxu0 %v23095_v50  ;;  %20222 = vmatprep.subr.bf16.mxu1 %v23096_v34  ;;  %v27774_v50 = vshrl.u32 %v27532_v32, 16  ;;  %v23147_v34 = vld [vmem:[%s28242_s9 + $0x480] sm:$0xff]  }
 0xbf5   : > { %14814 = vmatprep.subr.bf16.mxu0 %v23331_v0 }
 0xbf7   : > { %20223 = vmatpush3.bf16.msra.mxu1 %v23097_v47  ;;  %v23148_v47 = vld [vmem:[%s28242_s9 + $0x168] sm:$0xff]  }
 0xbf8   : > { %14815 = vmatpush1.bf16.msra.mxu0 %v23098_v62  ;;  %20224 = vmatprep.subr.bf16.mxu1 %v23099_v44  ;;  %v23149_v62 = vld [vmem:[%s28242_s9 + $0x4c8] sm:$0xff]  }
 0xbf9   : > { %14816 = vmatprep.subr.bf16.mxu0 %v23331_v0  ;;  %v23150_v44 = vld [vmem:[%s28242_s9 + $0x488] sm:$0xff]  }
 0xbfb   : > { %20225 = vmatpush3.bf16.msra.mxu1 %v23100_v49  ;;  %v23151_v49 = vld [vmem:[%s28242_s9 + $0x170] sm:$0xff]  }
 0xbfc   : > { %14817 = vmatpush1.bf16.msra.mxu0 %v23101_v53  ;;  %20232 = vmatprep.subr.bf16.mxu1 %v23102_v55  ;;  %v23152_v53 = vld [vmem:[%s28242_s9 + $0x4d0] sm:$0xff]  }
 0xbfd   : > { %14818 = vmatprep.subr.bf16.mxu0 %v23331_v0  ;;  %v23153_v55 = vld [vmem:[%s28242_s9 + $0x490] sm:$0xff]  }
 0xbfe   : > { %15752 = vmatmul.mubr.bf16.vlgmr.msra.gmra.mrb[64].mxu1 %v15541_v3  ;;  %v23155_v3 = vld [vmem:[%s28242_s9 + $0x4d8] sm:$0xff]  }
 0xbff   : > { %20233 = vmatpush3.bf16.msra.mxu1 %v23103_v57  ;;  %16067 = vmatprep.mubr.bf16.mxu1 %v15858_v37  ;;  %v23154_v57 = vld [vmem:[%s28242_s9 + $0x178] sm:$0xff]   ;;  %v23158_v37 = vld [vmem:[%s28242_s9 + $0x580] sm:$0xff]  }
 0xc00   : > { %14819 = vmatpush1.bf16.msra.mxu0 %v23104_v58  ;;  %20234 = vmatprep.subr.bf16.mxu1 %v23105_v26  ;;  %v23156_v58 = vld [vmem:[%s28242_s9 + $0x498] sm:$0xff]   ;;  %v23157_v26 = vld [vmem:[%s28242_s9 + $0x180] sm:$0xff]  }
 0xc01   : > { %14820 = vmatprep.subr.bf16.mxu0 %v23331_v0 }
 0xc03   : > { %20235 = vmatpush3.bf16.msra.mxu1 %v23106_v54  ;;  %v23159_v54 = vld [vmem:[%s28242_s9 + $0x540] sm:$0xff]  }
 0xc04   : > { %14821 = vmatpush1.bf16.msra.mxu0 %v23107_v1  ;;  %20236 = vmatprep.subr.bf16.mxu1 %v23108_v2  ;;  %v16173_v1 = vrot.slane %v27621_v13, 2  ;;  %v23160_v2 = vld [vmem:[%s28242_s9 + $0x188] sm:$0xff]  }
 0xc05   : > { %14822 = vmatprep.subr.bf16.mxu0 %v23331_v0 }
 0xc07   : > { %20237 = vmatpush3.bf16.msra.mxu1 %v23109_v33  ;;  %v23161_v33 = vld [vmem:[%s28242_s9 + $0x588] sm:$0xff]  }
 0xc08   : > { %14823 = vmatpush1.bf16.msra.mxu0 %v23110_v21  ;;  %20238 = vmatprep.subr.bf16.mxu1 %v23111_v51  ;;  %v16490_v21 = vrot.slane %v27527_v28, 3  ;;  %v23163_v51 = vld [vmem:[%s28242_s9 + $0x190] sm:$0xff]  }
 0xc09   : > { %20166 = vmatprep.subr.bf16.mxu0 %v23113_v56  ;;  %v23164_v56 = vld [vmem:[%s28242_s9 + $0x590] sm:$0xff]  }
 0xc0a   : > { %v23165_v28 = vld [vmem:[%s28242_s9 + $0x550] sm:$0xff]  }
 0xc0b   : > { %20239 = vmatpush3.bf16.msra.mxu1 %v23112_v52  ;;  %14833 = vmatmul.mubr.bf16.vlgmr.msra.gmra.mrb[108].mxu0 %v27670_v63  ;;  %v23166_v52 = vld [vmem:[%s28242_s9 + $0x198] sm:$0xff]  }
 0xc0c   : > { %20167 = vmatpush3.bf16.msra.mxu0 %v23114_v22  ;;  %15115 = vmatprep.mubr.bf16.mxu0 %v27537_v38  ;;  %v23139_v38 = vld [vmem:[%s28242_s9 + $0x4b0] sm:$0xff]   ;;  %v23167_v22 = vld [vmem:[%s28242_s9 + $0x598] sm:$0xff]  }
 0xc0d   : > { %20240 = vmatprep.subr.bf16.mxu1 %v23115_v20  ;;  %20168 = vmatprep.subr.bf16.mxu0 %v23117_v16  ;;  %v23168_v20 = vld [vmem:[%s28242_s9 + $0x558] sm:$0xff]   ;;  %v23169_v16 = vld [vmem:[%s28242_s9 + $0x1a0] sm:$0xff]  }
 0xc0f   : > { %20241 = vmatpush3.bf16.msra.mxu1 %v23116_v48  ;;  %v23170_v48 = vld [vmem:[%s28242_s9 + $0x5a0] sm:$0xff]  }
 0xc10   : > { %20169 = vmatpush3.bf16.msra.mxu0 %v23118_v17  ;;  %20242 = vmatprep.subr.bf16.mxu1 %v23119_v8  ;;  %v23171_v17 = vld [vmem:[%s28242_s9 + $0x560] sm:$0xff]   ;;  %v23172_v8 = vld [vmem:[%s28242_s9 + $0x1a8] sm:$0xff]  }
 0xc11   : > { %20170 = vmatprep.subr.bf16.mxu0 %v23121_v19  ;;  %v23173_v19 = vld [vmem:[%s28242_s9 + $0x5a8] sm:$0xff]  }
 0xc13   : > { %20243 = vmatpush3.bf16.msra.mxu1 %v23120_v45  ;;  %v23174_v45 = vld [vmem:[%s28242_s9 + $0x568] sm:$0xff]  }
 0xc14   : > { %20171 = vmatpush3.bf16.msra.mxu0 %v23122_v23  ;;  %20244 = vmatprep.subr.bf16.mxu1 %v23123_v7  ;;  %v23175_v23 = vld [vmem:[%s28242_s9 + $0x1b0] sm:$0xff]  }
 0xc15   : > { %20172 = vmatprep.subr.bf16.mxu0 %v23125_v61  ;;  %v23176_v7 = vld [vmem:[%s28242_s9 + $0x5b0] sm:$0xff]  }
 0xc16   : > { %v23177_v61 = vld [vmem:[%s28242_s9 + $0x570] sm:$0xff]  }
 0xc17   : > { %20245 = vmatpush3.bf16.msra.mxu1 %v23124_v14  ;;  %v23178_v14 = vld [vmem:[%s28242_s9 + $0x1b8] sm:$0xff]  }
 0xc18   : > { %20173 = vmatpush3.bf16.msra.mxu0 %v23126_v25  ;;  %20246 = vmatprep.subr.bf16.mxu1 %v23127_v59  ;;  %v23179_v25 = vld [vmem:[%s28242_s9 + $0x5b8] sm:$0xff]  }
 0xc19   : > { %20174 = vmatprep.subr.bf16.mxu0 %v23129_v11  ;;  %v23180_v59 = vld [vmem:[%s28242_s9 + $0x578] sm:$0xff]   ;;  %v23181_v11 = vld [vmem:[%s28242_s9 + $0x240] sm:$0xff]  }
 0xc1b   : > { %20247 = vmatpush3.bf16.msra.mxu1 %v23128_v36  ;;  %v27898_v36 = vshrl.u32 %v27670_v63, 16 }
 0xc1c   : > { %20175 = vmatpush3.bf16.msra.mxu0 %v23130_v9  ;;  %20254 = vmatprep.subr.bf16.mxu1 %v23131_v15  ;;  %v15228_v9 = vrot.slane %v27532_v32, 1  ;;  %v16489_v15 = vrot.slane %v27525_v12, 3  ;;  %v23184_v12 = vld [vmem:[%s28242_s9 + $0x258] sm:$0xff]  }
 0xc1d   : > { %20176 = vmatprep.subr.bf16.mxu0 %v23133_v27  ;;  %v23182_v27 = vld [vmem:[%s28242_s9 + $0x248] sm:$0xff]  }
 0xc1e   : > { %16068 = vmatmul.mubr.bf16.vlgmr.msra.gmra.mrb[68].mxu1 %v15857_v18  ;;  %v23185_v18 = vld [vmem:[%s28242_s9 + $0x260] sm:$0xff]  }
 0xc1f   : > { %20255 = vmatpush3.bf16.msra.mxu1 %v23132_v60  ;;  %16383 = vmatprep.mubr.bf16.mxu1 %v16174_v41  ;;  %v23183_v60 = vld [vmem:[%s28242_s9 + $0x250] sm:$0xff]   ;;  %v23188_v41 = vld [vmem:[%s28242_s9 + $0x278] sm:$0xff]  }
 0xc20   : > { %20177 = vmatpush3.bf16.msra.mxu0 %v23134_v4  ;;  %20256 = vmatprep.subr.bf16.mxu1 %v23135_v24  ;;  %v23186_v4 = vld [vmem:[%s28242_s9 + $0x268] sm:$0xff]   ;;  %v23187_v24 = vld [vmem:[%s28242_s9 + $0x270] sm:$0xff]  }
 0xc21   : > { %20178 = vmatprep.subr.bf16.mxu0 %v23137_v29  ;;  %v23189_v29 = vld [vmem:[%s28242_s9 + $0x280] sm:$0xff]  }
 0xc23   : > { %20257 = vmatpush3.bf16.msra.mxu1 %v23136_v30  ;;  %v23190_v30 = vld [vmem:[%s28242_s9 + $0x288] sm:$0xff]  }
 0xc24   : > { %20179 = vmatpush3.bf16.msra.mxu0 %v23138_v39  ;;  %20258 = vmatprep.subr.bf16.mxu1 %v23139_v38  ;;  %v23191_v39 = vld [vmem:[%s28242_s9 + $0x290] sm:$0xff]   ;;  %v23192_v38 = vld [vmem:[%s28242_s9 + $0x298] sm:$0xff]  }
 0xc25   : > { %20180 = vmatprep.subr.bf16.mxu0 %v23141_v31  ;;  %v23193_v31 = vld [vmem:[%s28242_s9 + $0x320] sm:$0xff]  }
 0xc27   : > { %20259 = vmatpush3.bf16.msra.mxu1 %v23140_v5  ;;  %v15227_v5 = vrot.slane %v27670_v63, 1 }
 0xc28   : > { %20181 = vmatpush3.bf16.msra.mxu0 %v23142_v42  ;;  %20260 = vmatprep.subr.bf16.mxu1 %v23143_v40  ;;  %v15544_v42 = vrot.slane %v27774_v50, 1  ;;  %v23194_v40 = vld [vmem:[%s28242_s9 + $0x328] sm:$0xff]  }
 0xc29   : > { %15123 = vmatprep.subr.bf16.mxu0 %v23331_v0 }
 0xc2b   : > { %20261 = vmatpush3.bf16.msra.mxu1 %v23144_v6  ;;  %15116 = vmatmul.mubr.bf16.vlgmr.msra.gmra.mrb[112].mxu0 %v27621_v13  ;;  %v23162_v13 = vld [vmem:[%s28242_s9 + $0x548] sm:$0xff]   ;;  %v23195_v6 = vld [vmem:[%s28242_s9 + $0x330] sm:$0xff]  }
 0xc2c   : > { %15124 = vmatpush1.bf16.msra.mxu0 %v23145_v43  ;;  %19548 = vmatprep.mubr.msk.bf16.mxu0 %vm14756_vm7, %v27774_v50  ;;  %v23196_v43 = vld [vmem:[%s28242_s9 + $0x338] sm:$0xff]  }
 0xc2d   : > { %20262 = vmatprep.subr.bf16.mxu1 %v23146_v46  ;;  %15125 = vmatprep.subr.bf16.mxu0 %v23331_v0  ;;  %v23197_v46 = vld [vmem:[%s28242_s9 + $0x340] sm:$0xff]  }
 0xc2f   : > { %20263 = vmatpush3.bf16.msra.mxu1 %v23147_v34  ;;  %v23198_v34 = vld [vmem:[%s28242_s9 + $0x348] sm:$0xff]  }
 0xc30   : > { %15126 = vmatpush1.bf16.msra.mxu0 %v23148_v47  ;;  %20264 = vmatprep.subr.bf16.mxu1 %v23149_v62  ;;  %v23199_v47 = vld [vmem:[%s28242_s9 + $0x350] sm:$0xff]   ;;  %v23200_v62 = vld [vmem:[%s28242_s9 + $0x358] sm:$0xff]  }
 0xc31   : > { %15127 = vmatprep.subr.bf16.mxu0 %v23331_v0 }
 0xc33   : > { %20265 = vmatpush3.bf16.msra.mxu1 %v23150_v44  ;;  %v23201_v44 = vld [vmem:[%s28242_s9 + $0x360] sm:$0xff]  }
 0xc34   : > { %15128 = vmatpush1.bf16.msra.mxu0 %v23151_v49  ;;  %20266 = vmatprep.subr.bf16.mxu1 %v23152_v53  ;;  %v23202_v49 = vld [vmem:[%s28242_s9 + $0x368] sm:$0xff]  }
 0xc35   : > { %15129 = vmatprep.subr.bf16.mxu0 %v23331_v0 }
 0xc37   : > { %20267 = vmatpush3.bf16.msra.mxu1 %v23153_v55 }
 0xc38   : > { %15130 = vmatpush1.bf16.msra.mxu0 %v23154_v57  ;;  %20268 = vmatprep.subr.bf16.mxu1 %v23155_v3 }
 0xc39   : > { %15131 = vmatprep.subr.bf16.mxu0 %v23331_v0 }
 0xc3b   : > { %20269 = vmatpush3.bf16.msra.mxu1 %v23156_v58  ;;  %v23203_v58 = vld [vmem:[%s28242_s9 + $0x370] sm:$0xff]  }
 0xc3c   : > { %15132 = vmatpush1.bf16.msra.mxu0 %v23157_v26  ;;  %20276 = vmatprep.subr.bf16.mxu1 %v23158_v37 }
 0xc3d   : > { %15133 = vmatprep.subr.bf16.mxu0 %v23331_v0 }
 0xc3e   : > { %16384 = vmatmul.mubr.bf16.vlgmr.msra.gmra.mrb[72].mxu1 %v16173_v1 }
 0xc3f   : > { %20277 = vmatpush3.bf16.msra.mxu1 %v23159_v54  ;;  %16699 = vmatprep.mubr.bf16.mxu1 %v16490_v21  ;;  %v23204_v21 = vld [vmem:[%s28242_s9 + $0x378] sm:$0xff]  }
 0xc40   : > { %15134 = vmatpush1.bf16.msra.mxu0 %v23160_v2  ;;  %20278 = vmatprep.subr.bf16.mxu1 %v23161_v33 }
 0xc41   : > { %15135 = vmatprep.subr.bf16.mxu0 %v23331_v0 }
 0xc43   : > { %20279 = vmatpush3.bf16.msra.mxu1 %v23162_v13  ;;  %v23205_v13 = vld [vmem:[%s28242_s9 + $0x400] sm:$0xff]  }
 0xc44   : > { %15136 = vmatpush1.bf16.msra.mxu0 %v23163_v51  ;;  %20280 = vmatprep.subr.bf16.mxu1 %v23164_v56  ;;  %v15543_v51 = vrot.slane %v27898_v36, 1  ;;  %v15860_v56 = vrot.slane %v27532_v32, 2 }
 0xc45   : > { %15137 = vmatprep.subr.bf16.mxu0 %v23331_v0 }
 0xc47   : > { %20281 = vmatpush3.bf16.msra.mxu1 %v23165_v28  ;;  %v23206_v28 = vld [vmem:[%s28242_s9 + $0x408] sm:$0xff]  }
 0xc48   : > { %15138 = vmatpush1.bf16.msra.mxu0 %v23166_v52  ;;  %20282 = vmatprep.subr.bf16.mxu1 %v23167_v22  ;;  %v23207_v52 = vld [vmem:[%s28242_s9 + $0x410] sm:$0xff]   ;;  %v23208_v22 = vld [vmem:[%s28242_s9 + $0x418] sm:$0xff]  }
 0xc49   : > { %15139 = vmatprep.subr.bf16.mxu0 %v23331_v0 }
 0xc4b   : > { %20283 = vmatpush3.bf16.msra.mxu1 %v23168_v20  ;;  %v23209_v20 = vld [vmem:[%s28242_s9 + $0x420] sm:$0xff]  }
 0xc4c   : > { %15140 = vmatpush1.bf16.msra.mxu0 %v23169_v16  ;;  %20284 = vmatprep.subr.bf16.mxu1 %v23170_v48  ;;  %v23241_v16 = vld [vmem:[%s28244_s11] sm:$0xff]   ;;  %v23210_v48 = vld [vmem:[%s28242_s9 + $0x428] sm:$0xff]  }
 0xc4d   : > { %15141 = vmatprep.subr.bf16.mxu0 %v23331_v0 }
 0xc4f   : > { %20285 = vmatpush3.bf16.msra.mxu1 %v23171_v17  ;;  %v23242_v17 = vld [vmem:[%s28244_s11 + $0x8] sm:$0xff]  }
 0xc50   : > { %15142 = vmatpush1.bf16.msra.mxu0 %v23172_v8  ;;  %20286 = vmatprep.subr.bf16.mxu1 %v23173_v19  ;;  %v23211_v8 = vld [vmem:[%s28242_s9 + $0x430] sm:$0xff]  }
 0xc51   : > { %15143 = vmatprep.subr.bf16.mxu0 %v23331_v0 }
 0xc53   : > { %20287 = vmatpush3.bf16.msra.mxu1 %v23174_v45  ;;  %v23243_v45 = vld [vmem:[%s28244_s11 + $0x10] sm:$0xff]  }
 0xc54   : > { %15144 = vmatpush1.bf16.msra.mxu0 %v23175_v23  ;;  %20288 = vmatprep.subr.bf16.mxu1 %v23176_v7 }
 0xc55   : > { %15145 = vmatprep.subr.bf16.mxu0 %v23331_v0 }
 0xc57   : > { %20289 = vmatpush3.bf16.msra.mxu1 %v23177_v61 }
 0xc58   : > { %15146 = vmatpush1.bf16.msra.mxu0 %v23178_v14  ;;  %20290 = vmatprep.subr.bf16.mxu1 %v23179_v25  ;;  %v23212_v25 = vld [vmem:[%s28242_s9 + $0x438] sm:$0xff]  }
 0xc59   : > { %15443 = vmatprep.subr.bf16.mxu0 %v23331_v0 }
 0xc5b   : > { %20291 = vmatpush3.bf16.msra.mxu1 %v23180_v59  ;;  %15156 = vmatmul.mubr.bf16.vlgmr.msra.gmra.mrb[108].mxu0 %v27898_v36  ;;  %v23244_v59 = vld [vmem:[%s28244_s11 + $0x18] sm:$0xff]  }
 0xc5c   : > { %15444 = vmatpush1.bf16.msra.mxu0 %v23181_v11  ;;  %19633 = vmatprep.mubr.msk.bf16.mxu0 %vm14756_vm7, %v15228_v9  ;;  %v23213_v11 = vld [vmem:[%s28242_s9 + $0x440] sm:$0xff]  }
 0xc5d   : > { %15445 = vmatprep.subr.bf16.mxu0 %v23331_v0  ;;  %20364 = vmatprep.subr.bf16.mxu1 %v23332_v10  ;;  %v23245_v9 = vld [vmem:[%s28244_s11 + $0x20] sm:$0xff]  }
 0xc5e   : > { %16700 = vmatmul.mubr.bf16.vlgmr.msra.gmra.mrb[76].mxu1 %v16489_v15  ;;  %v23214_v15 = vld [vmem:[%s28242_s9 + $0x448] sm:$0xff]  }
 0xc5f   : > { %20380 = vmatprep.mubr.msk.bf16.mxu1 %vm23333_vm3, %v23332_v10  ;;  %20365 = vmatpush3.bf16.msra.mxu1 %v23241_v16  ;;  %v23230_v16 = vld [vmem:[%s28242_s9 + $0x5c8] sm:$0xff]  }
 0xc60   : > { %15446 = vmatpush1.bf16.msra.mxu0 %v23182_v27  ;;  %20366 = vmatprep.subr.bf16.mxu1 %v23332_v10  ;;  %v23246_v27 = vld [vmem:[%s28244_s11 + $0x28] sm:$0xff]  }
 0xc61   : > { %15447 = vmatprep.subr.bf16.mxu0 %v23331_v0 }
 0xc63   : > { %20367 = vmatpush3.bf16.msra.mxu1 %v23242_v17  ;;  %v23234_v17 = vld [vmem:[%s28242_s9 + $0x5e8] sm:$0xff]  }
 0xc64   : > { %15448 = vmatpush1.bf16.msra.mxu0 %v23183_v60  ;;  %20368 = vmatprep.subr.bf16.mxu1 %v23332_v10  ;;  %v23215_v60 = vld [vmem:[%s28242_s9 + $0x450] sm:$0xff]  }
 0xc65   : > { %15449 = vmatprep.subr.bf16.mxu0 %v23331_v0 }
 0xc67   : > { %20369 = vmatpush3.bf16.msra.mxu1 %v23243_v45 }
 0xc68   : > { %15450 = vmatpush1.bf16.msra.mxu0 %v23184_v12  ;;  %20370 = vmatprep.subr.bf16.mxu1 %v23332_v10  ;;  %v23247_v12 = vld [vmem:[%s28244_s11 + $0x30] sm:$0xff]  }
 0xc69   : > { %15451 = vmatprep.subr.bf16.mxu0 %v23331_v0 }
 0xc6b   : > { %20371 = vmatpush3.bf16.msra.mxu1 %v23244_v59  ;;  %v23237_v59 = vld [vmem:[%s28242_s9 + $0x600] sm:$0xff]  }
 0xc6c   : > { %15452 = vmatpush1.bf16.msra.mxu0 %v23185_v18  ;;  %20372 = vmatprep.subr.bf16.mxu1 %v23332_v10  ;;  %v23216_v18 = vld [vmem:[%s28242_s9 + $0x458] sm:$0xff]  }
 0xc6d   : > { %15453 = vmatprep.subr.bf16.mxu0 %v23331_v0 }
 0xc6f   : > { %20373 = vmatpush3.bf16.msra.mxu1 %v23245_v9  ;;  %v23239_v9 = vld [vmem:[%s28242_s9 + $0x610] sm:$0xff]  }
 0xc70   : > { %15454 = vmatpush1.bf16.msra.mxu0 %v23186_v4  ;;  %20374 = vmatprep.subr.bf16.mxu1 %v23332_v10  ;;  %v23217_v4 = vld [vmem:[%s28242_s9 + $0x4e0] sm:$0xff]  }
 0xc71   : > { %15455 = vmatprep.subr.bf16.mxu0 %v23331_v0 }
 0xc73   : > { %20375 = vmatpush3.bf16.msra.mxu1 %v23246_v27  ;;  %v16491_v27 = vrot.slane %v27670_v63, 3 }
 0xc74   : > { %15456 = vmatpush1.bf16.msra.mxu0 %v23187_v24  ;;  %20376 = vmatprep.subr.bf16.mxu1 %v23332_v10  ;;  %v15859_v24 = vrot.slane %v27670_v63, 2  ;;  %v23250_v63 = vld [vmem:[%s28246_s13 + $0x8] sm:$0xff]  }
 0xc75   : > { %15457 = vmatprep.subr.bf16.mxu0 %v23331_v0 }
 0xc77   : > { %20377 = vmatpush3.bf16.msra.mxu1 %v23247_v12 }
 0xc78   : > { %15458 = vmatpush1.bf16.msra.mxu0 %v23188_v41  ;;  %20378 = vmatprep.subr.bf16.mxu1 %v23332_v10  ;;  %v16176_v41 = vrot.slane %v27774_v50, 2 }
 0xc79   : > { %15459 = vmatprep.subr.bf16.mxu0 %v23331_v0 }
 0xc7c   : > { %15460 = vmatpush1.bf16.msra.mxu0 %v23189_v29  ;;  %v23218_v29 = vld [vmem:[%s28242_s9 + $0x4e8] sm:$0xff]  }
 0xc7d   : > { %15461 = vmatprep.subr.bf16.mxu0 %v23331_v0 }
 0xc80   : > { %15462 = vmatpush1.bf16.msra.mxu0 %v23190_v30  ;;  %v23219_v30 = vld [vmem:[%s28242_s9 + $0x4f0] sm:$0xff]  }
 0xc81   : > { %15463 = vmatprep.subr.bf16.mxu0 %v23331_v0 }
 0xc84   : > { %15464 = vmatpush1.bf16.msra.mxu0 %v23191_v39 }
 0xc85   : > { %15465 = vmatprep.subr.bf16.mxu0 %v23331_v0 }
 0xc88   : > { %15466 = vmatpush1.bf16.msra.mxu0 %v23192_v38 }
 0xc89   : > { %15759 = vmatprep.subr.bf16.mxu0 %v23331_v0 }
 0xc8b   : > { %15476 = vmatmul.mubr.bf16.vlgmr.msra.gmra.mrb[108].mxu0 %v15227_v5 }
 0xc8c   : > { %15760 = vmatpush1.bf16.msra.mxu0 %v23193_v31  ;;  %19718 = vmatprep.mubr.msk.bf16.mxu0 %vm14756_vm7, %v15544_v42  ;;  %v23220_v42 = vld [vmem:[%s28242_s9 + $0x4f8] sm:$0xff]  }
 0xc8d   : > { %15761 = vmatprep.subr.bf16.mxu0 %v23331_v0 }
 0xc90   : > { %15762 = vmatpush1.bf16.msra.mxu0 %v23194_v40  ;;  %v23221_v40 = vld [vmem:[%s28242_s9 + $0x500] sm:$0xff]  }
 0xc91   : > { %15763 = vmatprep.subr.bf16.mxu0 %v23331_v0 }
 0xc94   : > { %15764 = vmatpush1.bf16.msra.mxu0 %v23195_v6  ;;  %v23222_v6 = vld [vmem:[%s28242_s9 + $0x508] sm:$0xff]  }
 0xc95   : > { %15765 = vmatprep.subr.bf16.mxu0 %v23331_v0 }
 0xc98   : > { %15766 = vmatpush1.bf16.msra.mxu0 %v23196_v43  ;;  %v14527_v43 = vld [vmem:[%s28243_s10] sm:$0x1] }
 0xc99   : > { %15767 = vmatprep.subr.bf16.mxu0 %v23331_v0 }
 0xc9c   : > { %15768 = vmatpush1.bf16.msra.mxu0 %v23197_v46 }
 0xc9d   : > { %15769 = vmatprep.subr.bf16.mxu0 %v23331_v0 }
 0xca0   : > { %15770 = vmatpush1.bf16.msra.mxu0 %v23198_v34 }
 0xca1   : > { %15771 = vmatprep.subr.bf16.mxu0 %v23331_v0 }
 0xca4   : > { %15772 = vmatpush1.bf16.msra.mxu0 %v23199_v47 }
 0xca5   : > { %15773 = vmatprep.subr.bf16.mxu0 %v23331_v0 }
 0xca8   : > { %15774 = vmatpush1.bf16.msra.mxu0 %v23200_v62 }
 0xca9   : > { %15775 = vmatprep.subr.bf16.mxu0 %v23331_v0 }
 0xcac   : > { %15776 = vmatpush1.bf16.msra.mxu0 %v23201_v44 }
 0xcad   : > { %15777 = vmatprep.subr.bf16.mxu0 %v23331_v0 }
 0xcae   : > { %v20160_v53 = vpop.f32.mrb[104].mxu0 }
 0xcaf   : > { %v20161_v55 = vpop.f32.mrb[105].mxu0 }
 0xcb0   : > { %v27995_v57 = vadd.f32 %v20161_v55, %v20160_v53  ;;  %15778 = vmatpush1.bf16.msra.mxu0 %v23202_v49  ;;  %v20163_v3 = vpop.f32.mrb[106].mxu0  ;;  %v23223_v49 = vld [vmem:[%s28242_s9 + $0x510] sm:$0xff]  }
 0xcb1   : > { %v20204_v26 = vpop.f32.mrb[60].mxu1  ;;  %v20164_v37 = vpop.f32.mrb[107].mxu0  ;;  %15779 = vmatprep.subr.bf16.mxu0 %v23331_v0 }
 0xcb2   : > { %v20205_v54 = vpop.f32.mrb[61].mxu1  ;;  %v20400_v47 = vadd.f32 %v27995_v57, %v14527_v43 }
 0xcb3   : > { %v28001_v1 = vadd.f32 %v20205_v54, %v20204_v26  ;;  %v20207_v2 = vpop.f32.mrb[62].mxu1  ;;  %v23225_v26 = vld [vmem:[%s28242_s9 + $0x520] sm:$0xff]   ;;  %v23226_v54 = vld [vmem:[%s28242_s9 + $0x528] sm:$0xff]  }
 0xcb4   : > { %v20208_v33 = vpop.f32.mrb[63].mxu1  ;;  %15780 = vmatpush1.bf16.msra.mxu0 %v23203_v58  ;;  %v23224_v58 = vld [vmem:[%s28242_s9 + $0x518] sm:$0xff]  }
 0xcb5   : > { %15781 = vmatprep.subr.bf16.mxu0 %v23331_v0 }
 0xcb8   : > { %15782 = vmatpush1.bf16.msra.mxu0 %v23204_v21 }
 0xcb9   : > { %16075 = vmatprep.subr.bf16.mxu0 %v23331_v0 }
 0xcbb   : > { %15792 = vmatmul.mubr.bf16.vlgmr.msra.gmra.mrb[108].mxu0 %v15543_v51 }
 0xcbc   : > { %16076 = vmatpush1.bf16.msra.mxu0 %v23205_v13  ;;  %19803 = vmatprep.mubr.msk.bf16.mxu0 %vm14756_vm7, %v15860_v56  ;;  %v23228_v56 = vld [vmem:[%s28242_s9 + $0x538] sm:$0xff]  }
 0xcbd   : > { %16077 = vmatprep.subr.bf16.mxu0 %v23331_v0 }
 0xcc0   : > { %16078 = vmatpush1.bf16.msra.mxu0 %v23206_v28 }
 0xcc1   : > { %16079 = vmatprep.subr.bf16.mxu0 %v23331_v0 }
 0xcc4   : > { %16080 = vmatpush1.bf16.msra.mxu0 %v23207_v52  ;;  %v23229_v52 = vld [vmem:[%s28242_s9 + $0x5c0] sm:$0xff]  }
 0xcc5   : > { %16081 = vmatprep.subr.bf16.mxu0 %v23331_v0 }
 0xcc8   : > { %16082 = vmatpush1.bf16.msra.mxu0 %v23208_v22  ;;  %v16175_v22 = vrot.slane %v27898_v36, 2  ;;  %v23233_v36 = vld [vmem:[%s28242_s9 + $0x5e0] sm:$0xff]  }
 0xcc9   : > { %16083 = vmatprep.subr.bf16.mxu0 %v23331_v0 }
 0xccc   : > { %16084 = vmatpush1.bf16.msra.mxu0 %v23209_v20  ;;  %v16492_v20 = vrot.slane %v27532_v32, 3  ;;  %v23232_v32 = vld [vmem:[%s28242_s9 + $0x5d8] sm:$0xff]  }
 0xccd   : > { %16085 = vmatprep.subr.bf16.mxu0 %v23331_v0 }
 0xcd0   : > { %16086 = vmatpush1.bf16.msra.mxu0 %v23210_v48  ;;  %v23231_v48 = vld [vmem:[%s28242_s9 + $0x5d0] sm:$0xff]  }
 0xcd1   : > { %v20226_v19 = vpop.f32.mrb[64].mxu1  ;;  %16087 = vmatprep.subr.bf16.mxu0 %v23331_v0 }
 0xcd2   : > { %v20227_v23 = vpop.f32.mrb[65].mxu1 }
 0xcd3   : > { %v28049_v7 = vadd.f32 %v20227_v23, %v20226_v19  ;;  %v20229_v61 = vpop.f32.mrb[66].mxu1 }
 0xcd4   : > { %v20230_v14 = vpop.f32.mrb[67].mxu1  ;;  %16088 = vmatpush1.bf16.msra.mxu0 %v23211_v8  ;;  %v23235_v8 = vld [vmem:[%s28242_s9 + $0x5f0] sm:$0xff]  }
 0xcd5   : > { %16089 = vmatprep.subr.bf16.mxu0 %v23331_v0  ;;  %v23236_v14 = vld [vmem:[%s28242_s9 + $0x5f8] sm:$0xff]  }
 0xcd8   : > { %16090 = vmatpush1.bf16.msra.mxu0 %v23212_v25 }
 0xcd9   : > { %16091 = vmatprep.subr.bf16.mxu0 %v23331_v0 }
 0xcdc   : > { %16092 = vmatpush1.bf16.msra.mxu0 %v23213_v11  ;;  %v23238_v11 = vld [vmem:[%s28242_s9 + $0x608] sm:$0xff]  }
 0xcdd   : > { %16093 = vmatprep.subr.bf16.mxu0 %v23331_v0 }
 0xce0   : > { %16094 = vmatpush1.bf16.msra.mxu0 %v23214_v15  ;;  %v23240_v15 = vld [vmem:[%s28242_s9 + $0x618] sm:$0xff]  }
 0xce1   : > { %16095 = vmatprep.subr.bf16.mxu0 %v23331_v0 }
 0xce4   : > { %16096 = vmatpush1.bf16.msra.mxu0 %v23215_v60  ;;  %v23248_v60 = vld [vmem:[%s28244_s11 + $0x38] sm:$0xff]  }
 0xce5   : > { %16097 = vmatprep.subr.bf16.mxu0 %v23331_v0  ;;  %20379 = vmatpush3.bf16.msra.mxu1 %v23248_v60 }
 0xce6   : > { %20384 = vmatprep.subr.bf16.mxu1 %v23332_v10 }
 0xce8   : > { %16098 = vmatpush1.bf16.msra.mxu0 %v23216_v18 }
 0xce9   : > { %16391 = vmatprep.subr.bf16.mxu0 %v23331_v0 }
 0xceb   : > { %16108 = vmatmul.mubr.bf16.vlgmr.msra.gmra.mrb[108].mxu0 %v15859_v24 }
 0xcec   : > { %16392 = vmatpush1.bf16.msra.mxu0 %v23217_v4  ;;  %19888 = vmatprep.mubr.msk.bf16.mxu0 %vm14756_vm7, %v16176_v41  ;;  %v23249_v41 = vld [vmem:[%s28246_s13] sm:$0xff]  }
 0xced   : > { %16393 = vmatprep.subr.bf16.mxu0 %v23331_v0 }
 0xcf0   : > { %16394 = vmatpush1.bf16.msra.mxu0 %v23218_v29 }
 0xcf1   : > { %v20248_v39 = vpop.f32.mrb[68].mxu1  ;;  %16395 = vmatprep.subr.bf16.mxu0 %v23331_v0 }
 0xcf2   : > { %v20249_v38 = vpop.f32.mrb[69].mxu1 }
 0xcf3   : > { %v20250_v50 = vadd.f32 %v20249_v38, %v20248_v39  ;;  %v20251_v31 = vpop.f32.mrb[70].mxu1  ;;  %v23252_v39 = vld [vmem:[%s28246_s13 + $0x18] sm:$0xff]   ;;  %v16765_v38 = vld [vmem:[%s28245_s12] sm:$0x1] }
 0xcf4   : > { %v20252_v5 = vpop.f32.mrb[71].mxu1  ;;  %16396 = vmatpush1.bf16.msra.mxu0 %v23219_v30  ;;  %v23251_v30 = vld [vmem:[%s28246_s13 + $0x10] sm:$0xff]  }
 0xcf5   : > { %16397 = vmatprep.subr.bf16.mxu0 %v23331_v0 }
 0xcf8   : > { %16398 = vmatpush1.bf16.msra.mxu0 %v23220_v42 }
 0xcf9   : > { %16399 = vmatprep.subr.bf16.mxu0 %v23331_v0 }
 0xcfc   : > { %16400 = vmatpush1.bf16.msra.mxu0 %v23221_v40 }
 0xcfd   : > { %16401 = vmatprep.subr.bf16.mxu0 %v23331_v0 }
 0xcfe   : > { %v20182_v46 = vpop.f32.mrb[112].mxu0 }
 0xcff   : > { %v20183_v34 = vpop.f32.mrb[113].mxu0 }
 0xd00   : > { %v20184_v62 = vadd.f32 %v20183_v34, %v20182_v46  ;;  %v20185_v44 = vpop.f32.mrb[114].mxu0  ;;  %16402 = vmatpush1.bf16.msra.mxu0 %v23222_v6 }
 0xd01   : > { %v20186_v53 = vpop.f32.mrb[115].mxu0  ;;  %16403 = vmatprep.subr.bf16.mxu0 %v23331_v0 }
 0xd02   : > { %v20401_v55 = vadd.f32 %v20400_v47, %v20184_v62 }
 0xd04   : > { %v20402_v3 = vadd.f32 %v20401_v55, %v28001_v1  ;;  %16404 = vmatpush1.bf16.msra.mxu0 %v23223_v49  ;;  %v23227_v1 = vld [vmem:[%s28242_s9 + $0x530] sm:$0xff]  }
 0xd05   : > { %16405 = vmatprep.subr.bf16.mxu0 %v23331_v0 }
 0xd06   : > { %v20403_v57 = vadd.f32 %v20402_v3, %v28049_v7 }
 0xd08   : > { %16406 = vmatpush1.bf16.msra.mxu0 %v23224_v58  ;;  %v20404_v37 = vadd.f32 %v20403_v57, %v20250_v50 }
 0xd09   : > { %16407 = vmatprep.subr.bf16.mxu0 %v23331_v0 }
 0xd0c   : > { %16408 = vmatpush1.bf16.msra.mxu0 %v23225_v26 }
 0xd0d   : > { %16409 = vmatprep.subr.bf16.mxu0 %v23331_v0 }
 0xd10   : > { %16410 = vmatpush1.bf16.msra.mxu0 %v23226_v54 }
 0xd11   : > { %v20270_v2 = vpop.f32.mrb[72].mxu1  ;;  %16411 = vmatprep.subr.bf16.mxu0 %v23331_v0 }
 0xd12   : > { %v20271_v33 = vpop.f32.mrb[73].mxu1 }
 0xd13   : > { %v20272_v21 = vadd.f32 %v20271_v33, %v20270_v2  ;;  %v20273_v13 = vpop.f32.mrb[74].mxu1 }
 0xd14   : > { %v20274_v51 = vpop.f32.mrb[75].mxu1  ;;  %16412 = vmatpush1.bf16.msra.mxu0 %v23227_v1 }
 0xd15   : > { %v20405_v28 = vadd.f32 %v20404_v37, %v20272_v21  ;;  %16413 = vmatprep.subr.bf16.mxu0 %v23331_v0 }
 0xd18   : > { %16414 = vmatpush1.bf16.msra.mxu0 %v23228_v56 }
 0xd19   : > { %16707 = vmatprep.subr.bf16.mxu0 %v23331_v0 }
 0xd1b   : > { %16424 = vmatmul.mubr.bf16.vlgmr.msra.gmra.mrb[108].mxu0 %v16175_v22 }
 0xd1c   : > { %16708 = vmatpush1.bf16.msra.mxu0 %v23229_v52  ;;  %19973 = vmatprep.mubr.msk.bf16.mxu0 %vm14756_vm7, %v16492_v20 }
 0xd1d   : > { %16709 = vmatprep.subr.bf16.mxu0 %v23331_v0 }
 0xd20   : > { %16710 = vmatpush1.bf16.msra.mxu0 %v23230_v16 }
 0xd21   : > { %16711 = vmatprep.subr.bf16.mxu0 %v23331_v0 }
 0xd24   : > { %16712 = vmatpush1.bf16.msra.mxu0 %v23231_v48 }
 0xd25   : > { %16713 = vmatprep.subr.bf16.mxu0 %v23331_v0 }
 0xd28   : > { %16714 = vmatpush1.bf16.msra.mxu0 %v23232_v32 }
 0xd29   : > { %16715 = vmatprep.subr.bf16.mxu0 %v23331_v0 }
 0xd2c   : > { %16716 = vmatpush1.bf16.msra.mxu0 %v23233_v36 }
 0xd2d   : > { %16717 = vmatprep.subr.bf16.mxu0 %v23331_v0 }
 0xd30   : > { %16718 = vmatpush1.bf16.msra.mxu0 %v23234_v17 }
 0xd31   : > { %v20292_v19 = vpop.f32.mrb[76].mxu1  ;;  %16719 = vmatprep.subr.bf16.mxu0 %v23331_v0 }
 0xd32   : > { %v20293_v45 = vpop.f32.mrb[77].mxu1 }
 0xd33   : > { %v20294_v23 = vadd.f32 %v20293_v45, %v20292_v19  ;;  %v20295_v7 = vpop.f32.mrb[78].mxu1 }
 0xd34   : > { %v20296_v61 = vpop.f32.mrb[79].mxu1  ;;  %16720 = vmatpush1.bf16.msra.mxu0 %v23235_v8 }
 0xd35   : > { %16721 = vmatprep.subr.bf16.mxu0 %v23331_v0  ;;  %v20406_v25 = vadd.f32 %v20405_v28, %v20294_v23 }
 0xd38   : > { %16722 = vmatpush1.bf16.msra.mxu0 %v23236_v14 }
 0xd39   : > { %16723 = vmatprep.subr.bf16.mxu0 %v23331_v0 }
 0xd3c   : > { %16724 = vmatpush1.bf16.msra.mxu0 %v23237_v59 }
 0xd3d   : > { %16725 = vmatprep.subr.bf16.mxu0 %v23331_v0 }
 0xd40   : > { %16726 = vmatpush1.bf16.msra.mxu0 %v23238_v11 }
 0xd41   : > { %16727 = vmatprep.subr.bf16.mxu0 %v23331_v0 }
 0xd44   : > { %16728 = vmatpush1.bf16.msra.mxu0 %v23239_v9 }
 0xd45   : > { %16729 = vmatprep.subr.bf16.mxu0 %v23331_v0 }
 0xd48   : > { %16730 = vmatpush1.bf16.msra.mxu0 %v23240_v15 }
 0xd4b   : > { %16740 = vmatmul.mubr.bf16.vlgmr.msra.gmra.mrb[108].mxu0 %v16491_v27 }
 0xe1e   : > { %v16741_v12 = vpop.f32.mrb[108].mxu0 }
 0xe1f   : > { %v20407_v18 = vadd.f32 %v20406_v25, %v16741_v12  ;;  %v16743_v4 = vpop.f32.mrb[109].mxu0 }
 0xe20   : > { %v16744_v24 = vpop.f32.mrb[110].mxu0 }
 0xe21   : > { %v16748_v0 = vpack.c.bf16 %v20407_v18, %v20407_v18  ;;  %v16745_v29 = vpop.f32.mrb[111].mxu0 }
 0xe23   : > { %20381 = vmatmul.mubr.bf16.vlgmr.msra.gmra.mrb[80].mxu1 %v16748_v0 }
 0xe24   : > { %20385 = vmatpush3.bf16.msra.mxu1 %v23249_v41  ;;  %20392 = vmatprep.mubr.msk.bf16.mxu1 %vm23333_vm3, %v23332_v10 }
 0xe25   : > { %20386 = vmatprep.subr.bf16.mxu1 %v23332_v10 }
 0xe28   : > { %20387 = vmatpush3.bf16.msra.mxu1 %v23250_v63 }
 0xe29   : > { %20388 = vmatprep.subr.bf16.mxu1 %v23332_v10 }
 0xe2c   : > { %20389 = vmatpush3.bf16.msra.mxu1 %v23251_v30 }
 0xe2d   : > { %20390 = vmatprep.subr.bf16.mxu1 %v23332_v10  ;;  %v16863_v10 = vld [vmem:[%s28247_s14] sm:$0x1] }
 0xe30   : > { %20391 = vmatpush3.bf16.msra.mxu1 %v23252_v39 }
 0xef6   : > { %v16848_v50 = vpop.f32.mrb[80].mxu1 }
 0xef7   : > { %v16849_v31 = vadd.f32 %v16848_v50, %v16765_v38  ;;  %v20382_v5 = vpop.f32.mrb[81].mxu1 }
 0xef8   : > { %v16851_v42 = vpop.f32.mrb[82].mxu1 }
 0xef9   : > { %v16854_v40 = vpack.c.bf16 %v16849_v31, %v16849_v31  ;;  %v20383_v6 = vpop.f32.mrb[83].mxu1 }
 0xefb   : > { %20393 = vmatmul.mubr.msk.bf16.vlgmr.msra.gmra.mrb[84].mxu1 %vm14756_vm7, %v16854_v40 }
 0xfce   : > { %v16925_v43 = vpop.f32.mrb[84].mxu1 }
 0xfcf   : > { %v16926_v46 = vadd.f32 %v16925_v43, %v16863_v10  ;;  %v20394_v34 = vpop.f32.mrb[85].mxu1 }
 0xfd0   : > { %v16928_v47 = vpop.f32.mrb[86].mxu1 }
 0xfd1   : > { %v16934_v62 = vrot.slane %v16926_v46, %v23613_v35  ;;  %v20395_v44 = vpop.f32.mrb[87].mxu1 }
 0xfd3   : > { %16935 = vst [vmem:[%s522_s18] sm:$0xff] %v16934_v62 }
 0xfd4 PF: > { %s28262_s23 = sld [smem:[#allocation8_spill]] }
 0xfda   : > { %s27_s18 = sadd.s32 1, %s28262_s23  }
 0xfdb   : > { %p24_p5 = scmp.ge.s32.totalorder %s27_s18, 4  }
 0xfdd   :  { %26 = sbr.rel (!%p24_p5) target bundleno = 4 (0x4), region = 133 }
 0xfe4   :  { %16955 = vsyncpa [#allocation3], 1 }
 0xfe5   :  { %16957 = vsyncpa [#allocation3 + $0x1], 1 }
 0xfe6   :  { %16958 = vsyncpa [#allocation5], 1 }

</bundles_post_ra>
